<compile_context>
chip_gen: v7x
topology: tpu7x:2x2x1
jax: 0.10.0
libtpu: 0.0.40
codegen_flags: <defaults>
</compile_context>

<pallas_src>
import functools

import jax
import jax.numpy as jnp
from jax import lax
from jax.experimental import pallas as pl
from jax.experimental.pallas import tpu as pltpu


def _fused_kernel(x_ref, w_ref, b_ref, att_ref, out_ref, sp_scr, beta_scr,
                  *, n_total, needs_mask):
    """Phase 0: accumulate score features + softmax.  Phase 1: beta-weighted sum."""
    phase = pl.program_id(0)
    t = pl.program_id(1)
    num_tiles = pl.num_programs(1)
    M, tn, D = x_ref.shape

    @pl.when((phase == 0) & (t == 0))
    def _init():
        sp_scr[...] = jnp.zeros_like(sp_scr)

    @pl.when(phase == 0)
    def _accumulate_scores():
        # fc(x) = x @ W^T + b  (W kept in torch (out, in) layout; contract the
        # two "in" dims directly so no transpose is ever materialized).
        x2 = x_ref[...].reshape(M * tn, D)             # leading-dim merge only
        h = jnp.tanh(
            lax.dot_general(
                x2, w_ref[...],
                dimension_numbers=(((1,), (1,)), ((), ())),
                preferred_element_type=jnp.float32,
            )
            + b_ref[...]
        ).reshape(M, tn, D)
        if needs_mask:
            # Zero rows of the (possibly partial) last tile that lie past N.
            row = t * tn + lax.broadcasted_iota(jnp.int32, (tn, 1), 0)
            h = jnp.where((row < n_total)[None, :, :], h, 0.0)
        # One full-tile read-modify-write (no per-m masked sublane stores).
        sp_scr[...] += jnp.sum(h, axis=1)

    @pl.when((phase == 0) & (t == num_tiles - 1))
    def _softmax():
        # score_m = att . mean_n(tanh(fc(x_m)))
        s = jnp.sum(sp_scr[...] * att_ref[...], axis=-1, keepdims=True) * (1.0 / n_total)
        s = s - jnp.max(s, axis=0, keepdims=True)
        e = jnp.exp(s)
        beta_scr[...] = e / jnp.sum(e, axis=0, keepdims=True)   # (M, 1)

    @pl.when(phase == 1)
    def _weighted_sum():
        # Accumulate per meta-path; never materialize the (M, tn, D) product.
        acc = x_ref[0] * beta_scr[0:1, 0:1]
        for m in range(1, M):                                   # M small & static
            acc = acc + x_ref[m] * beta_scr[m:m + 1, 0:1]
        out_ref[...] = acc.astype(out_ref.dtype)


def _pick_tile_n(n, d, m, *, budget_bytes=24 << 20, cap=2048):
    """Largest multiple-of-8 row tile fitting the VMEM budget (or the whole N)."""
    # Per-row f32 VMEM cost of one grid step:
    #   x block double-buffered (2*M) + fc/tanh temporary (~2*M) + out block (2).
    bytes_per_row = 4 * d * (4 * m + 2)
    max_rows = max(8, (budget_bytes // bytes_per_row) // 8 * 8)
    if n <= max_rows:
        return n            # whole-N block: x is read from HBM exactly once
    return int(min(max_rows, cap))


def attention_forward(embeds, W, b, att, *, tile_n=None, vmem_budget_bytes=24 << 20):
    """embeds: (M, N, D); W: torch-layout fc.weight (D, D); b: (D,); att: (1, D)."""
    M, N, D = embeds.shape
    f32 = jnp.float32

    if tile_n is None:
        tile_n = _pick_tile_n(N, D, M, budget_bytes=vmem_budget_bytes)
    num_tiles = pl.cdiv(N, tile_n)
    needs_mask = (N % tile_n) != 0

    b2 = b.reshape(1, D)

    # Explicit scoped-VMEM limit derived from the actual block sizes (v5e's
    # default is only 16 MiB; v7x has 64 MiB physical so stay well below that).
    bytes_per_row = 4 * D * (4 * M + 2)
    params_bytes = 4 * (D * D + 2 * D + M * (D + 1))
    vmem_limit = int(min(max(bytes_per_row * tile_n + params_bytes + (2 << 20),
                             16 << 20), 60 << 20))

    kernel = functools.partial(_fused_kernel, n_total=N, needs_mask=needs_mask)

    z = pl.pallas_call(
        kernel,
        out_shape=jax.ShapeDtypeStruct((N, D), embeds.dtype),
        grid_spec=pltpu.PrefetchScalarGridSpec(
            num_scalar_prefetch=0,
            grid=(2, num_tiles),                       # (phase, N-tile)
            in_specs=[
                pl.BlockSpec((M, tile_n, D), lambda p, t: (0, t, 0)),
                pl.BlockSpec((D, D), lambda p, t: (0, 0)),
                pl.BlockSpec((1, D), lambda p, t: (0, 0)),
                pl.BlockSpec((1, D), lambda p, t: (0, 0)),
            ],
            # Constant block (0,0) during phase 0 (never written there), then
            # the real tile index during phase 1 -> only correct data reaches HBM.
            out_specs=pl.BlockSpec((tile_n, D), lambda p, t: (p * t, 0)),
            scratch_shapes=[
                pltpu.VMEM((M, D), f32),               # per-meta-path feature sums
                pltpu.VMEM((M, 1), f32),               # beta carried across phases
            ],
        ),
        compiler_params=pltpu.CompilerParams(
            dimension_semantics=("arbitrary", "arbitrary"),
            vmem_limit_bytes=vmem_limit,
        ),
    )(embeds, W, b2, att)
    return z


if __name__ == "__main__":
    def run_case(M, N, D, key, tile_n=None):
        k_x, k_w, k_b, k_a = jax.random.split(key, 4)

        # deterministic parameter init mirroring the PyTorch __init__
        embeds = jax.random.normal(k_x, (M, N, D), jnp.float32)
        std_w = 1.414 * (2.0 / (D + D)) ** 0.5                   # xavier_normal_, gain=1.414
        W = std_w * jax.random.normal(k_w, (D, D), jnp.float32)  # torch layout (out, in)
        bound = 1.0 / (D ** 0.5)                                 # default Linear bias init
        b = jax.random.uniform(k_b, (D,), jnp.float32, -bound, bound)
        std_a = 1.414 * (2.0 / (1 + D)) ** 0.5                   # xavier_normal_, gain=1.414
        att = std_a * jax.random.normal(k_a, (1, D), jnp.float32)

        out = jax.block_until_ready(attention_forward(embeds, W, b, att, tile_n=tile_n))

        # pure-JAX reference
        h = jnp.tanh(embeds @ W.T + b)                # (M, N, D)
        sp = h.mean(axis=1)                           # (M, D)
        scores = (sp * att).sum(-1)                   # (M,)
        beta = jax.nn.softmax(scores)
        ref = jnp.einsum("m,mnd->nd", beta, embeds)

        assert out.shape == ref.shape, (out.shape, ref.shape)
        assert jnp.allclose(out, ref, rtol=2e-4, atol=2e-4), "mismatch vs reference"

    key = jax.random.PRNGKey(0)
    k1, k2 = jax.random.split(key)

    # Case 1: whole-N tile fits the VMEM budget -> x read from HBM exactly once.
    run_case(M=3, N=1024, D=64, key=k1)
    # Case 2: multi-tile streaming path with a masked partial last tile.
    run_case(M=4, N=1000, D=96, key=k2, tile_n=256)

    print("KERNEL_OK")
</pallas_src>

<mosaic_0001>
module attributes {stable_mosaic.version = 11 : i64} {
  func.func @_fused_kernel(%arg0: i32, %arg1: i32, %arg2: memref<3x1024x64xf32, #tpu.memory_space<vmem>>, %arg3: memref<64x64xf32, #tpu.memory_space<vmem>>, %arg4: memref<1x64xf32, #tpu.memory_space<vmem>>, %arg5: memref<1x64xf32, #tpu.memory_space<vmem>>, %arg6: memref<1024x64xf32, #tpu.memory_space<vmem>>, %arg7: memref<3x64xf32, #tpu.memory_space<vmem>>, %arg8: memref<3x1xf32, #tpu.memory_space<vmem>>) attributes {dimension_semantics = [#tpu.dimension_semantics<arbitrary>, #tpu.dimension_semantics<arbitrary>], iteration_bounds = array<i64: 2, 1>, scalar_prefetch = 0 : i64, scratch_operands = 2 : i64, tpu.core_type = #tpu.core_type<tc>, window_params = [{transform_indices = @transform_0, window_bounds = array<i64: 3, 1024, 64>}, {pipeline_mode = #tpu.pipeline_mode<synchronous>, transform_indices = @transform_1, window_bounds = array<i64: 64, 64>}, {pipeline_mode = #tpu.pipeline_mode<synchronous>, transform_indices = @transform_2, window_bounds = array<i64: 1, 64>}, {pipeline_mode = #tpu.pipeline_mode<synchronous>, transform_indices = @transform_3, window_bounds = array<i64: 1, 64>}, {transform_indices = @transform_4, window_bounds = array<i64: 1024, 64>}]} {
    %c0_i32 = arith.constant 0 : i32
    %0 = arith.cmpi eq, %arg0, %c0_i32 : i32
    %c0_i32_0 = arith.constant 0 : i32
    %1 = arith.cmpi eq, %arg1, %c0_i32_0 : i32
    %2 = arith.andi %0, %1 : i1
    %3 = arith.extui %2 : i1 to i32
    %c0_i32_1 = arith.constant 0 : i32
    %4 = arith.cmpi ne, %3, %c0_i32_1 : i32
    scf.if %4 {
      %cst = arith.constant 0.000000e+00 : f32
      %16 = vector.broadcast %cst : f32 to vector<3x64xf32>
      %c0 = arith.constant 0 : index
      %c0_8 = arith.constant 0 : index
      %17 = vector.load %arg7[%c0, %c0_8] : memref<3x64xf32, #tpu.memory_space<vmem>>, vector<3x64xf32>
      tpu.vector_store %arg7[%c0, %c0_8], %16 {strides = array<i32>} : memref<3x64xf32, #tpu.memory_space<vmem>>, vector<3x64xf32>,
    } else {
    }
    %c0_i32_2 = arith.constant 0 : i32
    %5 = arith.cmpi eq, %arg0, %c0_i32_2 : i32
    %6 = arith.extui %5 : i1 to i32
    %c0_i32_3 = arith.constant 0 : i32
    %7 = arith.cmpi ne, %6, %c0_i32_3 : i32
    scf.if %7 {
      %c0 = arith.constant 0 : index
      %c0_8 = arith.constant 0 : index
      %c0_9 = arith.constant 0 : index
      %16 = vector.load %arg2[%c0, %c0_8, %c0_9] : memref<3x1024x64xf32, #tpu.memory_space<vmem>>, vector<3x1024x64xf32>
      %17 = vector.shape_cast %16 : vector<3x1024x64xf32> to vector<3072x64xf32>
      %c0_10 = arith.constant 0 : index
      %c0_11 = arith.constant 0 : index
      %18 = vector.load %arg3[%c0_10, %c0_11] : memref<64x64xf32, #tpu.memory_space<vmem>>, vector<64x64xf32>
      %cst = arith.constant dense<0.000000e+00> : vector<3072x64xf32>
      %19 = tpu.matmul %17, %18, %cst {dimension_numbers = #tpu.dot_dimension_numbers<[1], [1], [0], [0], [0, 0, 1, 0], [], []>} : vector<3072x64xf32>, vector<64x64xf32>, vector<3072x64xf32> -> vector<3072x64xf32>
      %c0_12 = arith.constant 0 : index
      %c0_13 = arith.constant 0 : index
      %20 = vector.load %arg4[%c0_12, %c0_13] : memref<1x64xf32, #tpu.memory_space<vmem>>, vector<1x64xf32>
      %21 = vector.broadcast %20 : vector<1x64xf32> to vector<3072x64xf32>
      %22 = arith.addf %19, %21 : vector<3072x64xf32>
      %23 = math.tanh %22 : vector<3072x64xf32>
      %24 = vector.shape_cast %23 : vector<3072x64xf32> to vector<3x1024x64xf32>
      %c0_14 = arith.constant 0 : index
      %c0_15 = arith.constant 0 : index
      %25 = vector.load %arg7[%c0_14, %c0_15] : memref<3x64xf32, #tpu.memory_space<vmem>>, vector<3x64xf32>
      %cst_16 = arith.constant dense<0.000000e+00> : vector<3x64xf32>
      %26 = vector.multi_reduction <add>, %24, %cst_16 [1] : vector<3x1024x64xf32> to vector<3x64xf32>
      %27 = arith.addf %25, %26 : vector<3x64xf32>
      %c0_17 = arith.constant 0 : index
      %c0_18 = arith.constant 0 : index
      %28 = vector.load %arg7[%c0_17, %c0_18] : memref<3x64xf32, #tpu.memory_space<vmem>>, vector<3x64xf32>
      tpu.vector_store %arg7[%c0_17, %c0_18], %27 {strides = array<i32>} : memref<3x64xf32, #tpu.memory_space<vmem>>, vector<3x64xf32>,
    } else {
    }
    %c0_i32_4 = arith.constant 0 : i32
    %8 = arith.cmpi eq, %arg0, %c0_i32_4 : i32
    %c0_i32_5 = arith.constant 0 : i32
    %9 = arith.cmpi eq, %arg1, %c0_i32_5 : i32
    %10 = arith.andi %8, %9 : i1
    %11 = arith.extui %10 : i1 to i32
    %c0_i32_6 = arith.constant 0 : i32
    %12 = arith.cmpi ne, %11, %c0_i32_6 : i32
    scf.if %12 {
      %c0 = arith.constant 0 : index
      %c0_8 = arith.constant 0 : index
      %16 = vector.load %arg7[%c0, %c0_8] : memref<3x64xf32, #tpu.memory_space<vmem>>, vector<3x64xf32>
      %c0_9 = arith.constant 0 : index
      %c0_10 = arith.constant 0 : index
      %17 = vector.load %arg5[%c0_9, %c0_10] : memref<1x64xf32, #tpu.memory_space<vmem>>, vector<1x64xf32>
      %18 = vector.broadcast %17 : vector<1x64xf32> to vector<3x64xf32>
      %19 = arith.mulf %16, %18 : vector<3x64xf32>
      %cst = arith.constant dense<0.000000e+00> : vector<3xf32>
      %20 = vector.multi_reduction <add>, %19, %cst [1] : vector<3x64xf32> to vector<3xf32>
      %21 = vector.shape_cast %20 : vector<3xf32> to vector<3x1xf32>
      %cst_11 = arith.constant 9.765625E-4 : f32
      %22 = vector.broadcast %cst_11 : f32 to vector<3x1xf32>
      %23 = arith.mulf %21, %22 : vector<3x1xf32>
      %cst_12 = arith.constant dense<0xFF800000> : vector<1xf32>
      %24 = vector.multi_reduction <maximumf>, %23, %cst_12 [0] : vector<3x1xf32> to vector<1xf32>
      %25 = vector.shape_cast %24 : vector<1xf32> to vector<1x1xf32>
      %26 = vector.broadcast %25 : vector<1x1xf32> to vector<3x1xf32>
      %27 = arith.subf %23, %26 : vector<3x1xf32>
      %28 = math.exp %27 : vector<3x1xf32>
      %cst_13 = arith.constant dense<0.000000e+00> : vector<1xf32>
      %29 = vector.multi_reduction <add>, %28, %cst_13 [0] : vector<3x1xf32> to vector<1xf32>
      %30 = vector.shape_cast %29 : vector<1xf32> to vector<1x1xf32>
      %31 = vector.broadcast %30 : vector<1x1xf32> to vector<3x1xf32>
      %32 = arith.divf %28, %31 : vector<3x1xf32>
      %c0_14 = arith.constant 0 : index
      %c0_15 = arith.constant 0 : index
      %33 = vector.load %arg8[%c0_14, %c0_15] : memref<3x1xf32, #tpu.memory_space<vmem>>, vector<3x1xf32>
      tpu.vector_store %arg8[%c0_14, %c0_15], %32 {strides = array<i32>} : memref<3x1xf32, #tpu.memory_space<vmem>>, vector<3x1xf32>,
    } else {
    }
    %c1_i32 = arith.constant 1 : i32
    %13 = arith.cmpi eq, %arg0, %c1_i32 : i32
    %14 = arith.extui %13 : i1 to i32
    %c0_i32_7 = arith.constant 0 : i32
    %15 = arith.cmpi ne, %14, %c0_i32_7 : i32
    scf.if %15 {
      %c0 = arith.constant 0 : index
      %c0_8 = arith.constant 0 : index
      %c0_9 = arith.constant 0 : index
      %16 = vector.load %arg2[%c0, %c0_8, %c0_9] : memref<3x1024x64xf32, #tpu.memory_space<vmem>>, vector<1x1024x64xf32>
      %17 = vector.shape_cast %16 : vector<1x1024x64xf32> to vector<1024x64xf32>
      %c0_10 = arith.constant 0 : index
      %c0_11 = arith.constant 0 : index
      %18 = vector.load %arg8[%c0_10, %c0_11] : memref<3x1xf32, #tpu.memory_space<vmem>>, vector<1x1xf32>
      %19 = vector.broadcast %18 : vector<1x1xf32> to vector<1024x64xf32>
      %20 = arith.mulf %17, %19 : vector<1024x64xf32>
      %c1 = arith.constant 1 : index
      %c0_12 = arith.constant 0 : index
      %c0_13 = arith.constant 0 : index
      %21 = vector.load %arg2[%c1, %c0_12, %c0_13] : memref<3x1024x64xf32, #tpu.memory_space<vmem>>, vector<1x1024x64xf32>
      %22 = vector.shape_cast %21 : vector<1x1024x64xf32> to vector<1024x64xf32>
      %c1_14 = arith.constant 1 : index
      %c0_15 = arith.constant 0 : index
      %23 = vector.load %arg8[%c1_14, %c0_15] : memref<3x1xf32, #tpu.memory_space<vmem>>, vector<1x1xf32>
      %24 = vector.broadcast %23 : vector<1x1xf32> to vector<1024x64xf32>
      %25 = arith.mulf %22, %24 : vector<1024x64xf32>
      %26 = arith.addf %20, %25 : vector<1024x64xf32>
      %c2 = arith.constant 2 : index
      %c0_16 = arith.constant 0 : index
      %c0_17 = arith.constant 0 : index
      %27 = vector.load %arg2[%c2, %c0_16, %c0_17] : memref<3x1024x64xf32, #tpu.memory_space<vmem>>, vector<1x1024x64xf32>
      %28 = vector.shape_cast %27 : vector<1x1024x64xf32> to vector<1024x64xf32>
      %c2_18 = arith.constant 2 : index
      %c0_19 = arith.constant 0 : index
      %29 = vector.load %arg8[%c2_18, %c0_19] : memref<3x1xf32, #tpu.memory_space<vmem>>, vector<1x1xf32>
      %30 = vector.broadcast %29 : vector<1x1xf32> to vector<1024x64xf32>
      %31 = arith.mulf %28, %30 : vector<1024x64xf32>
      %32 = arith.addf %26, %31 : vector<1024x64xf32>
      %c0_20 = arith.constant 0 : index
      %c0_21 = arith.constant 0 : index
      %33 = vector.load %arg6[%c0_20, %c0_21] : memref<1024x64xf32, #tpu.memory_space<vmem>>, vector<1024x64xf32>
      tpu.vector_store %arg6[%c0_20, %c0_21], %32 {strides = array<i32>} : memref<1024x64xf32, #tpu.memory_space<vmem>>, vector<1024x64xf32>,
    } else {
    }
    return
  }
  func.func @transform_0(%arg0: i32, %arg1: i32) -> (i32, i32, i32) {
    %c0_i32 = arith.constant 0 : i32
    %c0_i32_0 = arith.constant 0 : i32
    %c0_i32_1 = arith.constant 0 : i32
    return %c0_i32, %arg1, %c0_i32_0 : i32, i32, i32
  }
  func.func @transform_1(%arg0: i32, %arg1: i32) -> (i32, i32) {
    %c0_i32 = arith.constant 0 : i32
    %c0_i32_0 = arith.constant 0 : i32
    %c0_i32_1 = arith.constant 0 : i32
    return %c0_i32, %c0_i32_0 : i32, i32
  }
  func.func @transform_2(%arg0: i32, %arg1: i32) -> (i32, i32) {
    %c0_i32 = arith.constant 0 : i32
    %c0_i32_0 = arith.constant 0 : i32
    %c0_i32_1 = arith.constant 0 : i32
    return %c0_i32, %c0_i32_0 : i32, i32
  }
  func.func @transform_3(%arg0: i32, %arg1: i32) -> (i32, i32) {
    %c0_i32 = arith.constant 0 : i32
    %c0_i32_0 = arith.constant 0 : i32
    %c0_i32_1 = arith.constant 0 : i32
    return %c0_i32, %c0_i32_0 : i32, i32
  }
  func.func @transform_4(%arg0: i32, %arg1: i32) -> (i32, i32) {
    %0 = arith.muli %arg0, %arg1 : i32
    %c0_i32 = arith.constant 0 : i32
    %c0_i32_0 = arith.constant 0 : i32
    return %0, %c0_i32 : i32, i32
  }
}

</mosaic_0001>

<bundles_post_ra>
// kernel: tpu_custom_call.1
= control target key start
LH: loop header
LB: loop body
LE: loop exit
PB: predicated region body
PF: predicated region fallthrough
CT: control target
= control target key end

     0   :  { %s8789_s15 = smov 0   ;;  %s8791_s16 = smov 0   ;;  %s15021_s0 = inlined_call_operand.vmem [shape: f32[3,1024,64], index: 0, kind: input, shape index: {}]   ;;  %s15022_s1 = inlined_call_operand.vmem [shape: f32[64,64], index: 1, kind: input, shape index: {}]   ;;  %s15023_s2 = inlined_call_operand.vmem [shape: f32[1,64], index: 2, kind: input, shape index: {}]   ;;  %s15024_s3 = inlined_call_operand.vmem [shape: f32[1,64], index: 3, kind: input, shape index: {}]   ;;  %s15025_s4 = inlined_call_operand.vmem [shape: f32[1024,64], index: 4, kind: output, shape index: {}]  }
   0x1   :  { %s8793_s17 = smov 0  }
   0x2 LB: > { %s26_s18 = sadd.s32 1, %s8757_s16  ;;  %p6256_p0 = scmp.ge.s32.totalorder %s8761_s17, 1  ;;  %s8761_s17 = sphi %s8793_s17, %s14_s17   ;;  %s8757_s16 = sphi %s8791_s16, %s15892_s16   ;;  %s8753_s15 = sphi %s8789_s15, %s15891_s15  }
   0x3   : > { %p28_p1 = scmp.ge.s32.totalorder %s26_s18, 2  ;;  %p177_p2 = scmp.lt.s32.totalorder %s8761_s17, 3 }
   0x5   : > { %s15894_s18 = smov (%p28_p1, %s26_s18), 0  ;;  %p178_p3 = pnand %p6256_p0, %p177_p2 }
   0x6   : > { %p218_p4 = scmp.eq.s32.totalorder (!%p178_p3), %s8753_s15, 0 }
   0x7   : > { %181 = sbr.rel (%p178_p3) target bundleno = 1429 (0x595), region = 36 }
   0xe   : > { %223 = sbr.rel (!%p218_p4) target bundleno = 21 (0x15), region = 40  ;;  %vm224_vm0 = vcmask (%p218_p4), 518144   ;;  %v8763_v0 = vmov (%p218_p4), 0.0  }
   0xf   : > { %225 = vst.msk [vmem:[#allocation2] sm:$0x7] (%p218_p4), %vm224_vm0, %v8763_v0 }
  0x15 PF: > { %p6258_p5 = scmp.ne.s32.totalorder %s8753_s15, 0 }
  0x17   : > { %228 = sbr.rel (%p6258_p5) target bundleno = 821 (0x335), region = 44 }
  0x1e   : > { %v613_v1 = vld [vmem:[%s15022_s1] sm:$0xff]  ;;  %v614_v2 = vld [vmem:[%s15022_s1 + $0x8] sm:$0xff]  ;;  %vm628_vm1 = vcmask 523264   ;;  %v615_v3 = vld [vmem:[%s15022_s1 + $0x10] sm:$0xff]  ;;  %vm4961_vm3 = vcmask 1041409   ;;  %vm4963_vm4 = vcmask 1042434  }
  0x1f   : > { %v7899_v4 = vpack.c.bf16 %v614_v2, %v613_v1  ;;  %vm8824_vm2 = vmpackc.low %vm628_vm1, %vm628_vm1  ;;  %v616_v6 = vld [vmem:[%s15022_s1 + $0x18] sm:$0xff]  ;;  %v229_v8 = vld [vmem:[%s15021_s0] sm:$0xff]  ;;  %vm4967_vm5 = vcmask 518144  }
  0x20   : > { %v7905_v7 = vpack.c.bf16 %v616_v6, %v615_v3  ;;  %7323 = vmatprep.mubr.msk.f32.mxu0 %vm628_vm1, %v229_v8  ;;  %v617_v9 = vld [vmem:[%s15022_s1 + $0x20] sm:$0xff]  ;;  %v618_v10 = vld [vmem:[%s15022_s1 + $0x28] sm:$0xff]  ;;  %v619_v12 = vld [vmem:[%s15022_s1 + $0x30] sm:$0xff] }
  0x21   : > { %7901 = vmatprep.subr.msk.bf16.mxu0 %vm8824_vm2, %v7899_v4  ;;  %7923 = vmatprep.subr.msk.bf16.mxu1 %vm8824_vm2, %v7899_v4  ;;  %v7911_v11 = vpack.c.bf16 %v618_v10, %v617_v9  ;;  %v620_v13 = vld [vmem:[%s15022_s1 + $0x38] sm:$0xff]  ;;  %v421_v15 = vld [vmem:[%s15021_s0 + $0x600] sm:$0xff]  ;;  %v230_v16 = vld [vmem:[%s15021_s0 + $0x8] sm:$0xff] }
  0x22   : > { %7904 = vmatpush3.bf16.xpose.msk.msra.mxu0 %vm8824_vm2, %v7899_v4  ;;  %7927 = vmatpush3.bf16.xpose.msk.msra.mxu1 %vm8824_vm2, %v7899_v4  ;;  %v7917_v14 = vpack.c.bf16 %v620_v13, %v619_v12  ;;  %v231_v17 = vld [vmem:[%s15021_s0 + $0x10] sm:$0xff]  ;;  %v422_v18 = vld [vmem:[%s15021_s0 + $0x608] sm:$0xff]  ;;  %v232_v20 = vld [vmem:[%s15021_s0 + $0x18] sm:$0xff] }
  0x23   : > { %7907 = vmatprep.subr.msk.bf16.mxu0 %vm8824_vm2, %v7905_v7  ;;  %7924 = vmatprep.subr.msk.bf16.mxu1 %vm8824_vm2, %v7905_v7  ;;  %v423_v19 = vld [vmem:[%s15021_s0 + $0x610] sm:$0xff]  ;;  %v233_v21 = vld [vmem:[%s15021_s0 + $0x20] sm:$0xff]  ;;  %v424_v22 = vld [vmem:[%s15021_s0 + $0x618] sm:$0xff] }
  0x24   : > { %7611 = vmatprep.mubr.msk.f32.mxu1 %vm628_vm1, %v421_v15  ;;  %v425_v23 = vld [vmem:[%s15021_s0 + $0x620] sm:$0xff]  ;;  %v234_v24 = vld [vmem:[%s15021_s0 + $0x28] sm:$0xff]  ;;  %v235_v25 = vld [vmem:[%s15021_s0 + $0x30] sm:$0xff] }
  0x25   : > { %v426_v26 = vld [vmem:[%s15021_s0 + $0x628] sm:$0xff]  ;;  %v427_v27 = vld [vmem:[%s15021_s0 + $0x630] sm:$0xff]  ;;  %v236_v28 = vld [vmem:[%s15021_s0 + $0x38] sm:$0xff] }
  0x26   : > { %v237_v29 = vld [vmem:[%s15021_s0 + $0x40] sm:$0xff]  ;;  %v428_v30 = vld [vmem:[%s15021_s0 + $0x638] sm:$0xff]  ;;  %v238_v32 = vld [vmem:[%s15021_s0 + $0x48] sm:$0xff] }
  0x27   : > { %v429_v31 = vld [vmem:[%s15021_s0 + $0x640] sm:$0xff]  ;;  %v239_v33 = vld [vmem:[%s15021_s0 + $0x50] sm:$0xff]  ;;  %v430_v34 = vld [vmem:[%s15021_s0 + $0x648] sm:$0xff] }
  0x28   : > { %v431_v35 = vld [vmem:[%s15021_s0 + $0x650] sm:$0xff]  ;;  %v240_v36 = vld [vmem:[%s15021_s0 + $0x58] sm:$0xff]  ;;  %v241_v37 = vld [vmem:[%s15021_s0 + $0x60] sm:$0xff] }
  0x29   : > { %v432_v38 = vld [vmem:[%s15021_s0 + $0x658] sm:$0xff]  ;;  %v433_v39 = vld [vmem:[%s15021_s0 + $0x660] sm:$0xff]  ;;  %v242_v40 = vld [vmem:[%s15021_s0 + $0x68] sm:$0xff] }
  0x2a   : > { %7910 = vmatpush3.bf16.xpose.msk.msra.mxu0 %vm8824_vm2, %v7905_v7  ;;  %7928 = vmatpush3.bf16.xpose.msk.msra.mxu1 %vm8824_vm2, %v7905_v7  ;;  %v243_v41 = vld [vmem:[%s15021_s0 + $0x70] sm:$0xff]  ;;  %v434_v42 = vld [vmem:[%s15021_s0 + $0x668] sm:$0xff]  ;;  %v244_v44 = vld [vmem:[%s15021_s0 + $0x78] sm:$0xff] }
  0x2b   : > { %7913 = vmatprep.subr.msk.bf16.mxu0 %vm8824_vm2, %v7911_v11  ;;  %7925 = vmatprep.subr.msk.bf16.mxu1 %vm8824_vm2, %v7911_v11  ;;  %v435_v43 = vld [vmem:[%s15021_s0 + $0x670] sm:$0xff]  ;;  %v245_v45 = vld [vmem:[%s15021_s0 + $0x80] sm:$0xff]  ;;  %v436_v46 = vld [vmem:[%s15021_s0 + $0x678] sm:$0xff] }
  0x2c   : > { %v437_v47 = vld [vmem:[%s15021_s0 + $0x680] sm:$0xff]  ;;  %v246_v48 = vld [vmem:[%s15021_s0 + $0x88] sm:$0xff]  ;;  %v247_v49 = vld [vmem:[%s15021_s0 + $0x90] sm:$0xff] }
  0x2d   : > { %v438_v50 = vld [vmem:[%s15021_s0 + $0x688] sm:$0xff]  ;;  %v439_v51 = vld [vmem:[%s15021_s0 + $0x690] sm:$0xff]  ;;  %v248_v52 = vld [vmem:[%s15021_s0 + $0x98] sm:$0xff] }
  0x2e   : > { %v249_v53 = vld [vmem:[%s15021_s0 + $0xa0] sm:$0xff]  ;;  %v440_v54 = vld [vmem:[%s15021_s0 + $0x698] sm:$0xff]  ;;  %v250_v56 = vld [vmem:[%s15021_s0 + $0xa8] sm:$0xff] }
  0x2f   : > { %v441_v55 = vld [vmem:[%s15021_s0 + $0x6a0] sm:$0xff]  ;;  %v251_v57 = vld [vmem:[%s15021_s0 + $0xb0] sm:$0xff]  ;;  %v442_v58 = vld [vmem:[%s15021_s0 + $0x6a8] sm:$0xff] }
  0x30   : > { %v443_v59 = vld [vmem:[%s15021_s0 + $0x6b0] sm:$0xff]  ;;  %v252_v60 = vld [vmem:[%s15021_s0 + $0xb8] sm:$0xff]  ;;  %v253_v61 = vld [vmem:[%s15021_s0 + $0xc0] sm:$0xff] }
  0x31   : > { %v444_v62 = vld [vmem:[%s15021_s0 + $0x6b8] sm:$0xff]  ;;  %v445_v63 = vld [vmem:[%s15021_s0 + $0x6c0] sm:$0xff]  ;;  %v254_v0 = vld [vmem:[%s15021_s0 + $0xc8] sm:$0xff] }
  0x32   : > { %7916 = vmatpush3.bf16.xpose.msk.msra.mxu0 %vm8824_vm2, %v7911_v11  ;;  %7929 = vmatpush3.bf16.xpose.msk.msra.mxu1 %vm8824_vm2, %v7911_v11  ;;  %v255_v1 = vld [vmem:[%s15021_s0 + $0xd0] sm:$0xff]  ;;  %v446_v2 = vld [vmem:[%s15021_s0 + $0x6c8] sm:$0xff]  ;;  %v256_v4 = vld [vmem:[%s15021_s0 + $0xd8] sm:$0xff] }
  0x33   : > { %7919 = vmatprep.subr.msk.bf16.mxu0 %vm8824_vm2, %v7917_v14  ;;  %7926 = vmatprep.subr.msk.bf16.mxu1 %vm8824_vm2, %v7917_v14  ;;  %v447_v3 = vld [vmem:[%s15021_s0 + $0x6d0] sm:$0xff]  ;;  %v257_v5 = vld [vmem:[%s15021_s0 + $0xe0] sm:$0xff]  ;;  %v448_v6 = vld [vmem:[%s15021_s0 + $0x6d8] sm:$0xff] }
  0x34   : > { %v449_v7 = vld [vmem:[%s15021_s0 + $0x6e0] sm:$0xff]  ;;  %v258_v8 = vld [vmem:[%s15021_s0 + $0xe8] sm:$0xff]  ;;  %v259_v9 = vld [vmem:[%s15021_s0 + $0xf0] sm:$0xff] }
  0x35   : > { %v450_v10 = vld [vmem:[%s15021_s0 + $0x6e8] sm:$0xff]  ;;  %v451_v11 = vld [vmem:[%s15021_s0 + $0x6f0] sm:$0xff]  ;;  %v260_v12 = vld [vmem:[%s15021_s0 + $0xf8] sm:$0xff] }
  0x36   : > { %v261_v13 = vld [vmem:[%s15021_s0 + $0x100] sm:$0xff] }
  0x37   : > { %v453_v15 = vld [vmem:[%s15021_s0 + $0x700] sm:$0xff] }
  0x3a   : > { %7922 = vmatpush3.bf16.xpose.msk.msra.mxu0 %vm8824_vm2, %v7917_v14  ;;  %7930 = vmatpush3.bf16.xpose.msk.msra.mxu1 %vm8824_vm2, %v7917_v14  ;;  %v452_v14 = vld [vmem:[%s15021_s0 + $0x6f8] sm:$0xff] }
  0x41   : > { %7324 = vmatmul.mubr.msk.f32.vlgmr.msra.gmra.mrb[0].mxu0 %vm628_vm1, %v230_v16  ;;  %7612 = vmatmul.mubr.msk.f32.vlgmr.msra.gmra.mrb[0].mxu1 %vm628_vm1, %v422_v18  ;;  %v262_v16 = vld [vmem:[%s15021_s0 + $0x108] sm:$0xff] }
  0x42   : > { %7326 = vmatprep.mubr.msk.f32.mxu0 %vm628_vm1, %v231_v17  ;;  %7614 = vmatprep.mubr.msk.f32.mxu1 %vm628_vm1, %v423_v19  ;;  %v263_v17 = vld [vmem:[%s15021_s0 + $0x110] sm:$0xff]  ;;  %v454_v18 = vld [vmem:[%s15021_s0 + $0x708] sm:$0xff] }
  0x43   : > { %v455_v19 = vld [vmem:[%s15021_s0 + $0x710] sm:$0xff] }
  0x45   : > { %7327 = vmatmul.mubr.msk.f32.gmra.mrb[2].mxu0 %vm628_vm1, %v232_v20  ;;  %7615 = vmatmul.mubr.msk.f32.gmra.mrb[2].mxu1 %vm628_vm1, %v424_v22  ;;  %v264_v20 = vld [vmem:[%s15021_s0 + $0x118] sm:$0xff] }
  0x46   : > { %7329 = vmatprep.mubr.msk.f32.mxu0 %vm628_vm1, %v233_v21  ;;  %7617 = vmatprep.mubr.msk.f32.mxu1 %vm628_vm1, %v425_v23  ;;  %v265_v21 = vld [vmem:[%s15021_s0 + $0x120] sm:$0xff]  ;;  %v456_v22 = vld [vmem:[%s15021_s0 + $0x718] sm:$0xff] }
  0x47   : > { %v457_v23 = vld [vmem:[%s15021_s0 + $0x720] sm:$0xff] }
  0x49   : > { %7330 = vmatmul.mubr.msk.f32.gmra.mrb[4].mxu0 %vm628_vm1, %v234_v24  ;;  %7618 = vmatmul.mubr.msk.f32.gmra.mrb[4].mxu1 %vm628_vm1, %v426_v26  ;;  %v266_v24 = vld [vmem:[%s15021_s0 + $0x128] sm:$0xff] }
  0x4a   : > { %7332 = vmatprep.mubr.msk.f32.mxu0 %vm628_vm1, %v235_v25  ;;  %7620 = vmatprep.mubr.msk.f32.mxu1 %vm628_vm1, %v427_v27  ;;  %v267_v25 = vld [vmem:[%s15021_s0 + $0x130] sm:$0xff]  ;;  %v458_v26 = vld [vmem:[%s15021_s0 + $0x728] sm:$0xff] }
  0x4b   : > { %v459_v27 = vld [vmem:[%s15021_s0 + $0x730] sm:$0xff] }
  0x4d   : > { %7333 = vmatmul.mubr.msk.f32.gmra.mrb[6].mxu0 %vm628_vm1, %v236_v28  ;;  %7621 = vmatmul.mubr.msk.f32.gmra.mrb[6].mxu1 %vm628_vm1, %v428_v30  ;;  %v268_v28 = vld [vmem:[%s15021_s0 + $0x138] sm:$0xff] }
  0x4e   : > { %7335 = vmatprep.mubr.msk.f32.mxu0 %vm628_vm1, %v237_v29  ;;  %7623 = vmatprep.mubr.msk.f32.mxu1 %vm628_vm1, %v429_v31  ;;  %v269_v29 = vld [vmem:[%s15021_s0 + $0x140] sm:$0xff]  ;;  %v460_v30 = vld [vmem:[%s15021_s0 + $0x738] sm:$0xff] }
  0x4f   : > { %v461_v31 = vld [vmem:[%s15021_s0 + $0x740] sm:$0xff] }
  0x51   : > { %7336 = vmatmul.mubr.msk.f32.gmra.mrb[8].mxu0 %vm628_vm1, %v238_v32  ;;  %7624 = vmatmul.mubr.msk.f32.gmra.mrb[8].mxu1 %vm628_vm1, %v430_v34  ;;  %v270_v32 = vld [vmem:[%s15021_s0 + $0x148] sm:$0xff] }
  0x52   : > { %7338 = vmatprep.mubr.msk.f32.mxu0 %vm628_vm1, %v239_v33  ;;  %7626 = vmatprep.mubr.msk.f32.mxu1 %vm628_vm1, %v431_v35  ;;  %v271_v33 = vld [vmem:[%s15021_s0 + $0x150] sm:$0xff]  ;;  %v462_v34 = vld [vmem:[%s15021_s0 + $0x748] sm:$0xff] }
  0x53   : > { %v463_v35 = vld [vmem:[%s15021_s0 + $0x750] sm:$0xff] }
  0x55   : > { %7339 = vmatmul.mubr.msk.f32.gmra.mrb[10].mxu0 %vm628_vm1, %v240_v36  ;;  %7627 = vmatmul.mubr.msk.f32.gmra.mrb[10].mxu1 %vm628_vm1, %v432_v38  ;;  %v272_v36 = vld [vmem:[%s15021_s0 + $0x158] sm:$0xff] }
  0x56   : > { %7341 = vmatprep.mubr.msk.f32.mxu0 %vm628_vm1, %v241_v37  ;;  %7629 = vmatprep.mubr.msk.f32.mxu1 %vm628_vm1, %v433_v39  ;;  %v273_v37 = vld [vmem:[%s15021_s0 + $0x160] sm:$0xff]  ;;  %v464_v38 = vld [vmem:[%s15021_s0 + $0x758] sm:$0xff] }
  0x57   : > { %v465_v39 = vld [vmem:[%s15021_s0 + $0x760] sm:$0xff] }
  0x59   : > { %7342 = vmatmul.mubr.msk.f32.gmra.mrb[12].mxu0 %vm628_vm1, %v242_v40  ;;  %7630 = vmatmul.mubr.msk.f32.gmra.mrb[12].mxu1 %vm628_vm1, %v434_v42  ;;  %v274_v40 = vld [vmem:[%s15021_s0 + $0x168] sm:$0xff] }
  0x5a   : > { %7344 = vmatprep.mubr.msk.f32.mxu0 %vm628_vm1, %v243_v41  ;;  %7632 = vmatprep.mubr.msk.f32.mxu1 %vm628_vm1, %v435_v43  ;;  %v275_v41 = vld [vmem:[%s15021_s0 + $0x170] sm:$0xff]  ;;  %v466_v42 = vld [vmem:[%s15021_s0 + $0x768] sm:$0xff] }
  0x5b   : > { %v467_v43 = vld [vmem:[%s15021_s0 + $0x770] sm:$0xff] }
  0x5d   : > { %7345 = vmatmul.mubr.msk.f32.gmra.mrb[14].mxu0 %vm628_vm1, %v244_v44  ;;  %7633 = vmatmul.mubr.msk.f32.gmra.mrb[14].mxu1 %vm628_vm1, %v436_v46  ;;  %v276_v44 = vld [vmem:[%s15021_s0 + $0x178] sm:$0xff] }
  0x5e   : > { %7347 = vmatprep.mubr.msk.f32.mxu0 %vm628_vm1, %v245_v45  ;;  %7635 = vmatprep.mubr.msk.f32.mxu1 %vm628_vm1, %v437_v47  ;;  %v277_v45 = vld [vmem:[%s15021_s0 + $0x180] sm:$0xff]  ;;  %v468_v46 = vld [vmem:[%s15021_s0 + $0x778] sm:$0xff] }
  0x5f   : > { %v469_v47 = vld [vmem:[%s15021_s0 + $0x780] sm:$0xff] }
  0x61   : > { %7348 = vmatmul.mubr.msk.f32.gmra.mrb[16].mxu0 %vm628_vm1, %v246_v48  ;;  %7636 = vmatmul.mubr.msk.f32.gmra.mrb[16].mxu1 %vm628_vm1, %v438_v50  ;;  %v278_v48 = vld [vmem:[%s15021_s0 + $0x188] sm:$0xff] }
  0x62   : > { %7350 = vmatprep.mubr.msk.f32.mxu0 %vm628_vm1, %v247_v49  ;;  %7638 = vmatprep.mubr.msk.f32.mxu1 %vm628_vm1, %v439_v51  ;;  %v279_v49 = vld [vmem:[%s15021_s0 + $0x190] sm:$0xff]  ;;  %v470_v50 = vld [vmem:[%s15021_s0 + $0x788] sm:$0xff] }
  0x63   : > { %v471_v51 = vld [vmem:[%s15021_s0 + $0x790] sm:$0xff] }
  0x65   : > { %7351 = vmatmul.mubr.msk.f32.gmra.mrb[18].mxu0 %vm628_vm1, %v248_v52  ;;  %7639 = vmatmul.mubr.msk.f32.gmra.mrb[18].mxu1 %vm628_vm1, %v440_v54  ;;  %v280_v52 = vld [vmem:[%s15021_s0 + $0x198] sm:$0xff] }
  0x66   : > { %7353 = vmatprep.mubr.msk.f32.mxu0 %vm628_vm1, %v249_v53  ;;  %7641 = vmatprep.mubr.msk.f32.mxu1 %vm628_vm1, %v441_v55  ;;  %v281_v53 = vld [vmem:[%s15021_s0 + $0x1a0] sm:$0xff]  ;;  %v472_v54 = vld [vmem:[%s15021_s0 + $0x798] sm:$0xff] }
  0x67   : > { %v473_v55 = vld [vmem:[%s15021_s0 + $0x7a0] sm:$0xff] }
  0x69   : > { %7354 = vmatmul.mubr.msk.f32.gmra.mrb[20].mxu0 %vm628_vm1, %v250_v56  ;;  %7642 = vmatmul.mubr.msk.f32.gmra.mrb[20].mxu1 %vm628_vm1, %v442_v58  ;;  %v282_v56 = vld [vmem:[%s15021_s0 + $0x1a8] sm:$0xff] }
  0x6a   : > { %7356 = vmatprep.mubr.msk.f32.mxu0 %vm628_vm1, %v251_v57  ;;  %7644 = vmatprep.mubr.msk.f32.mxu1 %vm628_vm1, %v443_v59  ;;  %v283_v57 = vld [vmem:[%s15021_s0 + $0x1b0] sm:$0xff]  ;;  %v474_v58 = vld [vmem:[%s15021_s0 + $0x7a8] sm:$0xff] }
  0x6b   : > { %v475_v59 = vld [vmem:[%s15021_s0 + $0x7b0] sm:$0xff] }
  0x6d   : > { %7357 = vmatmul.mubr.msk.f32.gmra.mrb[22].mxu0 %vm628_vm1, %v252_v60  ;;  %7645 = vmatmul.mubr.msk.f32.gmra.mrb[22].mxu1 %vm628_vm1, %v444_v62  ;;  %v284_v60 = vld [vmem:[%s15021_s0 + $0x1b8] sm:$0xff] }
  0x6e   : > { %7359 = vmatprep.mubr.msk.f32.mxu0 %vm628_vm1, %v253_v61  ;;  %7647 = vmatprep.mubr.msk.f32.mxu1 %vm628_vm1, %v445_v63  ;;  %v285_v61 = vld [vmem:[%s15021_s0 + $0x1c0] sm:$0xff]  ;;  %v476_v62 = vld [vmem:[%s15021_s0 + $0x7b8] sm:$0xff] }
  0x6f   : > { %v477_v63 = vld [vmem:[%s15021_s0 + $0x7c0] sm:$0xff] }
  0x71   : > { %7360 = vmatmul.mubr.msk.f32.gmra.mrb[24].mxu0 %vm628_vm1, %v254_v0  ;;  %7648 = vmatmul.mubr.msk.f32.gmra.mrb[24].mxu1 %vm628_vm1, %v446_v2  ;;  %v286_v0 = vld [vmem:[%s15021_s0 + $0x1c8] sm:$0xff] }
  0x72   : > { %7362 = vmatprep.mubr.msk.f32.mxu0 %vm628_vm1, %v255_v1  ;;  %7650 = vmatprep.mubr.msk.f32.mxu1 %vm628_vm1, %v447_v3  ;;  %v287_v1 = vld [vmem:[%s15021_s0 + $0x1d0] sm:$0xff]  ;;  %v478_v2 = vld [vmem:[%s15021_s0 + $0x7c8] sm:$0xff] }
  0x73   : > { %v479_v3 = vld [vmem:[%s15021_s0 + $0x7d0] sm:$0xff] }
  0x75   : > { %7363 = vmatmul.mubr.msk.f32.gmra.mrb[26].mxu0 %vm628_vm1, %v256_v4  ;;  %7651 = vmatmul.mubr.msk.f32.gmra.mrb[26].mxu1 %vm628_vm1, %v448_v6  ;;  %v288_v4 = vld [vmem:[%s15021_s0 + $0x1d8] sm:$0xff] }
  0x76   : > { %7365 = vmatprep.mubr.msk.f32.mxu0 %vm628_vm1, %v257_v5  ;;  %7653 = vmatprep.mubr.msk.f32.mxu1 %vm628_vm1, %v449_v7  ;;  %v289_v5 = vld [vmem:[%s15021_s0 + $0x1e0] sm:$0xff]  ;;  %v480_v6 = vld [vmem:[%s15021_s0 + $0x7d8] sm:$0xff] }
  0x77   : > { %v481_v7 = vld [vmem:[%s15021_s0 + $0x7e0] sm:$0xff] }
  0x79   : > { %7366 = vmatmul.mubr.msk.f32.gmra.mrb[28].mxu0 %vm628_vm1, %v258_v8  ;;  %7654 = vmatmul.mubr.msk.f32.gmra.mrb[28].mxu1 %vm628_vm1, %v450_v10  ;;  %v290_v8 = vld [vmem:[%s15021_s0 + $0x1e8] sm:$0xff] }
  0x7a   : > { %7368 = vmatprep.mubr.msk.f32.mxu0 %vm628_vm1, %v259_v9  ;;  %7656 = vmatprep.mubr.msk.f32.mxu1 %vm628_vm1, %v451_v11  ;;  %v291_v9 = vld [vmem:[%s15021_s0 + $0x1f0] sm:$0xff]  ;;  %v482_v10 = vld [vmem:[%s15021_s0 + $0x7e8] sm:$0xff] }
  0x7b   : > { %v483_v11 = vld [vmem:[%s15021_s0 + $0x7f0] sm:$0xff] }
  0x7d   : > { %7369 = vmatmul.mubr.msk.f32.gmra.mrb[30].mxu0 %vm628_vm1, %v260_v12  ;;  %7657 = vmatmul.mubr.msk.f32.gmra.mrb[30].mxu1 %vm628_vm1, %v452_v14  ;;  %v292_v12 = vld [vmem:[%s15021_s0 + $0x1f8] sm:$0xff] }
  0x7e   : > { %7371 = vmatprep.mubr.msk.f32.mxu0 %vm628_vm1, %v261_v13  ;;  %7659 = vmatprep.mubr.msk.f32.mxu1 %vm628_vm1, %v453_v15  ;;  %v293_v13 = vld [vmem:[%s15021_s0 + $0x200] sm:$0xff]  ;;  %v484_v14 = vld [vmem:[%s15021_s0 + $0x7f8] sm:$0xff] }
  0x7f   : > { %v485_v15 = vld [vmem:[%s15021_s0 + $0x800] sm:$0xff] }
  0x81   : > { %7372 = vmatmul.mubr.msk.f32.gmra.mrb[32].mxu0 %vm628_vm1, %v262_v16  ;;  %7660 = vmatmul.mubr.msk.f32.gmra.mrb[32].mxu1 %vm628_vm1, %v454_v18  ;;  %v294_v16 = vld [vmem:[%s15021_s0 + $0x208] sm:$0xff] }
  0x82   : > { %7374 = vmatprep.mubr.msk.f32.mxu0 %vm628_vm1, %v263_v17  ;;  %7662 = vmatprep.mubr.msk.f32.mxu1 %vm628_vm1, %v455_v19  ;;  %v295_v17 = vld [vmem:[%s15021_s0 + $0x210] sm:$0xff]  ;;  %v486_v18 = vld [vmem:[%s15021_s0 + $0x808] sm:$0xff] }
  0x83   : > { %v487_v19 = vld [vmem:[%s15021_s0 + $0x810] sm:$0xff] }
  0x85   : > { %7375 = vmatmul.mubr.msk.f32.gmra.mrb[34].mxu0 %vm628_vm1, %v264_v20  ;;  %7663 = vmatmul.mubr.msk.f32.gmra.mrb[34].mxu1 %vm628_vm1, %v456_v22  ;;  %v296_v20 = vld [vmem:[%s15021_s0 + $0x218] sm:$0xff] }
  0x86   : > { %7377 = vmatprep.mubr.msk.f32.mxu0 %vm628_vm1, %v265_v21  ;;  %7665 = vmatprep.mubr.msk.f32.mxu1 %vm628_vm1, %v457_v23  ;;  %v297_v21 = vld [vmem:[%s15021_s0 + $0x220] sm:$0xff]  ;;  %v488_v22 = vld [vmem:[%s15021_s0 + $0x818] sm:$0xff] }
  0x87   : > { %v489_v23 = vld [vmem:[%s15021_s0 + $0x820] sm:$0xff] }
  0x89   : > { %7378 = vmatmul.mubr.msk.f32.gmra.mrb[36].mxu0 %vm628_vm1, %v266_v24  ;;  %7666 = vmatmul.mubr.msk.f32.gmra.mrb[36].mxu1 %vm628_vm1, %v458_v26  ;;  %v298_v24 = vld [vmem:[%s15021_s0 + $0x228] sm:$0xff] }
  0x8a   : > { %7380 = vmatprep.mubr.msk.f32.mxu0 %vm628_vm1, %v267_v25  ;;  %7668 = vmatprep.mubr.msk.f32.mxu1 %vm628_vm1, %v459_v27  ;;  %v299_v25 = vld [vmem:[%s15021_s0 + $0x230] sm:$0xff]  ;;  %v490_v26 = vld [vmem:[%s15021_s0 + $0x828] sm:$0xff] }
  0x8b   : > { %v491_v27 = vld [vmem:[%s15021_s0 + $0x830] sm:$0xff] }
  0x8d   : > { %7381 = vmatmul.mubr.msk.f32.gmra.mrb[38].mxu0 %vm628_vm1, %v268_v28  ;;  %7669 = vmatmul.mubr.msk.f32.gmra.mrb[38].mxu1 %vm628_vm1, %v460_v30  ;;  %v300_v28 = vld [vmem:[%s15021_s0 + $0x238] sm:$0xff] }
  0x8e   : > { %7383 = vmatprep.mubr.msk.f32.mxu0 %vm628_vm1, %v269_v29  ;;  %7671 = vmatprep.mubr.msk.f32.mxu1 %vm628_vm1, %v461_v31  ;;  %v301_v29 = vld [vmem:[%s15021_s0 + $0x240] sm:$0xff]  ;;  %v492_v30 = vld [vmem:[%s15021_s0 + $0x838] sm:$0xff] }
  0x8f   : > { %v493_v31 = vld [vmem:[%s15021_s0 + $0x840] sm:$0xff] }
  0x91   : > { %7384 = vmatmul.mubr.msk.f32.gmra.mrb[40].mxu0 %vm628_vm1, %v270_v32  ;;  %7672 = vmatmul.mubr.msk.f32.gmra.mrb[40].mxu1 %vm628_vm1, %v462_v34  ;;  %v302_v32 = vld [vmem:[%s15021_s0 + $0x248] sm:$0xff] }
  0x92   : > { %7386 = vmatprep.mubr.msk.f32.mxu0 %vm628_vm1, %v271_v33  ;;  %7674 = vmatprep.mubr.msk.f32.mxu1 %vm628_vm1, %v463_v35  ;;  %v303_v33 = vld [vmem:[%s15021_s0 + $0x250] sm:$0xff]  ;;  %v494_v34 = vld [vmem:[%s15021_s0 + $0x848] sm:$0xff] }
  0x93   : > { %v495_v35 = vld [vmem:[%s15021_s0 + $0x850] sm:$0xff] }
  0x95   : > { %7387 = vmatmul.mubr.msk.f32.gmra.mrb[42].mxu0 %vm628_vm1, %v272_v36  ;;  %7675 = vmatmul.mubr.msk.f32.gmra.mrb[42].mxu1 %vm628_vm1, %v464_v38  ;;  %v304_v36 = vld [vmem:[%s15021_s0 + $0x258] sm:$0xff] }
  0x96   : > { %7389 = vmatprep.mubr.msk.f32.mxu0 %vm628_vm1, %v273_v37  ;;  %7677 = vmatprep.mubr.msk.f32.mxu1 %vm628_vm1, %v465_v39  ;;  %v305_v37 = vld [vmem:[%s15021_s0 + $0x260] sm:$0xff]  ;;  %v496_v38 = vld [vmem:[%s15021_s0 + $0x858] sm:$0xff] }
  0x97   : > { %v497_v39 = vld [vmem:[%s15021_s0 + $0x860] sm:$0xff] }
  0x99   : > { %7390 = vmatmul.mubr.msk.f32.gmra.mrb[44].mxu0 %vm628_vm1, %v274_v40  ;;  %7678 = vmatmul.mubr.msk.f32.gmra.mrb[44].mxu1 %vm628_vm1, %v466_v42  ;;  %v306_v40 = vld [vmem:[%s15021_s0 + $0x268] sm:$0xff] }
  0x9a   : > { %7392 = vmatprep.mubr.msk.f32.mxu0 %vm628_vm1, %v275_v41  ;;  %7680 = vmatprep.mubr.msk.f32.mxu1 %vm628_vm1, %v467_v43  ;;  %v307_v41 = vld [vmem:[%s15021_s0 + $0x270] sm:$0xff]  ;;  %v498_v42 = vld [vmem:[%s15021_s0 + $0x868] sm:$0xff] }
  0x9b   : > { %v499_v43 = vld [vmem:[%s15021_s0 + $0x870] sm:$0xff] }
  0x9d   : > { %7393 = vmatmul.mubr.msk.f32.gmra.mrb[46].mxu0 %vm628_vm1, %v276_v44  ;;  %7681 = vmatmul.mubr.msk.f32.gmra.mrb[46].mxu1 %vm628_vm1, %v468_v46  ;;  %v308_v44 = vld [vmem:[%s15021_s0 + $0x278] sm:$0xff] }
  0x9e   : > { %7395 = vmatprep.mubr.msk.f32.mxu0 %vm628_vm1, %v277_v45  ;;  %7683 = vmatprep.mubr.msk.f32.mxu1 %vm628_vm1, %v469_v47  ;;  %v309_v45 = vld [vmem:[%s15021_s0 + $0x280] sm:$0xff]  ;;  %v500_v46 = vld [vmem:[%s15021_s0 + $0x878] sm:$0xff] }
  0x9f   : > { %v501_v47 = vld [vmem:[%s15021_s0 + $0x880] sm:$0xff] }
  0xa1   : > { %7396 = vmatmul.mubr.msk.f32.gmra.mrb[48].mxu0 %vm628_vm1, %v278_v48  ;;  %7684 = vmatmul.mubr.msk.f32.gmra.mrb[48].mxu1 %vm628_vm1, %v470_v50  ;;  %v310_v48 = vld [vmem:[%s15021_s0 + $0x288] sm:$0xff] }
  0xa2   : > { %7398 = vmatprep.mubr.msk.f32.mxu0 %vm628_vm1, %v279_v49  ;;  %7686 = vmatprep.mubr.msk.f32.mxu1 %vm628_vm1, %v471_v51  ;;  %v311_v49 = vld [vmem:[%s15021_s0 + $0x290] sm:$0xff]  ;;  %v502_v50 = vld [vmem:[%s15021_s0 + $0x888] sm:$0xff] }
  0xa3   : > { %v503_v51 = vld [vmem:[%s15021_s0 + $0x890] sm:$0xff] }
  0xa5   : > { %7399 = vmatmul.mubr.msk.f32.gmra.mrb[50].mxu0 %vm628_vm1, %v280_v52  ;;  %7687 = vmatmul.mubr.msk.f32.gmra.mrb[50].mxu1 %vm628_vm1, %v472_v54  ;;  %v312_v52 = vld [vmem:[%s15021_s0 + $0x298] sm:$0xff] }
  0xa6   : > { %7401 = vmatprep.mubr.msk.f32.mxu0 %vm628_vm1, %v281_v53  ;;  %7689 = vmatprep.mubr.msk.f32.mxu1 %vm628_vm1, %v473_v55  ;;  %v313_v53 = vld [vmem:[%s15021_s0 + $0x2a0] sm:$0xff]  ;;  %v504_v54 = vld [vmem:[%s15021_s0 + $0x898] sm:$0xff] }
  0xa7   : > { %v505_v55 = vld [vmem:[%s15021_s0 + $0x8a0] sm:$0xff] }
  0xa9   : > { %7402 = vmatmul.mubr.msk.f32.gmra.mrb[52].mxu0 %vm628_vm1, %v282_v56  ;;  %7690 = vmatmul.mubr.msk.f32.gmra.mrb[52].mxu1 %vm628_vm1, %v474_v58  ;;  %v314_v56 = vld [vmem:[%s15021_s0 + $0x2a8] sm:$0xff] }
  0xaa   : > { %7404 = vmatprep.mubr.msk.f32.mxu0 %vm628_vm1, %v283_v57  ;;  %7692 = vmatprep.mubr.msk.f32.mxu1 %vm628_vm1, %v475_v59  ;;  %v315_v57 = vld [vmem:[%s15021_s0 + $0x2b0] sm:$0xff]  ;;  %v506_v58 = vld [vmem:[%s15021_s0 + $0x8a8] sm:$0xff] }
  0xab   : > { %v507_v59 = vld [vmem:[%s15021_s0 + $0x8b0] sm:$0xff] }
  0xad   : > { %7405 = vmatmul.mubr.msk.f32.gmra.mrb[54].mxu0 %vm628_vm1, %v284_v60  ;;  %7693 = vmatmul.mubr.msk.f32.gmra.mrb[54].mxu1 %vm628_vm1, %v476_v62  ;;  %v316_v60 = vld [vmem:[%s15021_s0 + $0x2b8] sm:$0xff] }
  0xae   : > { %7407 = vmatprep.mubr.msk.f32.mxu0 %vm628_vm1, %v285_v61  ;;  %7695 = vmatprep.mubr.msk.f32.mxu1 %vm628_vm1, %v477_v63  ;;  %v317_v61 = vld [vmem:[%s15021_s0 + $0x2c0] sm:$0xff]  ;;  %v508_v62 = vld [vmem:[%s15021_s0 + $0x8b8] sm:$0xff] }
  0xaf   : > { %v509_v63 = vld [vmem:[%s15021_s0 + $0x8c0] sm:$0xff] }
  0xb1   : > { %7408 = vmatmul.mubr.msk.f32.gmra.mrb[56].mxu0 %vm628_vm1, %v286_v0  ;;  %7696 = vmatmul.mubr.msk.f32.gmra.mrb[56].mxu1 %vm628_vm1, %v478_v2  ;;  %v318_v0 = vld [vmem:[%s15021_s0 + $0x2c8] sm:$0xff] }
  0xb2   : > { %7410 = vmatprep.mubr.msk.f32.mxu0 %vm628_vm1, %v287_v1  ;;  %7698 = vmatprep.mubr.msk.f32.mxu1 %vm628_vm1, %v479_v3  ;;  %v319_v1 = vld [vmem:[%s15021_s0 + $0x2d0] sm:$0xff]  ;;  %v510_v2 = vld [vmem:[%s15021_s0 + $0x8c8] sm:$0xff] }
  0xb3   : > { %v511_v3 = vld [vmem:[%s15021_s0 + $0x8d0] sm:$0xff] }
  0xb5   : > { %7411 = vmatmul.mubr.msk.f32.gmra.mrb[58].mxu0 %vm628_vm1, %v288_v4  ;;  %7699 = vmatmul.mubr.msk.f32.gmra.mrb[58].mxu1 %vm628_vm1, %v480_v6  ;;  %v320_v4 = vld [vmem:[%s15021_s0 + $0x2d8] sm:$0xff] }
  0xb6   : > { %7413 = vmatprep.mubr.msk.f32.mxu0 %vm628_vm1, %v289_v5  ;;  %7701 = vmatprep.mubr.msk.f32.mxu1 %vm628_vm1, %v481_v7  ;;  %v321_v5 = vld [vmem:[%s15021_s0 + $0x2e0] sm:$0xff]  ;;  %v512_v6 = vld [vmem:[%s15021_s0 + $0x8d8] sm:$0xff] }
  0xb7   : > { %v513_v7 = vld [vmem:[%s15021_s0 + $0x8e0] sm:$0xff] }
  0xb9   : > { %7414 = vmatmul.mubr.msk.f32.gmra.mrb[60].mxu0 %vm628_vm1, %v290_v8  ;;  %7702 = vmatmul.mubr.msk.f32.gmra.mrb[60].mxu1 %vm628_vm1, %v482_v10  ;;  %v322_v8 = vld [vmem:[%s15021_s0 + $0x2e8] sm:$0xff] }
  0xba   : > { %7416 = vmatprep.mubr.msk.f32.mxu0 %vm628_vm1, %v291_v9  ;;  %7704 = vmatprep.mubr.msk.f32.mxu1 %vm628_vm1, %v483_v11  ;;  %v323_v9 = vld [vmem:[%s15021_s0 + $0x2f0] sm:$0xff]  ;;  %v514_v10 = vld [vmem:[%s15021_s0 + $0x8e8] sm:$0xff] }
  0xbb   : > { %v515_v11 = vld [vmem:[%s15021_s0 + $0x8f0] sm:$0xff] }
  0xbd   : > { %7417 = vmatmul.mubr.msk.f32.gmra.mrb[62].mxu0 %vm628_vm1, %v292_v12  ;;  %7705 = vmatmul.mubr.msk.f32.gmra.mrb[62].mxu1 %vm628_vm1, %v484_v14  ;;  %v324_v12 = vld [vmem:[%s15021_s0 + $0x2f8] sm:$0xff] }
  0xbe   : > { %7419 = vmatprep.mubr.msk.f32.mxu0 %vm628_vm1, %v293_v13  ;;  %7707 = vmatprep.mubr.msk.f32.mxu1 %vm628_vm1, %v485_v15  ;;  %v325_v13 = vld [vmem:[%s15021_s0 + $0x300] sm:$0xff]  ;;  %v516_v14 = vld [vmem:[%s15021_s0 + $0x8f8] sm:$0xff] }
  0xbf   : > { %v517_v15 = vld [vmem:[%s15021_s0 + $0x900] sm:$0xff] }
  0xc1   : > { %7420 = vmatmul.mubr.msk.f32.gmra.mrb[64].mxu0 %vm628_vm1, %v294_v16  ;;  %7708 = vmatmul.mubr.msk.f32.gmra.mrb[64].mxu1 %vm628_vm1, %v486_v18  ;;  %v326_v16 = vld [vmem:[%s15021_s0 + $0x308] sm:$0xff] }
  0xc2   : > { %7422 = vmatprep.mubr.msk.f32.mxu0 %vm628_vm1, %v295_v17  ;;  %7710 = vmatprep.mubr.msk.f32.mxu1 %vm628_vm1, %v487_v19  ;;  %v327_v17 = vld [vmem:[%s15021_s0 + $0x310] sm:$0xff]  ;;  %v518_v18 = vld [vmem:[%s15021_s0 + $0x908] sm:$0xff] }
  0xc3   : > { %v519_v19 = vld [vmem:[%s15021_s0 + $0x910] sm:$0xff] }
  0xc5   : > { %7423 = vmatmul.mubr.msk.f32.gmra.mrb[66].mxu0 %vm628_vm1, %v296_v20  ;;  %7711 = vmatmul.mubr.msk.f32.gmra.mrb[66].mxu1 %vm628_vm1, %v488_v22  ;;  %v328_v20 = vld [vmem:[%s15021_s0 + $0x318] sm:$0xff] }
  0xc6   : > { %7425 = vmatprep.mubr.msk.f32.mxu0 %vm628_vm1, %v297_v21  ;;  %7713 = vmatprep.mubr.msk.f32.mxu1 %vm628_vm1, %v489_v23  ;;  %v329_v21 = vld [vmem:[%s15021_s0 + $0x320] sm:$0xff]  ;;  %v520_v22 = vld [vmem:[%s15021_s0 + $0x918] sm:$0xff] }
  0xc7   : > { %v521_v23 = vld [vmem:[%s15021_s0 + $0x920] sm:$0xff] }
  0xc9   : > { %7426 = vmatmul.mubr.msk.f32.gmra.mrb[68].mxu0 %vm628_vm1, %v298_v24  ;;  %7714 = vmatmul.mubr.msk.f32.gmra.mrb[68].mxu1 %vm628_vm1, %v490_v26  ;;  %v330_v24 = vld [vmem:[%s15021_s0 + $0x328] sm:$0xff] }
  0xca   : > { %7428 = vmatprep.mubr.msk.f32.mxu0 %vm628_vm1, %v299_v25  ;;  %7716 = vmatprep.mubr.msk.f32.mxu1 %vm628_vm1, %v491_v27  ;;  %v331_v25 = vld [vmem:[%s15021_s0 + $0x330] sm:$0xff]  ;;  %v522_v26 = vld [vmem:[%s15021_s0 + $0x928] sm:$0xff] }
  0xcb   : > { %v523_v27 = vld [vmem:[%s15021_s0 + $0x930] sm:$0xff] }
  0xcd   : > { %7429 = vmatmul.mubr.msk.f32.gmra.mrb[70].mxu0 %vm628_vm1, %v300_v28  ;;  %7717 = vmatmul.mubr.msk.f32.gmra.mrb[70].mxu1 %vm628_vm1, %v492_v30  ;;  %v332_v28 = vld [vmem:[%s15021_s0 + $0x338] sm:$0xff] }
  0xce   : > { %7431 = vmatprep.mubr.msk.f32.mxu0 %vm628_vm1, %v301_v29  ;;  %7719 = vmatprep.mubr.msk.f32.mxu1 %vm628_vm1, %v493_v31  ;;  %v333_v29 = vld [vmem:[%s15021_s0 + $0x340] sm:$0xff]  ;;  %v524_v30 = vld [vmem:[%s15021_s0 + $0x938] sm:$0xff] }
  0xcf   : > { %v525_v31 = vld [vmem:[%s15021_s0 + $0x940] sm:$0xff] }
  0xd1   : > { %7432 = vmatmul.mubr.msk.f32.gmra.mrb[72].mxu0 %vm628_vm1, %v302_v32  ;;  %7720 = vmatmul.mubr.msk.f32.gmra.mrb[72].mxu1 %vm628_vm1, %v494_v34  ;;  %v334_v32 = vld [vmem:[%s15021_s0 + $0x348] sm:$0xff] }
  0xd2   : > { %7434 = vmatprep.mubr.msk.f32.mxu0 %vm628_vm1, %v303_v33  ;;  %7722 = vmatprep.mubr.msk.f32.mxu1 %vm628_vm1, %v495_v35  ;;  %v335_v33 = vld [vmem:[%s15021_s0 + $0x350] sm:$0xff]  ;;  %v526_v34 = vld [vmem:[%s15021_s0 + $0x948] sm:$0xff] }
  0xd3   : > { %v527_v35 = vld [vmem:[%s15021_s0 + $0x950] sm:$0xff] }
  0xd5   : > { %7435 = vmatmul.mubr.msk.f32.gmra.mrb[74].mxu0 %vm628_vm1, %v304_v36  ;;  %7723 = vmatmul.mubr.msk.f32.gmra.mrb[74].mxu1 %vm628_vm1, %v496_v38  ;;  %v9731_v36 = vld [vmem:[%s15023_s2] ss:$0 sm:$0xff] }
  0xd6   : > { %7437 = vmatprep.mubr.msk.f32.mxu0 %vm628_vm1, %v305_v37  ;;  %7725 = vmatprep.mubr.msk.f32.mxu1 %vm628_vm1, %v497_v39  ;;  %v336_v37 = vld [vmem:[%s15021_s0 + $0x358] sm:$0xff]  ;;  %v337_v38 = vld [vmem:[%s15021_s0 + $0x360] sm:$0xff] }
  0xd7   : > { %v528_v39 = vld [vmem:[%s15021_s0 + $0x958] sm:$0xff] }
  0xd9   : > { %7438 = vmatmul.mubr.msk.f32.gmra.mrb[76].mxu0 %vm628_vm1, %v306_v40  ;;  %7726 = vmatmul.mubr.msk.f32.gmra.mrb[76].mxu1 %vm628_vm1, %v498_v42 }
  0xda   : > { %7440 = vmatprep.mubr.msk.f32.mxu0 %vm628_vm1, %v307_v41  ;;  %7728 = vmatprep.mubr.msk.f32.mxu1 %vm628_vm1, %v499_v43  ;;  %v529_v41 = vld [vmem:[%s15021_s0 + $0x960] sm:$0xff] }
  0xdd   : > { %7441 = vmatmul.mubr.msk.f32.gmra.mrb[78].mxu0 %vm628_vm1, %v308_v44  ;;  %7729 = vmatmul.mubr.msk.f32.gmra.mrb[78].mxu1 %vm628_vm1, %v500_v46  ;;  %v338_v46 = vld [vmem:[%s15021_s0 + $0x368] sm:$0xff] }
  0xde   : > { %7443 = vmatprep.mubr.msk.f32.mxu0 %vm628_vm1, %v309_v45  ;;  %7731 = vmatprep.mubr.msk.f32.mxu1 %vm628_vm1, %v501_v47 }
  0xe1   : > { %7444 = vmatmul.mubr.msk.f32.gmra.mrb[80].mxu0 %vm628_vm1, %v310_v48  ;;  %7732 = vmatmul.mubr.msk.f32.gmra.mrb[80].mxu1 %vm628_vm1, %v502_v50  ;;  %v339_v48 = vld [vmem:[%s15021_s0 + $0x370] sm:$0xff] }
  0xe2   : > { %7446 = vmatprep.mubr.msk.f32.mxu0 %vm628_vm1, %v311_v49  ;;  %7734 = vmatprep.mubr.msk.f32.mxu1 %vm628_vm1, %v503_v51  ;;  %v530_v49 = vld [vmem:[%s15021_s0 + $0x968] sm:$0xff]  ;;  %v531_v51 = vld [vmem:[%s15021_s0 + $0x970] sm:$0xff] }
  0xe5   : > { %7447 = vmatmul.mubr.msk.f32.gmra.mrb[82].mxu0 %vm628_vm1, %v312_v52  ;;  %7735 = vmatmul.mubr.msk.f32.gmra.mrb[82].mxu1 %vm628_vm1, %v504_v54 }
  0xe6   : > { %7449 = vmatprep.mubr.msk.f32.mxu0 %vm628_vm1, %v313_v53  ;;  %7737 = vmatprep.mubr.msk.f32.mxu1 %vm628_vm1, %v505_v55 }
  0xe9   : > { %7450 = vmatmul.mubr.msk.f32.gmra.mrb[84].mxu0 %vm628_vm1, %v314_v56  ;;  %7738 = vmatmul.mubr.msk.f32.gmra.mrb[84].mxu1 %vm628_vm1, %v506_v58  ;;  %v340_v56 = vld [vmem:[%s15021_s0 + $0x378] sm:$0xff]  ;;  %v341_v58 = vld [vmem:[%s15021_s0 + $0x380] sm:$0xff] }
  0xea   : > { %7452 = vmatprep.mubr.msk.f32.mxu0 %vm628_vm1, %v315_v57  ;;  %7740 = vmatprep.mubr.msk.f32.mxu1 %vm628_vm1, %v507_v59  ;;  %v532_v59 = vld [vmem:[%s15021_s0 + $0x978] sm:$0xff] }
  0xed   : > { %7453 = vmatmul.mubr.msk.f32.gmra.mrb[86].mxu0 %vm628_vm1, %v316_v60  ;;  %7741 = vmatmul.mubr.msk.f32.gmra.mrb[86].mxu1 %vm628_vm1, %v508_v62 }
  0xee   : > { %7455 = vmatprep.mubr.msk.f32.mxu0 %vm628_vm1, %v317_v61  ;;  %7743 = vmatprep.mubr.msk.f32.mxu1 %vm628_vm1, %v509_v63  ;;  %v533_v61 = vld [vmem:[%s15021_s0 + $0x980] sm:$0xff] }
  0xf1   : > { %7456 = vmatmul.mubr.msk.f32.gmra.mrb[88].mxu0 %vm628_vm1, %v318_v0  ;;  %7744 = vmatmul.mubr.msk.f32.gmra.mrb[88].mxu1 %vm628_vm1, %v510_v2  ;;  %v342_v2 = vld [vmem:[%s15021_s0 + $0x388] sm:$0xff] }
  0xf2   : > { %7458 = vmatprep.mubr.msk.f32.mxu0 %vm628_vm1, %v319_v1  ;;  %7746 = vmatprep.mubr.msk.f32.mxu1 %vm628_vm1, %v511_v3 }
  0xf5   : > { %7459 = vmatmul.mubr.msk.f32.gmra.mrb[90].mxu0 %vm628_vm1, %v320_v4  ;;  %7747 = vmatmul.mubr.msk.f32.gmra.mrb[90].mxu1 %vm628_vm1, %v512_v6  ;;  %v343_v4 = vld [vmem:[%s15021_s0 + $0x390] sm:$0xff] }
  0xf6   : > { %7461 = vmatprep.mubr.msk.f32.mxu0 %vm628_vm1, %v321_v5  ;;  %7749 = vmatprep.mubr.msk.f32.mxu1 %vm628_vm1, %v513_v7  ;;  %v534_v5 = vld [vmem:[%s15021_s0 + $0x988] sm:$0xff]  ;;  %v535_v7 = vld [vmem:[%s15021_s0 + $0x990] sm:$0xff] }
  0xf9   : > { %7462 = vmatmul.mubr.msk.f32.gmra.mrb[92].mxu0 %vm628_vm1, %v322_v8  ;;  %7750 = vmatmul.mubr.msk.f32.gmra.mrb[92].mxu1 %vm628_vm1, %v514_v10 }
  0xfa   : > { %7464 = vmatprep.mubr.msk.f32.mxu0 %vm628_vm1, %v323_v9  ;;  %7752 = vmatprep.mubr.msk.f32.mxu1 %vm628_vm1, %v515_v11 }
  0xfd   : > { %7465 = vmatmul.mubr.msk.f32.gmra.mrb[94].mxu0 %vm628_vm1, %v324_v12  ;;  %7753 = vmatmul.mubr.msk.f32.gmra.mrb[94].mxu1 %vm628_vm1, %v516_v14 }
  0xfe   : > { %7467 = vmatprep.mubr.msk.f32.mxu0 %vm628_vm1, %v325_v13  ;;  %7755 = vmatprep.mubr.msk.f32.mxu1 %vm628_vm1, %v517_v15  ;;  %v344_v15 = vld [vmem:[%s15021_s0 + $0x398] sm:$0xff] }
 0x101   : > { %7468 = vmatmul.mubr.msk.f32.gmra.mrb[96].mxu0 %vm628_vm1, %v326_v16  ;;  %7756 = vmatmul.mubr.msk.f32.gmra.mrb[96].mxu1 %vm628_vm1, %v518_v18  ;;  %v345_v18 = vld [vmem:[%s15021_s0 + $0x3a0] sm:$0xff] }
 0x102   : > { %7470 = vmatprep.mubr.msk.f32.mxu0 %vm628_vm1, %v327_v17  ;;  %7758 = vmatprep.mubr.msk.f32.mxu1 %vm628_vm1, %v519_v19  ;;  %v536_v19 = vld [vmem:[%s15021_s0 + $0x998] sm:$0xff] }
 0x105   : > { %7471 = vmatmul.mubr.msk.f32.gmra.mrb[98].mxu0 %vm628_vm1, %v328_v20  ;;  %7759 = vmatmul.mubr.msk.f32.gmra.mrb[98].mxu1 %vm628_vm1, %v520_v22  ;;  %v537_v22 = vld [vmem:[%s15021_s0 + $0x9a0] sm:$0xff] }
 0x106   : > { %7473 = vmatprep.mubr.msk.f32.mxu0 %vm628_vm1, %v329_v21  ;;  %7761 = vmatprep.mubr.msk.f32.mxu1 %vm628_vm1, %v521_v23 }
 0x109   : > { %7474 = vmatmul.mubr.msk.f32.gmra.mrb[100].mxu0 %vm628_vm1, %v330_v24  ;;  %7762 = vmatmul.mubr.msk.f32.gmra.mrb[100].mxu1 %vm628_vm1, %v522_v26 }
 0x10a   : > { %7476 = vmatprep.mubr.msk.f32.mxu0 %vm628_vm1, %v331_v25  ;;  %7764 = vmatprep.mubr.msk.f32.mxu1 %vm628_vm1, %v523_v27 }
 0x10d   : > { %7477 = vmatmul.mubr.msk.f32.gmra.mrb[102].mxu0 %vm628_vm1, %v332_v28  ;;  %7765 = vmatmul.mubr.msk.f32.gmra.mrb[102].mxu1 %vm628_vm1, %v524_v30 }
 0x10e   : > { %7479 = vmatprep.mubr.msk.f32.mxu0 %vm628_vm1, %v333_v29  ;;  %7767 = vmatprep.mubr.msk.f32.mxu1 %vm628_vm1, %v525_v31  ;;  %v346_v29 = vld [vmem:[%s15021_s0 + $0x3a8] sm:$0xff] }
 0x111   : > { %7480 = vmatmul.mubr.msk.f32.gmra.mrb[104].mxu0 %vm628_vm1, %v334_v32  ;;  %7768 = vmatmul.mubr.msk.f32.gmra.mrb[104].mxu1 %vm628_vm1, %v526_v34  ;;  %v347_v32 = vld [vmem:[%s15021_s0 + $0x3b0] sm:$0xff] }
 0x112   : > { %7482 = vmatprep.mubr.msk.f32.mxu0 %vm628_vm1, %v335_v33  ;;  %7770 = vmatprep.mubr.msk.f32.mxu1 %vm628_vm1, %v527_v35  ;;  %v538_v33 = vld [vmem:[%s15021_s0 + $0x9a8] sm:$0xff] }
 0x114   : > { %v7325_v40 = vpop.f32.mrb[0].mxu0  ;;  %v9750_v44 = vpop.f32.mrb[0].mxu1 }
 0x115   : > { %v1877_v42 = vadd.f32 %v7325_v40, %v9731_v36  ;;  %v1871_v43 = vpop.f32.mrb[1].mxu0  ;;  %7483 = vmatmul.mubr.msk.f32.gmra.mrb[106].mxu0 %vm628_vm1, %v336_v37  ;;  %7771 = vmatmul.mubr.msk.f32.gmra.mrb[106].mxu1 %vm628_vm1, %v528_v39  ;;  %v9758_v47 = vpop.f32.mrb[1].mxu1  ;;  %v539_v37 = vld [vmem:[%s15021_s0 + $0x9b0] sm:$0xff] }
 0x116   : > { %v1872_v45 = vadd.f32 %v9731_v36, %v1871_v43  ;;  %7485 = vmatprep.mubr.msk.f32.mxu0 %vm628_vm1, %v337_v38  ;;  %7773 = vmatprep.mubr.msk.f32.mxu1 %vm628_vm1, %v529_v41 }
 0x117   : > { %7962 = vtanh.f32 %v1877_v42 }
 0x118   : > { %7964 = vtanh.f32 %v1872_v45  ;;  %v7328_v50 = vpop.f32.mrb[2].mxu0  ;;  %v9772_v54 = vpop.f32.mrb[2].mxu1 }
 0x119   : > { %v1887_v52 = vadd.f32 %v7328_v50, %v9731_v36  ;;  %v1881_v53 = vpop.f32.mrb[3].mxu0  ;;  %7486 = vmatmul.mubr.msk.f32.gmra.mrb[108].mxu0 %vm628_vm1, %v338_v46  ;;  %7774 = vmatmul.mubr.msk.f32.gmra.mrb[108].mxu1 %vm628_vm1, %v530_v49  ;;  %v9780_v57 = vpop.f32.mrb[3].mxu1 }
 0x11a   : > { %v1882_v55 = vadd.f32 %v9731_v36, %v1881_v53  ;;  %7488 = vmatprep.mubr.msk.f32.mxu0 %vm628_vm1, %v339_v48  ;;  %7776 = vmatprep.mubr.msk.f32.mxu1 %vm628_vm1, %v531_v51  ;;  %v348_v48 = vld [vmem:[%s15021_s0 + $0x3b8] sm:$0xff]  ;;  %v349_v51 = vld [vmem:[%s15021_s0 + $0x3c0] sm:$0xff] }
 0x11b   : > { %7966 = vtanh.f32 %v1887_v52  ;;  %v540_v52 = vld [vmem:[%s15021_s0 + $0x9b8] sm:$0xff] }
 0x11c   : > { %7968 = vtanh.f32 %v1882_v55  ;;  %v7331_v60 = vpop.f32.mrb[4].mxu0  ;;  %v9794_v0 = vpop.f32.mrb[4].mxu1 }
 0x11d   : > { %v1897_v62 = vadd.f32 %v7331_v60, %v9731_v36  ;;  %v1891_v63 = vpop.f32.mrb[5].mxu0  ;;  %7489 = vmatmul.mubr.msk.f32.gmra.mrb[110].mxu0 %vm628_vm1, %v340_v56  ;;  %7777 = vmatmul.mubr.msk.f32.gmra.mrb[110].mxu1 %vm628_vm1, %v532_v59  ;;  %v9802_v3 = vpop.f32.mrb[5].mxu1  ;;  %v541_v56 = vld [vmem:[%s15021_s0 + $0x9c0] sm:$0xff] }
 0x11e   : > { %v1892_v1 = vadd.f32 %v9731_v36, %v1891_v63  ;;  %7491 = vmatprep.mubr.msk.f32.mxu0 %vm628_vm1, %v341_v58  ;;  %7779 = vmatprep.mubr.msk.f32.mxu1 %vm628_vm1, %v533_v61 }
 0x11f   : > { %7970 = vtanh.f32 %v1897_v62 }
 0x120   : > { %7972 = vtanh.f32 %v1892_v1  ;;  %v7334_v6 = vpop.f32.mrb[6].mxu0  ;;  %v9816_v11 = vpop.f32.mrb[6].mxu1 }
 0x121   : > { %v7963_v8 = vpop.eup %7962  ;;  %v1907_v9 = vadd.f32 %v7334_v6, %v9731_v36  ;;  %v1901_v10 = vpop.f32.mrb[7].mxu0  ;;  %7492 = vmatmul.mubr.msk.f32.gmra.mrb[112].mxu0 %vm628_vm1, %v342_v2  ;;  %7780 = vmatmul.mubr.msk.f32.gmra.mrb[112].mxu1 %vm628_vm1, %v534_v5 }
 0x122   : > { %v7965_v12 = vpop.eup %7964  ;;  %v4176_v13 = vsel %vm628_vm1, %v7963_v8, 0.0  ;;  %v1902_v14 = vadd.f32 %v9731_v36, %v1901_v10  ;;  %7494 = vmatprep.mubr.msk.f32.mxu0 %vm628_vm1, %v343_v4  ;;  %v9825_v16 = vpop.f32.mrb[7].mxu1  ;;  %7782 = vmatprep.mubr.msk.f32.mxu1 %vm628_vm1, %v535_v7  ;;  %v350_v4 = vld [vmem:[%s15021_s0 + $0x3c8] sm:$0xff]  ;;  %v351_v7 = vld [vmem:[%s15021_s0 + $0x3d0] sm:$0xff] }
 0x123   : > { %v4175_v17 = vsel %vm628_vm1, %v7965_v12, 0.0  ;;  %7974 = vtanh.f32 %v1907_v9  ;;  %v542_v8 = vld [vmem:[%s15021_s0 + $0x9c8] sm:$0xff]  ;;  %v543_v12 = vld [vmem:[%s15021_s0 + $0x9d0] sm:$0xff] }
 0x124   : > { %v4177_v20 = vadd.f32 %v4176_v13, %v4175_v17  ;;  %7976 = vtanh.f32 %v1902_v14  ;;  %v7337_v21 = vpop.f32.mrb[8].mxu0  ;;  %v9840_v26 = vpop.f32.mrb[8].mxu1 }
 0x125   : > { %v7967_v23 = vpop.eup %7966  ;;  %v1917_v24 = vadd.f32 %v7337_v21, %v9731_v36  ;;  %v1911_v25 = vpop.f32.mrb[9].mxu0  ;;  %7495 = vmatmul.mubr.msk.f32.gmra.mrb[114].mxu0 %vm628_vm1, %v344_v15  ;;  %7783 = vmatmul.mubr.msk.f32.gmra.mrb[114].mxu1 %vm628_vm1, %v536_v19 }
 0x126   : > { %v7969_v27 = vpop.eup %7968  ;;  %v1912_v28 = vadd.f32 %v9731_v36, %v1911_v25  ;;  %7497 = vmatprep.mubr.msk.f32.mxu0 %vm628_vm1, %v345_v18  ;;  %v9848_v30 = vpop.f32.mrb[9].mxu1  ;;  %7785 = vmatprep.mubr.msk.f32.mxu1 %vm628_vm1, %v537_v22  ;;  %v4180_v39 = vsel %vm628_vm1, %v7967_v23, 0.0  ;;  %v352_v22 = vld [vmem:[%s15021_s0 + $0x3d8] sm:$0xff]  ;;  %v353_v25 = vld [vmem:[%s15021_s0 + $0x3e0] sm:$0xff] }
 0x127   : > { %v4178_v31 = vsel %vm628_vm1, %v7969_v27, 0.0  ;;  %7978 = vtanh.f32 %v1917_v24  ;;  %v544_v27 = vld [vmem:[%s15021_s0 + $0x9d8] sm:$0xff] }
 0x128   : > { %v4179_v34 = vadd.f32 %v4178_v31, %v4177_v20  ;;  %7980 = vtanh.f32 %v1912_v28  ;;  %v7340_v35 = vpop.f32.mrb[10].mxu0  ;;  %v9864_v42 = vpop.f32.mrb[10].mxu1  ;;  %v545_v31 = vld [vmem:[%s15021_s0 + $0x9e0] sm:$0xff] }
 0x129   : > { %v7971_v38 = vpop.eup %7970  ;;  %v1927_v40 = vadd.f32 %v7340_v35, %v9731_v36  ;;  %v1921_v41 = vpop.f32.mrb[11].mxu0  ;;  %7498 = vmatmul.mubr.msk.f32.gmra.mrb[116].mxu0 %vm628_vm1, %v346_v29  ;;  %7786 = vmatmul.mubr.msk.f32.gmra.mrb[116].mxu1 %vm628_vm1, %v538_v33 }
 0x12a   : > { %v7973_v43 = vpop.eup %7972  ;;  %v4181_v45 = vadd.f32 %v4180_v39, %v4179_v34  ;;  %v1922_v46 = vadd.f32 %v9731_v36, %v1921_v41  ;;  %7500 = vmatprep.mubr.msk.f32.mxu0 %vm628_vm1, %v347_v32  ;;  %v9872_v49 = vpop.f32.mrb[11].mxu1  ;;  %7788 = vmatprep.mubr.msk.f32.mxu1 %vm628_vm1, %v539_v37  ;;  %v4184_v59 = vsel %vm628_vm1, %v7971_v38, 0.0  ;;  %v354_v41 = vld [vmem:[%s15021_s0 + $0x3e8] sm:$0xff] }
 0x12b   : > { %v4182_v50 = vsel %vm628_vm1, %v7973_v43, 0.0  ;;  %7982 = vtanh.f32 %v1927_v40 }
 0x12c   : > { %v4183_v53 = vadd.f32 %v4182_v50, %v4181_v45  ;;  %7984 = vtanh.f32 %v1922_v46  ;;  %v7343_v55 = vpop.f32.mrb[12].mxu0  ;;  %v9888_v62 = vpop.f32.mrb[12].mxu1  ;;  %v355_v46 = vld [vmem:[%s15021_s0 + $0x3f0] sm:$0xff] }
 0x12d   : > { %v7975_v58 = vpop.eup %7974  ;;  %v1937_v60 = vadd.f32 %v7343_v55, %v9731_v36  ;;  %v1931_v61 = vpop.f32.mrb[13].mxu0  ;;  %7501 = vmatmul.mubr.msk.f32.gmra.mrb[118].mxu0 %vm628_vm1, %v348_v48  ;;  %7789 = vmatmul.mubr.msk.f32.gmra.mrb[118].mxu1 %vm628_vm1, %v540_v52  ;;  %v546_v48 = vld [vmem:[%s15021_s0 + $0x9e8] sm:$0xff]  ;;  %v547_v52 = vld [vmem:[%s15021_s0 + $0x9f0] sm:$0xff] }
 0x12e   : > { %v7977_v63 = vpop.eup %7976  ;;  %v4185_v1 = vadd.f32 %v4184_v59, %v4183_v53  ;;  %v1932_v2 = vadd.f32 %v9731_v36, %v1931_v61  ;;  %7503 = vmatprep.mubr.msk.f32.mxu0 %vm628_vm1, %v349_v51  ;;  %v9896_v5 = vpop.f32.mrb[13].mxu1  ;;  %7791 = vmatprep.mubr.msk.f32.mxu1 %vm628_vm1, %v541_v56  ;;  %v4188_v14 = vsel %vm628_vm1, %v7975_v58, 0.0 }
 0x12f   : > { %v4186_v6 = vsel %vm628_vm1, %v7977_v63, 0.0  ;;  %7986 = vtanh.f32 %v1937_v60 }
 0x130   : > { %v4187_v9 = vadd.f32 %v4186_v6, %v4185_v1  ;;  %7988 = vtanh.f32 %v1932_v2  ;;  %v7346_v10 = vpop.f32.mrb[14].mxu0  ;;  %v9912_v18 = vpop.f32.mrb[14].mxu1  ;;  %v356_v1 = vld [vmem:[%s15021_s0 + $0x3f8] sm:$0xff]  ;;  %v357_v6 = vld [vmem:[%s15021_s0 + $0x400] sm:$0xff] }
 0x131   : > { %v7979_v13 = vpop.eup %7978  ;;  %v1947_v15 = vadd.f32 %v7346_v10, %v9731_v36  ;;  %v1941_v17 = vpop.f32.mrb[15].mxu0  ;;  %7504 = vmatmul.mubr.msk.f32.gmra.mrb[120].mxu0 %vm628_vm1, %v350_v4  ;;  %7792 = vmatmul.mubr.msk.f32.gmra.mrb[120].mxu1 %vm628_vm1, %v542_v8  ;;  %v549_v10 = vld [vmem:[%s15021_s0 + $0xa00] sm:$0xff] }
 0x132   : > { %v7981_v19 = vpop.eup %7980  ;;  %v4189_v20 = vadd.f32 %v4188_v14, %v4187_v9  ;;  %v1942_v21 = vadd.f32 %v9731_v36, %v1941_v17  ;;  %7506 = vmatprep.mubr.msk.f32.mxu0 %vm628_vm1, %v351_v7  ;;  %v9920_v23 = vpop.f32.mrb[15].mxu1  ;;  %7794 = vmatprep.mubr.msk.f32.mxu1 %vm628_vm1, %v543_v12  ;;  %v4192_v33 = vsel %vm628_vm1, %v7979_v13, 0.0  ;;  %v548_v7 = vld [vmem:[%s15021_s0 + $0x9f8] sm:$0xff] }
 0x133   : > { %v4190_v24 = vsel %vm628_vm1, %v7981_v19, 0.0  ;;  %7990 = vtanh.f32 %v1947_v15 }
 0x134   : > { %v4191_v28 = vadd.f32 %v4190_v24, %v4189_v20  ;;  %7992 = vtanh.f32 %v1942_v21  ;;  %v7349_v29 = vpop.f32.mrb[16].mxu0  ;;  %v9936_v37 = vpop.f32.mrb[16].mxu1 }
 0x135   : > { %v7983_v32 = vpop.eup %7982  ;;  %v1957_v34 = vadd.f32 %v7349_v29, %v9731_v36  ;;  %v1951_v35 = vpop.f32.mrb[17].mxu0  ;;  %7507 = vmatmul.mubr.msk.f32.gmra.mrb[122].mxu0 %vm628_vm1, %v352_v22  ;;  %7795 = vmatmul.mubr.msk.f32.gmra.mrb[122].mxu1 %vm628_vm1, %v544_v27  ;;  %v358_v22 = vld [vmem:[%s15021_s0 + $0x408] sm:$0xff]  ;;  %v359_v27 = vld [vmem:[%s15021_s0 + $0x410] sm:$0xff] }
 0x136   : > { %v7985_v38 = vpop.eup %7984  ;;  %v4193_v39 = vadd.f32 %v4192_v33, %v4191_v28  ;;  %v1952_v40 = vadd.f32 %v9731_v36, %v1951_v35  ;;  %7509 = vmatprep.mubr.msk.f32.mxu0 %vm628_vm1, %v353_v25  ;;  %v9944_v43 = vpop.f32.mrb[17].mxu1  ;;  %7797 = vmatprep.mubr.msk.f32.mxu1 %vm628_vm1, %v545_v31  ;;  %v4196_v55 = vsel %vm628_vm1, %v7983_v32, 0.0  ;;  %v550_v28 = vld [vmem:[%s15021_s0 + $0xa08] sm:$0xff]  ;;  %v551_v32 = vld [vmem:[%s15021_s0 + $0xa10] sm:$0xff] }
 0x137   : > { %v4194_v45 = vsel %vm628_vm1, %v7985_v38, 0.0  ;;  %7994 = vtanh.f32 %v1957_v34 }
 0x138   : > { %v4195_v50 = vadd.f32 %v4194_v45, %v4193_v39  ;;  %7996 = vtanh.f32 %v1952_v40  ;;  %v7352_v51 = vpop.f32.mrb[18].mxu0  ;;  %v9960_v59 = vpop.f32.mrb[18].mxu1 }
 0x139   : > { %v7987_v53 = vpop.eup %7986  ;;  %v1967_v56 = vadd.f32 %v7352_v51, %v9731_v36  ;;  %v1961_v58 = vpop.f32.mrb[19].mxu0  ;;  %7510 = vmatmul.mubr.msk.f32.gmra.mrb[124].mxu0 %vm628_vm1, %v354_v41  ;;  %7798 = vmatmul.mubr.msk.f32.gmra.mrb[124].mxu1 %vm628_vm1, %v546_v48  ;;  %v361_v51 = vld [vmem:[%s15021_s0 + $0x420] sm:$0xff] }
 0x13a   : > { %v7989_v60 = vpop.eup %7988  ;;  %v4197_v61 = vadd.f32 %v4196_v55, %v4195_v50  ;;  %v1962_v63 = vadd.f32 %v9731_v36, %v1961_v58  ;;  %7512 = vmatprep.mubr.msk.f32.mxu0 %vm628_vm1, %v355_v46  ;;  %v9968_v2 = vpop.f32.mrb[19].mxu1  ;;  %7800 = vmatprep.mubr.msk.f32.mxu1 %vm628_vm1, %v547_v52  ;;  %v4200_v13 = vsel %vm628_vm1, %v7987_v53, 0.0  ;;  %v360_v46 = vld [vmem:[%s15021_s0 + $0x418] sm:$0xff] }
 0x13b   : > { %v4198_v4 = vsel %vm628_vm1, %v7989_v60, 0.0  ;;  %7998 = vtanh.f32 %v1967_v56  ;;  %v552_v52 = vld [vmem:[%s15021_s0 + $0xa18] sm:$0xff]  ;;  %v553_v56 = vld [vmem:[%s15021_s0 + $0xa20] sm:$0xff] }
 0x13c   : > { %v4199_v8 = vadd.f32 %v4198_v4, %v4197_v61  ;;  %8000 = vtanh.f32 %v1962_v63  ;;  %v7355_v9 = vpop.f32.mrb[20].mxu0  ;;  %v9984_v17 = vpop.f32.mrb[20].mxu1 }
 0x13d   : > { %v7991_v12 = vpop.eup %7990  ;;  %v1977_v14 = vadd.f32 %v7355_v9, %v9731_v36  ;;  %v1971_v15 = vpop.f32.mrb[21].mxu0  ;;  %7513 = vmatmul.mubr.msk.f32.gmra.mrb[126].mxu0 %vm628_vm1, %v356_v1  ;;  %7801 = vmatmul.mubr.msk.f32.gmra.mrb[126].mxu1 %vm628_vm1, %v548_v7 }
 0x13e   : > { %v7993_v19 = vpop.eup %7992  ;;  %v4201_v20 = vadd.f32 %v4200_v13, %v4199_v8  ;;  %v1972_v21 = vadd.f32 %v9731_v36, %v1971_v15  ;;  %7515 = vmatprep.mubr.msk.f32.mxu0 %vm628_vm1, %v357_v6  ;;  %v9992_v24 = vpop.f32.mrb[21].mxu1  ;;  %7803 = vmatprep.mubr.msk.f32.mxu1 %vm628_vm1, %v549_v10  ;;  %v4204_v34 = vsel %vm628_vm1, %v7991_v12, 0.0  ;;  %v362_v8 = vld [vmem:[%s15021_s0 + $0x428] sm:$0xff]  ;;  %v363_v12 = vld [vmem:[%s15021_s0 + $0x430] sm:$0xff] }
 0x13f   : > { %v4202_v25 = vsel %vm628_vm1, %v7993_v19, 0.0  ;;  %8002 = vtanh.f32 %v1977_v14  ;;  %v554_v13 = vld [vmem:[%s15021_s0 + $0xa28] sm:$0xff]  ;;  %v555_v19 = vld [vmem:[%s15021_s0 + $0xa30] sm:$0xff] }
 0x140   : > { %v4203_v29 = vadd.f32 %v4202_v25, %v4201_v20  ;;  %8004 = vtanh.f32 %v1972_v21  ;;  %v7358_v31 = vpop.f32.mrb[22].mxu0  ;;  %v10008_v39 = vpop.f32.mrb[22].mxu1 }
 0x141   : > { %v7995_v33 = vpop.eup %7994  ;;  %v1987_v35 = vadd.f32 %v7358_v31, %v9731_v36  ;;  %v1981_v38 = vpop.f32.mrb[23].mxu0  ;;  %7516 = vmatmul.mubr.msk.f32.gmra.mrb[128].mxu0 %vm628_vm1, %v358_v22  ;;  %7804 = vmatmul.mubr.msk.f32.gmra.mrb[128].mxu1 %vm628_vm1, %v550_v28 }
 0x142   : > { %v7997_v40 = vpop.eup %7996  ;;  %v4205_v41 = vadd.f32 %v4204_v34, %v4203_v29  ;;  %v1982_v45 = vadd.f32 %v9731_v36, %v1981_v38  ;;  %7518 = vmatprep.mubr.msk.f32.mxu0 %vm628_vm1, %v359_v27  ;;  %v10016_v48 = vpop.f32.mrb[23].mxu1  ;;  %7806 = vmatprep.mubr.msk.f32.mxu1 %vm628_vm1, %v551_v32  ;;  %v4208_v60 = vsel %vm628_vm1, %v7995_v33, 0.0  ;;  %v364_v32 = vld [vmem:[%s15021_s0 + $0x438] sm:$0xff] }
 0x143   : > { %v4206_v50 = vsel %vm628_vm1, %v7997_v40, 0.0  ;;  %8006 = vtanh.f32 %v1987_v35  ;;  %v365_v35 = vld [vmem:[%s15021_s0 + $0x440] sm:$0xff]  ;;  %v556_v38 = vld [vmem:[%s15021_s0 + $0xa38] sm:$0xff] }
 0x144   : > { %v4207_v53 = vadd.f32 %v4206_v50, %v4205_v41  ;;  %8008 = vtanh.f32 %v1982_v45  ;;  %v7361_v55 = vpop.f32.mrb[24].mxu0  ;;  %v10032_v1 = vpop.f32.mrb[24].mxu1  ;;  %v557_v45 = vld [vmem:[%s15021_s0 + $0xa40] sm:$0xff] }
 0x145   : > { %v7999_v58 = vpop.eup %7998  ;;  %v1997_v61 = vadd.f32 %v7361_v55, %v9731_v36  ;;  %v1991_v63 = vpop.f32.mrb[25].mxu0  ;;  %7519 = vmatmul.mubr.msk.f32.gmra.mrb[130].mxu0 %vm628_vm1, %v360_v46  ;;  %7807 = vmatmul.mubr.msk.f32.gmra.mrb[130].mxu1 %vm628_vm1, %v552_v52 }
 0x146   : > { %v8001_v4 = vpop.eup %8000  ;;  %v4209_v6 = vadd.f32 %v4208_v60, %v4207_v53  ;;  %v1992_v7 = vadd.f32 %v9731_v36, %v1991_v63  ;;  %7521 = vmatprep.mubr.msk.f32.mxu0 %vm628_vm1, %v361_v51  ;;  %v10040_v9 = vpop.f32.mrb[25].mxu1  ;;  %7809 = vmatprep.mubr.msk.f32.mxu1 %vm628_vm1, %v553_v56  ;;  %v4212_v21 = vsel %vm628_vm1, %v7999_v58, 0.0  ;;  %v366_v60 = vld [vmem:[%s15021_s0 + $0x448] sm:$0xff] }
 0x147   : > { %v4210_v10 = vsel %vm628_vm1, %v8001_v4, 0.0  ;;  %8010 = vtanh.f32 %v1997_v61  ;;  %v367_v4 = vld [vmem:[%s15021_s0 + $0x450] sm:$0xff] }
 0x148   : > { %v4211_v14 = vadd.f32 %v4210_v10, %v4209_v6  ;;  %8012 = vtanh.f32 %v1992_v7  ;;  %v7364_v15 = vpop.f32.mrb[26].mxu0  ;;  %v10056_v27 = vpop.f32.mrb[26].mxu1  ;;  %v558_v6 = vld [vmem:[%s15021_s0 + $0xa48] sm:$0xff]  ;;  %v559_v10 = vld [vmem:[%s15021_s0 + $0xa50] sm:$0xff] }
 0x149   : > { %v8003_v20 = vpop.eup %8002  ;;  %v2007_v22 = vadd.f32 %v7364_v15, %v9731_v36  ;;  %v2001_v25 = vpop.f32.mrb[27].mxu0  ;;  %7522 = vmatmul.mubr.msk.f32.gmra.mrb[132].mxu0 %vm628_vm1, %v362_v8  ;;  %7810 = vmatmul.mubr.msk.f32.gmra.mrb[132].mxu1 %vm628_vm1, %v554_v13 }
 0x14a   : > { %v8005_v28 = vpop.eup %8004  ;;  %v4213_v29 = vadd.f32 %v4212_v21, %v4211_v14  ;;  %v2002_v31 = vadd.f32 %v9731_v36, %v2001_v25  ;;  %7524 = vmatprep.mubr.msk.f32.mxu0 %vm628_vm1, %v363_v12  ;;  %v10064_v33 = vpop.f32.mrb[27].mxu1  ;;  %7812 = vmatprep.mubr.msk.f32.mxu1 %vm628_vm1, %v555_v19  ;;  %v4216_v50 = vsel %vm628_vm1, %v8003_v20, 0.0  ;;  %v368_v25 = vld [vmem:[%s15021_s0 + $0x458] sm:$0xff] }
 0x14b   : > { %v4214_v34 = vsel %vm628_vm1, %v8005_v28, 0.0  ;;  %8014 = vtanh.f32 %v2007_v22 }
 0x14c   : > { %v4215_v40 = vadd.f32 %v4214_v34, %v4213_v29  ;;  %8016 = vtanh.f32 %v2002_v31  ;;  %v7367_v41 = vpop.f32.mrb[28].mxu0  ;;  %v10080_v53 = vpop.f32.mrb[28].mxu1  ;;  %v369_v31 = vld [vmem:[%s15021_s0 + $0x460] sm:$0xff] }
 0x14d   : > { %v8007_v46 = vpop.eup %8006  ;;  %v2017_v51 = vadd.f32 %v7367_v41, %v9731_v36  ;;  %v2011_v52 = vpop.f32.mrb[29].mxu0  ;;  %7525 = vmatmul.mubr.msk.f32.gmra.mrb[134].mxu0 %vm628_vm1, %v364_v32  ;;  %7813 = vmatmul.mubr.msk.f32.gmra.mrb[134].mxu1 %vm628_vm1, %v556_v38  ;;  %v560_v32 = vld [vmem:[%s15021_s0 + $0xa58] sm:$0xff]  ;;  %v561_v38 = vld [vmem:[%s15021_s0 + $0xa60] sm:$0xff] }
 0x14e   : > { %v8009_v55 = vpop.eup %8008  ;;  %v4217_v56 = vadd.f32 %v4216_v50, %v4215_v40  ;;  %v2012_v58 = vadd.f32 %v9731_v36, %v2011_v52  ;;  %7527 = vmatprep.mubr.msk.f32.mxu0 %vm628_vm1, %v365_v35  ;;  %v10088_v61 = vpop.f32.mrb[29].mxu1  ;;  %7815 = vmatprep.mubr.msk.f32.mxu1 %vm628_vm1, %v557_v45  ;;  %v4220_v13 = vsel %vm628_vm1, %v8007_v46, 0.0 }
 0x14f   : > { %v4218_v63 = vsel %vm628_vm1, %v8009_v55, 0.0  ;;  %8018 = vtanh.f32 %v2017_v51 }
 0x150   : > { %v4219_v7 = vadd.f32 %v4218_v63, %v4217_v56  ;;  %8020 = vtanh.f32 %v2012_v58  ;;  %v7370_v8 = vpop.f32.mrb[30].mxu0  ;;  %v10104_v19 = vpop.f32.mrb[30].mxu1  ;;  %v370_v56 = vld [vmem:[%s15021_s0 + $0x468] sm:$0xff]  ;;  %v371_v63 = vld [vmem:[%s15021_s0 + $0x470] sm:$0xff] }
 0x151   : > { %v8011_v12 = vpop.eup %8010  ;;  %v2027_v14 = vadd.f32 %v7370_v8, %v9731_v36  ;;  %v2021_v15 = vpop.f32.mrb[31].mxu0  ;;  %7528 = vmatmul.mubr.msk.f32.gmra.mrb[136].mxu0 %vm628_vm1, %v366_v60  ;;  %7816 = vmatmul.mubr.msk.f32.gmra.mrb[136].mxu1 %vm628_vm1, %v558_v6  ;;  %v563_v8 = vld [vmem:[%s15021_s0 + $0xa70] sm:$0xff] }
 0x152   : > { %v8013_v20 = vpop.eup %8012  ;;  %v4221_v21 = vadd.f32 %v4220_v13, %v4219_v7  ;;  %v2022_v22 = vadd.f32 %v9731_v36, %v2021_v15  ;;  %7530 = vmatprep.mubr.msk.f32.mxu0 %vm628_vm1, %v367_v4  ;;  %v10112_v28 = vpop.f32.mrb[31].mxu1  ;;  %7818 = vmatprep.mubr.msk.f32.mxu1 %vm628_vm1, %v559_v10  ;;  %v4224_v41 = vsel %vm628_vm1, %v8011_v12, 0.0  ;;  %v562_v4 = vld [vmem:[%s15021_s0 + $0xa68] sm:$0xff] }
 0x153   : > { %v4222_v29 = vsel %vm628_vm1, %v8013_v20, 0.0  ;;  %8022 = vtanh.f32 %v2027_v14 }
 0x154   : > { %v4223_v34 = vadd.f32 %v4222_v29, %v4221_v21  ;;  %8024 = vtanh.f32 %v2022_v22  ;;  %v7373_v35 = vpop.f32.mrb[32].mxu0  ;;  %v10128_v50 = vpop.f32.mrb[32].mxu1 }
 0x155   : > { %v8015_v40 = vpop.eup %8014  ;;  %v2037_v45 = vadd.f32 %v7373_v35, %v9731_v36  ;;  %v2031_v46 = vpop.f32.mrb[33].mxu0  ;;  %7531 = vmatmul.mubr.msk.f32.gmra.mrb[138].mxu0 %vm628_vm1, %v368_v25  ;;  %7819 = vmatmul.mubr.msk.f32.gmra.mrb[138].mxu1 %vm628_vm1, %v560_v32  ;;  %v372_v25 = vld [vmem:[%s15021_s0 + $0x478] sm:$0xff]  ;;  %v373_v32 = vld [vmem:[%s15021_s0 + $0x480] sm:$0xff] }
 0x156   : > { %v8017_v51 = vpop.eup %8016  ;;  %v4225_v52 = vadd.f32 %v4224_v41, %v4223_v34  ;;  %v2032_v55 = vadd.f32 %v9731_v36, %v2031_v46  ;;  %7533 = vmatprep.mubr.msk.f32.mxu0 %vm628_vm1, %v369_v31  ;;  %v10136_v58 = vpop.f32.mrb[33].mxu1  ;;  %7821 = vmatprep.mubr.msk.f32.mxu1 %vm628_vm1, %v561_v38  ;;  %v4228_v12 = vsel %vm628_vm1, %v8015_v40, 0.0  ;;  %v564_v34 = vld [vmem:[%s15021_s0 + $0xa78] sm:$0xff]  ;;  %v565_v40 = vld [vmem:[%s15021_s0 + $0xa80] sm:$0xff] }
 0x157   : > { %v4226_v60 = vsel %vm628_vm1, %v8017_v51, 0.0  ;;  %8026 = vtanh.f32 %v2037_v45 }
 0x158   : > { %v4227_v6 = vadd.f32 %v4226_v60, %v4225_v52  ;;  %8028 = vtanh.f32 %v2032_v55  ;;  %v7376_v7 = vpop.f32.mrb[34].mxu0  ;;  %v10152_v15 = vpop.f32.mrb[34].mxu1 }
 0x159   : > { %v8019_v10 = vpop.eup %8018  ;;  %v2047_v13 = vadd.f32 %v7376_v7, %v9731_v36  ;;  %v2041_v14 = vpop.f32.mrb[35].mxu0  ;;  %7534 = vmatmul.mubr.msk.f32.gmra.mrb[140].mxu0 %vm628_vm1, %v370_v56  ;;  %15029 = vst [vmem:[#allocation4_spill] sm:$0xff] %v10152_v15  ;;  %7822 = vmatmul.mubr.msk.f32.gmra.mrb[140].mxu1 %vm628_vm1, %v562_v4  ;;  %v375_v7 = vld [vmem:[%s15021_s0 + $0x490] sm:$0xff] }
 0x15a   : > { %v8021_v20 = vpop.eup %8020  ;;  %v4229_v21 = vadd.f32 %v4228_v12, %v4227_v6  ;;  %v2042_v22 = vadd.f32 %v9731_v36, %v2041_v14  ;;  %7536 = vmatprep.mubr.msk.f32.mxu0 %vm628_vm1, %v371_v63  ;;  %v10160_v29 = vpop.f32.mrb[35].mxu1  ;;  %7824 = vmatprep.mubr.msk.f32.mxu1 %vm628_vm1, %v563_v8  ;;  %v4232_v45 = vsel %vm628_vm1, %v8019_v10, 0.0  ;;  %v374_v63 = vld [vmem:[%s15021_s0 + $0x488] sm:$0xff] }
 0x15b   : > { %15030 = vst [vmem:[#allocation5_spill] sm:$0xff] %v10160_v29  ;;  %v4230_v31 = vsel %vm628_vm1, %v8021_v20, 0.0  ;;  %8030 = vtanh.f32 %v2047_v13  ;;  %v566_v8 = vld [vmem:[%s15021_s0 + $0xa88] sm:$0xff]  ;;  %v567_v13 = vld [vmem:[%s15021_s0 + $0xa90] sm:$0xff] }
 0x15c   : > { %v4231_v35 = vadd.f32 %v4230_v31, %v4229_v21  ;;  %8032 = vtanh.f32 %v2042_v22  ;;  %v7379_v38 = vpop.f32.mrb[36].mxu0  ;;  %v10176_v52 = vpop.f32.mrb[36].mxu1 }
 0x15d   : > { %v8023_v41 = vpop.eup %8022  ;;  %v2057_v46 = vadd.f32 %v7379_v38, %v9731_v36  ;;  %v2051_v51 = vpop.f32.mrb[37].mxu0  ;;  %7537 = vmatmul.mubr.msk.f32.gmra.mrb[142].mxu0 %vm628_vm1, %v372_v25  ;;  %15031 = vst [vmem:[#allocation6_spill] sm:$0xff] %v10176_v52  ;;  %7825 = vmatmul.mubr.msk.f32.gmra.mrb[142].mxu1 %vm628_vm1, %v564_v34 }
 0x15e   : > { %v8025_v55 = vpop.eup %8024  ;;  %v4233_v56 = vadd.f32 %v4232_v45, %v4231_v35  ;;  %v2052_v60 = vadd.f32 %v9731_v36, %v2051_v51  ;;  %7539 = vmatprep.mubr.msk.f32.mxu0 %vm628_vm1, %v373_v32  ;;  %v10184_v4 = vpop.f32.mrb[37].mxu1  ;;  %7827 = vmatprep.mubr.msk.f32.mxu1 %vm628_vm1, %v565_v40  ;;  %v4236_v20 = vsel %vm628_vm1, %v8023_v41, 0.0  ;;  %v376_v35 = vld [vmem:[%s15021_s0 + $0x498] sm:$0xff]  ;;  %v377_v41 = vld [vmem:[%s15021_s0 + $0x4a0] sm:$0xff] }
 0x15f   : > { %15032 = vst [vmem:[#allocation7_spill] sm:$0xff] %v10184_v4  ;;  %v4234_v6 = vsel %vm628_vm1, %v8025_v55, 0.0  ;;  %8034 = vtanh.f32 %v2057_v46  ;;  %v568_v45 = vld [vmem:[%s15021_s0 + $0xa98] sm:$0xff]  ;;  %v569_v55 = vld [vmem:[%s15021_s0 + $0xaa0] sm:$0xff] }
 0x160   : > { %v4235_v10 = vadd.f32 %v4234_v6, %v4233_v56  ;;  %8036 = vtanh.f32 %v2052_v60  ;;  %v7382_v12 = vpop.f32.mrb[38].mxu0  ;;  %v10200_v25 = vpop.f32.mrb[38].mxu1 }
 0x161   : > { %v8027_v14 = vpop.eup %8026  ;;  %v2067_v21 = vadd.f32 %v7382_v12, %v9731_v36  ;;  %v2061_v22 = vpop.f32.mrb[39].mxu0  ;;  %7540 = vmatmul.mubr.msk.f32.gmra.mrb[144].mxu0 %vm628_vm1, %v374_v63  ;;  %15033 = vst [vmem:[#allocation8_spill] sm:$0xff] %v10200_v25  ;;  %7828 = vmatmul.mubr.msk.f32.gmra.mrb[144].mxu1 %vm628_vm1, %v566_v8 }
 0x162   : > { %v8029_v31 = vpop.eup %8028  ;;  %v4237_v32 = vadd.f32 %v4236_v20, %v4235_v10  ;;  %v2062_v34 = vadd.f32 %v9731_v36, %v2061_v22  ;;  %7542 = vmatprep.mubr.msk.f32.mxu0 %vm628_vm1, %v375_v7  ;;  %v10208_v38 = vpop.f32.mrb[39].mxu1  ;;  %7830 = vmatprep.mubr.msk.f32.mxu1 %vm628_vm1, %v567_v13  ;;  %v4240_v60 = vsel %vm628_vm1, %v8027_v14, 0.0  ;;  %v378_v13 = vld [vmem:[%s15021_s0 + $0x4a8] sm:$0xff] }
 0x163   : > { %15034 = vst [vmem:[#allocation9_spill] sm:$0xff] %v10208_v38  ;;  %v4238_v40 = vsel %vm628_vm1, %v8029_v31, 0.0  ;;  %8038 = vtanh.f32 %v2067_v21  ;;  %v379_v21 = vld [vmem:[%s15021_s0 + $0x4b0] sm:$0xff]  ;;  %v570_v22 = vld [vmem:[%s15021_s0 + $0xaa8] sm:$0xff] }
 0x164   : > { %v4239_v46 = vadd.f32 %v4238_v40, %v4237_v32  ;;  %8040 = vtanh.f32 %v2062_v34  ;;  %v7385_v51 = vpop.f32.mrb[40].mxu0  ;;  %v10224_v7 = vpop.f32.mrb[40].mxu1  ;;  %v571_v34 = vld [vmem:[%s15021_s0 + $0xab0] sm:$0xff] }
 0x165   : > { %v8031_v56 = vpop.eup %8030  ;;  %v2077_v63 = vadd.f32 %v7385_v51, %v9731_v36  ;;  %v2071_v6 = vpop.f32.mrb[41].mxu0  ;;  %7543 = vmatmul.mubr.msk.f32.gmra.mrb[146].mxu0 %vm628_vm1, %v376_v35  ;;  %15035 = vst [vmem:[#allocation10_spill] sm:$0xff] %v10224_v7  ;;  %7831 = vmatmul.mubr.msk.f32.gmra.mrb[146].mxu1 %vm628_vm1, %v568_v45 }
 0x166   : > { %v8033_v8 = vpop.eup %8032  ;;  %v4241_v10 = vadd.f32 %v4240_v60, %v4239_v46  ;;  %v2072_v12 = vadd.f32 %v9731_v36, %v2071_v6  ;;  %7545 = vmatprep.mubr.msk.f32.mxu0 %vm628_vm1, %v377_v41  ;;  %v10232_v14 = vpop.f32.mrb[41].mxu1  ;;  %7833 = vmatprep.mubr.msk.f32.mxu1 %vm628_vm1, %v569_v55  ;;  %v4244_v40 = vsel %vm628_vm1, %v8031_v56, 0.0 }
 0x167   : > { %15036 = vst [vmem:[#allocation11_spill] sm:$0xff] %v10232_v14  ;;  %v4242_v20 = vsel %vm628_vm1, %v8033_v8, 0.0  ;;  %8042 = vtanh.f32 %v2077_v63  ;;  %v380_v63 = vld [vmem:[%s15021_s0 + $0x4b8] sm:$0xff]  ;;  %v381_v8 = vld [vmem:[%s15021_s0 + $0x4c0] sm:$0xff] }
 0x168   : > { %v4243_v31 = vadd.f32 %v4242_v20, %v4241_v10  ;;  %8044 = vtanh.f32 %v2072_v12  ;;  %v7388_v32 = vpop.f32.mrb[42].mxu0  ;;  %v10248_v46 = vpop.f32.mrb[42].mxu1  ;;  %v572_v10 = vld [vmem:[%s15021_s0 + $0xab8] sm:$0xff]  ;;  %v573_v20 = vld [vmem:[%s15021_s0 + $0xac0] sm:$0xff] }
 0x169   : > { %v8035_v35 = vpop.eup %8034  ;;  %v2087_v41 = vadd.f32 %v7388_v32, %v9731_v36  ;;  %v2081_v45 = vpop.f32.mrb[43].mxu0  ;;  %7546 = vmatmul.mubr.msk.f32.gmra.mrb[148].mxu0 %vm628_vm1, %v378_v13  ;;  %15037 = vst [vmem:[#allocation12_spill] sm:$0xff] %v10248_v46  ;;  %7834 = vmatmul.mubr.msk.f32.gmra.mrb[148].mxu1 %vm628_vm1, %v570_v22 }
 0x16a   : > { %v8037_v51 = vpop.eup %8036  ;;  %v4245_v55 = vadd.f32 %v4244_v40, %v4243_v31  ;;  %v2082_v60 = vadd.f32 %v9731_v36, %v2081_v45  ;;  %7548 = vmatprep.mubr.msk.f32.mxu0 %vm628_vm1, %v379_v21  ;;  %v10256_v56 = vpop.f32.mrb[43].mxu1  ;;  %7836 = vmatprep.mubr.msk.f32.mxu1 %vm628_vm1, %v571_v34  ;;  %v4248_v22 = vsel %vm628_vm1, %v8035_v35, 0.0 }
 0x16b   : > { %15038 = vst [vmem:[#allocation13_spill] sm:$0xff] %v10256_v56  ;;  %v4246_v6 = vsel %vm628_vm1, %v8037_v51, 0.0  ;;  %8046 = vtanh.f32 %v2087_v41  ;;  %v382_v51 = vld [vmem:[%s15021_s0 + $0x4c8] sm:$0xff] }
 0x16c   : > { %v4247_v12 = vadd.f32 %v4246_v6, %v4245_v55  ;;  %8048 = vtanh.f32 %v2082_v60  ;;  %v7391_v13 = vpop.f32.mrb[44].mxu0  ;;  %v10272_v34 = vpop.f32.mrb[44].mxu1  ;;  %v383_v60 = vld [vmem:[%s15021_s0 + $0x4d0] sm:$0xff] }
 0x16d   : > { %v8039_v21 = vpop.eup %8038  ;;  %v2097_v31 = vadd.f32 %v7391_v13, %v9731_v36  ;;  %v2091_v32 = vpop.f32.mrb[45].mxu0  ;;  %7549 = vmatmul.mubr.msk.f32.gmra.mrb[150].mxu0 %vm628_vm1, %v380_v63  ;;  %15039 = vst [vmem:[#allocation14_spill] sm:$0xff] %v10272_v34  ;;  %7837 = vmatmul.mubr.msk.f32.gmra.mrb[150].mxu1 %vm628_vm1, %v572_v10  ;;  %v574_v63 = vld [vmem:[%s15021_s0 + $0xac8] sm:$0xff]  ;;  %v575_v10 = vld [vmem:[%s15021_s0 + $0xad0] sm:$0xff] }
 0x16e   : > { %v8041_v40 = vpop.eup %8040  ;;  %v4249_v41 = vadd.f32 %v4248_v22, %v4247_v12  ;;  %v2092_v45 = vadd.f32 %v9731_v36, %v2091_v32  ;;  %7551 = vmatprep.mubr.msk.f32.mxu0 %vm628_vm1, %v381_v8  ;;  %v10280_v35 = vpop.f32.mrb[45].mxu1  ;;  %7839 = vmatprep.mubr.msk.f32.mxu1 %vm628_vm1, %v573_v20  ;;  %v4252_v13 = vsel %vm628_vm1, %v8039_v21, 0.0 }
 0x16f   : > { %15040 = vst [vmem:[#allocation15_spill] sm:$0xff] %v10280_v35  ;;  %v4250_v55 = vsel %vm628_vm1, %v8041_v40, 0.0  ;;  %8050 = vtanh.f32 %v2097_v31 }
 0x170   : > { %v4251_v6 = vadd.f32 %v4250_v55, %v4249_v41  ;;  %8052 = vtanh.f32 %v2092_v45  ;;  %v7394_v8 = vpop.f32.mrb[46].mxu0  ;;  %v10296_v20 = vpop.f32.mrb[46].mxu1  ;;  %v384_v45 = vld [vmem:[%s15021_s0 + $0x4d8] sm:$0xff] }
 0x171   : > { %v8043_v12 = vpop.eup %8042  ;;  %v2107_v22 = vadd.f32 %v7394_v8, %v9731_v36  ;;  %v2101_v31 = vpop.f32.mrb[47].mxu0  ;;  %7552 = vmatmul.mubr.msk.f32.gmra.mrb[152].mxu0 %vm628_vm1, %v382_v51  ;;  %15041 = vst [vmem:[#allocation16_spill] sm:$0xff] %v10296_v20  ;;  %7840 = vmatmul.mubr.msk.f32.gmra.mrb[152].mxu1 %vm628_vm1, %v574_v63  ;;  %v385_v51 = vld [vmem:[%s15021_s0 + $0x4e0] sm:$0xff] }
 0x172   : > { %v8045_v32 = vpop.eup %8044  ;;  %v4253_v40 = vadd.f32 %v4252_v13, %v4251_v6  ;;  %v2102_v41 = vadd.f32 %v9731_v36, %v2101_v31  ;;  %7554 = vmatprep.mubr.msk.f32.mxu0 %vm628_vm1, %v383_v60  ;;  %v10304_v21 = vpop.f32.mrb[47].mxu1  ;;  %7842 = vmatprep.mubr.msk.f32.mxu1 %vm628_vm1, %v575_v10  ;;  %v576_v36 = vld [vmem:[%s15021_s0 + $0xad8] sm:$0xff]  ;;  %v577_v63 = vld [vmem:[%s15021_s0 + $0xae0] sm:$0xff]  ;;  %v4256_v13 = vsel %vm628_vm1, %v8043_v12, 0.0  ;;  %v386_v12 = vld [vmem:[%s15021_s0 + $0x4e8] sm:$0xff] }
 0x173   : > { %15042 = vst [vmem:[#allocation17_spill] sm:$0xff] %v10304_v21  ;;  %v4254_v55 = vsel %vm628_vm1, %v8045_v32, 0.0  ;;  %8054 = vtanh.f32 %v2107_v22  ;;  %v10321_v22 = vld [vmem:[%s15023_s2] ss:$0 sm:$0xff] }
 0x174   : > { %v4255_v60 = vadd.f32 %v4254_v55, %v4253_v40  ;;  %8056 = vtanh.f32 %v2102_v41  ;;  %v7397_v6 = vpop.f32.mrb[48].mxu0  ;;  %v10325_v32 = vpop.f32.mrb[48].mxu1 }
 0x175   : > { %v8047_v8 = vpop.eup %8046  ;;  %v2117_v10 = vadd.f32 %v10321_v22, %v7397_v6  ;;  %v2111_v31 = vpop.f32.mrb[49].mxu0  ;;  %7555 = vmatmul.mubr.msk.f32.gmra.mrb[154].mxu0 %vm628_vm1, %v384_v45  ;;  %15043 = vst [vmem:[#allocation18_spill] sm:$0xff] %v10325_v32  ;;  %7843 = vmatmul.mubr.msk.f32.gmra.mrb[154].mxu1 %vm628_vm1, %v576_v36  ;;  %v387_v45 = vld [vmem:[%s15021_s0 + $0x4f0] sm:$0xff] }
 0x176   : > { %v8049_v40 = vpop.eup %8048  ;;  %v4257_v41 = vadd.f32 %v4256_v13, %v4255_v60  ;;  %v2112_v55 = vadd.f32 %v10321_v22, %v2111_v31  ;;  %7557 = vmatprep.mubr.msk.f32.mxu0 %vm628_vm1, %v385_v51  ;;  %v10333_v20 = vpop.f32.mrb[49].mxu1  ;;  %7845 = vmatprep.mubr.msk.f32.mxu1 %vm628_vm1, %v577_v63  ;;  %v578_v51 = vld [vmem:[%s15021_s0 + $0xae8] sm:$0xff]  ;;  %v579_v36 = vld [vmem:[%s15021_s0 + $0xaf0] sm:$0xff] }
 0x177   : > { %15044 = vst [vmem:[#allocation19_spill] sm:$0xff] %v10333_v20  ;;  %v4258_v6 = vsel %vm628_vm1, %v8049_v40, 0.0  ;;  %8058 = vtanh.f32 %v2117_v10  ;;  %v4260_v10 = vsel %vm628_vm1, %v8047_v8, 0.0 }
 0x178   : > { %v4259_v60 = vadd.f32 %v4258_v6, %v4257_v41  ;;  %8060 = vtanh.f32 %v2112_v55  ;;  %v7400_v13 = vpop.f32.mrb[50].mxu0  ;;  %v10349_v63 = vpop.f32.mrb[50].mxu1  ;;  %v388_v55 = vld [vmem:[%s15021_s0 + $0x4f8] sm:$0xff] }
 0x179   : > { %v8051_v31 = vpop.eup %8050  ;;  %v2127_v40 = vadd.f32 %v10321_v22, %v7400_v13  ;;  %v2121_v32 = vpop.f32.mrb[51].mxu0  ;;  %7558 = vmatmul.mubr.msk.f32.gmra.mrb[156].mxu0 %vm628_vm1, %v386_v12  ;;  %15045 = vst [vmem:[#allocation20_spill] sm:$0xff] %v10349_v63  ;;  %7846 = vmatmul.mubr.msk.f32.gmra.mrb[156].mxu1 %vm628_vm1, %v578_v51  ;;  %v389_v12 = vld [vmem:[%s15021_s0 + $0x500] sm:$0xff] }
 0x17a   : > { %v8053_v20 = vpop.eup %8052  ;;  %v4261_v21 = vadd.f32 %v4260_v10, %v4259_v60  ;;  %v2122_v41 = vadd.f32 %v10321_v22, %v2121_v32  ;;  %7560 = vmatprep.mubr.msk.f32.mxu0 %vm628_vm1, %v387_v45  ;;  %v10357_v8 = vpop.f32.mrb[51].mxu1  ;;  %7848 = vmatprep.mubr.msk.f32.mxu1 %vm628_vm1, %v579_v36  ;;  %v580_v32 = vld [vmem:[%s15021_s0 + $0xaf8] sm:$0xff]  ;;  %v581_v51 = vld [vmem:[%s15021_s0 + $0xb00] sm:$0xff] }
 0x17b   : > { %15046 = vst [vmem:[#allocation21_spill] sm:$0xff] %v10357_v8  ;;  %v4262_v6 = vsel %vm628_vm1, %v8053_v20, 0.0  ;;  %8062 = vtanh.f32 %v2127_v40  ;;  %v4264_v20 = vsel %vm628_vm1, %v8051_v31, 0.0 }
 0x17c   : > { %v4263_v45 = vadd.f32 %v4262_v6, %v4261_v21  ;;  %8064 = vtanh.f32 %v2122_v41  ;;  %v7403_v60 = vpop.f32.mrb[52].mxu0  ;;  %v10373_v36 = vpop.f32.mrb[52].mxu1  ;;  %v390_v41 = vld [vmem:[%s15021_s0 + $0x508] sm:$0xff] }
 0x17d   : > { %v8055_v13 = vpop.eup %8054  ;;  %v2137_v10 = vadd.f32 %v10321_v22, %v7403_v60  ;;  %v2131_v40 = vpop.f32.mrb[53].mxu0  ;;  %7561 = vmatmul.mubr.msk.f32.gmra.mrb[158].mxu0 %vm628_vm1, %v388_v55  ;;  %15047 = vst [vmem:[#allocation22_spill] sm:$0xff] %v10373_v36  ;;  %7849 = vmatmul.mubr.msk.f32.gmra.mrb[158].mxu1 %vm628_vm1, %v580_v32  ;;  %v391_v55 = vld [vmem:[%s15021_s0 + $0x510] sm:$0xff] }
 0x17e   : > { %v8057_v63 = vpop.eup %8056  ;;  %v4265_v8 = vadd.f32 %v4264_v20, %v4263_v45  ;;  %v2132_v21 = vadd.f32 %v10321_v22, %v2131_v40  ;;  %7563 = vmatprep.mubr.msk.f32.mxu0 %vm628_vm1, %v389_v12  ;;  %v10381_v31 = vpop.f32.mrb[53].mxu1  ;;  %7851 = vmatprep.mubr.msk.f32.mxu1 %vm628_vm1, %v581_v51  ;;  %v582_v12 = vld [vmem:[%s15021_s0 + $0xb08] sm:$0xff]  ;;  %v583_v32 = vld [vmem:[%s15021_s0 + $0xb10] sm:$0xff] }
 0x17f   : > { %15048 = vst [vmem:[#allocation23_spill] sm:$0xff] %v10381_v31  ;;  %v4266_v6 = vsel %vm628_vm1, %v8057_v63, 0.0  ;;  %8066 = vtanh.f32 %v2137_v10  ;;  %v4268_v63 = vsel %vm628_vm1, %v8055_v13, 0.0 }
 0x180   : > { %v4267_v45 = vadd.f32 %v4266_v6, %v4265_v8  ;;  %8068 = vtanh.f32 %v2132_v21  ;;  %v7406_v60 = vpop.f32.mrb[54].mxu0  ;;  %v10397_v51 = vpop.f32.mrb[54].mxu1  ;;  %v392_v21 = vld [vmem:[%s15021_s0 + $0x518] sm:$0xff] }
 0x181   : > { %v8059_v20 = vpop.eup %8058  ;;  %v2147_v10 = vadd.f32 %v10321_v22, %v7406_v60  ;;  %v2141_v40 = vpop.f32.mrb[55].mxu0  ;;  %7564 = vmatmul.mubr.msk.f32.gmra.mrb[160].mxu0 %vm628_vm1, %v390_v41  ;;  %15049 = vst [vmem:[#allocation24_spill] sm:$0xff] %v10397_v51  ;;  %7852 = vmatmul.mubr.msk.f32.gmra.mrb[160].mxu1 %vm628_vm1, %v582_v12  ;;  %v393_v41 = vld [vmem:[%s15021_s0 + $0x520] sm:$0xff] }
 0x182   : > { %v8061_v36 = vpop.eup %8060  ;;  %v4269_v31 = vadd.f32 %v4268_v63, %v4267_v45  ;;  %v2142_v8 = vadd.f32 %v10321_v22, %v2141_v40  ;;  %7566 = vmatprep.mubr.msk.f32.mxu0 %vm628_vm1, %v391_v55  ;;  %v10405_v13 = vpop.f32.mrb[55].mxu1  ;;  %7854 = vmatprep.mubr.msk.f32.mxu1 %vm628_vm1, %v583_v32  ;;  %v584_v55 = vld [vmem:[%s15021_s0 + $0xb18] sm:$0xff]  ;;  %v585_v12 = vld [vmem:[%s15021_s0 + $0xb20] sm:$0xff] }
 0x183   : > { %15050 = vst [vmem:[#allocation25_spill] sm:$0xff] %v10405_v13  ;;  %v4270_v6 = vsel %vm628_vm1, %v8061_v36, 0.0  ;;  %8070 = vtanh.f32 %v2147_v10  ;;  %v4272_v36 = vsel %vm628_vm1, %v8059_v20, 0.0 }
 0x184   : > { %v4271_v45 = vadd.f32 %v4270_v6, %v4269_v31  ;;  %8072 = vtanh.f32 %v2142_v8  ;;  %v7409_v60 = vpop.f32.mrb[56].mxu0  ;;  %v10421_v32 = vpop.f32.mrb[56].mxu1  ;;  %v394_v8 = vld [vmem:[%s15021_s0 + $0x528] sm:$0xff] }
 0x185   : > { %v8063_v63 = vpop.eup %8062  ;;  %v2157_v10 = vadd.f32 %v10321_v22, %v7409_v60  ;;  %v2151_v40 = vpop.f32.mrb[57].mxu0  ;;  %7567 = vmatmul.mubr.msk.f32.gmra.mrb[162].mxu0 %vm628_vm1, %v392_v21  ;;  %15051 = vst [vmem:[#allocation26_spill] sm:$0xff] %v10421_v32  ;;  %7855 = vmatmul.mubr.msk.f32.gmra.mrb[162].mxu1 %vm628_vm1, %v584_v55  ;;  %v395_v21 = vld [vmem:[%s15021_s0 + $0x530] sm:$0xff] }
 0x186   : > { %v8065_v51 = vpop.eup %8064  ;;  %v4273_v13 = vadd.f32 %v4272_v36, %v4271_v45  ;;  %v2152_v31 = vadd.f32 %v10321_v22, %v2151_v40  ;;  %7569 = vmatprep.mubr.msk.f32.mxu0 %vm628_vm1, %v393_v41  ;;  %v10429_v20 = vpop.f32.mrb[57].mxu1  ;;  %7857 = vmatprep.mubr.msk.f32.mxu1 %vm628_vm1, %v585_v12  ;;  %v586_v41 = vld [vmem:[%s15021_s0 + $0xb28] sm:$0xff]  ;;  %v587_v55 = vld [vmem:[%s15021_s0 + $0xb30] sm:$0xff] }
 0x187   : > { %15052 = vst [vmem:[#allocation27_spill] sm:$0xff] %v10429_v20  ;;  %v4274_v6 = vsel %vm628_vm1, %v8065_v51, 0.0  ;;  %8074 = vtanh.f32 %v2157_v10  ;;  %v4276_v51 = vsel %vm628_vm1, %v8063_v63, 0.0 }
 0x188   : > { %v4275_v45 = vadd.f32 %v4274_v6, %v4273_v13  ;;  %8076 = vtanh.f32 %v2152_v31  ;;  %v7412_v60 = vpop.f32.mrb[58].mxu0  ;;  %v10445_v12 = vpop.f32.mrb[58].mxu1  ;;  %v396_v31 = vld [vmem:[%s15021_s0 + $0x538] sm:$0xff] }
 0x189   : > { %v8067_v36 = vpop.eup %8066  ;;  %v2167_v10 = vadd.f32 %v10321_v22, %v7412_v60  ;;  %v2161_v40 = vpop.f32.mrb[59].mxu0  ;;  %7570 = vmatmul.mubr.msk.f32.gmra.mrb[164].mxu0 %vm628_vm1, %v394_v8  ;;  %15053 = vst [vmem:[#allocation28_spill] sm:$0xff] %v10445_v12  ;;  %7858 = vmatmul.mubr.msk.f32.gmra.mrb[164].mxu1 %vm628_vm1, %v586_v41  ;;  %v397_v8 = vld [vmem:[%s15021_s0 + $0x540] sm:$0xff] }
 0x18a   : > { %v8069_v32 = vpop.eup %8068  ;;  %v4277_v20 = vadd.f32 %v4276_v51, %v4275_v45  ;;  %v2162_v13 = vadd.f32 %v10321_v22, %v2161_v40  ;;  %7572 = vmatprep.mubr.msk.f32.mxu0 %vm628_vm1, %v395_v21  ;;  %v10453_v63 = vpop.f32.mrb[59].mxu1  ;;  %7860 = vmatprep.mubr.msk.f32.mxu1 %vm628_vm1, %v587_v55  ;;  %v588_v21 = vld [vmem:[%s15021_s0 + $0xb38] sm:$0xff]  ;;  %v589_v41 = vld [vmem:[%s15021_s0 + $0xb40] sm:$0xff] }
 0x18b   : > { %15054 = vst [vmem:[#allocation29_spill] sm:$0xff] %v10453_v63  ;;  %v4278_v6 = vsel %vm628_vm1, %v8069_v32, 0.0  ;;  %8078 = vtanh.f32 %v2167_v10  ;;  %v4280_v32 = vsel %vm628_vm1, %v8067_v36, 0.0 }
 0x18c   : > { %v4279_v45 = vadd.f32 %v4278_v6, %v4277_v20  ;;  %8080 = vtanh.f32 %v2162_v13  ;;  %v7415_v60 = vpop.f32.mrb[60].mxu0  ;;  %v10469_v55 = vpop.f32.mrb[60].mxu1  ;;  %v398_v13 = vld [vmem:[%s15021_s0 + $0x548] sm:$0xff] }
 0x18d   : > { %v8071_v51 = vpop.eup %8070  ;;  %v2177_v10 = vadd.f32 %v10321_v22, %v7415_v60  ;;  %v2171_v40 = vpop.f32.mrb[61].mxu0  ;;  %7573 = vmatmul.mubr.msk.f32.gmra.mrb[166].mxu0 %vm628_vm1, %v396_v31  ;;  %15055 = vst [vmem:[#allocation30_spill] sm:$0xff] %v10469_v55  ;;  %7861 = vmatmul.mubr.msk.f32.gmra.mrb[166].mxu1 %vm628_vm1, %v588_v21  ;;  %v399_v31 = vld [vmem:[%s15021_s0 + $0x550] sm:$0xff] }
 0x18e   : > { %v8073_v12 = vpop.eup %8072  ;;  %v4281_v63 = vadd.f32 %v4280_v32, %v4279_v45  ;;  %v2172_v20 = vadd.f32 %v10321_v22, %v2171_v40  ;;  %7575 = vmatprep.mubr.msk.f32.mxu0 %vm628_vm1, %v397_v8  ;;  %v10477_v36 = vpop.f32.mrb[61].mxu1  ;;  %7863 = vmatprep.mubr.msk.f32.mxu1 %vm628_vm1, %v589_v41  ;;  %v590_v8 = vld [vmem:[%s15021_s0 + $0xb48] sm:$0xff]  ;;  %v591_v21 = vld [vmem:[%s15021_s0 + $0xb50] sm:$0xff] }
 0x18f   : > { %15056 = vst [vmem:[#allocation31_spill] sm:$0xff] %v10477_v36  ;;  %v4282_v6 = vsel %vm628_vm1, %v8073_v12, 0.0  ;;  %8082 = vtanh.f32 %v2177_v10  ;;  %v4284_v12 = vsel %vm628_vm1, %v8071_v51, 0.0  ;;  %v400_v51 = vld [vmem:[%s15021_s0 + $0x558] sm:$0xff] }
 0x190   : > { %v4283_v45 = vadd.f32 %v4282_v6, %v4281_v63  ;;  %8084 = vtanh.f32 %v2172_v20  ;;  %v7418_v60 = vpop.f32.mrb[62].mxu0  ;;  %v10493_v41 = vpop.f32.mrb[62].mxu1  ;;  %v2837_v20 = vadd.f32 %v10321_v22, %v9750_v44  ;;  %v592_v44 = vld [vmem:[%s15021_s0 + $0xb58] sm:$0xff] }
 0x191   : > { %v8075_v32 = vpop.eup %8074  ;;  %v2187_v10 = vadd.f32 %v10321_v22, %v7418_v60  ;;  %v2181_v40 = vpop.f32.mrb[63].mxu0  ;;  %7576 = vmatmul.mubr.msk.f32.gmra.mrb[168].mxu0 %vm628_vm1, %v398_v13  ;;  %15057 = vst [vmem:[#allocation32_spill] sm:$0xff] %v10493_v41  ;;  %7864 = vmatmul.mubr.msk.f32.gmra.mrb[168].mxu1 %vm628_vm1, %v590_v8  ;;  %v593_v8 = vld [vmem:[%s15021_s0 + $0xb60] sm:$0xff] }
 0x192   : > { %v8077_v55 = vpop.eup %8076  ;;  %v4285_v36 = vadd.f32 %v4284_v12, %v4283_v45  ;;  %v2182_v63 = vadd.f32 %v10321_v22, %v2181_v40  ;;  %7578 = vmatprep.mubr.msk.f32.mxu0 %vm628_vm1, %v399_v31  ;;  %v10503_v6 = vpop.f32.mrb[63].mxu1  ;;  %v401_v45 = vld [vmem:[%s15021_s0 + $0x560] sm:$0xff]  ;;  %7866 = vmatprep.mubr.msk.f32.mxu1 %vm628_vm1, %v591_v21 }
 0x193   : > { %15058 = vst [vmem:[#allocation33_spill] sm:$0xff] %v10503_v6  ;;  %v4286_v13 = vsel %vm628_vm1, %v8077_v55, 0.0  ;;  %8086 = vtanh.f32 %v2187_v10  ;;  %v4288_v55 = vsel %vm628_vm1, %v8075_v32, 0.0 }
 0x194   : > { %v4287_v31 = vadd.f32 %v4286_v13, %v4285_v36  ;;  %8088 = vtanh.f32 %v2182_v63  ;;  %v7421_v60 = vpop.f32.mrb[64].mxu0  ;;  %v7709_v21 = vpop.f32.mrb[64].mxu1  ;;  %v402_v63 = vld [vmem:[%s15021_s0 + $0x568] sm:$0xff] }
 0x195   : > { %v8079_v12 = vpop.eup %8078  ;;  %v2197_v10 = vadd.f32 %v10321_v22, %v7421_v60  ;;  %v2191_v40 = vpop.f32.mrb[65].mxu0  ;;  %7579 = vmatmul.mubr.msk.f32.gmra.mrb[170].mxu0 %vm628_vm1, %v400_v51  ;;  %8090 = vtanh.f32 %v2837_v20  ;;  %7867 = vmatmul.mubr.msk.f32.gmra.mrb[170].mxu1 %vm628_vm1, %v592_v44  ;;  %v403_v51 = vld [vmem:[%s15021_s0 + $0x570] sm:$0xff]  ;;  %v3157_v20 = vadd.f32 %v10321_v22, %v7709_v21 }
 0x196   : > { %v8081_v41 = vpop.eup %8080  ;;  %v4289_v6 = vadd.f32 %v4288_v55, %v4287_v31  ;;  %v2192_v36 = vadd.f32 %v10321_v22, %v2191_v40  ;;  %7581 = vmatprep.mubr.msk.f32.mxu0 %vm628_vm1, %v401_v45  ;;  %v3151_v32 = vpop.f32.mrb[65].mxu1  ;;  %7869 = vmatprep.mubr.msk.f32.mxu1 %vm628_vm1, %v593_v8  ;;  %v594_v45 = vld [vmem:[%s15021_s0 + $0xb68] sm:$0xff] }
 0x197   : > { %v4290_v13 = vsel %vm628_vm1, %v8081_v41, 0.0  ;;  %8092 = vtanh.f32 %v2197_v10  ;;  %v3152_v31 = vadd.f32 %v10321_v22, %v3151_v32  ;;  %v595_v41 = vld [vmem:[%s15021_s0 + $0xb70] sm:$0xff]  ;;  %v4292_v10 = vsel %vm628_vm1, %v8079_v12, 0.0 }
 0x198   : > { %v4291_v60 = vadd.f32 %v4290_v13, %v4289_v6  ;;  %8094 = vtanh.f32 %v2192_v36  ;;  %v7424_v44 = vpop.f32.mrb[66].mxu0  ;;  %v7712_v8 = vpop.f32.mrb[66].mxu1  ;;  %v404_v36 = vld [vmem:[%s15021_s0 + $0x578] sm:$0xff] }
 0x199   : > { %v8083_v55 = vpop.eup %8082  ;;  %v2207_v40 = vadd.f32 %v10321_v22, %v7424_v44  ;;  %v2201_v21 = vpop.f32.mrb[67].mxu0  ;;  %7582 = vmatmul.mubr.msk.f32.gmra.mrb[172].mxu0 %vm628_vm1, %v402_v63  ;;  %8096 = vtanh.f32 %v3157_v20  ;;  %7870 = vmatmul.mubr.msk.f32.gmra.mrb[172].mxu1 %vm628_vm1, %v594_v45  ;;  %v405_v63 = vld [vmem:[%s15021_s0 + $0x580] sm:$0xff]  ;;  %v3167_v20 = vadd.f32 %v10321_v22, %v7712_v8 }
 0x19a   : > { %v8085_v32 = vpop.eup %8084  ;;  %v4293_v34 = vadd.f32 %v4292_v10, %v4291_v60  ;;  %v2202_v6 = vadd.f32 %v10321_v22, %v2201_v21  ;;  %7584 = vmatprep.mubr.msk.f32.mxu0 %vm628_vm1, %v403_v51  ;;  %8098 = vtanh.f32 %v3152_v31  ;;  %v3161_v13 = vpop.f32.mrb[67].mxu1  ;;  %7872 = vmatprep.mubr.msk.f32.mxu1 %vm628_vm1, %v595_v41  ;;  %v596_v51 = vld [vmem:[%s15021_s0 + $0xb78] sm:$0xff]  ;;  %v597_v44 = vld [vmem:[%s15021_s0 + $0xb80] sm:$0xff] }
 0x19b   : > { %v4294_v12 = vsel %vm628_vm1, %v8085_v32, 0.0  ;;  %8100 = vtanh.f32 %v2207_v40  ;;  %v3162_v60 = vadd.f32 %v10321_v22, %v3161_v13  ;;  %v4296_v40 = vsel %vm628_vm1, %v8083_v55, 0.0 }
 0x19c   : > { %v4295_v31 = vadd.f32 %v4294_v12, %v4293_v34  ;;  %8102 = vtanh.f32 %v2202_v6  ;;  %v7427_v45 = vpop.f32.mrb[68].mxu0  ;;  %v7715_v41 = vpop.f32.mrb[68].mxu1  ;;  %v406_v6 = vld [vmem:[%s15021_s0 + $0x588] sm:$0xff] }
 0x19d   : > { %v8087_v10 = vpop.eup %8086  ;;  %v2217_v21 = vadd.f32 %v10321_v22, %v7427_v45  ;;  %v2211_v8 = vpop.f32.mrb[69].mxu0  ;;  %7585 = vmatmul.mubr.msk.f32.gmra.mrb[174].mxu0 %vm628_vm1, %v404_v36  ;;  %8104 = vtanh.f32 %v3167_v20  ;;  %7873 = vmatmul.mubr.msk.f32.gmra.mrb[174].mxu1 %vm628_vm1, %v596_v51  ;;  %v407_v36 = vld [vmem:[%s15021_s0 + $0x590] sm:$0xff]  ;;  %v3177_v20 = vadd.f32 %v10321_v22, %v7715_v41 }
 0x19e   : > { %v8089_v32 = vpop.eup %8088  ;;  %v4297_v13 = vadd.f32 %v4296_v40, %v4295_v31  ;;  %v2212_v34 = vadd.f32 %v10321_v22, %v2211_v8  ;;  %7587 = vmatprep.mubr.msk.f32.mxu0 %vm628_vm1, %v405_v63  ;;  %8106 = vtanh.f32 %v3162_v60  ;;  %v3171_v12 = vpop.f32.mrb[69].mxu1  ;;  %7875 = vmatprep.mubr.msk.f32.mxu1 %vm628_vm1, %v597_v44  ;;  %v598_v63 = vld [vmem:[%s15021_s0 + $0xb88] sm:$0xff]  ;;  %v599_v40 = vld [vmem:[%s15021_s0 + $0xb90] sm:$0xff]  ;;  %v4300_v8 = vsel %vm628_vm1, %v8087_v10, 0.0 }
 0x19f   : > { %v4298_v55 = vsel %vm628_vm1, %v8089_v32, 0.0  ;;  %8108 = vtanh.f32 %v2217_v21  ;;  %v3172_v31 = vadd.f32 %v10321_v22, %v3171_v12  ;;  %v10579_v60 = vpop.eup %8090 }
 0x1a0   : > { %v4299_v51 = vadd.f32 %v4298_v55, %v4297_v13  ;;  %8110 = vtanh.f32 %v2212_v34  ;;  %v7430_v45 = vpop.f32.mrb[70].mxu0  ;;  %v7718_v44 = vpop.f32.mrb[70].mxu1  ;;  %v408_v34 = vld [vmem:[%s15021_s0 + $0x598] sm:$0xff] }
 0x1a1   : > { %v8093_v21 = vpop.eup %8092  ;;  %v2227_v41 = vadd.f32 %v10321_v22, %v7430_v45  ;;  %v2221_v32 = vpop.f32.mrb[71].mxu0  ;;  %7588 = vmatmul.mubr.msk.f32.gmra.mrb[176].mxu0 %vm628_vm1, %v406_v6  ;;  %8112 = vtanh.f32 %v3177_v20  ;;  %7876 = vmatmul.mubr.msk.f32.gmra.mrb[176].mxu1 %vm628_vm1, %v598_v63  ;;  %v409_v6 = vld [vmem:[%s15021_s0 + $0x5a0] sm:$0xff]  ;;  %v3187_v20 = vadd.f32 %v10321_v22, %v7718_v44  ;;  %v2832_v63 = vadd.f32 %v10321_v22, %v9758_v47 }
 0x1a2   : > { %v8095_v12 = vpop.eup %8094  ;;  %v4301_v35 = vadd.f32 %v4300_v8, %v4299_v51  ;;  %v2222_v13 = vadd.f32 %v10321_v22, %v2221_v32  ;;  %7590 = vmatprep.mubr.msk.f32.mxu0 %vm628_vm1, %v407_v36  ;;  %8114 = vtanh.f32 %v3172_v31  ;;  %v3181_v55 = vpop.f32.mrb[71].mxu1  ;;  %7878 = vmatprep.mubr.msk.f32.mxu1 %vm628_vm1, %v599_v40  ;;  %v600_v36 = vld [vmem:[%s15021_s0 + $0xb98] sm:$0xff]  ;;  %v601_v32 = vld [vmem:[%s15021_s0 + $0xba0] sm:$0xff]  ;;  %v4304_v40 = vsel %vm628_vm1, %v8093_v21, 0.0  ;;  %v410_v21 = vld [vmem:[%s15021_s0 + $0x5a8] sm:$0xff] }
 0x1a3   : > { %v8097_v10 = vpop.eup %8096  ;;  %v4302_v45 = vsel %vm628_vm1, %v8095_v12, 0.0  ;;  %8116 = vtanh.f32 %v2227_v41  ;;  %v3182_v47 = vadd.f32 %v10321_v22, %v3181_v55  ;;  %v411_v55 = vld [vmem:[%s15021_s0 + $0x5b0] sm:$0xff] }
 0x1a4   : > { %v8099_v31 = vpop.eup %8098  ;;  %v4303_v51 = vadd.f32 %v4302_v45, %v4301_v35  ;;  %8118 = vtanh.f32 %v2222_v13  ;;  %v7433_v8 = vpop.f32.mrb[72].mxu0  ;;  %v4698_v41 = vsel %vm628_vm1, %v8097_v10, 0.0 }
 0x1a5   : > { %v8101_v44 = vpop.eup %8100  ;;  %v2237_v12 = vadd.f32 %v10321_v22, %v7433_v8  ;;  %v2231_v46 = vpop.f32.mrb[73].mxu0  ;;  %7591 = vmatmul.mubr.msk.f32.gmra.mrb[178].mxu0 %vm628_vm1, %v408_v34  ;;  %v4697_v35 = vsel %vm628_vm1, %v8099_v31, 0.0  ;;  %8120 = vtanh.f32 %v3187_v20  ;;  %7879 = vmatmul.mubr.msk.f32.gmra.mrb[178].mxu1 %vm628_vm1, %v600_v36 }
 0x1a6   : > { %v7721_v13 = vpop.f32.mrb[72].mxu1  ;;  %v8103_v45 = vpop.eup %8102  ;;  %v4305_v56 = vadd.f32 %v4304_v40, %v4303_v51  ;;  %v2232_v10 = vadd.f32 %v10321_v22, %v2231_v46  ;;  %7593 = vmatprep.mubr.msk.f32.mxu0 %vm628_vm1, %v409_v6  ;;  %v4699_v7 = vadd.f32 %v4698_v41, %v4697_v35  ;;  %7881 = vmatprep.mubr.msk.f32.mxu1 %vm628_vm1, %v601_v32  ;;  %v602_v46 = vld [vmem:[%s15021_s0 + $0xba8] sm:$0xff]  ;;  %v4308_v20 = vsel %vm628_vm1, %v8101_v44, 0.0  ;;  %v603_v40 = vld [vmem:[%s15021_s0 + $0xbb0] sm:$0xff] }
 0x1a7   : > { %v3191_v8 = vpop.f32.mrb[73].mxu1  ;;  %v8105_v34 = vpop.eup %8104  ;;  %v4306_v31 = vsel %vm628_vm1, %v8103_v45, 0.0  ;;  %8122 = vtanh.f32 %v2237_v12  ;;  %v3197_v41 = vadd.f32 %v10321_v22, %v7721_v13 }
 0x1a8   : > { %v8107_v6 = vpop.eup %8106  ;;  %v4307_v51 = vadd.f32 %v4306_v31, %v4305_v56  ;;  %8124 = vtanh.f32 %v2232_v10  ;;  %v7436_v36 = vpop.f32.mrb[74].mxu0  ;;  %v4702_v45 = vsel %vm628_vm1, %v8105_v34, 0.0  ;;  %v412_v31 = vld [vmem:[%s15021_s0 + $0x5b8] sm:$0xff] }
 0x1a9   : > { %v8109_v12 = vpop.eup %8108  ;;  %v2247_v35 = vadd.f32 %v10321_v22, %v7436_v36  ;;  %v2241_v32 = vpop.f32.mrb[75].mxu0  ;;  %7594 = vmatmul.mubr.msk.f32.gmra.mrb[180].mxu0 %vm628_vm1, %v410_v21  ;;  %v4700_v14 = vsel %vm628_vm1, %v8107_v6, 0.0  ;;  %8126 = vtanh.f32 %v3182_v47  ;;  %7882 = vmatmul.mubr.msk.f32.gmra.mrb[180].mxu1 %vm628_vm1, %v602_v46  ;;  %v3192_v47 = vadd.f32 %v10321_v22, %v3191_v8 }
 0x1aa   : > { %v7724_v56 = vpop.f32.mrb[74].mxu1  ;;  %v8111_v44 = vpop.eup %8110  ;;  %8128 = vtanh.f32 %v2832_v63  ;;  %v4309_v10 = vadd.f32 %v4308_v20, %v4307_v51  ;;  %v2242_v13 = vadd.f32 %v10321_v22, %v2241_v32  ;;  %7596 = vmatprep.mubr.msk.f32.mxu0 %vm628_vm1, %v411_v55  ;;  %v4701_v36 = vadd.f32 %v4700_v14, %v4699_v7  ;;  %v413_v63 = vld [vmem:[%s15021_s0 + $0x5c0] sm:$0xff]  ;;  %7884 = vmatprep.mubr.msk.f32.mxu1 %vm628_vm1, %v603_v40  ;;  %v604_v55 = vld [vmem:[%s15021_s0 + $0xbb8] sm:$0xff] }
 0x1ab   : > { %v3201_v25 = vpop.f32.mrb[75].mxu1  ;;  %v8113_v21 = vpop.eup %8112  ;;  %v4310_v34 = vsel %vm628_vm1, %v8111_v44, 0.0  ;;  %8130 = vtanh.f32 %v2247_v35  ;;  %v4312_v14 = vsel %vm628_vm1, %v8109_v12, 0.0  ;;  %v605_v51 = vld [vmem:[%s15021_s0 + $0xbc0] sm:$0xff]  ;;  %v3207_v12 = vadd.f32 %v10321_v22, %v7724_v56  ;;  %v415_v56 = vld [vmem:[%s15021_s0 + $0x5d0] sm:$0xff] }
 0x1ac   : > { %v8115_v7 = vpop.eup %8114  ;;  %v4311_v46 = vadd.f32 %v4310_v34, %v4309_v10  ;;  %8132 = vtanh.f32 %v2242_v13  ;;  %v7439_v6 = vpop.f32.mrb[76].mxu0  ;;  %v4703_v20 = vadd.f32 %v4702_v45, %v4701_v36  ;;  %v4706_v40 = vsel %vm628_vm1, %v8113_v21, 0.0  ;;  %v414_v36 = vld [vmem:[%s15021_s0 + $0x5c8] sm:$0xff] }
 0x1ad   : > { %v8117_v35 = vpop.eup %8116  ;;  %v2257_v8 = vadd.f32 %v10321_v22, %v7439_v6  ;;  %v2251_v32 = vpop.f32.mrb[77].mxu0  ;;  %7597 = vmatmul.mubr.msk.f32.gmra.mrb[182].mxu0 %vm628_vm1, %v412_v31  ;;  %v4704_v44 = vsel %vm628_vm1, %v8115_v7, 0.0  ;;  %8134 = vtanh.f32 %v3197_v41  ;;  %7885 = vmatmul.mubr.msk.f32.gmra.mrb[182].mxu1 %vm628_vm1, %v604_v55  ;;  %v607_v55 = vld [vmem:[%s15021_s0 + $0xbd0] sm:$0xff] }
 0x1ae   : > { %v7727_v10 = vpop.f32.mrb[76].mxu1  ;;  %v8119_v13 = vpop.eup %8118  ;;  %v4313_v34 = vadd.f32 %v4312_v14, %v4311_v46  ;;  %v2252_v45 = vadd.f32 %v10321_v22, %v2251_v32  ;;  %7599 = vmatprep.mubr.msk.f32.mxu0 %vm628_vm1, %v413_v63  ;;  %v4705_v6 = vadd.f32 %v4704_v44, %v4703_v20  ;;  %7887 = vmatprep.mubr.msk.f32.mxu1 %vm628_vm1, %v605_v51  ;;  %v606_v63 = vld [vmem:[%s15021_s0 + $0xbc8] sm:$0xff] }
 0x1af   : > { %v3211_v31 = vpop.f32.mrb[77].mxu1  ;;  %v4314_v21 = vsel %vm628_vm1, %v8119_v13, 0.0  ;;  %8136 = vtanh.f32 %v2257_v8  ;;  %v8121_v7 = vpop.eup %8120  ;;  %v4316_v8 = vsel %vm628_vm1, %v8117_v35, 0.0  ;;  %v3202_v51 = vadd.f32 %v10321_v22, %v3201_v25 }
 0x1b0   : > { %v4315_v14 = vadd.f32 %v4314_v21, %v4313_v34  ;;  %8138 = vtanh.f32 %v2252_v45  ;;  %v7442_v41 = vpop.f32.mrb[78].mxu0  ;;  %v4707_v46 = vadd.f32 %v4706_v40, %v4705_v6  ;;  %v7730_v13 = vpop.f32.mrb[78].mxu1  ;;  %v416_v6 = vld [vmem:[%s15021_s0 + $0x5d8] sm:$0xff]  ;;  %v3217_v35 = vadd.f32 %v10321_v22, %v7727_v10 }
 0x1b1   : > { %v8123_v20 = vpop.eup %8122  ;;  %v2267_v32 = vadd.f32 %v10321_v22, %v7442_v41  ;;  %v2261_v44 = vpop.f32.mrb[79].mxu0  ;;  %7600 = vmatmul.mubr.msk.f32.gmra.mrb[184].mxu0 %vm628_vm1, %v414_v36  ;;  %8140 = vtanh.f32 %v3192_v47  ;;  %7888 = vmatmul.mubr.msk.f32.gmra.mrb[184].mxu1 %vm628_vm1, %v606_v63  ;;  %v417_v36 = vld [vmem:[%s15021_s0 + $0x5e0] sm:$0xff]  ;;  %v4710_v41 = vsel %vm628_vm1, %v8121_v7, 0.0 }
 0x1b2   : > { %v8125_v34 = vpop.eup %8124  ;;  %v4317_v45 = vadd.f32 %v4316_v8, %v4315_v14  ;;  %v2262_v40 = vadd.f32 %v10321_v22, %v2261_v44  ;;  %7602 = vmatprep.mubr.msk.f32.mxu0 %vm628_vm1, %v415_v56  ;;  %8142 = vtanh.f32 %v3207_v12  ;;  %v3221_v21 = vpop.f32.mrb[79].mxu1  ;;  %v3212_v56 = vadd.f32 %v10321_v22, %v3211_v31  ;;  %7890 = vmatprep.mubr.msk.f32.mxu1 %vm628_vm1, %v607_v55  ;;  %v608_v12 = vld [vmem:[%s15021_s0 + $0xbd8] sm:$0xff] }
 0x1b3   : > { %v8127_v47 = vpop.eup %8126  ;;  %v4318_v25 = vsel %vm628_vm1, %v8125_v34, 0.0  ;;  %8144 = vtanh.f32 %v2267_v32  ;;  %v609_v32 = vld [vmem:[%s15021_s0 + $0xbe0] sm:$0xff]  ;;  %v4320_v55 = vsel %vm628_vm1, %v8123_v20, 0.0  ;;  %v3227_v20 = vadd.f32 %v10321_v22, %v7730_v13 }
 0x1b4   : > { %v10697_v10 = vpop.eup %8128  ;;  %v4319_v14 = vadd.f32 %v4318_v25, %v4317_v45  ;;  %8146 = vtanh.f32 %v2262_v40  ;;  %v7445_v63 = vpop.f32.mrb[80].mxu0  ;;  %v4708_v8 = vsel %vm628_vm1, %v8127_v47, 0.0  ;;  %v418_v47 = vld [vmem:[%s15021_s0 + $0x5e8] sm:$0xff] }
 0x1b5   : > { %v8131_v31 = vpop.eup %8130  ;;  %v2277_v44 = vadd.f32 %v10321_v22, %v7445_v63  ;;  %v2271_v34 = vpop.f32.mrb[81].mxu0  ;;  %7603 = vmatmul.mubr.msk.f32.gmra.mrb[186].mxu0 %vm628_vm1, %v416_v6  ;;  %v4709_v38 = vadd.f32 %v4708_v8, %v4707_v46  ;;  %8148 = vtanh.f32 %v3202_v51  ;;  %7891 = vmatmul.mubr.msk.f32.gmra.mrb[186].mxu1 %vm628_vm1, %v608_v12  ;;  %v419_v51 = vld [vmem:[%s15021_s0 + $0x5f0] sm:$0xff] }
 0x1b6   : > { %v7733_v45 = vpop.f32.mrb[80].mxu1  ;;  %v8133_v40 = vpop.eup %8132  ;;  %v4321_v25 = vadd.f32 %v4320_v55, %v4319_v14  ;;  %v2272_v7 = vadd.f32 %v10321_v22, %v2271_v34  ;;  %7605 = vmatprep.mubr.msk.f32.mxu0 %vm628_vm1, %v417_v36  ;;  %8150 = vtanh.f32 %v3217_v35  ;;  %7893 = vmatprep.mubr.msk.f32.mxu1 %vm628_vm1, %v609_v32  ;;  %v610_v36 = vld [vmem:[%s15021_s0 + $0xbe8] sm:$0xff]  ;;  %v611_v12 = vld [vmem:[%s15021_s0 + $0xbf0] sm:$0xff]  ;;  %v4324_v55 = vsel %vm628_vm1, %v8131_v31, 0.0 }
 0x1b7   : > { %v3231_v63 = vpop.f32.mrb[81].mxu1  ;;  %v4322_v46 = vsel %vm628_vm1, %v8133_v40, 0.0  ;;  %8152 = vtanh.f32 %v2277_v44  ;;  %v4711_v6 = vadd.f32 %v4710_v41, %v4709_v38  ;;  %v8135_v35 = vpop.eup %8134  ;;  %v3222_v41 = vadd.f32 %v10321_v22, %v3221_v21 }
 0x1b8   : > { %v4323_v14 = vadd.f32 %v4322_v46, %v4321_v25  ;;  %8154 = vtanh.f32 %v2272_v7  ;;  %v7448_v13 = vpop.f32.mrb[82].mxu0  ;;  %v7736_v32 = vpop.f32.mrb[82].mxu1  ;;  %v420_v7 = vld [vmem:[%s15021_s0 + $0x5f8] sm:$0xff]  ;;  %v3237_v31 = vadd.f32 %v10321_v22, %v7733_v45 }
 0x1b9   : > { %v8137_v8 = vpop.eup %8136  ;;  %v2287_v44 = vadd.f32 %v10321_v22, %v7448_v13  ;;  %v2281_v38 = vpop.f32.mrb[83].mxu0  ;;  %7606 = vmatmul.mubr.msk.f32.gmra.mrb[188].mxu0 %vm628_vm1, %v418_v47  ;;  %8156 = vtanh.f32 %v3212_v56  ;;  %7894 = vmatmul.mubr.msk.f32.gmra.mrb[188].mxu1 %vm628_vm1, %v610_v36  ;;  %v4714_v47 = vsel %vm628_vm1, %v8135_v35, 0.0 }
 0x1ba   : > { %v8139_v34 = vpop.eup %8138  ;;  %v4325_v40 = vadd.f32 %v4324_v55, %v4323_v14  ;;  %v2282_v25 = vadd.f32 %v10321_v22, %v2281_v38  ;;  %7608 = vmatprep.mubr.msk.f32.mxu0 %vm628_vm1, %v419_v51  ;;  %8158 = vtanh.f32 %v3227_v20  ;;  %v3241_v46 = vpop.f32.mrb[83].mxu1  ;;  %v3232_v14 = vadd.f32 %v10321_v22, %v3231_v63  ;;  %7896 = vmatprep.mubr.msk.f32.mxu1 %vm628_vm1, %v611_v12  ;;  %v612_v51 = vld [vmem:[%s15021_s0 + $0xbf8] sm:$0xff] }
 0x1bb   : > { %v8141_v56 = vpop.eup %8140  ;;  %v4326_v21 = vsel %vm628_vm1, %v8139_v34, 0.0  ;;  %8160 = vtanh.f32 %v2287_v44  ;;  %v4328_v45 = vsel %vm628_vm1, %v8137_v8, 0.0  ;;  %v3247_v12 = vadd.f32 %v10321_v22, %v7736_v32 }
 0x1bc   : > { %v8143_v20 = vpop.eup %8142  ;;  %v4327_v13 = vadd.f32 %v4326_v21, %v4325_v40  ;;  %8162 = vtanh.f32 %v2282_v25  ;;  %v7451_v36 = vpop.f32.mrb[84].mxu0  ;;  %v4712_v55 = vsel %vm628_vm1, %v8141_v56, 0.0  ;;  %v3242_v40 = vadd.f32 %v10321_v22, %v3241_v46 }
 0x1bd   : > { %v8145_v38 = vpop.eup %8144  ;;  %v2297_v44 = vadd.f32 %v10321_v22, %v7451_v36  ;;  %v2291_v35 = vpop.f32.mrb[85].mxu0  ;;  %7609 = vmatmul.mubr.msk.f32.gmra.mrb[190].mxu0 %vm628_vm1, %v420_v7  ;;  %v4713_v63 = vadd.f32 %v4712_v55, %v4711_v6  ;;  %8164 = vtanh.f32 %v3222_v41  ;;  %7897 = vmatmul.mubr.msk.f32.gmra.mrb[190].mxu1 %vm628_vm1, %v612_v51  ;;  %v4718_v6 = vsel %vm628_vm1, %v8143_v20, 0.0 }
 0x1be   : > { %v7739_v34 = vpop.f32.mrb[84].mxu1  ;;  %v8147_v52 = vpop.eup %8146  ;;  %v4329_v4 = vadd.f32 %v4328_v45, %v4327_v13  ;;  %v2292_v8 = vadd.f32 %v10321_v22, %v2291_v35  ;;  %8166 = vtanh.f32 %v3237_v31  ;;  %v4332_v32 = vsel %vm628_vm1, %v8145_v38, 0.0 }
 0x1bf   : > { %v3251_v25 = vpop.f32.mrb[85].mxu1  ;;  %v8149_v56 = vpop.eup %8148  ;;  %v4330_v21 = vsel %vm628_vm1, %v8147_v52, 0.0  ;;  %8168 = vtanh.f32 %v2297_v44  ;;  %v4715_v7 = vadd.f32 %v4714_v47, %v4713_v63  ;;  %v3257_v52 = vadd.f32 %v10321_v22, %v7739_v34 }
 0x1c0   : > { %v8151_v41 = vpop.eup %8150  ;;  %v4331_v36 = vadd.f32 %v4330_v21, %v4329_v4  ;;  %8170 = vtanh.f32 %v2292_v8  ;;  %v7454_v45 = vpop.f32.mrb[86].mxu0  ;;  %v4716_v31 = vsel %vm628_vm1, %v8149_v56, 0.0  ;;  %v3252_v4 = vadd.f32 %v10321_v22, %v3251_v25 }
 0x1c1   : > { %v8153_v13 = vpop.eup %8152  ;;  %v2307_v46 = vadd.f32 %v10321_v22, %v7454_v45  ;;  %v2301_v55 = vpop.f32.mrb[87].mxu0  ;;  %v4717_v51 = vadd.f32 %v4716_v31, %v4715_v7  ;;  %8172 = vtanh.f32 %v3232_v14  ;;  %v4722_v21 = vsel %vm628_vm1, %v8151_v41, 0.0 }
 0x1c2   : > { %v7742_v44 = vpop.f32.mrb[86].mxu1  ;;  %v8155_v47 = vpop.eup %8154  ;;  %v4333_v35 = vadd.f32 %v4332_v32, %v4331_v36  ;;  %v2302_v20 = vadd.f32 %v10321_v22, %v2301_v55  ;;  %8174 = vtanh.f32 %v3247_v12  ;;  %v4336_v14 = vsel %vm628_vm1, %v8153_v13, 0.0 }
 0x1c3   : > { %v3261_v38 = vpop.f32.mrb[87].mxu1  ;;  %v8157_v63 = vpop.eup %8156  ;;  %v4334_v8 = vsel %vm628_vm1, %v8155_v47, 0.0  ;;  %8176 = vtanh.f32 %v2307_v46  ;;  %v4719_v56 = vadd.f32 %v4718_v6, %v4717_v51  ;;  %v10767_v6 = vld [vmem:[%s15023_s2] ss:$0 sm:$0xff] }
 0x1c4   : > { %v8159_v7 = vpop.eup %8158  ;;  %v4335_v34 = vadd.f32 %v4334_v8, %v4333_v35  ;;  %8178 = vtanh.f32 %v2302_v20  ;;  %v7457_v45 = vpop.f32.mrb[88].mxu0  ;;  %v4720_v32 = vsel %vm628_vm1, %v8157_v63, 0.0  ;;  %v3267_v41 = vadd.f32 %v10767_v6, %v7742_v44 }
 0x1c5   : > { %v8161_v36 = vpop.eup %8160  ;;  %v2317_v12 = vadd.f32 %v10321_v22, %v7457_v45  ;;  %v2311_v25 = vpop.f32.mrb[89].mxu0  ;;  %v4721_v31 = vadd.f32 %v4720_v32, %v4719_v56  ;;  %8180 = vtanh.f32 %v3242_v40  ;;  %v3262_v47 = vadd.f32 %v10767_v6, %v3261_v38 }
 0x1c6   : > { %v7745_v46 = vpop.f32.mrb[88].mxu1  ;;  %v8163_v13 = vpop.eup %8162  ;;  %v4337_v55 = vadd.f32 %v4336_v14, %v4335_v34  ;;  %v2312_v51 = vadd.f32 %v10767_v6, %v2311_v25  ;;  %8182 = vtanh.f32 %v3257_v52  ;;  %v4726_v63 = vsel %vm628_vm1, %v8159_v7, 0.0 }
 0x1c7   : > { %v3271_v35 = vpop.f32.mrb[89].mxu1  ;;  %v8165_v22 = vpop.eup %8164  ;;  %v4338_v20 = vsel %vm628_vm1, %v8163_v13, 0.0  ;;  %8184 = vtanh.f32 %v2317_v12  ;;  %v4723_v40 = vadd.f32 %v4722_v21, %v4721_v31  ;;  %v4340_v56 = vsel %vm628_vm1, %v8161_v36, 0.0 }
 0x1c8   : > { %v8167_v8 = vpop.eup %8166  ;;  %v4339_v44 = vadd.f32 %v4338_v20, %v4337_v55  ;;  %8186 = vtanh.f32 %v2312_v51  ;;  %v7460_v45 = vpop.f32.mrb[90].mxu0  ;;  %v4724_v14 = vsel %vm628_vm1, %v8165_v22, 0.0  ;;  %v3277_v25 = vadd.f32 %v10767_v6, %v7745_v46 }
 0x1c9   : > { %v8169_v34 = vpop.eup %8168  ;;  %v2327_v52 = vadd.f32 %v10767_v6, %v7460_v45  ;;  %v2321_v38 = vpop.f32.mrb[91].mxu0  ;;  %v4725_v32 = vadd.f32 %v4724_v14, %v4723_v40  ;;  %8188 = vtanh.f32 %v3252_v4  ;;  %v3272_v36 = vadd.f32 %v10767_v6, %v3271_v35 }
 0x1ca   : > { %v7748_v12 = vpop.f32.mrb[90].mxu1  ;;  %v8171_v21 = vpop.eup %8170  ;;  %v4341_v31 = vadd.f32 %v4340_v56, %v4339_v44  ;;  %v2322_v7 = vadd.f32 %v10767_v6, %v2321_v38  ;;  %8190 = vtanh.f32 %v3267_v41  ;;  %v4730_v20 = vsel %vm628_vm1, %v8167_v8, 0.0 }
 0x1cb   : > { %v3281_v13 = vpop.f32.mrb[91].mxu1  ;;  %v8173_v55 = vpop.eup %8172  ;;  %v4342_v51 = vsel %vm628_vm1, %v8171_v21, 0.0  ;;  %8192 = vtanh.f32 %v2327_v52  ;;  %v4727_v22 = vadd.f32 %v4726_v63, %v4725_v32  ;;  %v4344_v4 = vsel %vm628_vm1, %v8169_v34, 0.0 }
 0x1cc   : > { %v8175_v40 = vpop.eup %8174  ;;  %v4343_v46 = vadd.f32 %v4342_v51, %v4341_v31  ;;  %8194 = vtanh.f32 %v2322_v7  ;;  %v7463_v45 = vpop.f32.mrb[92].mxu0  ;;  %v4728_v56 = vsel %vm628_vm1, %v8173_v55, 0.0  ;;  %v3287_v38 = vadd.f32 %v10767_v6, %v7748_v12 }
 0x1cd   : > { %v8177_v44 = vpop.eup %8176  ;;  %v2337_v41 = vadd.f32 %v10767_v6, %v7463_v45  ;;  %v2331_v35 = vpop.f32.mrb[93].mxu0  ;;  %v4729_v14 = vadd.f32 %v4728_v56, %v4727_v22  ;;  %8196 = vtanh.f32 %v3262_v47  ;;  %v3282_v34 = vadd.f32 %v10767_v6, %v3281_v13 }
 0x1ce   : > { %v7751_v52 = vpop.f32.mrb[92].mxu1  ;;  %v8179_v63 = vpop.eup %8178  ;;  %v4345_v32 = vadd.f32 %v4344_v4, %v4343_v46  ;;  %v2332_v8 = vadd.f32 %v10767_v6, %v2331_v35  ;;  %8198 = vtanh.f32 %v3277_v25  ;;  %v4734_v51 = vsel %vm628_vm1, %v8175_v40, 0.0 }
 0x1cf   : > { %v3291_v21 = vpop.f32.mrb[93].mxu1  ;;  %v8181_v31 = vpop.eup %8180  ;;  %v4346_v7 = vsel %vm628_vm1, %v8179_v63, 0.0  ;;  %8200 = vtanh.f32 %v2337_v41  ;;  %v4731_v55 = vadd.f32 %v4730_v20, %v4729_v14  ;;  %v4348_v47 = vsel %vm628_vm1, %v8177_v44, 0.0 }
 0x1d0   : > { %v8183_v22 = vpop.eup %8182  ;;  %v4347_v12 = vadd.f32 %v4346_v7, %v4345_v32  ;;  %8202 = vtanh.f32 %v2332_v8  ;;  %v7466_v45 = vpop.f32.mrb[94].mxu0  ;;  %v4732_v4 = vsel %vm628_vm1, %v8181_v31, 0.0  ;;  %v3297_v35 = vadd.f32 %v10767_v6, %v7751_v52 }
 0x1d1   : > { %v8185_v46 = vpop.eup %8184  ;;  %v2347_v25 = vadd.f32 %v10767_v6, %v7466_v45  ;;  %v2341_v13 = vpop.f32.mrb[95].mxu0  ;;  %v4733_v56 = vadd.f32 %v4732_v4, %v4731_v55  ;;  %8204 = vtanh.f32 %v3272_v36  ;;  %v3292_v44 = vadd.f32 %v10767_v6, %v3291_v21 }
 0x1d2   : > { %v7754_v41 = vpop.f32.mrb[94].mxu1  ;;  %v8187_v20 = vpop.eup %8186  ;;  %v4349_v14 = vadd.f32 %v4348_v47, %v4347_v12  ;;  %v2342_v40 = vadd.f32 %v10767_v6, %v2341_v13  ;;  %8206 = vtanh.f32 %v3287_v38  ;;  %v4738_v7 = vsel %vm628_vm1, %v8183_v22, 0.0 }
 0x1d3   : > { %v3301_v63 = vpop.f32.mrb[95].mxu1  ;;  %v8189_v32 = vpop.eup %8188  ;;  %v4350_v8 = vsel %vm628_vm1, %v8187_v20, 0.0  ;;  %8208 = vtanh.f32 %v2347_v25  ;;  %v4735_v31 = vadd.f32 %v4734_v51, %v4733_v56  ;;  %v4352_v36 = vsel %vm628_vm1, %v8185_v46, 0.0 }
 0x1d4   : > { %v8191_v55 = vpop.eup %8190  ;;  %v4351_v52 = vadd.f32 %v4350_v8, %v4349_v14  ;;  %8210 = vtanh.f32 %v2342_v40  ;;  %v7469_v45 = vpop.f32.mrb[96].mxu0  ;;  %v4736_v47 = vsel %vm628_vm1, %v8189_v32, 0.0  ;;  %v3307_v13 = vadd.f32 %v10767_v6, %v7754_v41 }
 0x1d5   : > { %v8193_v12 = vpop.eup %8192  ;;  %v2357_v38 = vadd.f32 %v10767_v6, %v7469_v45  ;;  %v2351_v21 = vpop.f32.mrb[97].mxu0  ;;  %v4737_v4 = vadd.f32 %v4736_v47, %v4735_v31  ;;  %8212 = vtanh.f32 %v3282_v34  ;;  %v3302_v46 = vadd.f32 %v10767_v6, %v3301_v63 }
 0x1d6   : > { %v7757_v25 = vpop.f32.mrb[96].mxu1  ;;  %v8195_v51 = vpop.eup %8194  ;;  %v4353_v56 = vadd.f32 %v4352_v36, %v4351_v52  ;;  %v2352_v22 = vadd.f32 %v10767_v6, %v2351_v21  ;;  %8214 = vtanh.f32 %v3297_v35  ;;  %v4742_v8 = vsel %vm628_vm1, %v8191_v55, 0.0 }
 0x1d7   : > { %v3311_v20 = vpop.f32.mrb[97].mxu1  ;;  %v8197_v14 = vpop.eup %8196  ;;  %v4354_v40 = vsel %vm628_vm1, %v8195_v51, 0.0  ;;  %8216 = vtanh.f32 %v2357_v38  ;;  %v4739_v32 = vadd.f32 %v4738_v7, %v4737_v4  ;;  %v4356_v34 = vsel %vm628_vm1, %v8193_v12, 0.0 }
 0x1d8   : > { %v8199_v31 = vpop.eup %8198  ;;  %v4355_v41 = vadd.f32 %v4354_v40, %v4353_v56  ;;  %8218 = vtanh.f32 %v2352_v22  ;;  %v7472_v45 = vpop.f32.mrb[98].mxu0  ;;  %v4740_v36 = vsel %vm628_vm1, %v8197_v14, 0.0  ;;  %v3317_v21 = vadd.f32 %v10767_v6, %v7757_v25 }
 0x1d9   : > { %v8201_v52 = vpop.eup %8200  ;;  %v2367_v35 = vadd.f32 %v10767_v6, %v7472_v45  ;;  %v2361_v63 = vpop.f32.mrb[99].mxu0  ;;  %v4741_v47 = vadd.f32 %v4740_v36, %v4739_v32  ;;  %8220 = vtanh.f32 %v3292_v44  ;;  %v3312_v12 = vadd.f32 %v10767_v6, %v3311_v20 }
 0x1da   : > { %v7760_v38 = vpop.f32.mrb[98].mxu1  ;;  %v8203_v7 = vpop.eup %8202  ;;  %v4357_v4 = vadd.f32 %v4356_v34, %v4355_v41  ;;  %v2362_v55 = vadd.f32 %v10767_v6, %v2361_v63  ;;  %8222 = vtanh.f32 %v3307_v13  ;;  %v4746_v40 = vsel %vm628_vm1, %v8199_v31, 0.0 }
 0x1db   : > { %v3321_v51 = vpop.f32.mrb[99].mxu1  ;;  %v8205_v56 = vpop.eup %8204  ;;  %v4358_v22 = vsel %vm628_vm1, %v8203_v7, 0.0  ;;  %8224 = vtanh.f32 %v2367_v35  ;;  %v4743_v14 = vadd.f32 %v4742_v8, %v4741_v47  ;;  %v4360_v44 = vsel %vm628_vm1, %v8201_v52, 0.0 }
 0x1dc   : > { %v8207_v32 = vpop.eup %8206  ;;  %v4359_v25 = vadd.f32 %v4358_v22, %v4357_v4  ;;  %8226 = vtanh.f32 %v2362_v55  ;;  %v7475_v45 = vpop.f32.mrb[100].mxu0  ;;  %v4744_v34 = vsel %vm628_vm1, %v8205_v56, 0.0  ;;  %v3327_v63 = vadd.f32 %v10767_v6, %v7760_v38 }
 0x1dd   : > { %v8209_v41 = vpop.eup %8208  ;;  %v2377_v13 = vadd.f32 %v10767_v6, %v7475_v45  ;;  %v2371_v20 = vpop.f32.mrb[101].mxu0  ;;  %v4745_v36 = vadd.f32 %v4744_v34, %v4743_v14  ;;  %8228 = vtanh.f32 %v3302_v46  ;;  %v3322_v52 = vadd.f32 %v10767_v6, %v3321_v51 }
 0x1de   : > { %v7763_v35 = vpop.f32.mrb[100].mxu1  ;;  %v8211_v8 = vpop.eup %8210  ;;  %v4361_v47 = vadd.f32 %v4360_v44, %v4359_v25  ;;  %v2372_v31 = vadd.f32 %v10767_v6, %v2371_v20  ;;  %8230 = vtanh.f32 %v3317_v21  ;;  %v4750_v22 = vsel %vm628_vm1, %v8207_v32, 0.0 }
 0x1df   : > { %v3331_v7 = vpop.f32.mrb[101].mxu1  ;;  %v8213_v4 = vpop.eup %8212  ;;  %v4362_v55 = vsel %vm628_vm1, %v8211_v8, 0.0  ;;  %8232 = vtanh.f32 %v2377_v13  ;;  %v4747_v56 = vadd.f32 %v4746_v40, %v4745_v36  ;;  %v4364_v46 = vsel %vm628_vm1, %v8209_v41, 0.0 }
 0x1e0   : > { %v8215_v14 = vpop.eup %8214  ;;  %v4363_v38 = vadd.f32 %v4362_v55, %v4361_v47  ;;  %8234 = vtanh.f32 %v2372_v31  ;;  %v7478_v45 = vpop.f32.mrb[102].mxu0  ;;  %v4748_v44 = vsel %vm628_vm1, %v8213_v4, 0.0  ;;  %v3337_v20 = vadd.f32 %v10767_v6, %v7763_v35 }
 0x1e1   : > { %v8217_v25 = vpop.eup %8216  ;;  %v2387_v21 = vadd.f32 %v10767_v6, %v7478_v45  ;;  %v2381_v51 = vpop.f32.mrb[103].mxu0  ;;  %v4749_v34 = vadd.f32 %v4748_v44, %v4747_v56  ;;  %8236 = vtanh.f32 %v3312_v12  ;;  %v3332_v41 = vadd.f32 %v10767_v6, %v3331_v7 }
 0x1e2   : > { %v7766_v13 = vpop.f32.mrb[102].mxu1  ;;  %v8219_v40 = vpop.eup %8218  ;;  %v4365_v36 = vadd.f32 %v4364_v46, %v4363_v38  ;;  %v2382_v32 = vadd.f32 %v10767_v6, %v2381_v51  ;;  %8238 = vtanh.f32 %v3327_v63  ;;  %v4754_v55 = vsel %vm628_vm1, %v8215_v14, 0.0 }
 0x1e3   : > { %v3341_v8 = vpop.f32.mrb[103].mxu1  ;;  %v8221_v47 = vpop.eup %8220  ;;  %v4366_v31 = vsel %vm628_vm1, %v8219_v40, 0.0  ;;  %8240 = vtanh.f32 %v2387_v21  ;;  %v4751_v4 = vadd.f32 %v4750_v22, %v4749_v34  ;;  %v4368_v12 = vsel %vm628_vm1, %v8217_v25, 0.0 }
 0x1e4   : > { %v8223_v56 = vpop.eup %8222  ;;  %v4367_v35 = vadd.f32 %v4366_v31, %v4365_v36  ;;  %8242 = vtanh.f32 %v2382_v32  ;;  %v7481_v45 = vpop.f32.mrb[104].mxu0  ;;  %v4752_v46 = vsel %vm628_vm1, %v8221_v47, 0.0  ;;  %v3347_v51 = vadd.f32 %v10767_v6, %v7766_v13 }
 0x1e5   : > { %v8225_v38 = vpop.eup %8224  ;;  %v2397_v63 = vadd.f32 %v10767_v6, %v7481_v45  ;;  %v2391_v7 = vpop.f32.mrb[105].mxu0  ;;  %v4753_v44 = vadd.f32 %v4752_v46, %v4751_v4  ;;  %8244 = vtanh.f32 %v3322_v52  ;;  %v3342_v25 = vadd.f32 %v10767_v6, %v3341_v8 }
 0x1e6   : > { %v7769_v21 = vpop.f32.mrb[104].mxu1  ;;  %v8227_v22 = vpop.eup %8226  ;;  %v4369_v34 = vadd.f32 %v4368_v12, %v4367_v35  ;;  %v2392_v14 = vadd.f32 %v10767_v6, %v2391_v7  ;;  %8246 = vtanh.f32 %v3337_v20  ;;  %v4758_v31 = vsel %vm628_vm1, %v8223_v56, 0.0 }
 0x1e7   : > { %v3351_v40 = vpop.f32.mrb[105].mxu1  ;;  %v8229_v36 = vpop.eup %8228  ;;  %v4370_v32 = vsel %vm628_vm1, %v8227_v22, 0.0  ;;  %8248 = vtanh.f32 %v2397_v63  ;;  %v4755_v47 = vadd.f32 %v4754_v55, %v4753_v44  ;;  %v4372_v52 = vsel %vm628_vm1, %v8225_v38, 0.0 }
 0x1e8   : > { %v8231_v4 = vpop.eup %8230  ;;  %v4371_v13 = vadd.f32 %v4370_v32, %v4369_v34  ;;  %8250 = vtanh.f32 %v2392_v14  ;;  %v7484_v45 = vpop.f32.mrb[106].mxu0  ;;  %v4756_v12 = vsel %vm628_vm1, %v8229_v36, 0.0  ;;  %v3357_v7 = vadd.f32 %v10767_v6, %v7769_v21 }
 0x1e9   : > { %v8233_v35 = vpop.eup %8232  ;;  %v2407_v20 = vadd.f32 %v10767_v6, %v7484_v45  ;;  %v2401_v8 = vpop.f32.mrb[107].mxu0  ;;  %v4757_v46 = vadd.f32 %v4756_v12, %v4755_v47  ;;  %8252 = vtanh.f32 %v3332_v41  ;;  %v3352_v38 = vadd.f32 %v10767_v6, %v3351_v40 }
 0x1ea   : > { %v7772_v63 = vpop.f32.mrb[106].mxu1  ;;  %v8235_v55 = vpop.eup %8234  ;;  %v4373_v44 = vadd.f32 %v4372_v52, %v4371_v13  ;;  %v2402_v56 = vadd.f32 %v10767_v6, %v2401_v8  ;;  %8254 = vtanh.f32 %v3347_v51  ;;  %v4762_v32 = vsel %vm628_vm1, %v8231_v4, 0.0 }
 0x1eb   : > { %v3361_v22 = vpop.f32.mrb[107].mxu1  ;;  %v8237_v34 = vpop.eup %8236  ;;  %v4374_v14 = vsel %vm628_vm1, %v8235_v55, 0.0  ;;  %8256 = vtanh.f32 %v2407_v20  ;;  %v4759_v36 = vadd.f32 %v4758_v31, %v4757_v46  ;;  %v4376_v41 = vsel %vm628_vm1, %v8233_v35, 0.0 }
 0x1ec   : > { %v8239_v47 = vpop.eup %8238  ;;  %v4375_v21 = vadd.f32 %v4374_v14, %v4373_v44  ;;  %8258 = vtanh.f32 %v2402_v56  ;;  %v7487_v45 = vpop.f32.mrb[108].mxu0  ;;  %v4760_v52 = vsel %vm628_vm1, %v8237_v34, 0.0  ;;  %v3367_v8 = vadd.f32 %v10767_v6, %v7772_v63 }
 0x1ed   : > { %v8241_v13 = vpop.eup %8240  ;;  %v2417_v51 = vadd.f32 %v10767_v6, %v7487_v45  ;;  %v2411_v40 = vpop.f32.mrb[109].mxu0  ;;  %v4761_v12 = vadd.f32 %v4760_v52, %v4759_v36  ;;  %8260 = vtanh.f32 %v3342_v25  ;;  %v3362_v35 = vadd.f32 %v10767_v6, %v3361_v22 }
 0x1ee   : > { %v7775_v20 = vpop.f32.mrb[108].mxu1  ;;  %v8243_v31 = vpop.eup %8242  ;;  %v4377_v46 = vadd.f32 %v4376_v41, %v4375_v21  ;;  %v2412_v4 = vadd.f32 %v10767_v6, %v2411_v40  ;;  %8262 = vtanh.f32 %v3357_v7  ;;  %v4766_v14 = vsel %vm628_vm1, %v8239_v47, 0.0 }
 0x1ef   : > { %v3371_v55 = vpop.f32.mrb[109].mxu1  ;;  %v8245_v44 = vpop.eup %8244  ;;  %v4378_v56 = vsel %vm628_vm1, %v8243_v31, 0.0  ;;  %8264 = vtanh.f32 %v2417_v51  ;;  %v4763_v34 = vadd.f32 %v4762_v32, %v4761_v12  ;;  %v4380_v25 = vsel %vm628_vm1, %v8241_v13, 0.0 }
 0x1f0   : > { %v8247_v36 = vpop.eup %8246  ;;  %v4379_v63 = vadd.f32 %v4378_v56, %v4377_v46  ;;  %8266 = vtanh.f32 %v2412_v4  ;;  %v7490_v45 = vpop.f32.mrb[110].mxu0  ;;  %v4764_v41 = vsel %vm628_vm1, %v8245_v44, 0.0  ;;  %v3377_v40 = vadd.f32 %v10767_v6, %v7775_v20 }
 0x1f1   : > { %v8249_v21 = vpop.eup %8248  ;;  %v2427_v7 = vadd.f32 %v10767_v6, %v7490_v45  ;;  %v2421_v22 = vpop.f32.mrb[111].mxu0  ;;  %v4765_v52 = vadd.f32 %v4764_v41, %v4763_v34  ;;  %8268 = vtanh.f32 %v3352_v38  ;;  %v3372_v13 = vadd.f32 %v10767_v6, %v3371_v55 }
 0x1f2   : > { %v7778_v51 = vpop.f32.mrb[110].mxu1  ;;  %v8251_v32 = vpop.eup %8250  ;;  %v4381_v12 = vadd.f32 %v4380_v25, %v4379_v63  ;;  %v2422_v47 = vadd.f32 %v10767_v6, %v2421_v22  ;;  %8270 = vtanh.f32 %v3367_v8  ;;  %v4770_v56 = vsel %vm628_vm1, %v8247_v36, 0.0 }
 0x1f3   : > { %v3381_v31 = vpop.f32.mrb[111].mxu1  ;;  %v8253_v46 = vpop.eup %8252  ;;  %v4382_v4 = vsel %vm628_vm1, %v8251_v32, 0.0  ;;  %8272 = vtanh.f32 %v2427_v7  ;;  %v4767_v44 = vadd.f32 %v4766_v14, %v4765_v52  ;;  %v4384_v38 = vsel %vm628_vm1, %v8249_v21, 0.0 }
 0x1f4   : > { %v8255_v34 = vpop.eup %8254  ;;  %v4383_v20 = vadd.f32 %v4382_v4, %v4381_v12  ;;  %8274 = vtanh.f32 %v2422_v47  ;;  %v7493_v45 = vpop.f32.mrb[112].mxu0  ;;  %v4768_v25 = vsel %vm628_vm1, %v8253_v46, 0.0  ;;  %v3387_v22 = vadd.f32 %v10767_v6, %v7778_v51 }
 0x1f5   : > { %v8257_v63 = vpop.eup %8256  ;;  %v2437_v8 = vadd.f32 %v10767_v6, %v7493_v45  ;;  %v2431_v55 = vpop.f32.mrb[113].mxu0  ;;  %v4769_v41 = vadd.f32 %v4768_v25, %v4767_v44  ;;  %8276 = vtanh.f32 %v3362_v35  ;;  %v3382_v21 = vadd.f32 %v10767_v6, %v3381_v31 }
 0x1f6   : > { %v7781_v7 = vpop.f32.mrb[112].mxu1  ;;  %v8259_v14 = vpop.eup %8258  ;;  %v4385_v52 = vadd.f32 %v4384_v38, %v4383_v20  ;;  %v2432_v36 = vadd.f32 %v10767_v6, %v2431_v55  ;;  %8278 = vtanh.f32 %v3377_v40  ;;  %v4774_v4 = vsel %vm628_vm1, %v8255_v34, 0.0 }
 0x1f7   : > { %v3391_v32 = vpop.f32.mrb[113].mxu1  ;;  %v8261_v12 = vpop.eup %8260  ;;  %v4386_v47 = vsel %vm628_vm1, %v8259_v14, 0.0  ;;  %8280 = vtanh.f32 %v2437_v8  ;;  %v4771_v46 = vadd.f32 %v4770_v56, %v4769_v41  ;;  %v4388_v35 = vsel %vm628_vm1, %v8257_v63, 0.0 }
 0x1f8   : > { %v8263_v44 = vpop.eup %8262  ;;  %v4387_v51 = vadd.f32 %v4386_v47, %v4385_v52  ;;  %8282 = vtanh.f32 %v2432_v36  ;;  %v7496_v45 = vpop.f32.mrb[114].mxu0  ;;  %v4772_v38 = vsel %vm628_vm1, %v8261_v12, 0.0  ;;  %v3397_v55 = vadd.f32 %v10767_v6, %v7781_v7 }
 0x1f9   : > { %v8265_v20 = vpop.eup %8264  ;;  %v2447_v40 = vadd.f32 %v10767_v6, %v7496_v45  ;;  %v2441_v31 = vpop.f32.mrb[115].mxu0  ;;  %v4773_v25 = vadd.f32 %v4772_v38, %v4771_v46  ;;  %8284 = vtanh.f32 %v3372_v13  ;;  %v3392_v63 = vadd.f32 %v10767_v6, %v3391_v32 }
 0x1fa   : > { %v7784_v8 = vpop.f32.mrb[114].mxu1  ;;  %v8267_v56 = vpop.eup %8266  ;;  %v4389_v41 = vadd.f32 %v4388_v35, %v4387_v51  ;;  %v2442_v34 = vadd.f32 %v10767_v6, %v2441_v31  ;;  %8286 = vtanh.f32 %v3387_v22  ;;  %v4778_v47 = vsel %vm628_vm1, %v8263_v44, 0.0 }
 0x1fb   : > { %v3401_v14 = vpop.f32.mrb[115].mxu1  ;;  %v8269_v52 = vpop.eup %8268  ;;  %v4390_v36 = vsel %vm628_vm1, %v8267_v56, 0.0  ;;  %8288 = vtanh.f32 %v2447_v40  ;;  %v4775_v12 = vadd.f32 %v4774_v4, %v4773_v25  ;;  %v4392_v13 = vsel %vm628_vm1, %v8265_v20, 0.0 }
 0x1fc   : > { %v8271_v46 = vpop.eup %8270  ;;  %v4391_v7 = vadd.f32 %v4390_v36, %v4389_v41  ;;  %8290 = vtanh.f32 %v2442_v34  ;;  %v7499_v45 = vpop.f32.mrb[116].mxu0  ;;  %v4776_v35 = vsel %vm628_vm1, %v8269_v52, 0.0  ;;  %v3407_v31 = vadd.f32 %v10767_v6, %v7784_v8 }
 0x1fd   : > { %v8273_v51 = vpop.eup %8272  ;;  %v2457_v22 = vadd.f32 %v10767_v6, %v7499_v45  ;;  %v2451_v32 = vpop.f32.mrb[117].mxu0  ;;  %v4777_v38 = vadd.f32 %v4776_v35, %v4775_v12  ;;  %8292 = vtanh.f32 %v3382_v21  ;;  %v3402_v20 = vadd.f32 %v10767_v6, %v3401_v14 }
 0x1fe   : > { %v7787_v40 = vpop.f32.mrb[116].mxu1  ;;  %v8275_v4 = vpop.eup %8274  ;;  %v4393_v25 = vadd.f32 %v4392_v13, %v4391_v7  ;;  %v2452_v44 = vadd.f32 %v10767_v6, %v2451_v32  ;;  %8294 = vtanh.f32 %v3397_v55  ;;  %v4782_v36 = vsel %vm628_vm1, %v8271_v46, 0.0 }
 0x1ff   : > { %v3411_v56 = vpop.f32.mrb[117].mxu1  ;;  %v8277_v41 = vpop.eup %8276  ;;  %v4394_v34 = vsel %vm628_vm1, %v8275_v4, 0.0  ;;  %8296 = vtanh.f32 %v2457_v22  ;;  %v4779_v52 = vadd.f32 %v4778_v47, %v4777_v38  ;;  %v4396_v21 = vsel %vm628_vm1, %v8273_v51, 0.0 }
 0x200   : > { %v8279_v12 = vpop.eup %8278  ;;  %v4395_v8 = vadd.f32 %v4394_v34, %v4393_v25  ;;  %8298 = vtanh.f32 %v2452_v44  ;;  %v7502_v45 = vpop.f32.mrb[118].mxu0  ;;  %v4780_v13 = vsel %vm628_vm1, %v8277_v41, 0.0  ;;  %v3417_v32 = vadd.f32 %v10767_v6, %v7787_v40 }
 0x201   : > { %v8281_v7 = vpop.eup %8280  ;;  %v2467_v55 = vadd.f32 %v10767_v6, %v7502_v45  ;;  %v2461_v14 = vpop.f32.mrb[119].mxu0  ;;  %v4781_v35 = vadd.f32 %v4780_v13, %v4779_v52  ;;  %8300 = vtanh.f32 %v3392_v63  ;;  %v3412_v51 = vadd.f32 %v10767_v6, %v3411_v56 }
 0x202   : > { %v7790_v22 = vpop.f32.mrb[118].mxu1  ;;  %v8283_v47 = vpop.eup %8282  ;;  %v4397_v38 = vadd.f32 %v4396_v21, %v4395_v8  ;;  %v2462_v46 = vadd.f32 %v10767_v6, %v2461_v14  ;;  %8302 = vtanh.f32 %v3407_v31  ;;  %v4786_v34 = vsel %vm628_vm1, %v8279_v12, 0.0 }
 0x203   : > { %v3421_v4 = vpop.f32.mrb[119].mxu1  ;;  %v8285_v25 = vpop.eup %8284  ;;  %v4398_v44 = vsel %vm628_vm1, %v8283_v47, 0.0  ;;  %8304 = vtanh.f32 %v2467_v55  ;;  %v4783_v41 = vadd.f32 %v4782_v36, %v4781_v35  ;;  %v4400_v63 = vsel %vm628_vm1, %v8281_v7, 0.0 }
 0x204   : > { %v8287_v52 = vpop.eup %8286  ;;  %v4399_v40 = vadd.f32 %v4398_v44, %v4397_v38  ;;  %8306 = vtanh.f32 %v2462_v46  ;;  %v7505_v45 = vpop.f32.mrb[120].mxu0  ;;  %v4784_v21 = vsel %vm628_vm1, %v8285_v25, 0.0  ;;  %v3427_v14 = vadd.f32 %v10767_v6, %v7790_v22 }
 0x205   : > { %v8289_v8 = vpop.eup %8288  ;;  %v2477_v31 = vadd.f32 %v10767_v6, %v7505_v45  ;;  %v2471_v56 = vpop.f32.mrb[121].mxu0  ;;  %v4785_v13 = vadd.f32 %v4784_v21, %v4783_v41  ;;  %8308 = vtanh.f32 %v3402_v20  ;;  %v3422_v7 = vadd.f32 %v10767_v6, %v3421_v4 }
 0x206   : > { %v7793_v55 = vpop.f32.mrb[120].mxu1  ;;  %v8291_v36 = vpop.eup %8290  ;;  %v4401_v35 = vadd.f32 %v4400_v63, %v4399_v40  ;;  %v2472_v12 = vadd.f32 %v10767_v6, %v2471_v56  ;;  %8310 = vtanh.f32 %v3417_v32  ;;  %v4790_v44 = vsel %vm628_vm1, %v8287_v52, 0.0 }
 0x207   : > { %v3431_v47 = vpop.f32.mrb[121].mxu1  ;;  %v8293_v38 = vpop.eup %8292  ;;  %v4402_v46 = vsel %vm628_vm1, %v8291_v36, 0.0  ;;  %8312 = vtanh.f32 %v2477_v31  ;;  %v4787_v25 = vadd.f32 %v4786_v34, %v4785_v13  ;;  %v4404_v20 = vsel %vm628_vm1, %v8289_v8, 0.0 }
 0x208   : > { %v8295_v41 = vpop.eup %8294  ;;  %v4403_v22 = vadd.f32 %v4402_v46, %v4401_v35  ;;  %8314 = vtanh.f32 %v2472_v12  ;;  %v7508_v45 = vpop.f32.mrb[122].mxu0  ;;  %v4788_v63 = vsel %vm628_vm1, %v8293_v38, 0.0  ;;  %v3437_v56 = vadd.f32 %v10767_v6, %v7793_v55 }
 0x209   : > { %v8297_v40 = vpop.eup %8296  ;;  %v2487_v32 = vadd.f32 %v10767_v6, %v7508_v45  ;;  %v2481_v4 = vpop.f32.mrb[123].mxu0  ;;  %v4789_v21 = vadd.f32 %v4788_v63, %v4787_v25  ;;  %8316 = vtanh.f32 %v3412_v51  ;;  %v3432_v8 = vadd.f32 %v10767_v6, %v3431_v47 }
 0x20a   : > { %v7796_v31 = vpop.f32.mrb[122].mxu1  ;;  %v8299_v34 = vpop.eup %8298  ;;  %v4405_v13 = vadd.f32 %v4404_v20, %v4403_v22  ;;  %v2482_v52 = vadd.f32 %v10767_v6, %v2481_v4  ;;  %8318 = vtanh.f32 %v3427_v14  ;;  %v4794_v46 = vsel %vm628_vm1, %v8295_v41, 0.0 }
 0x20b   : > { %v3441_v36 = vpop.f32.mrb[123].mxu1  ;;  %v8301_v35 = vpop.eup %8300  ;;  %v4406_v12 = vsel %vm628_vm1, %v8299_v34, 0.0  ;;  %8320 = vtanh.f32 %v2487_v32  ;;  %v4791_v38 = vadd.f32 %v4790_v44, %v4789_v21  ;;  %v4408_v51 = vsel %vm628_vm1, %v8297_v40, 0.0 }
 0x20c   : > { %v8303_v25 = vpop.eup %8302  ;;  %v4407_v55 = vadd.f32 %v4406_v12, %v4405_v13  ;;  %8322 = vtanh.f32 %v2482_v52  ;;  %v7511_v45 = vpop.f32.mrb[124].mxu0  ;;  %v4792_v20 = vsel %vm628_vm1, %v8301_v35, 0.0  ;;  %v3447_v4 = vadd.f32 %v10767_v6, %v7796_v31 }
 0x20d   : > { %v8305_v22 = vpop.eup %8304  ;;  %v2497_v14 = vadd.f32 %v10767_v6, %v7511_v45  ;;  %v2491_v47 = vpop.f32.mrb[125].mxu0  ;;  %v4793_v63 = vadd.f32 %v4792_v20, %v4791_v38  ;;  %8324 = vtanh.f32 %v3422_v7  ;;  %v3442_v40 = vadd.f32 %v10767_v6, %v3441_v36 }
 0x20e   : > { %v7799_v32 = vpop.f32.mrb[124].mxu1  ;;  %v8307_v44 = vpop.eup %8306  ;;  %v4409_v21 = vadd.f32 %v4408_v51, %v4407_v55  ;;  %v2492_v41 = vadd.f32 %v10767_v6, %v2491_v47  ;;  %8326 = vtanh.f32 %v3437_v56  ;;  %v4798_v12 = vsel %vm628_vm1, %v8303_v25, 0.0 }
 0x20f   : > { %v3451_v34 = vpop.f32.mrb[125].mxu1  ;;  %v8309_v13 = vpop.eup %8308  ;;  %v4410_v52 = vsel %vm628_vm1, %v8307_v44, 0.0  ;;  %8328 = vtanh.f32 %v2497_v14  ;;  %v4795_v35 = vadd.f32 %v4794_v46, %v4793_v63  ;;  %v4412_v7 = vsel %vm628_vm1, %v8305_v22, 0.0 }
 0x210   : > { %v8311_v38 = vpop.eup %8310  ;;  %v4411_v31 = vadd.f32 %v4410_v52, %v4409_v21  ;;  %8330 = vtanh.f32 %v2492_v41  ;;  %v7514_v45 = vpop.f32.mrb[126].mxu0  ;;  %v4796_v51 = vsel %vm628_vm1, %v8309_v13, 0.0  ;;  %v3457_v47 = vadd.f32 %v10767_v6, %v7799_v32 }
 0x211   : > { %v8313_v55 = vpop.eup %8312  ;;  %v2507_v56 = vadd.f32 %v10767_v6, %v7514_v45  ;;  %v2501_v36 = vpop.f32.mrb[127].mxu0  ;;  %v4797_v20 = vadd.f32 %v4796_v51, %v4795_v35  ;;  %8332 = vtanh.f32 %v3432_v8  ;;  %v3452_v22 = vadd.f32 %v10767_v6, %v3451_v34 }
 0x212   : > { %v7802_v14 = vpop.f32.mrb[126].mxu1  ;;  %v8315_v46 = vpop.eup %8314  ;;  %v4413_v63 = vadd.f32 %v4412_v7, %v4411_v31  ;;  %v2502_v25 = vadd.f32 %v10767_v6, %v2501_v36  ;;  %8334 = vtanh.f32 %v3447_v4  ;;  %v4802_v52 = vsel %vm628_vm1, %v8311_v38, 0.0 }
 0x213   : > { %v3461_v44 = vpop.f32.mrb[127].mxu1  ;;  %v8317_v21 = vpop.eup %8316  ;;  %v4414_v41 = vsel %vm628_vm1, %v8315_v46, 0.0  ;;  %8336 = vtanh.f32 %v2507_v56  ;;  %v4799_v13 = vadd.f32 %v4798_v12, %v4797_v20  ;;  %v4416_v8 = vsel %vm628_vm1, %v8313_v55, 0.0 }
 0x214   : > { %v8319_v35 = vpop.eup %8318  ;;  %v4415_v32 = vadd.f32 %v4414_v41, %v4413_v63  ;;  %8338 = vtanh.f32 %v2502_v25  ;;  %v7517_v45 = vpop.f32.mrb[128].mxu0  ;;  %v4800_v7 = vsel %vm628_vm1, %v8317_v21, 0.0  ;;  %v3467_v36 = vadd.f32 %v10767_v6, %v7802_v14 }
 0x215   : > { %v8321_v31 = vpop.eup %8320  ;;  %v2517_v4 = vadd.f32 %v10767_v6, %v7517_v45  ;;  %v2511_v34 = vpop.f32.mrb[129].mxu0  ;;  %v4801_v51 = vadd.f32 %v4800_v7, %v4799_v13  ;;  %8340 = vtanh.f32 %v3442_v40  ;;  %v3462_v55 = vadd.f32 %v10767_v6, %v3461_v44 }
 0x216   : > { %v7805_v56 = vpop.f32.mrb[128].mxu1  ;;  %v8323_v12 = vpop.eup %8322  ;;  %v4417_v20 = vadd.f32 %v4416_v8, %v4415_v32  ;;  %v2512_v38 = vadd.f32 %v10767_v6, %v2511_v34  ;;  %8342 = vtanh.f32 %v3457_v47  ;;  %v4806_v41 = vsel %vm628_vm1, %v8319_v35, 0.0 }
 0x217   : > { %v3471_v46 = vpop.f32.mrb[129].mxu1  ;;  %v8325_v63 = vpop.eup %8324  ;;  %v4418_v25 = vsel %vm628_vm1, %v8323_v12, 0.0  ;;  %8344 = vtanh.f32 %v2517_v4  ;;  %v4803_v21 = vadd.f32 %v4802_v52, %v4801_v51  ;;  %v4420_v40 = vsel %vm628_vm1, %v8321_v31, 0.0 }
 0x218   : > { %v8327_v13 = vpop.eup %8326  ;;  %v4419_v14 = vadd.f32 %v4418_v25, %v4417_v20  ;;  %8346 = vtanh.f32 %v2512_v38  ;;  %v7520_v45 = vpop.f32.mrb[130].mxu0  ;;  %v4804_v8 = vsel %vm628_vm1, %v8325_v63, 0.0  ;;  %v3477_v34 = vadd.f32 %v10767_v6, %v7805_v56 }
 0x219   : > { %v8329_v32 = vpop.eup %8328  ;;  %v2527_v47 = vadd.f32 %v10767_v6, %v7520_v45  ;;  %v2521_v44 = vpop.f32.mrb[131].mxu0  ;;  %v4805_v7 = vadd.f32 %v4804_v8, %v4803_v21  ;;  %8348 = vtanh.f32 %v3452_v22  ;;  %v3472_v31 = vadd.f32 %v10767_v6, %v3471_v46 }
 0x21a   : > { %v7808_v4 = vpop.f32.mrb[130].mxu1  ;;  %v8331_v52 = vpop.eup %8330  ;;  %v4421_v51 = vadd.f32 %v4420_v40, %v4419_v14  ;;  %v2522_v35 = vadd.f32 %v10767_v6, %v2521_v44  ;;  %8350 = vtanh.f32 %v3467_v36  ;;  %v4810_v25 = vsel %vm628_vm1, %v8327_v13, 0.0  ;;  %v10947_v6 = vld [vmem:[%s15023_s2] ss:$0 sm:$0xff] }
 0x21b   : > { %v3481_v12 = vpop.f32.mrb[131].mxu1  ;;  %v8333_v20 = vpop.eup %8332  ;;  %v4422_v38 = vsel %vm628_vm1, %v8331_v52, 0.0  ;;  %8352 = vtanh.f32 %v2527_v47  ;;  %v4807_v63 = vadd.f32 %v4806_v41, %v4805_v7  ;;  %v4424_v22 = vsel %vm628_vm1, %v8329_v32, 0.0 }
 0x21c   : > { %v8335_v21 = vpop.eup %8334  ;;  %v4423_v56 = vadd.f32 %v4422_v38, %v4421_v51  ;;  %8354 = vtanh.f32 %v2522_v35  ;;  %v7523_v45 = vpop.f32.mrb[132].mxu0  ;;  %v4808_v40 = vsel %vm628_vm1, %v8333_v20, 0.0  ;;  %v3487_v13 = vadd.f32 %v10947_v6, %v7808_v4 }
 0x21d   : > { %v8337_v14 = vpop.eup %8336  ;;  %v2537_v36 = vadd.f32 %v10947_v6, %v7523_v45  ;;  %v2531_v46 = vpop.f32.mrb[133].mxu0  ;;  %v4809_v41 = vadd.f32 %v4808_v40, %v4807_v63  ;;  %8356 = vtanh.f32 %v3462_v55  ;;  %v3482_v7 = vadd.f32 %v10947_v6, %v3481_v12 }
 0x21e   : > { %v7811_v8 = vpop.f32.mrb[132].mxu1  ;;  %v8339_v32 = vpop.eup %8338  ;;  %v4425_v47 = vadd.f32 %v4424_v22, %v4423_v56  ;;  %v2532_v44 = vadd.f32 %v10947_v6, %v2531_v46  ;;  %8358 = vtanh.f32 %v3477_v34  ;;  %v4814_v38 = vsel %vm628_vm1, %v8335_v21, 0.0 }
 0x21f   : > { %v3491_v52 = vpop.f32.mrb[133].mxu1  ;;  %v8341_v51 = vpop.eup %8340  ;;  %v4426_v35 = vsel %vm628_vm1, %v8339_v32, 0.0  ;;  %8360 = vtanh.f32 %v2537_v36  ;;  %v4811_v20 = vadd.f32 %v4810_v25, %v4809_v41  ;;  %v4428_v55 = vsel %vm628_vm1, %v8337_v14, 0.0 }
 0x220   : > { %v8343_v63 = vpop.eup %8342  ;;  %v4427_v4 = vadd.f32 %v4426_v35, %v4425_v47  ;;  %8362 = vtanh.f32 %v2532_v44  ;;  %v7526_v45 = vpop.f32.mrb[134].mxu0  ;;  %v4812_v22 = vsel %vm628_vm1, %v8341_v51, 0.0  ;;  %v3497_v46 = vadd.f32 %v10947_v6, %v7811_v8 }
 0x221   : > { %v8345_v56 = vpop.eup %8344  ;;  %v2547_v34 = vadd.f32 %v10947_v6, %v7526_v45  ;;  %v2541_v12 = vpop.f32.mrb[135].mxu0  ;;  %v4813_v40 = vadd.f32 %v4812_v22, %v4811_v20  ;;  %8364 = vtanh.f32 %v3472_v31  ;;  %v4818_v8 = vsel %vm628_vm1, %v8343_v63, 0.0 }
 0x222   : > { %v7814_v36 = vpop.f32.mrb[134].mxu1  ;;  %v8347_v25 = vpop.eup %8346  ;;  %v10959_v41 = vadd.f32 %v4428_v55, %v4427_v4  ;;  %v4437_v21 = vsel %vm628_vm1, %v8345_v56, 0.0  ;;  %v2542_v14 = vadd.f32 %v10947_v6, %v2541_v12  ;;  %8366 = vtanh.f32 %v3487_v13 }
 0x223   : > { %v3501_v32 = vpop.f32.mrb[135].mxu1  ;;  %v8349_v47 = vpop.eup %8348  ;;  %v4436_v44 = vsel %vm628_vm1, %v8347_v25, 0.0  ;;  %8368 = vtanh.f32 %v2547_v34  ;;  %v4815_v51 = vadd.f32 %v4814_v38, %v4813_v40  ;;  %v3492_v13 = vadd.f32 %v10947_v6, %v3491_v52 }
 0x224   : > { %15059 = vst [vmem:[#allocation34_spill] sm:$0xff] %v10959_v41  ;;  %v8351_v35 = vpop.eup %8350  ;;  %v4438_v20 = vadd.f32 %v4437_v21, %v4436_v44  ;;  %8370 = vtanh.f32 %v2542_v14  ;;  %v7529_v31 = vpop.f32.mrb[136].mxu0  ;;  %v4816_v55 = vsel %vm628_vm1, %v8349_v47, 0.0  ;;  %v2847_v38 = vadd.f32 %v10947_v6, %v9772_v54 }
 0x225   : > { %v8353_v4 = vpop.eup %8352  ;;  %v2557_v45 = vadd.f32 %v10947_v6, %v7529_v31  ;;  %v2551_v22 = vpop.f32.mrb[137].mxu0  ;;  %v4817_v56 = vadd.f32 %v4816_v55, %v4815_v51  ;;  %8372 = vtanh.f32 %v3482_v7  ;;  %v4822_v52 = vsel %vm628_vm1, %v8351_v35, 0.0 }
 0x226   : > { %v7817_v12 = vpop.f32.mrb[136].mxu1  ;;  %v8355_v25 = vpop.eup %8354  ;;  %v2552_v34 = vadd.f32 %v10947_v6, %v2551_v22  ;;  %8374 = vtanh.f32 %v3497_v46  ;;  %v4441_v54 = vsel %vm628_vm1, %v8353_v4, 0.0 }
 0x227   : > { %v10971_v40 = vpop.f32.mrb[137].mxu1  ;;  %v8357_v63 = vpop.eup %8356  ;;  %v4439_v21 = vsel %vm628_vm1, %v8355_v25, 0.0  ;;  %8376 = vtanh.f32 %v2557_v45  ;;  %v4819_v14 = vadd.f32 %v4818_v8, %v4817_v56  ;;  %v3507_v45 = vadd.f32 %v10947_v6, %v7814_v36 }
 0x228   : > { %v8359_v47 = vpop.eup %8358  ;;  %v4440_v44 = vadd.f32 %v4439_v21, %v4438_v20  ;;  %8378 = vtanh.f32 %v2552_v34  ;;  %v7532_v7 = vpop.f32.mrb[138].mxu0  ;;  %v4820_v51 = vsel %vm628_vm1, %v8357_v63, 0.0 }
 0x229   : > { %v8361_v31 = vpop.eup %8360  ;;  %v2567_v46 = vadd.f32 %v10947_v6, %v7532_v7  ;;  %v2561_v55 = vpop.f32.mrb[139].mxu0  ;;  %v4821_v22 = vadd.f32 %v4820_v51, %v4819_v14  ;;  %8380 = vtanh.f32 %v3492_v13  ;;  %v4826_v13 = vsel %vm628_vm1, %v8359_v47, 0.0 }
 0x22a   : > { %v7820_v41 = vpop.f32.mrb[138].mxu1  ;;  %v8363_v25 = vpop.eup %8362  ;;  %8382 = vtanh.f32 %v2847_v38  ;;  %v4442_v8 = vadd.f32 %v4441_v54, %v4440_v44  ;;  %v2562_v20 = vadd.f32 %v10947_v6, %v2561_v55  ;;  %v4445_v7 = vsel %vm628_vm1, %v8361_v31, 0.0 }
 0x22b   : > { %v10980_v56 = vpop.f32.mrb[139].mxu1  ;;  %v8365_v35 = vpop.eup %8364  ;;  %v4443_v34 = vsel %vm628_vm1, %v8363_v25, 0.0  ;;  %8384 = vtanh.f32 %v2567_v46  ;;  %v4823_v4 = vadd.f32 %v4822_v52, %v4821_v22  ;;  %v3502_v55 = vadd.f32 %v10947_v6, %v3501_v32 }
 0x22c   : > { %v8367_v63 = vpop.eup %8366  ;;  %v4444_v21 = vadd.f32 %v4443_v34, %v4442_v8  ;;  %8386 = vtanh.f32 %v2562_v20  ;;  %v7535_v14 = vpop.f32.mrb[140].mxu0  ;;  %v4824_v38 = vsel %vm628_vm1, %v8365_v35, 0.0  ;;  %v3517_v8 = vadd.f32 %v10947_v6, %v7817_v12 }
 0x22d   : > { %v8369_v44 = vpop.eup %8368  ;;  %v2577_v36 = vadd.f32 %v10947_v6, %v7535_v14  ;;  %v2571_v51 = vpop.f32.mrb[141].mxu0  ;;  %v4825_v54 = vadd.f32 %v4824_v38, %v4823_v4  ;;  %8388 = vtanh.f32 %v3507_v45  ;;  %v4830_v34 = vsel %vm628_vm1, %v8367_v63, 0.0 }
 0x22e   : > { %v7823_v25 = vpop.f32.mrb[140].mxu1  ;;  %v8371_v46 = vpop.eup %8370  ;;  %v4446_v52 = vadd.f32 %v4445_v7, %v4444_v21  ;;  %v2572_v22 = vadd.f32 %v10947_v6, %v2571_v51  ;;  %v4449_v4 = vsel %vm628_vm1, %v8369_v44, 0.0  ;;  %v3527_v44 = vadd.f32 %v10947_v6, %v7820_v41 }
 0x22f   : > { %v3531_v47 = vpop.f32.mrb[141].mxu1  ;;  %v8373_v20 = vpop.eup %8372  ;;  %v4447_v35 = vsel %vm628_vm1, %v8371_v46, 0.0  ;;  %8390 = vtanh.f32 %v2577_v36  ;;  %v4827_v31 = vadd.f32 %v4826_v13, %v4825_v54  ;;  %v3512_v36 = vadd.f32 %v10947_v6, %v10971_v40 }
 0x230   : > { %v8375_v14 = vpop.eup %8374  ;;  %v4448_v32 = vadd.f32 %v4447_v35, %v4446_v52  ;;  %8392 = vtanh.f32 %v2572_v22  ;;  %v7538_v38 = vpop.f32.mrb[142].mxu0  ;;  %v4828_v21 = vsel %vm628_vm1, %v8373_v20, 0.0 }
 0x231   : > { %v8377_v7 = vpop.eup %8376  ;;  %v2587_v45 = vadd.f32 %v10947_v6, %v7538_v38  ;;  %v2581_v12 = vpop.f32.mrb[143].mxu0  ;;  %v4829_v51 = vadd.f32 %v4828_v21, %v4827_v31  ;;  %8394 = vtanh.f32 %v3502_v55  ;;  %v4834_v35 = vsel %vm628_vm1, %v8375_v14, 0.0 }
 0x232   : > { %v7826_v13 = vpop.f32.mrb[142].mxu1  ;;  %v8379_v54 = vpop.eup %8378  ;;  %v4450_v63 = vadd.f32 %v4449_v4, %v4448_v32  ;;  %v2582_v46 = vadd.f32 %v10947_v6, %v2581_v12  ;;  %8396 = vtanh.f32 %v3517_v8  ;;  %v4453_v40 = vsel %vm628_vm1, %v8377_v7, 0.0 }
 0x233   : > { %v3541_v52 = vpop.f32.mrb[143].mxu1  ;;  %v8381_v22 = vpop.eup %8380  ;;  %v4451_v20 = vsel %vm628_vm1, %v8379_v54, 0.0  ;;  %8398 = vtanh.f32 %v2587_v45  ;;  %v4831_v31 = vadd.f32 %v4830_v34, %v4829_v51  ;;  %v3522_v45 = vadd.f32 %v10947_v6, %v10980_v56 }
 0x234   : > { %v11001_v55 = vpop.eup %8382  ;;  %v4452_v38 = vadd.f32 %v4451_v20, %v4450_v63  ;;  %8400 = vtanh.f32 %v2582_v46  ;;  %v7541_v4 = vpop.f32.mrb[144].mxu0  ;;  %v4832_v32 = vsel %vm628_vm1, %v8381_v22, 0.0  ;;  %v3537_v7 = vadd.f32 %v10947_v6, %v7823_v25 }
 0x235   : > { %v8385_v8 = vpop.eup %8384  ;;  %v2597_v41 = vadd.f32 %v10947_v6, %v7541_v4  ;;  %v2591_v21 = vpop.f32.mrb[145].mxu0  ;;  %v4833_v12 = vadd.f32 %v4832_v32, %v4831_v31  ;;  %8402 = vtanh.f32 %v3512_v36 }
 0x236   : > { %v7829_v14 = vpop.f32.mrb[144].mxu1  ;;  %v8387_v34 = vpop.eup %8386  ;;  %v4454_v51 = vadd.f32 %v4453_v40, %v4452_v38  ;;  %v2592_v54 = vadd.f32 %v10947_v6, %v2591_v21  ;;  %8404 = vtanh.f32 %v3527_v44  ;;  %v4457_v56 = vsel %vm628_vm1, %v8385_v8, 0.0 }
 0x237   : > { %v3551_v63 = vpop.f32.mrb[145].mxu1  ;;  %v4455_v46 = vsel %vm628_vm1, %v8387_v34, 0.0  ;;  %8406 = vtanh.f32 %v2597_v41  ;;  %v4835_v22 = vadd.f32 %v4834_v35, %v4833_v12  ;;  %v8389_v20 = vpop.eup %8388  ;;  %v3532_v44 = vadd.f32 %v10947_v6, %v3531_v47 }
 0x238   : > { %v4456_v4 = vadd.f32 %v4455_v46, %v4454_v51  ;;  %8408 = vtanh.f32 %v2592_v54  ;;  %v7544_v36 = vpop.f32.mrb[146].mxu0  ;;  %v7832_v38 = vpop.f32.mrb[146].mxu1  ;;  %v3547_v35 = vadd.f32 %v10947_v6, %v7826_v13  ;;  %v4838_v8 = vsel %vm628_vm1, %v8389_v20, 0.0 }
 0x239   : > { %v8391_v31 = vpop.eup %8390  ;;  %v2607_v32 = vadd.f32 %v10947_v6, %v7544_v36  ;;  %v2601_v40 = vpop.f32.mrb[147].mxu0  ;;  %8410 = vtanh.f32 %v3522_v45 }
 0x23a   : > { %v8393_v25 = vpop.eup %8392  ;;  %v4458_v21 = vadd.f32 %v4457_v56, %v4456_v4  ;;  %v2602_v34 = vadd.f32 %v10947_v6, %v2601_v40  ;;  %8412 = vtanh.f32 %v3537_v7  ;;  %v3561_v41 = vpop.f32.mrb[147].mxu1  ;;  %v3542_v4 = vadd.f32 %v10947_v6, %v3541_v52 }
 0x23b   : > { %v8395_v12 = vpop.eup %8394  ;;  %v4459_v51 = vsel %vm628_vm1, %v8393_v25, 0.0  ;;  %8414 = vtanh.f32 %v2607_v32  ;;  %v4461_v7 = vsel %vm628_vm1, %v8391_v31, 0.0  ;;  %v3552_v31 = vadd.f32 %v10947_v6, %v3551_v63 }
 0x23c   : > { %v8397_v54 = vpop.eup %8396  ;;  %v4460_v46 = vadd.f32 %v4459_v51, %v4458_v21  ;;  %8416 = vtanh.f32 %v2602_v34  ;;  %v7547_v45 = vpop.f32.mrb[148].mxu0  ;;  %v4836_v47 = vsel %vm628_vm1, %v8395_v12, 0.0  ;;  %v3557_v21 = vadd.f32 %v10947_v6, %v7829_v14 }
 0x23d   : > { %v8399_v36 = vpop.eup %8398  ;;  %v2617_v13 = vadd.f32 %v10947_v6, %v7547_v45  ;;  %v2611_v56 = vpop.f32.mrb[149].mxu0  ;;  %v4837_v40 = vadd.f32 %v4836_v47, %v4835_v22  ;;  %8418 = vtanh.f32 %v3532_v44  ;;  %v4842_v44 = vsel %vm628_vm1, %v8397_v54, 0.0 }
 0x23e   : > { %v7835_v25 = vpop.f32.mrb[148].mxu1  ;;  %v8401_v32 = vpop.eup %8400  ;;  %v4462_v15 = vadd.f32 %v4461_v7, %v4460_v46  ;;  %v2612_v20 = vadd.f32 %v10947_v6, %v2611_v56  ;;  %8420 = vtanh.f32 %v3547_v35  ;;  %v4465_v35 = vsel %vm628_vm1, %v8399_v36, 0.0 }
 0x23f   : > { %v3571_v34 = vpop.f32.mrb[149].mxu1  ;;  %v8403_v12 = vpop.eup %8402  ;;  %v4463_v52 = vsel %vm628_vm1, %v8401_v32, 0.0  ;;  %8422 = vtanh.f32 %v2617_v13  ;;  %v4839_v51 = vadd.f32 %v4838_v8, %v4837_v40  ;;  %v3562_v36 = vadd.f32 %v10947_v6, %v3561_v41 }
 0x240   : > { %v8405_v45 = vpop.eup %8404  ;;  %v4464_v29 = vadd.f32 %v4463_v52, %v4462_v15  ;;  %8424 = vtanh.f32 %v2612_v20  ;;  %v7550_v22 = vpop.f32.mrb[150].mxu0  ;;  %v4840_v46 = vsel %vm628_vm1, %v8403_v12, 0.0  ;;  %v3567_v15 = vadd.f32 %v10947_v6, %v7832_v38 }
 0x241   : > { %v8407_v47 = vpop.eup %8406  ;;  %v2627_v14 = vadd.f32 %v10947_v6, %v7550_v22  ;;  %v2621_v7 = vpop.f32.mrb[151].mxu0  ;;  %v4841_v56 = vadd.f32 %v4840_v46, %v4839_v51  ;;  %8426 = vtanh.f32 %v3542_v4  ;;  %v4846_v51 = vsel %vm628_vm1, %v8405_v45, 0.0 }
 0x242   : > { %v7838_v13 = vpop.f32.mrb[150].mxu1  ;;  %v8409_v8 = vpop.eup %8408  ;;  %v4466_v40 = vadd.f32 %v4465_v35, %v4464_v29  ;;  %v2622_v63 = vadd.f32 %v10947_v6, %v2621_v7  ;;  %8428 = vtanh.f32 %v3557_v21  ;;  %v4469_v21 = vsel %vm628_vm1, %v8407_v47, 0.0 }
 0x243   : > { %v3581_v32 = vpop.f32.mrb[151].mxu1  ;;  %v8411_v54 = vpop.eup %8410  ;;  %v4467_v20 = vsel %vm628_vm1, %v8409_v8, 0.0  ;;  %8430 = vtanh.f32 %v2627_v14  ;;  %v4843_v12 = vadd.f32 %v4842_v44, %v4841_v56  ;;  %v3577_v8 = vadd.f32 %v10947_v6, %v7835_v25 }
 0x244   : > { %v8413_v52 = vpop.eup %8412  ;;  %v4468_v22 = vadd.f32 %v4467_v20, %v4466_v40  ;;  %8432 = vtanh.f32 %v2622_v63  ;;  %v7553_v4 = vpop.f32.mrb[152].mxu0  ;;  %v4844_v29 = vsel %vm628_vm1, %v8411_v54, 0.0  ;;  %v3572_v47 = vadd.f32 %v10947_v6, %v3571_v34 }
 0x245   : > { %v8415_v46 = vpop.eup %8414  ;;  %v2637_v38 = vadd.f32 %v10947_v6, %v7553_v4  ;;  %v2631_v35 = vpop.f32.mrb[153].mxu0  ;;  %v4845_v7 = vadd.f32 %v4844_v29, %v4843_v12  ;;  %8434 = vtanh.f32 %v3552_v31  ;;  %v4850_v12 = vsel %vm628_vm1, %v8413_v52, 0.0 }
 0x246   : > { %v7841_v14 = vpop.f32.mrb[152].mxu1  ;;  %v8417_v44 = vpop.eup %8416  ;;  %v4470_v56 = vadd.f32 %v4469_v21, %v4468_v22  ;;  %v2632_v41 = vadd.f32 %v10947_v6, %v2631_v35  ;;  %8436 = vtanh.f32 %v3567_v15  ;;  %v4473_v15 = vsel %vm628_vm1, %v8415_v46, 0.0 }
 0x247   : > { %v3591_v40 = vpop.f32.mrb[153].mxu1  ;;  %v8419_v45 = vpop.eup %8418  ;;  %v4471_v63 = vsel %vm628_vm1, %v8417_v44, 0.0  ;;  %8438 = vtanh.f32 %v2637_v38  ;;  %v4847_v54 = vadd.f32 %v4846_v51, %v4845_v7  ;;  %v3587_v44 = vadd.f32 %v10947_v6, %v7838_v13 }
 0x248   : > { %v8421_v20 = vpop.eup %8420  ;;  %v4472_v4 = vadd.f32 %v4471_v63, %v4470_v56  ;;  %8440 = vtanh.f32 %v2632_v41  ;;  %v7556_v31 = vpop.f32.mrb[154].mxu0  ;;  %v4848_v22 = vsel %vm628_vm1, %v8419_v45, 0.0  ;;  %v3582_v46 = vadd.f32 %v10947_v6, %v3581_v32 }
 0x249   : > { %v8423_v29 = vpop.eup %8422  ;;  %v2647_v25 = vadd.f32 %v10947_v6, %v7556_v31  ;;  %v2641_v21 = vpop.f32.mrb[155].mxu0  ;;  %v4849_v35 = vadd.f32 %v4848_v22, %v4847_v54  ;;  %8442 = vtanh.f32 %v3562_v36  ;;  %v4854_v54 = vsel %vm628_vm1, %v8421_v20, 0.0 }
 0x24a   : > { %v7844_v38 = vpop.f32.mrb[154].mxu1  ;;  %v8425_v51 = vpop.eup %8424  ;;  %v4474_v7 = vadd.f32 %v4473_v15, %v4472_v4  ;;  %v2642_v34 = vadd.f32 %v10947_v6, %v2641_v21  ;;  %8444 = vtanh.f32 %v3577_v8  ;;  %v4477_v8 = vsel %vm628_vm1, %v8423_v29, 0.0 }
 0x24b   : > { %v3601_v56 = vpop.f32.mrb[155].mxu1  ;;  %v8427_v52 = vpop.eup %8426  ;;  %v4475_v41 = vsel %vm628_vm1, %v8425_v51, 0.0  ;;  %8446 = vtanh.f32 %v2647_v25  ;;  %v4851_v45 = vadd.f32 %v4850_v12, %v4849_v35  ;;  %v3597_v51 = vadd.f32 %v10947_v6, %v7841_v14 }
 0x24c   : > { %v8429_v63 = vpop.eup %8428  ;;  %v4476_v31 = vadd.f32 %v4475_v41, %v4474_v7  ;;  %8448 = vtanh.f32 %v2642_v34  ;;  %v7559_v36 = vpop.f32.mrb[156].mxu0  ;;  %v4852_v4 = vsel %vm628_vm1, %v8427_v52, 0.0  ;;  %v3592_v29 = vadd.f32 %v10947_v6, %v3591_v40 }
 0x24d   : > { %v8431_v22 = vpop.eup %8430  ;;  %v2657_v13 = vadd.f32 %v10947_v6, %v7559_v36  ;;  %v2651_v15 = vpop.f32.mrb[157].mxu0  ;;  %v4853_v21 = vadd.f32 %v4852_v4, %v4851_v45  ;;  %8450 = vtanh.f32 %v3572_v47  ;;  %v4858_v45 = vsel %vm628_vm1, %v8429_v63, 0.0 }
 0x24e   : > { %v7847_v25 = vpop.f32.mrb[156].mxu1  ;;  %v8433_v12 = vpop.eup %8432  ;;  %v4478_v35 = vadd.f32 %v4477_v8, %v4476_v31  ;;  %v2652_v32 = vadd.f32 %v10947_v6, %v2651_v15  ;;  %8452 = vtanh.f32 %v3587_v44  ;;  %v4481_v44 = vsel %vm628_vm1, %v8431_v22, 0.0 }
 0x24f   : > { %v3611_v7 = vpop.f32.mrb[157].mxu1  ;;  %v8435_v20 = vpop.eup %8434  ;;  %v4479_v34 = vsel %vm628_vm1, %v8433_v12, 0.0  ;;  %8454 = vtanh.f32 %v2657_v13  ;;  %v4855_v52 = vadd.f32 %v4854_v54, %v4853_v21  ;;  %v3607_v12 = vadd.f32 %v10947_v6, %v7844_v38 }
 0x250   : > { %v8437_v41 = vpop.eup %8436  ;;  %v4480_v36 = vadd.f32 %v4479_v34, %v4478_v35  ;;  %8456 = vtanh.f32 %v2652_v32  ;;  %v7562_v47 = vpop.f32.mrb[158].mxu0  ;;  %v4856_v31 = vsel %vm628_vm1, %v8435_v20, 0.0  ;;  %v3602_v22 = vadd.f32 %v10947_v6, %v3601_v56 }
 0x251   : > { %v8439_v4 = vpop.eup %8438  ;;  %v2667_v14 = vadd.f32 %v10947_v6, %v7562_v47  ;;  %v2661_v8 = vpop.f32.mrb[159].mxu0  ;;  %v4857_v15 = vadd.f32 %v4856_v31, %v4855_v52  ;;  %8458 = vtanh.f32 %v3582_v46  ;;  %v4862_v52 = vsel %vm628_vm1, %v8437_v41, 0.0 }
 0x252   : > { %v7850_v13 = vpop.f32.mrb[158].mxu1  ;;  %v8441_v54 = vpop.eup %8440  ;;  %v4482_v21 = vadd.f32 %v4481_v44, %v4480_v36  ;;  %v2662_v40 = vadd.f32 %v10947_v6, %v2661_v8  ;;  %8460 = vtanh.f32 %v3597_v51  ;;  %v4485_v51 = vsel %vm628_vm1, %v8439_v4, 0.0 }
 0x253   : > { %v3621_v35 = vpop.f32.mrb[159].mxu1  ;;  %v8443_v63 = vpop.eup %8442  ;;  %v4483_v32 = vsel %vm628_vm1, %v8441_v54, 0.0  ;;  %8462 = vtanh.f32 %v2667_v14  ;;  %v4859_v20 = vadd.f32 %v4858_v45, %v4857_v15  ;;  %v3617_v54 = vadd.f32 %v10947_v6, %v7847_v25 }
 0x254   : > { %v8445_v34 = vpop.eup %8444  ;;  %v4484_v47 = vadd.f32 %v4483_v32, %v4482_v21  ;;  %8464 = vtanh.f32 %v2662_v40  ;;  %v7565_v46 = vpop.f32.mrb[160].mxu0  ;;  %v4860_v36 = vsel %vm628_vm1, %v8443_v63, 0.0  ;;  %v3612_v4 = vadd.f32 %v10947_v6, %v3611_v7 }
 0x255   : > { %v8447_v31 = vpop.eup %8446  ;;  %v2677_v38 = vadd.f32 %v10947_v6, %v7565_v46  ;;  %v2671_v44 = vpop.f32.mrb[161].mxu0  ;;  %v4861_v8 = vadd.f32 %v4860_v36, %v4859_v20  ;;  %8466 = vtanh.f32 %v3592_v29  ;;  %v4866_v20 = vsel %vm628_vm1, %v8445_v34, 0.0 }
 0x256   : > { %v7853_v14 = vpop.f32.mrb[160].mxu1  ;;  %v8449_v45 = vpop.eup %8448  ;;  %v4486_v15 = vadd.f32 %v4485_v51, %v4484_v47  ;;  %v2672_v56 = vadd.f32 %v10947_v6, %v2671_v44  ;;  %8468 = vtanh.f32 %v3607_v12  ;;  %v4489_v12 = vsel %vm628_vm1, %v8447_v31, 0.0 }
 0x257   : > { %v3631_v21 = vpop.f32.mrb[161].mxu1  ;;  %v8451_v41 = vpop.eup %8450  ;;  %v4487_v40 = vsel %vm628_vm1, %v8449_v45, 0.0  ;;  %8470 = vtanh.f32 %v2677_v38  ;;  %v4863_v63 = vadd.f32 %v4862_v52, %v4861_v8  ;;  %v3627_v45 = vadd.f32 %v10947_v6, %v7850_v13 }
 0x258   : > { %v8453_v32 = vpop.eup %8452  ;;  %v4488_v46 = vadd.f32 %v4487_v40, %v4486_v15  ;;  %8472 = vtanh.f32 %v2672_v56  ;;  %v7568_v29 = vpop.f32.mrb[162].mxu0  ;;  %v4864_v47 = vsel %vm628_vm1, %v8451_v41, 0.0  ;;  %v3622_v31 = vadd.f32 %v10947_v6, %v3621_v35 }
 0x259   : > { %v8455_v36 = vpop.eup %8454  ;;  %v2687_v25 = vadd.f32 %v10947_v6, %v7568_v29  ;;  %v2681_v51 = vpop.f32.mrb[163].mxu0  ;;  %v4865_v44 = vadd.f32 %v4864_v47, %v4863_v63  ;;  %8474 = vtanh.f32 %v3602_v22  ;;  %v4870_v63 = vsel %vm628_vm1, %v8453_v32, 0.0 }
 0x25a   : > { %v7856_v38 = vpop.f32.mrb[162].mxu1  ;;  %v8457_v52 = vpop.eup %8456  ;;  %v4490_v8 = vadd.f32 %v4489_v12, %v4488_v46  ;;  %v2682_v7 = vadd.f32 %v10947_v6, %v2681_v51  ;;  %8476 = vtanh.f32 %v3617_v54  ;;  %v4493_v54 = vsel %vm628_vm1, %v8455_v36, 0.0 }
 0x25b   : > { %v3641_v15 = vpop.f32.mrb[163].mxu1  ;;  %v8459_v34 = vpop.eup %8458  ;;  %v4491_v56 = vsel %vm628_vm1, %v8457_v52, 0.0  ;;  %8478 = vtanh.f32 %v2687_v25  ;;  %v4867_v41 = vadd.f32 %v4866_v20, %v4865_v44  ;;  %v3637_v52 = vadd.f32 %v10947_v6, %v7853_v14 }
 0x25c   : > { %v8461_v40 = vpop.eup %8460  ;;  %v4492_v29 = vadd.f32 %v4491_v56, %v4490_v8  ;;  %8480 = vtanh.f32 %v2682_v7  ;;  %v7571_v22 = vpop.f32.mrb[164].mxu0  ;;  %v4868_v46 = vsel %vm628_vm1, %v8459_v34, 0.0  ;;  %v3632_v36 = vadd.f32 %v10947_v6, %v3631_v21 }
 0x25d   : > { %v8463_v47 = vpop.eup %8462  ;;  %v2697_v13 = vadd.f32 %v10947_v6, %v7571_v22  ;;  %v2691_v12 = vpop.f32.mrb[165].mxu0  ;;  %v4869_v51 = vadd.f32 %v4868_v46, %v4867_v41  ;;  %8482 = vtanh.f32 %v3612_v4  ;;  %v4874_v41 = vsel %vm628_vm1, %v8461_v40, 0.0 }
 0x25e   : > { %v7859_v25 = vpop.f32.mrb[164].mxu1  ;;  %v8465_v20 = vpop.eup %8464  ;;  %v4494_v44 = vadd.f32 %v4493_v54, %v4492_v29  ;;  %v2692_v35 = vadd.f32 %v10947_v6, %v2691_v12  ;;  %8484 = vtanh.f32 %v3627_v45  ;;  %v4497_v45 = vsel %vm628_vm1, %v8463_v47, 0.0 }
 0x25f   : > { %v3651_v8 = vpop.f32.mrb[165].mxu1  ;;  %v8467_v32 = vpop.eup %8466  ;;  %v4495_v7 = vsel %vm628_vm1, %v8465_v20, 0.0  ;;  %8486 = vtanh.f32 %v2697_v13  ;;  %v4871_v34 = vadd.f32 %v4870_v63, %v4869_v51  ;;  %v3647_v20 = vadd.f32 %v10947_v6, %v7856_v38 }
 0x260   : > { %v8469_v56 = vpop.eup %8468  ;;  %v4496_v22 = vadd.f32 %v4495_v7, %v4494_v44  ;;  %8488 = vtanh.f32 %v2692_v35  ;;  %v7574_v4 = vpop.f32.mrb[166].mxu0  ;;  %v4872_v29 = vsel %vm628_vm1, %v8467_v32, 0.0  ;;  %v3642_v47 = vadd.f32 %v10947_v6, %v3641_v15 }
 0x261   : > { %v8471_v46 = vpop.eup %8470  ;;  %v2707_v14 = vadd.f32 %v10947_v6, %v7574_v4  ;;  %v2701_v54 = vpop.f32.mrb[167].mxu0  ;;  %v4873_v12 = vadd.f32 %v4872_v29, %v4871_v34  ;;  %8490 = vtanh.f32 %v3622_v31  ;;  %v4878_v34 = vsel %vm628_vm1, %v8469_v56, 0.0 }
 0x262   : > { %v7862_v13 = vpop.f32.mrb[166].mxu1  ;;  %v8473_v63 = vpop.eup %8472  ;;  %v4498_v51 = vadd.f32 %v4497_v45, %v4496_v22  ;;  %v2702_v21 = vadd.f32 %v10947_v6, %v2701_v54  ;;  %8492 = vtanh.f32 %v3637_v52  ;;  %v4501_v52 = vsel %vm628_vm1, %v8471_v46, 0.0 }
 0x263   : > { %v3661_v44 = vpop.f32.mrb[167].mxu1  ;;  %v8475_v40 = vpop.eup %8474  ;;  %v4499_v35 = vsel %vm628_vm1, %v8473_v63, 0.0  ;;  %8494 = vtanh.f32 %v2707_v14  ;;  %v4875_v32 = vadd.f32 %v4874_v41, %v4873_v12  ;;  %v3657_v63 = vadd.f32 %v10947_v6, %v7859_v25 }
 0x264   : > { %v8477_v7 = vpop.eup %8476  ;;  %v4500_v4 = vadd.f32 %v4499_v35, %v4498_v51  ;;  %8496 = vtanh.f32 %v2702_v21  ;;  %v7577_v31 = vpop.f32.mrb[168].mxu0  ;;  %v4876_v22 = vsel %vm628_vm1, %v8475_v40, 0.0  ;;  %v3652_v46 = vadd.f32 %v10947_v6, %v3651_v8 }
 0x265   : > { %v8479_v29 = vpop.eup %8478  ;;  %v2717_v38 = vadd.f32 %v10947_v6, %v7577_v31  ;;  %v2711_v45 = vpop.f32.mrb[169].mxu0  ;;  %v4877_v54 = vadd.f32 %v4876_v22, %v4875_v32  ;;  %8498 = vtanh.f32 %v3632_v36  ;;  %v4882_v32 = vsel %vm628_vm1, %v8477_v7, 0.0 }
 0x266   : > { %v7865_v14 = vpop.f32.mrb[168].mxu1  ;;  %v8481_v41 = vpop.eup %8480  ;;  %v4502_v12 = vadd.f32 %v4501_v52, %v4500_v4  ;;  %v2712_v15 = vadd.f32 %v10947_v6, %v2711_v45  ;;  %8500 = vtanh.f32 %v3647_v20  ;;  %v4505_v20 = vsel %vm628_vm1, %v8479_v29, 0.0 }
 0x267   : > { %v3671_v51 = vpop.f32.mrb[169].mxu1  ;;  %v8483_v56 = vpop.eup %8482  ;;  %v4503_v21 = vsel %vm628_vm1, %v8481_v41, 0.0  ;;  %8502 = vtanh.f32 %v2717_v38  ;;  %v4879_v40 = vadd.f32 %v4878_v34, %v4877_v54  ;;  %v3667_v41 = vadd.f32 %v10947_v6, %v7862_v13 }
 0x268   : > { %v8485_v35 = vpop.eup %8484  ;;  %v4504_v31 = vadd.f32 %v4503_v21, %v4502_v12  ;;  %8504 = vtanh.f32 %v2712_v15  ;;  %v7580_v36 = vpop.f32.mrb[170].mxu0  ;;  %v4880_v4 = vsel %vm628_vm1, %v8483_v56, 0.0  ;;  %v3662_v29 = vadd.f32 %v10947_v6, %v3661_v44 }
 0x269   : > { %v8487_v22 = vpop.eup %8486  ;;  %v2727_v25 = vadd.f32 %v10947_v6, %v7580_v36  ;;  %v2721_v52 = vpop.f32.mrb[171].mxu0  ;;  %v4881_v45 = vadd.f32 %v4880_v4, %v4879_v40  ;;  %8506 = vtanh.f32 %v3642_v47  ;;  %v4886_v40 = vsel %vm628_vm1, %v8485_v35, 0.0 }
 0x26a   : > { %v7868_v38 = vpop.f32.mrb[170].mxu1  ;;  %v8489_v34 = vpop.eup %8488  ;;  %v4506_v54 = vadd.f32 %v4505_v20, %v4504_v31  ;;  %v2722_v8 = vadd.f32 %v10947_v6, %v2721_v52  ;;  %8508 = vtanh.f32 %v3657_v63  ;;  %v4509_v63 = vsel %vm628_vm1, %v8487_v22, 0.0 }
 0x26b   : > { %v3681_v12 = vpop.f32.mrb[171].mxu1  ;;  %v8491_v7 = vpop.eup %8490  ;;  %v4507_v15 = vsel %vm628_vm1, %v8489_v34, 0.0  ;;  %8510 = vtanh.f32 %v2727_v25  ;;  %v4883_v56 = vadd.f32 %v4882_v32, %v4881_v45  ;;  %v3677_v34 = vadd.f32 %v10947_v6, %v7865_v14 }
 0x26c   : > { %v8493_v21 = vpop.eup %8492  ;;  %v4508_v36 = vadd.f32 %v4507_v15, %v4506_v54  ;;  %8512 = vtanh.f32 %v2722_v8  ;;  %v7583_v47 = vpop.f32.mrb[172].mxu0  ;;  %v4884_v31 = vsel %vm628_vm1, %v8491_v7, 0.0  ;;  %v3672_v22 = vadd.f32 %v10947_v6, %v3671_v51 }
 0x26d   : > { %v8495_v4 = vpop.eup %8494  ;;  %v2737_v13 = vadd.f32 %v10947_v6, %v7583_v47  ;;  %v2731_v20 = vpop.f32.mrb[173].mxu0  ;;  %v4885_v52 = vadd.f32 %v4884_v31, %v4883_v56  ;;  %8514 = vtanh.f32 %v3652_v46  ;;  %v4890_v56 = vsel %vm628_vm1, %v8493_v21, 0.0 }
 0x26e   : > { %v7871_v25 = vpop.f32.mrb[172].mxu1  ;;  %v8497_v32 = vpop.eup %8496  ;;  %v4510_v45 = vadd.f32 %v4509_v63, %v4508_v36  ;;  %v2732_v44 = vadd.f32 %v10947_v6, %v2731_v20  ;;  %8516 = vtanh.f32 %v3667_v41  ;;  %v4513_v41 = vsel %vm628_vm1, %v8495_v4, 0.0 }
 0x26f   : > { %v3691_v54 = vpop.f32.mrb[173].mxu1  ;;  %v8499_v35 = vpop.eup %8498  ;;  %v4511_v8 = vsel %vm628_vm1, %v8497_v32, 0.0  ;;  %8518 = vtanh.f32 %v2737_v13  ;;  %v4887_v7 = vadd.f32 %v4886_v40, %v4885_v52  ;;  %v3687_v32 = vadd.f32 %v10947_v6, %v7868_v38  ;;  %v11136_v38 = vld [vmem:[%s15023_s2] ss:$0 sm:$0xff] }
 0x270   : > { %v8501_v15 = vpop.eup %8500  ;;  %v4512_v47 = vadd.f32 %v4511_v8, %v4510_v45  ;;  %8520 = vtanh.f32 %v2732_v44  ;;  %v7586_v46 = vpop.f32.mrb[174].mxu0  ;;  %v4888_v36 = vsel %vm628_vm1, %v8499_v35, 0.0  ;;  %v3682_v4 = vadd.f32 %v10947_v6, %v3681_v12 }
 0x271   : > { %v8503_v31 = vpop.eup %8502  ;;  %v2747_v14 = vadd.f32 %v10947_v6, %v7586_v46  ;;  %v2741_v63 = vpop.f32.mrb[175].mxu0  ;;  %v4889_v20 = vadd.f32 %v4888_v36, %v4887_v7  ;;  %8522 = vtanh.f32 %v3662_v29  ;;  %v4894_v7 = vsel %vm628_vm1, %v8501_v15, 0.0 }
 0x272   : > { %v7874_v13 = vpop.f32.mrb[174].mxu1  ;;  %v8505_v40 = vpop.eup %8504  ;;  %v4514_v52 = vadd.f32 %v4513_v41, %v4512_v47  ;;  %v2742_v51 = vadd.f32 %v10947_v6, %v2741_v63  ;;  %8524 = vtanh.f32 %v3677_v34  ;;  %v4517_v34 = vsel %vm628_vm1, %v8503_v31, 0.0 }
 0x273   : > { %v3701_v45 = vpop.f32.mrb[175].mxu1  ;;  %v8507_v21 = vpop.eup %8506  ;;  %v4515_v44 = vsel %vm628_vm1, %v8505_v40, 0.0  ;;  %8526 = vtanh.f32 %v2747_v14  ;;  %v4891_v35 = vadd.f32 %v4890_v56, %v4889_v20  ;;  %v3697_v20 = vadd.f32 %v11136_v38, %v7871_v25 }
 0x274   : > { %v8509_v8 = vpop.eup %8508  ;;  %v4516_v46 = vadd.f32 %v4515_v44, %v4514_v52  ;;  %8528 = vtanh.f32 %v2742_v51  ;;  %v7589_v29 = vpop.f32.mrb[176].mxu0  ;;  %v4892_v47 = vsel %vm628_vm1, %v8507_v21, 0.0  ;;  %v3692_v21 = vadd.f32 %v11136_v38, %v3691_v54 }
 0x275   : > { %v8511_v36 = vpop.eup %8510  ;;  %v2757_v56 = vadd.f32 %v11136_v38, %v7589_v29  ;;  %v2751_v41 = vpop.f32.mrb[177].mxu0  ;;  %v4893_v6 = vadd.f32 %v4892_v47, %v4891_v35  ;;  %8530 = vtanh.f32 %v3672_v22  ;;  %v4898_v35 = vsel %vm628_vm1, %v8509_v8, 0.0 }
 0x276   : > { %v7877_v12 = vpop.f32.mrb[176].mxu1  ;;  %v8513_v14 = vpop.eup %8512  ;;  %v4518_v63 = vadd.f32 %v4517_v34, %v4516_v46  ;;  %v2752_v15 = vadd.f32 %v11136_v38, %v2751_v41  ;;  %8532 = vtanh.f32 %v3687_v32  ;;  %v4521_v32 = vsel %vm628_vm1, %v8511_v36, 0.0 }
 0x277   : > { %v3711_v40 = vpop.f32.mrb[177].mxu1  ;;  %v8515_v31 = vpop.eup %8514  ;;  %v4519_v52 = vsel %vm628_vm1, %v8513_v14, 0.0  ;;  %8534 = vtanh.f32 %v2757_v56  ;;  %v4895_v51 = vadd.f32 %v4894_v7, %v4893_v6  ;;  %v3707_v14 = vadd.f32 %v11136_v38, %v7874_v13 }
 0x278   : > { %v8517_v44 = vpop.eup %8516  ;;  %v4520_v29 = vadd.f32 %v4519_v52, %v4518_v63  ;;  %8536 = vtanh.f32 %v2752_v15  ;;  %v7592_v22 = vpop.f32.mrb[178].mxu0  ;;  %v4896_v46 = vsel %vm628_vm1, %v8515_v31, 0.0  ;;  %v3702_v36 = vadd.f32 %v11136_v38, %v3701_v45 }
 0x279   : > { %v8519_v47 = vpop.eup %8518  ;;  %v2767_v25 = vadd.f32 %v11136_v38, %v7592_v22  ;;  %v2761_v34 = vpop.f32.mrb[179].mxu0  ;;  %v4897_v41 = vadd.f32 %v4896_v46, %v4895_v51  ;;  %8538 = vtanh.f32 %v3682_v4  ;;  %v4902_v51 = vsel %vm628_vm1, %v8517_v44, 0.0 }
 0x27a   : > { %v7880_v56 = vpop.f32.mrb[178].mxu1  ;;  %v8521_v7 = vpop.eup %8520  ;;  %v4522_v6 = vadd.f32 %v4521_v32, %v4520_v29  ;;  %v2762_v54 = vadd.f32 %v11136_v38, %v2761_v34  ;;  %8540 = vtanh.f32 %v3697_v20  ;;  %v4525_v20 = vsel %vm628_vm1, %v8519_v47, 0.0 }
 0x27b   : > { %v3721_v63 = vpop.f32.mrb[179].mxu1  ;;  %v8523_v8 = vpop.eup %8522  ;;  %v4523_v15 = vsel %vm628_vm1, %v8521_v7, 0.0  ;;  %8542 = vtanh.f32 %v2767_v25  ;;  %v4899_v31 = vadd.f32 %v4898_v35, %v4897_v41  ;;  %v3717_v7 = vadd.f32 %v11136_v38, %v7877_v12 }
 0x27c   : > { %v8525_v52 = vpop.eup %8524  ;;  %v4524_v22 = vadd.f32 %v4523_v15, %v4522_v6  ;;  %8544 = vtanh.f32 %v2762_v54  ;;  %v7595_v4 = vpop.f32.mrb[180].mxu0  ;;  %v4900_v29 = vsel %vm628_vm1, %v8523_v8, 0.0  ;;  %v3712_v47 = vadd.f32 %v11136_v38, %v3711_v40 }
 0x27d   : > { %v8527_v46 = vpop.eup %8526  ;;  %v2777_v13 = vadd.f32 %v11136_v38, %v7595_v4  ;;  %v2771_v32 = vpop.f32.mrb[181].mxu0  ;;  %v4901_v34 = vadd.f32 %v4900_v29, %v4899_v31  ;;  %8546 = vtanh.f32 %v3692_v21  ;;  %v4906_v31 = vsel %vm628_vm1, %v8525_v52, 0.0 }
 0x27e   : > { %v7883_v25 = vpop.f32.mrb[180].mxu1  ;;  %v8529_v35 = vpop.eup %8528  ;;  %v4526_v41 = vadd.f32 %v4525_v20, %v4524_v22  ;;  %v2772_v45 = vadd.f32 %v11136_v38, %v2771_v32  ;;  %8548 = vtanh.f32 %v3707_v14  ;;  %v4529_v14 = vsel %vm628_vm1, %v8527_v46, 0.0 }
 0x27f   : > { %v3731_v6 = vpop.f32.mrb[181].mxu1  ;;  %v8531_v44 = vpop.eup %8530  ;;  %v4527_v54 = vsel %vm628_vm1, %v8529_v35, 0.0  ;;  %8550 = vtanh.f32 %v2777_v13  ;;  %v4903_v8 = vadd.f32 %v4902_v51, %v4901_v34  ;;  %v3727_v35 = vadd.f32 %v11136_v38, %v7880_v56 }
 0x280   : > { %v8533_v15 = vpop.eup %8532  ;;  %v4528_v4 = vadd.f32 %v4527_v54, %v4526_v41  ;;  %8552 = vtanh.f32 %v2772_v45  ;;  %v7598_v21 = vpop.f32.mrb[182].mxu0  ;;  %v4904_v22 = vsel %vm628_vm1, %v8531_v44, 0.0  ;;  %v3722_v46 = vadd.f32 %v11136_v38, %v3721_v63 }
 0x281   : > { %v8535_v29 = vpop.eup %8534  ;;  %v2787_v12 = vadd.f32 %v11136_v38, %v7598_v21  ;;  %v2781_v20 = vpop.f32.mrb[183].mxu0  ;;  %v4905_v32 = vadd.f32 %v4904_v22, %v4903_v8  ;;  %8554 = vtanh.f32 %v3702_v36  ;;  %v4910_v8 = vsel %vm628_vm1, %v8533_v15, 0.0 }
 0x282   : > { %v7886_v13 = vpop.f32.mrb[182].mxu1  ;;  %v8537_v51 = vpop.eup %8536  ;;  %v4530_v34 = vadd.f32 %v4529_v14, %v4528_v4  ;;  %v2782_v40 = vadd.f32 %v11136_v38, %v2781_v20  ;;  %8556 = vtanh.f32 %v3717_v7  ;;  %v4533_v7 = vsel %vm628_vm1, %v8535_v29, 0.0 }
 0x283   : > { %v3741_v41 = vpop.f32.mrb[183].mxu1  ;;  %v8539_v52 = vpop.eup %8538  ;;  %v4531_v45 = vsel %vm628_vm1, %v8537_v51, 0.0  ;;  %8558 = vtanh.f32 %v2787_v12  ;;  %v4907_v44 = vadd.f32 %v4906_v31, %v4905_v32  ;;  %v3737_v51 = vadd.f32 %v11136_v38, %v7883_v25 }
 0x284   : > { %v8541_v54 = vpop.eup %8540  ;;  %v4532_v21 = vadd.f32 %v4531_v45, %v4530_v34  ;;  %8560 = vtanh.f32 %v2782_v40  ;;  %v7601_v36 = vpop.f32.mrb[184].mxu0  ;;  %v4908_v4 = vsel %vm628_vm1, %v8539_v52, 0.0  ;;  %v3732_v29 = vadd.f32 %v11136_v38, %v3731_v6 }
 0x285   : > { %v8543_v22 = vpop.eup %8542  ;;  %v2797_v56 = vadd.f32 %v11136_v38, %v7601_v36  ;;  %v2791_v14 = vpop.f32.mrb[185].mxu0  ;;  %v4909_v20 = vadd.f32 %v4908_v4, %v4907_v44  ;;  %8562 = vtanh.f32 %v3712_v47  ;;  %v4914_v44 = vsel %vm628_vm1, %v8541_v54, 0.0 }
 0x286   : > { %v7889_v12 = vpop.f32.mrb[184].mxu1  ;;  %v8545_v31 = vpop.eup %8544  ;;  %v4534_v32 = vadd.f32 %v4533_v7, %v4532_v21  ;;  %v2792_v63 = vadd.f32 %v11136_v38, %v2791_v14  ;;  %8564 = vtanh.f32 %v3727_v35  ;;  %v4537_v35 = vsel %vm628_vm1, %v8543_v22, 0.0 }
 0x287   : > { %v3751_v34 = vpop.f32.mrb[185].mxu1  ;;  %v8547_v15 = vpop.eup %8546  ;;  %v4535_v40 = vsel %vm628_vm1, %v8545_v31, 0.0  ;;  %8566 = vtanh.f32 %v2797_v56  ;;  %v4911_v52 = vadd.f32 %v4910_v8, %v4909_v20  ;;  %v3747_v31 = vadd.f32 %v11136_v38, %v7886_v13 }
 0x288   : > { %v8549_v45 = vpop.eup %8548  ;;  %v4536_v36 = vadd.f32 %v4535_v40, %v4534_v32  ;;  %8568 = vtanh.f32 %v2792_v63  ;;  %v7604_v47 = vpop.f32.mrb[186].mxu0  ;;  %v4912_v21 = vsel %vm628_vm1, %v8547_v15, 0.0  ;;  %v3742_v22 = vadd.f32 %v11136_v38, %v3741_v41 }
 0x289   : > { %v8551_v4 = vpop.eup %8550  ;;  %v2807_v25 = vadd.f32 %v11136_v38, %v7604_v47  ;;  %v2801_v7 = vpop.f32.mrb[187].mxu0  ;;  %v4913_v14 = vadd.f32 %v4912_v21, %v4911_v52  ;;  %8570 = vtanh.f32 %v3722_v46  ;;  %v4918_v52 = vsel %vm628_vm1, %v8549_v45, 0.0 }
 0x28a   : > { %v7892_v56 = vpop.f32.mrb[186].mxu1  ;;  %v8553_v8 = vpop.eup %8552  ;;  %v4538_v20 = vadd.f32 %v4537_v35, %v4536_v36  ;;  %v2802_v6 = vadd.f32 %v11136_v38, %v2801_v7  ;;  %8572 = vtanh.f32 %v3737_v51  ;;  %v4541_v51 = vsel %vm628_vm1, %v8551_v4, 0.0 }
 0x28b   : > { %v3761_v32 = vpop.f32.mrb[187].mxu1  ;;  %v8555_v54 = vpop.eup %8554  ;;  %v4539_v63 = vsel %vm628_vm1, %v8553_v8, 0.0  ;;  %8574 = vtanh.f32 %v2807_v25  ;;  %v4915_v15 = vadd.f32 %v4914_v44, %v4913_v14  ;;  %v3757_v8 = vadd.f32 %v11136_v38, %v7889_v12 }
 0x28c   : > { %v8557_v40 = vpop.eup %8556  ;;  %v4540_v47 = vadd.f32 %v4539_v63, %v4538_v20  ;;  %8576 = vtanh.f32 %v2802_v6  ;;  %v7607_v46 = vpop.f32.mrb[188].mxu0  ;;  %v4916_v36 = vsel %vm628_vm1, %v8555_v54, 0.0  ;;  %v3752_v4 = vadd.f32 %v11136_v38, %v3751_v34 }
 0x28d   : > { %v8559_v21 = vpop.eup %8558  ;;  %v2817_v13 = vadd.f32 %v11136_v38, %v7607_v46  ;;  %v2811_v35 = vpop.f32.mrb[189].mxu0  ;;  %v4917_v7 = vadd.f32 %v4916_v36, %v4915_v15  ;;  %8578 = vtanh.f32 %v3732_v29  ;;  %v4922_v15 = vsel %vm628_vm1, %v8557_v40, 0.0 }
 0x28e   : > { %v7895_v25 = vpop.f32.mrb[188].mxu1  ;;  %v8561_v44 = vpop.eup %8560  ;;  %v4542_v14 = vadd.f32 %v4541_v51, %v4540_v47  ;;  %v2812_v41 = vadd.f32 %v11136_v38, %v2811_v35  ;;  %8580 = vtanh.f32 %v3747_v31  ;;  %v4545_v31 = vsel %vm628_vm1, %v8559_v21, 0.0 }
 0x28f   : > { %v3771_v20 = vpop.f32.mrb[189].mxu1  ;;  %v8563_v45 = vpop.eup %8562  ;;  %v4543_v6 = vsel %vm628_vm1, %v8561_v44, 0.0  ;;  %8582 = vtanh.f32 %v2817_v13  ;;  %v4919_v54 = vadd.f32 %v4918_v52, %v4917_v7  ;;  %v3767_v44 = vadd.f32 %v11136_v38, %v7892_v56 }
 0x290   : > { %v8565_v63 = vpop.eup %8564  ;;  %v4544_v46 = vadd.f32 %v4543_v6, %v4542_v14  ;;  %8584 = vtanh.f32 %v2812_v41  ;;  %v7610_v29 = vpop.f32.mrb[190].mxu0  ;;  %v4920_v47 = vsel %vm628_vm1, %v8563_v45, 0.0  ;;  %v3762_v21 = vadd.f32 %v11136_v38, %v3761_v32 }
 0x291   : > { %v8567_v36 = vpop.eup %8566  ;;  %v2827_v12 = vadd.f32 %v11136_v38, %v7610_v29  ;;  %v2821_v51 = vpop.f32.mrb[191].mxu0  ;;  %v4921_v35 = vadd.f32 %v4920_v47, %v4919_v54  ;;  %8586 = vtanh.f32 %v3742_v22  ;;  %v4926_v22 = vsel %vm628_vm1, %v8565_v63, 0.0 }
 0x292   : > { %v7898_v13 = vpop.f32.mrb[190].mxu1  ;;  %v8569_v52 = vpop.eup %8568  ;;  %v4546_v7 = vadd.f32 %v4545_v31, %v4544_v46  ;;  %v2822_v34 = vadd.f32 %v11136_v38, %v2821_v51  ;;  %8588 = vtanh.f32 %v3757_v8  ;;  %v4549_v8 = vsel %vm628_vm1, %v8567_v36, 0.0 }
 0x293   : > { %v3781_v14 = vpop.f32.mrb[191].mxu1  ;;  %v8571_v40 = vpop.eup %8570  ;;  %v4547_v41 = vsel %vm628_vm1, %v8569_v52, 0.0  ;;  %8590 = vtanh.f32 %v2827_v12  ;;  %v4923_v45 = vadd.f32 %v4922_v15, %v4921_v35  ;;  %v3772_v56 = vadd.f32 %v11136_v38, %v3771_v20 }
 0x294   : > { %v8573_v6 = vpop.eup %8572  ;;  %v4548_v29 = vadd.f32 %v4547_v41, %v4546_v7  ;;  %8592 = vtanh.f32 %v2822_v34  ;;  %v4924_v54 = vsel %vm628_vm1, %v8571_v40, 0.0  ;;  %v2842_v15 = vadd.f32 %v11136_v38, %v9780_v57 }
 0x295   : > { %v8575_v46 = vpop.eup %8574  ;;  %v4925_v47 = vadd.f32 %v4924_v54, %v4923_v45  ;;  %8594 = vtanh.f32 %v3752_v4  ;;  %v3777_v63 = vadd.f32 %v11136_v38, %v7895_v25  ;;  %v2857_v36 = vadd.f32 %v11136_v38, %v9794_v0 }
 0x296   : > { %v8577_v31 = vpop.eup %8576  ;;  %v4550_v12 = vadd.f32 %v4549_v8, %v4548_v29  ;;  %8596 = vtanh.f32 %v3767_v44  ;;  %v4930_v20 = vsel %vm628_vm1, %v8573_v6, 0.0  ;;  %v4553_v57 = vsel %vm628_vm1, %v8575_v46, 0.0 }
 0x297   : > { %v8579_v32 = vpop.eup %8578  ;;  %v4551_v51 = vsel %vm628_vm1, %v8577_v31, 0.0  ;;  %v4927_v35 = vadd.f32 %v4926_v22, %v4925_v47  ;;  %8598 = vtanh.f32 %v3762_v21  ;;  %v3782_v40 = vadd.f32 %v11136_v38, %v3781_v14 }
 0x298   : > { %v8581_v52 = vpop.eup %8580  ;;  %v4552_v4 = vadd.f32 %v4551_v51, %v4550_v12  ;;  %v4928_v7 = vsel %vm628_vm1, %v8579_v32, 0.0  ;;  %8600 = vtanh.f32 %v3772_v56  ;;  %v2852_v25 = vadd.f32 %v11136_v38, %v9802_v3 }
 0x299   : > { %v8583_v34 = vpop.eup %8582  ;;  %v4929_v44 = vadd.f32 %v4928_v7, %v4927_v35  ;;  %8602 = vtanh.f32 %v2842_v15  ;;  %v3787_v6 = vadd.f32 %v11136_v38, %v7898_v13  ;;  %v4934_v46 = vsel %vm628_vm1, %v8581_v52, 0.0 }
 0x29a   : > { %v8585_v41 = vpop.eup %8584  ;;  %v4554_v45 = vadd.f32 %v4553_v57, %v4552_v4  ;;  %8604 = vtanh.f32 %v3777_v63  ;;  %v4557_v47 = vsel %vm628_vm1, %v8583_v34, 0.0  ;;  %v2862_v31 = vadd.f32 %v11136_v38, %v9825_v16 }
 0x29b   : > { %v8587_v21 = vpop.eup %8586  ;;  %v4555_v0 = vsel %vm628_vm1, %v8585_v41, 0.0  ;;  %v4931_v29 = vadd.f32 %v4930_v20, %v4929_v44  ;;  %8606 = vtanh.f32 %v2857_v36  ;;  %v2867_v35 = vadd.f32 %v11136_v38, %v9816_v11 }
 0x29c   : > { %v8589_v22 = vpop.eup %8588  ;;  %v4556_v54 = vadd.f32 %v4555_v0, %v4554_v45  ;;  %v4932_v14 = vsel %vm628_vm1, %v8587_v21, 0.0  ;;  %8608 = vtanh.f32 %v3782_v40  ;;  %v2872_v16 = vadd.f32 %v11136_v38, %v9848_v30 }
 0x29d   : > { %v8591_v8 = vpop.eup %8590  ;;  %v4933_v56 = vadd.f32 %v4932_v14, %v4931_v29  ;;  %8610 = vtanh.f32 %v2852_v25  ;;  %v4938_v52 = vsel %vm628_vm1, %v8589_v22, 0.0  ;;  %v4563_v11 = vsel %vm628_vm1, %v10697_v10, 0.0 }
 0x29e   : > { %v8593_v3 = vpop.eup %8592  ;;  %v4558_v15 = vadd.f32 %v4557_v47, %v4556_v54  ;;  %8612 = vtanh.f32 %v3787_v6  ;;  %v4561_v20 = vsel %vm628_vm1, %v8591_v8, 0.0  ;;  %v2877_v25 = vadd.f32 %v11136_v38, %v9840_v26 }
 0x29f   : > { %v8595_v12 = vpop.eup %8594  ;;  %v4559_v13 = vsel %vm628_vm1, %v8593_v3, 0.0  ;;  %v4935_v32 = vadd.f32 %v4934_v46, %v4933_v56  ;;  %8614 = vtanh.f32 %v2862_v31  ;;  %v4565_v30 = vsel %vm628_vm1, %v10579_v60, 0.0 }
 0x2a0   : > { %v8597_v51 = vpop.eup %8596  ;;  %v4560_v63 = vadd.f32 %v4559_v13, %v4558_v15  ;;  %v4936_v36 = vsel %vm628_vm1, %v8595_v12, 0.0  ;;  %8616 = vtanh.f32 %v2867_v35  ;;  %v2882_v22 = vadd.f32 %v11136_v38, %v9872_v49 }
 0x2a1   : > { %v8599_v4 = vpop.eup %8598  ;;  %v4937_v7 = vadd.f32 %v4936_v36, %v4935_v32  ;;  %v4942_v21 = vsel %vm628_vm1, %v8597_v51, 0.0  ;;  %8618 = vtanh.f32 %v2872_v16  ;;  %v2887_v47 = vadd.f32 %v11136_v38, %v9864_v42 }
 0x2a2   : > { %v4562_v34 = vadd.f32 %v4561_v20, %v4560_v63  ;;  %v4940_v57 = vsel %vm628_vm1, %v8599_v4, 0.0  ;;  %v8601_v44 = vpop.eup %8600  ;;  %8620 = vtanh.f32 %v2877_v25  ;;  %v4569_v31 = vsel %vm628_vm1, %v11001_v55, 0.0 }
 0x2a3   : > { %v4939_v40 = vadd.f32 %v4938_v52, %v4937_v7  ;;  %v8603_v41 = vpop.eup %8602  ;;  %v4944_v54 = vsel %vm628_vm1, %v8601_v44, 0.0  ;;  %8622 = vtanh.f32 %v2882_v22  ;;  %v2892_v15 = vadd.f32 %v11136_v38, %v9896_v5 }
 0x2a4   : > { %v4564_v45 = vadd.f32 %v4563_v11, %v4562_v34  ;;  %v8605_v0 = vpop.eup %8604  ;;  %v4567_v14 = vsel %vm628_vm1, %v8603_v41, 0.0  ;;  %8624 = vtanh.f32 %v2887_v47  ;;  %v2897_v42 = vadd.f32 %v11136_v38, %v9888_v62 }
 0x2a5   : > { %v4941_v29 = vadd.f32 %v4940_v57, %v4939_v40  ;;  %v8607_v6 = vpop.eup %8606  ;;  %v4946_v60 = vsel %vm628_vm1, %v8605_v0, 0.0  ;;  %8626 = vtanh.f32 %v2892_v15  ;;  %v2902_v5 = vadd.f32 %v11136_v38, %v9920_v23 }
 0x2a6   : > { %v4566_v10 = vadd.f32 %v4565_v30, %v4564_v45  ;;  %v8609_v46 = vpop.eup %8608  ;;  %v4573_v55 = vsel %vm628_vm1, %v8607_v6, 0.0  ;;  %8628 = vtanh.f32 %v2897_v42  ;;  %v2907_v62 = vadd.f32 %v11136_v38, %v9912_v18 }
 0x2a7   : > { %v4943_v26 = vadd.f32 %v4942_v21, %v4941_v29  ;;  %v8611_v8 = vpop.eup %8610  ;;  %v4948_v13 = vsel %vm628_vm1, %v8609_v46, 0.0  ;;  %8630 = vtanh.f32 %v2902_v5  ;;  %v2912_v40 = vadd.f32 %v11136_v38, %v9944_v43 }
 0x2a8   : > { %v4568_v56 = vadd.f32 %v4567_v14, %v4566_v10  ;;  %v8613_v3 = vpop.eup %8612  ;;  %v4571_v32 = vsel %vm628_vm1, %v8611_v8, 0.0  ;;  %8632 = vtanh.f32 %v2907_v62  ;;  %v2917_v45 = vadd.f32 %v11136_v38, %v9936_v37 }
 0x2a9   : > { %v4945_v49 = vadd.f32 %v4944_v54, %v4943_v26  ;;  %v8615_v35 = vpop.eup %8614  ;;  %v4950_v52 = vsel %vm628_vm1, %v8613_v3, 0.0  ;;  %8634 = vtanh.f32 %v2912_v40  ;;  %v2922_v30 = vadd.f32 %v11136_v38, %v9968_v2 }
 0x2aa   : > { %v4570_v12 = vadd.f32 %v4569_v31, %v4568_v56  ;;  %v8617_v4 = vpop.eup %8616  ;;  %v4575_v7 = vsel %vm628_vm1, %v8615_v35, 0.0  ;;  %8636 = vtanh.f32 %v2917_v45  ;;  %v2927_v22 = vadd.f32 %v11136_v38, %v9960_v59 }
 0x2ab   : > { %v4947_v51 = vadd.f32 %v4946_v60, %v4945_v49  ;;  %v8619_v34 = vpop.eup %8618  ;;  %v4577_v44 = vsel %vm628_vm1, %v8617_v4, 0.0  ;;  %8638 = vtanh.f32 %v2922_v30  ;;  %v2932_v46 = vadd.f32 %v11136_v38, %v9992_v24 }
 0x2ac   : > { %v4572_v63 = vadd.f32 %v4571_v32, %v4570_v12  ;;  %v8621_v11 = vpop.eup %8620  ;;  %v4579_v23 = vsel %vm628_vm1, %v8619_v34, 0.0  ;;  %8640 = vtanh.f32 %v2927_v22  ;;  %v2937_v8 = vadd.f32 %v11136_v38, %v9984_v17  ;;  %v15060_v22 = vld [vmem:[#allocation5_spill] sm:$0xff] }
 0x2ad   : > { %v4949_v36 = vadd.f32 %v4948_v13, %v4947_v51  ;;  %v8623_v25 = vpop.eup %8622  ;;  %v4581_v0 = vsel %vm628_vm1, %v8621_v11, 0.0  ;;  %8642 = vtanh.f32 %v2932_v46  ;;  %v2942_v60 = vadd.f32 %v11136_v38, %v10016_v48  ;;  %v15061_v46 = vld [vmem:[#allocation4_spill] sm:$0xff] }
 0x2ae   : > { %v4574_v20 = vadd.f32 %v4573_v55, %v4572_v63  ;;  %v8625_v18 = vpop.eup %8624  ;;  %v4583_v6 = vsel %vm628_vm1, %v8623_v25, 0.0  ;;  %8644 = vtanh.f32 %v2937_v8  ;;  %v2947_v49 = vadd.f32 %v11136_v38, %v10008_v39  ;;  %v15062_v8 = vld [vmem:[#allocation7_spill] sm:$0xff] }
 0x2af   : > { %v11258_v16 = vadd.f32 %v4950_v52, %v4949_v36  ;;  %v8627_v43 = vpop.eup %8626  ;;  %v4585_v54 = vsel %vm628_vm1, %v8625_v18, 0.0  ;;  %8646 = vtanh.f32 %v2942_v60  ;;  %v2952_v13 = vadd.f32 %v11136_v38, %v10040_v9 }
 0x2b0   : > { %v4576_v57 = vadd.f32 %v4575_v7, %v4574_v20  ;;  %v8629_v37 = vpop.eup %8628  ;;  %v4587_v26 = vsel %vm628_vm1, %v8627_v43, 0.0  ;;  %8648 = vtanh.f32 %v2947_v49  ;;  %v2957_v35 = vadd.f32 %v11136_v38, %v10032_v1 }
 0x2b1   : > { %v8631_v2 = vpop.eup %8630  ;;  %v4589_v56 = vsel %vm628_vm1, %v8629_v37, 0.0  ;;  %8650 = vtanh.f32 %v2952_v13  ;;  %v2962_v52 = vadd.f32 %v11136_v38, %v10064_v33  ;;  %v2967_v4 = vadd.f32 %v11136_v38, %v10056_v27 }
 0x2b2   : > { %v4578_v41 = vadd.f32 %v4577_v44, %v4576_v57  ;;  %v8633_v59 = vpop.eup %8632  ;;  %v4591_v31 = vsel %vm628_vm1, %v8631_v2, 0.0  ;;  %8652 = vtanh.f32 %v2957_v35  ;;  %v2972_v7 = vadd.f32 %v11136_v38, %v10088_v61 }
 0x2b3   : > { %v8635_v24 = vpop.eup %8634  ;;  %v4593_v12 = vsel %vm628_vm1, %v8633_v59, 0.0  ;;  %8654 = vtanh.f32 %v2962_v52  ;;  %v2977_v57 = vadd.f32 %v11136_v38, %v10080_v53  ;;  %v2982_v40 = vadd.f32 %v11136_v38, %v10112_v28  ;;  %v15066_v52 = vld [vmem:[#allocation11_spill] sm:$0xff] }
 0x2b4   : > { %v4580_v21 = vadd.f32 %v4579_v23, %v4578_v41  ;;  %v8637_v17 = vpop.eup %8636  ;;  %v4595_v51 = vsel %vm628_vm1, %v8635_v24, 0.0  ;;  %8656 = vtanh.f32 %v2967_v4  ;;  %v2987_v25 = vadd.f32 %v11136_v38, %v10104_v19 }
 0x2b5   : > { %v8639_v48 = vpop.eup %8638  ;;  %v4597_v63 = vsel %vm628_vm1, %v8637_v17, 0.0  ;;  %8658 = vtanh.f32 %v2972_v7 }
 0x2b6   : > { %v4582_v29 = vadd.f32 %v4581_v0, %v4580_v21  ;;  %v8641_v39 = vpop.eup %8640  ;;  %v4599_v36 = vsel %vm628_vm1, %v8639_v48, 0.0  ;;  %8660 = vtanh.f32 %v2977_v57  ;;  %v2992_v0 = vadd.f32 %v11136_v38, %v10136_v58  ;;  %v15065_v48 = vld [vmem:[#allocation8_spill] sm:$0xff] }
 0x2b7   : > { %v8643_v9 = vpop.eup %8642  ;;  %v4601_v20 = vsel %vm628_vm1, %v8641_v39, 0.0  ;;  %8662 = vtanh.f32 %v2982_v40  ;;  %v3027_v35 = vadd.f32 %v11136_v38, %v15065_v48 }
 0x2b8   : > { %v4584_v10 = vadd.f32 %v4583_v6, %v4582_v29  ;;  %v8645_v1 = vpop.eup %8644  ;;  %v4603_v62 = vsel %vm628_vm1, %v8643_v9, 0.0  ;;  %8664 = vtanh.f32 %v2987_v25  ;;  %v2997_v29 = vadd.f32 %v11136_v38, %v10128_v50  ;;  %v15070_v25 = vld [vmem:[#allocation15_spill] sm:$0xff] }
 0x2b9   : > { %v8647_v33 = vpop.eup %8646  ;;  %v4605_v11 = vsel %vm628_vm1, %v8645_v1, 0.0  ;;  %8666 = vtanh.f32 %v2992_v0 }
 0x2ba   : > { %v4586_v14 = vadd.f32 %v4585_v54, %v4584_v10  ;;  %v8649_v27 = vpop.eup %8648  ;;  %v4607_v23 = vsel %vm628_vm1, %v8647_v33, 0.0  ;;  %v3002_v10 = vadd.f32 %v11136_v38, %v15060_v22  ;;  %8668 = vtanh.f32 %v2997_v29 }
 0x2bb   : > { %v8651_v61 = vpop.eup %8650  ;;  %v4609_v21 = vsel %vm628_vm1, %v8649_v27, 0.0  ;;  %v15069_v27 = vld [vmem:[#allocation12_spill] sm:$0xff] }
 0x2bc   : > { %v4588_v47 = vadd.f32 %v4587_v26, %v4586_v14  ;;  %v8653_v53 = vpop.eup %8652  ;;  %v4611_v30 = vsel %vm628_vm1, %v8651_v61, 0.0  ;;  %v3007_v14 = vadd.f32 %v11136_v38, %v15061_v46  ;;  %8670 = vtanh.f32 %v3002_v10 }
 0x2bd   : > { %v8655_v28 = vpop.eup %8654  ;;  %v4613_v43 = vsel %vm628_vm1, %v8653_v53, 0.0  ;;  %v3047_v40 = vadd.f32 %v11136_v38, %v15069_v27 }
 0x2be   : > { %v4590_v3 = vadd.f32 %v4589_v56, %v4588_v47  ;;  %v8657_v19 = vpop.eup %8656  ;;  %v4615_v37 = vsel %vm628_vm1, %v8655_v28, 0.0  ;;  %v3012_v47 = vadd.f32 %v11136_v38, %v15062_v8  ;;  %8672 = vtanh.f32 %v3007_v14 }
 0x2bf   : > { %v8659_v58 = vpop.eup %8658  ;;  %v4617_v2 = vsel %vm628_vm1, %v8657_v19, 0.0 }
 0x2c0   : > { %v4592_v15 = vadd.f32 %v4591_v31, %v4590_v3  ;;  %v8661_v50 = vpop.eup %8660  ;;  %v4619_v59 = vsel %vm628_vm1, %v8659_v58, 0.0  ;;  %v15063_v3 = vld [vmem:[#allocation6_spill] sm:$0xff]  ;;  %8674 = vtanh.f32 %v3012_v47 }
 0x2c1   : > { %v8663_v60 = vpop.eup %8662  ;;  %v3017_v31 = vadd.f32 %v11136_v38, %v15063_v3  ;;  %v4621_v49 = vsel %vm628_vm1, %v8661_v50, 0.0 }
 0x2c2   : > { %v4594_v32 = vadd.f32 %v4593_v12, %v4592_v15  ;;  %v8665_v15 = vpop.eup %8664  ;;  %v15064_v12 = vld [vmem:[#allocation9_spill] sm:$0xff] }
 0x2c3   : > { %v3022_v17 = vadd.f32 %v11136_v38, %v15064_v12  ;;  %8676 = vtanh.f32 %v3017_v31 }
 0x2c4   : > { %v4596_v42 = vadd.f32 %v4595_v51, %v4594_v32  ;;  %v4623_v32 = vsel %vm628_vm1, %v8663_v60, 0.0  ;;  %v8667_v51 = vpop.eup %8666 }
 0x2c5   : > { %v8669_v39 = vpop.eup %8668  ;;  %8678 = vtanh.f32 %v3022_v17  ;;  %v4627_v9 = vsel %vm628_vm1, %v8667_v51, 0.0 }
 0x2c6   : > { %v4598_v55 = vadd.f32 %v4597_v63, %v4596_v42  ;;  %v4625_v63 = vsel %vm628_vm1, %v8665_v15, 0.0  ;;  %v8671_v4 = vpop.eup %8670  ;;  %8680 = vtanh.f32 %v3027_v35  ;;  %v4629_v7 = vsel %vm628_vm1, %v8669_v39, 0.0 }
 0x2c8   : > { %v4600_v5 = vadd.f32 %v4599_v36, %v4598_v55  ;;  %v3032_v55 = vadd.f32 %v11136_v38, %v15066_v52 }
 0x2ca   : > { %v4602_v34 = vadd.f32 %v4601_v20, %v4600_v5  ;;  %v15067_v5 = vld [vmem:[#allocation10_spill] sm:$0xff]  ;;  %8682 = vtanh.f32 %v3032_v55 }
 0x2cb   : > { %v3037_v20 = vadd.f32 %v11136_v38, %v15067_v5 }
 0x2cc   : > { %v4604_v44 = vadd.f32 %v4603_v62, %v4602_v34  ;;  %v8673_v34 = vpop.eup %8672  ;;  %v15068_v62 = vld [vmem:[#allocation13_spill] sm:$0xff] }
 0x2cd   : > { %v3042_v33 = vadd.f32 %v11136_v38, %v15068_v62  ;;  %8684 = vtanh.f32 %v3037_v20 }
 0x2ce   : > { %v4606_v41 = vadd.f32 %v4605_v11, %v4604_v44  ;;  %v4631_v44 = vsel %vm628_vm1, %v8671_v4, 0.0  ;;  %v8675_v11 = vpop.eup %8674 }
 0x2cf   : > { %v8677_v61 = vpop.eup %8676  ;;  %8686 = vtanh.f32 %v3042_v33  ;;  %v4635_v53 = vsel %vm628_vm1, %v8675_v11, 0.0 }
 0x2d0   : > { %v4608_v45 = vadd.f32 %v4607_v23, %v4606_v41  ;;  %v4633_v23 = vsel %vm628_vm1, %v8673_v34, 0.0  ;;  %v8679_v0 = vpop.eup %8678  ;;  %8688 = vtanh.f32 %v3047_v40  ;;  %v4637_v29 = vsel %vm628_vm1, %v8677_v61, 0.0 }
 0x2d1   : > { %v4639_v10 = vsel %vm628_vm1, %v8679_v0, 0.0 }
 0x2d2   : > { %v4610_v18 = vadd.f32 %v4609_v21, %v4608_v45  ;;  %v3052_v45 = vadd.f32 %v11136_v38, %v15070_v25 }
 0x2d4   : > { %v4612_v6 = vadd.f32 %v4611_v30, %v4610_v18  ;;  %v15071_v18 = vld [vmem:[#allocation14_spill] sm:$0xff]  ;;  %8690 = vtanh.f32 %v3052_v45 }
 0x2d5   : > { %v3057_v30 = vadd.f32 %v11136_v38, %v15071_v18 }
 0x2d6   : > { %v4614_v54 = vadd.f32 %v4613_v43, %v4612_v6  ;;  %v8681_v6 = vpop.eup %8680  ;;  %v15072_v43 = vld [vmem:[#allocation17_spill] sm:$0xff] }
 0x2d7   : > { %v3062_v19 = vadd.f32 %v11136_v38, %v15072_v43  ;;  %8692 = vtanh.f32 %v3057_v30  ;;  %v4641_v14 = vsel %vm628_vm1, %v8681_v6, 0.0  ;;  %v15084_v6 = vld [vmem:[#allocation29_spill] sm:$0xff] }
 0x2d8   : > { %v4616_v26 = vadd.f32 %v4615_v37, %v4614_v54  ;;  %v8683_v54 = vpop.eup %8682  ;;  %v15073_v37 = vld [vmem:[#allocation16_spill] sm:$0xff] }
 0x2d9   : > { %v3067_v58 = vadd.f32 %v11136_v38, %v15073_v37  ;;  %8694 = vtanh.f32 %v3062_v19  ;;  %v4643_v47 = vsel %vm628_vm1, %v8683_v54, 0.0  ;;  %v15085_v54 = vld [vmem:[#allocation28_spill] sm:$0xff] }
 0x2da   : > { %v4618_v56 = vadd.f32 %v4617_v2, %v4616_v26  ;;  %v8685_v26 = vpop.eup %8684  ;;  %v15074_v2 = vld [vmem:[#allocation19_spill] sm:$0xff] }
 0x2db   : > { %v3072_v50 = vadd.f32 %v11136_v38, %v15074_v2  ;;  %8696 = vtanh.f32 %v3067_v58  ;;  %v4645_v31 = vsel %vm628_vm1, %v8685_v26, 0.0 }
 0x2dc   : > { %v4620_v24 = vadd.f32 %v4619_v59, %v4618_v56  ;;  %v8687_v56 = vpop.eup %8686  ;;  %v15075_v59 = vld [vmem:[#allocation18_spill] sm:$0xff] }
 0x2dd   : > { %v3077_v60 = vadd.f32 %v11136_v38, %v15075_v59  ;;  %8698 = vtanh.f32 %v3072_v50  ;;  %v4647_v17 = vsel %vm628_vm1, %v8687_v56, 0.0 }
 0x2de   : > { %v4622_v13 = vadd.f32 %v4621_v49, %v4620_v24  ;;  %v8689_v24 = vpop.eup %8688  ;;  %v15076_v49 = vld [vmem:[#allocation21_spill] sm:$0xff] }
 0x2df   : > { %v3082_v15 = vadd.f32 %v11136_v38, %v15076_v49  ;;  %8700 = vtanh.f32 %v3077_v60  ;;  %v4649_v35 = vsel %vm628_vm1, %v8689_v24, 0.0 }
 0x2e0   : > { %v4624_v42 = vadd.f32 %v4623_v32, %v4622_v13  ;;  %v8691_v13 = vpop.eup %8690  ;;  %v15077_v32 = vld [vmem:[#allocation20_spill] sm:$0xff] }
 0x2e1   : > { %v3087_v51 = vadd.f32 %v11136_v38, %v15077_v32  ;;  %8702 = vtanh.f32 %v3082_v15  ;;  %v4651_v55 = vsel %vm628_vm1, %v8691_v13, 0.0 }
 0x2e2   : > { %v4626_v36 = vadd.f32 %v4625_v63, %v4624_v42  ;;  %v8693_v42 = vpop.eup %8692  ;;  %v15078_v63 = vld [vmem:[#allocation23_spill] sm:$0xff] }
 0x2e3   : > { %v3092_v39 = vadd.f32 %v11136_v38, %v15078_v63  ;;  %8704 = vtanh.f32 %v3087_v51  ;;  %v4653_v20 = vsel %vm628_vm1, %v8693_v42, 0.0 }
 0x2e4   : > { %v4628_v1 = vadd.f32 %v4627_v9, %v4626_v36  ;;  %v8695_v36 = vpop.eup %8694  ;;  %v15079_v9 = vld [vmem:[#allocation22_spill] sm:$0xff] }
 0x2e5   : > { %v3097_v4 = vadd.f32 %v11136_v38, %v15079_v9  ;;  %8706 = vtanh.f32 %v3092_v39  ;;  %v4655_v33 = vsel %vm628_vm1, %v8695_v36, 0.0 }
 0x2e6   : > { %v4630_v57 = vadd.f32 %v4629_v7, %v4628_v1  ;;  %v8697_v1 = vpop.eup %8696  ;;  %v15080_v7 = vld [vmem:[#allocation25_spill] sm:$0xff] }
 0x2e7   : > { %v3102_v34 = vadd.f32 %v11136_v38, %v15080_v7  ;;  %8708 = vtanh.f32 %v3097_v4  ;;  %v4657_v40 = vsel %vm628_vm1, %v8697_v1, 0.0  ;;  %v15090_v7 = vld [vmem:[#allocation34_spill] sm:$0xff] }
 0x2e8   : > { %v4632_v41 = vadd.f32 %v4631_v44, %v4630_v57  ;;  %v8699_v57 = vpop.eup %8698  ;;  %v15081_v44 = vld [vmem:[#allocation24_spill] sm:$0xff] }
 0x2e9   : > { %v3107_v11 = vadd.f32 %v11136_v38, %v15081_v44  ;;  %8710 = vtanh.f32 %v3102_v34  ;;  %v4659_v45 = vsel %vm628_vm1, %v8699_v57, 0.0  ;;  %v4430_v34 = vrot.slane %v15090_v7, 4 }
 0x2ea   : > { %v4634_v21 = vadd.f32 %v4633_v23, %v4632_v41  ;;  %v8701_v41 = vpop.eup %8700  ;;  %v15082_v23 = vld [vmem:[#allocation27_spill] sm:$0xff]  ;;  %v4952_v57 = vrot.slane %v11258_v16, 4 }
 0x2eb   : > { %v3112_v61 = vadd.f32 %v11136_v38, %v15082_v23  ;;  %8712 = vtanh.f32 %v3107_v11  ;;  %v4661_v30 = vsel %vm628_vm1, %v8701_v41, 0.0  ;;  %v4431_v41 = vadd.f32 %v4430_v34, %v15090_v7 }
 0x2ec   : > { %v4636_v28 = vadd.f32 %v4635_v53, %v4634_v21  ;;  %v8703_v21 = vpop.eup %8702  ;;  %v15083_v53 = vld [vmem:[#allocation26_spill] sm:$0xff] }
 0x2ed   : > { %v3117_v0 = vadd.f32 %v11136_v38, %v15083_v53  ;;  %8714 = vtanh.f32 %v3112_v61  ;;  %v4432_v53 = vrot.slane %v4431_v41, 2 }
 0x2ee   : > { %v4638_v22 = vadd.f32 %v4637_v29, %v4636_v28  ;;  %v8705_v28 = vpop.eup %8704  ;;  %v8734_v29 = vld [vmem:[%s15023_s2] ss:$0 sm:$0xff] }
 0x2ef   : > { %v3122_v43 = vadd.f32 %v8734_v29, %v15084_v6  ;;  %8716 = vtanh.f32 %v3117_v0  ;;  %v3127_v37 = vadd.f32 %v8734_v29, %v15085_v54  ;;  %v4665_v38 = vsel %vm628_vm1, %v8705_v28, 0.0 }
 0x2f0   : > { %v4640_v46 = vadd.f32 %v4639_v10, %v4638_v22  ;;  %v4663_v22 = vsel %vm628_vm1, %v8703_v21, 0.0  ;;  %v8707_v10 = vpop.eup %8706  ;;  %v4433_v28 = vadd.f32 %v4432_v53, %v4431_v41 }
 0x2f1   : > { %8718 = vtanh.f32 %v3122_v43  ;;  %v4667_v50 = vsel %vm628_vm1, %v8707_v10, 0.0 }
 0x2f2   : > { %v4642_v8 = vadd.f32 %v4641_v14, %v4640_v46  ;;  %v8709_v46 = vpop.eup %8708  ;;  %v15086_v14 = vld [vmem:[#allocation31_spill] sm:$0xff]  ;;  %8720 = vtanh.f32 %v3127_v37 }
 0x2f3   : > { %v3132_v26 = vadd.f32 %v8734_v29, %v15086_v14  ;;  %v4669_v60 = vsel %vm628_vm1, %v8709_v46, 0.0 }
 0x2f4   : > { %v4644_v3 = vadd.f32 %v4643_v47, %v4642_v8  ;;  %v8711_v8 = vpop.eup %8710  ;;  %v15087_v47 = vld [vmem:[#allocation30_spill] sm:$0xff] }
 0x2f5   : > { %v3137_v56 = vadd.f32 %v8734_v29, %v15087_v47  ;;  %8722 = vtanh.f32 %v3132_v26  ;;  %v4671_v15 = vsel %vm628_vm1, %v8711_v8, 0.0 }
 0x2f6   : > { %v4646_v12 = vadd.f32 %v4645_v31, %v4644_v3  ;;  %v8713_v3 = vpop.eup %8712  ;;  %v15088_v31 = vld [vmem:[#allocation33_spill] sm:$0xff] }
 0x2f7   : > { %v3142_v24 = vadd.f32 %v8734_v29, %v15088_v31  ;;  %8724 = vtanh.f32 %v3137_v56  ;;  %v4673_v51 = vsel %vm628_vm1, %v8713_v3, 0.0 }
 0x2f8   : > { %v4648_v48 = vadd.f32 %v4647_v17, %v4646_v12  ;;  %v8715_v12 = vpop.eup %8714  ;;  %v15089_v17 = vld [vmem:[#allocation32_spill] sm:$0xff] }
 0x2f9   : > { %v3147_v13 = vadd.f32 %v8734_v29, %v15089_v17  ;;  %8726 = vtanh.f32 %v3142_v24  ;;  %v4675_v42 = vsel %vm628_vm1, %v8715_v12, 0.0 }
 0x2fa   : > { %v4650_v52 = vadd.f32 %v4649_v35, %v4648_v48  ;;  %v8717_v48 = vpop.eup %8716 }
 0x2fb   : > { %v8719_v63 = vpop.eup %8718  ;;  %8728 = vtanh.f32 %v3147_v13 }
 0x2fc   : > { %v4652_v5 = vadd.f32 %v4651_v55, %v4650_v52  ;;  %v4677_v52 = vsel %vm628_vm1, %v8717_v48, 0.0  ;;  %v8721_v55 = vpop.eup %8720  ;;  %v4679_v9 = vsel %vm628_vm1, %v8719_v63, 0.0 }
 0x2fe   : > { %v4654_v62 = vadd.f32 %v4653_v20, %v4652_v5  ;;  %v4681_v20 = vsel %vm628_vm1, %v8721_v55, 0.0 }
 0x2ff   : > { %v8723_v4 = vpop.eup %8722 }
 0x300   : > { %v4656_v27 = vadd.f32 %v4655_v33, %v4654_v62  ;;  %v4683_v33 = vsel %vm628_vm1, %v8723_v4, 0.0 }
 0x301   : > { %v8725_v1 = vpop.eup %8724 }
 0x302   : > { %v4658_v25 = vadd.f32 %v4657_v40, %v4656_v27  ;;  %v4685_v27 = vsel %vm628_vm1, %v8725_v1, 0.0 }
 0x303   : > { %v8727_v44 = vpop.eup %8726 }
 0x304   : > { %v4660_v18 = vadd.f32 %v4659_v45, %v4658_v25  ;;  %v4687_v61 = vsel %vm628_vm1, %v8727_v44, 0.0  ;;  %v4953_v25 = vadd.f32 %v4952_v57, %v11258_v16  ;;  %v4174_v16 = vld [vmem:[#allocation2] sm:$0x7] }
 0x305   : > { %v8729_v40 = vpop.eup %8728 }
 0x306   : > { %v4662_v19 = vadd.f32 %v4661_v30, %v4660_v18  ;;  %v4689_v21 = vsel %vm628_vm1, %v8729_v40, 0.0  ;;  %v4954_v18 = vrot.slane %v4953_v25, 2 }
 0x308   : > { %v4664_v58 = vadd.f32 %v4663_v22, %v4662_v19  ;;  %v4955_v6 = vadd.f32 %v4954_v18, %v4953_v25  ;;  %v4434_v19 = vrot.slane %v4433_v28, 1 }
 0x30a   : > { %v4666_v2 = vadd.f32 %v4665_v38, %v4664_v58  ;;  %v4956_v10 = vrot.slane %v4955_v6, 1  ;;  %v4435_v37 = vadd.f32 %v4434_v19, %v4433_v28 }
 0x30c   : > { %v4668_v59 = vadd.f32 %v4667_v50, %v4666_v2  ;;  %v4957_v38 = vadd.f32 %v4956_v10, %v4955_v6 }
 0x30e   : > { %v4670_v49 = vadd.f32 %v4669_v60, %v4668_v59 }
 0x310   : > { %v4672_v32 = vadd.f32 %v4671_v15, %v4670_v49 }
 0x312   : > { %v4674_v35 = vadd.f32 %v4673_v51, %v4672_v32 }
 0x314   : > { %v4676_v39 = vadd.f32 %v4675_v42, %v4674_v35 }
 0x316   : > { %v4678_v36 = vadd.f32 %v4677_v52, %v4676_v39 }
 0x318   : > { %v4680_v5 = vadd.f32 %v4679_v9, %v4678_v36 }
 0x31a   : > { %v4682_v62 = vadd.f32 %v4681_v20, %v4680_v5 }
 0x31c   : > { %v4684_v11 = vadd.f32 %v4683_v33, %v4682_v62 }
 0x31e   : > { %v4686_v23 = vadd.f32 %v4685_v27, %v4684_v11 }
 0x320   : > { %v4688_v45 = vadd.f32 %v4687_v61, %v4686_v23 }
 0x322   : > { %v4690_v0 = vadd.f32 %v4689_v21, %v4688_v45 }
 0x324   : > { %v4691_v30 = vrot.slane %v4690_v0, 4 }
 0x326   : > { %v4692_v29 = vadd.f32 %v4691_v30, %v4690_v0 }
 0x328   : > { %v4693_v43 = vrot.slane %v4692_v29, 2 }
 0x32a   : > { %v4694_v22 = vadd.f32 %v4693_v43, %v4692_v29 }
 0x32c   : > { %v4695_v54 = vrot.slane %v4694_v22, 1 }
 0x32e   : > { %v4696_v58 = vadd.f32 %v4695_v54, %v4694_v22 }
 0x330   : > { %v4962_v46 = vsel %vm4961_vm3, %v4696_v58, %v4435_v37 }
 0x331   : > { %v4964_v14 = vsel %vm4963_vm4, %v4957_v38, %v4962_v46 }
 0x332   : > { %v4966_v26 = vadd.f32 %v4964_v14, %v4174_v16 }
 0x334   : > { %4968 = vst.msk [vmem:[#allocation2] sm:$0x7] %vm4967_vm5, %v4966_v26 }
 0x335 PF: > { %4970 = sbr.rel (!%p218_p4) target bundleno = 1030 (0x406), region = 48  ;;  %v6652_v50 = vld [vmem:[%s15024_s3] ss:$0 sm:$0xff] (%p218_p4)  ;;  %vm4980_vm6 = vcmask (%p218_p4), 518144   ;;  %vm4985_vm7 = vcmask (%p218_p4), 1042432   ;;  %vm5005_vm8 = vcmask (%p218_p4), 2048  }
 0x33b   : > { %v4971_v2 = vld [vmem:[#allocation2] sm:$0x7] (%p218_p4) }
 0x33c   : > { %v4979_v8 = vmul.f32 %v6652_v50, %v4971_v2 }
 0x33e   : > { %v4981_v47 = vsel %vm4980_vm6, %v4979_v8, 0.0 }
 0x33f   : > { %4982 = vadd.xlane.f32.xlu0 %v4981_v47 }
 0x3cc   : > { %v4983_v56 = vpop.xlane.xlu0 %4982 }
 0x3cd   : > { %v4984_v59 = vmul.f32 0.0009765625, %v4983_v56 }
 0x3cf   : > { %v4986_v60 = vsel %vm4985_vm7, %v4984_v59, -inf }
 0x3d0   : > { %v4987_v3 = vrot.slane %v4986_v60, 4 }
 0x3d2   : > { %v4988_v31 = vmax.f32 %v4986_v60, %v4987_v3 }
 0x3d4   : > { %v4989_v24 = vrot.slane %v4988_v31, 2 }
 0x3d6   : > { %v4990_v49 = vmax.f32 %v4988_v31, %v4989_v24 }
 0x3d8   : > { %v4991_v15 = vrot.slane %v4990_v49, 1 }
 0x3da   : > { %v4992_v12 = vmax.f32 %v4990_v49, %v4991_v15 }
 0x3dc   : > { %v4993_v17 = vsub.f32 %v4984_v59, %v4992_v12 }
 0x3de   : > { %v4994_v13 = vmul.f32 1.442695, %v4993_v17 }
 0x3e0   : > { %8735 = vpow2.f32 %v4994_v13 }
 0x3ea   : > { %v8736_v32 = vpop.eup %8735 }
 0x3eb   : > { %v4996_v51 = vsel %vm4985_vm7, %v8736_v32, 0.0 }
 0x3ec   : > { %v4997_v48 = vrot.slane %v4996_v51, 4 }
 0x3ee   : > { %v4998_v35 = vadd.f32 %v4997_v48, %v4996_v51 }
 0x3f0   : > { %v4999_v42 = vrot.slane %v4998_v35, 2 }
 0x3f2   : > { %v5000_v63 = vadd.f32 %v4999_v42, %v4998_v35 }
 0x3f4   : > { %v5001_v39 = vrot.slane %v5000_v63, 1 }
 0x3f6   : > { %v5002_v52 = vadd.f32 %v5001_v39, %v5000_v63 }
 0x3f8   : > { %8737 = vrcp.f32 %v5002_v52 }
 0x402   : > { %v8738_v55 = vpop.eup %8737 }
 0x403   : > { %v5004_v36 = vmul.f32 %v8738_v55, %v8736_v32 }
 0x405   : > { %5006 = vst.msk [vmem:[#allocation3] sm:$0x7] %vm5005_vm8, %v5004_v36 }
 0x406 PF: > { %p6653_p6 = scmp.ne.s32.totalorder %s8753_s15, 1 }
 0x408   : > { %5010 = sbr.rel (%p6653_p6) target bundleno = 1429 (0x595), region = 52 }
 0x40f   : > { %v5139_v9 = vld [vmem:[#allocation3] sm:$0x1]  ;;  %v5401_v4 = vld [vmem:[#allocation3 + $0x1] sm:$0x1]  ;;  %v5012_v20 = vld [vmem:[%s15021_s0 + $0x8] sm:$0xff]  ;;  %vm6052_vm9 = vcmask 523264  }
 0x410   : > { %7931 = vpush %v5139_v9  ;;  %v5011_v5 = vld [vmem:[%s15021_s0] sm:$0xff]  ;;  %v5013_v1 = vld [vmem:[%s15021_s0 + $0x10] sm:$0xff]  ;;  %v5014_v7 = vld [vmem:[%s15021_s0 + $0x18] sm:$0xff] }
 0x411   : > { %7933 = vpush %v5401_v4  ;;  %v5015_v34 = vld [vmem:[%s15021_s0 + $0x20] sm:$0xff]  ;;  %v5016_v62 = vld [vmem:[%s15021_s0 + $0x28] sm:$0xff]  ;;  %v5017_v33 = vld [vmem:[%s15021_s0 + $0x30] sm:$0xff] }
 0x412   : > { %v5018_v57 = vld [vmem:[%s15021_s0 + $0x38] sm:$0xff]  ;;  %v5019_v44 = vld [vmem:[%s15021_s0 + $0x40] sm:$0xff]  ;;  %v5020_v11 = vld [vmem:[%s15021_s0 + $0x48] sm:$0xff] }
 0x413   : > { %v5021_v40 = vld [vmem:[%s15021_s0 + $0x50] sm:$0xff]  ;;  %v5022_v41 = vld [vmem:[%s15021_s0 + $0x58] sm:$0xff]  ;;  %v5023_v23 = vld [vmem:[%s15021_s0 + $0x60] sm:$0xff] }
 0x414   : > { %v5024_v61 = vld [vmem:[%s15021_s0 + $0x68] sm:$0xff]  ;;  %v5025_v25 = vld [vmem:[%s15021_s0 + $0x70] sm:$0xff]  ;;  %v5026_v45 = vld [vmem:[%s15021_s0 + $0x78] sm:$0xff] }
 0x415   : > { %v5027_v21 = vld [vmem:[%s15021_s0 + $0x80] sm:$0xff]  ;;  %v5028_v53 = vld [vmem:[%s15021_s0 + $0x88] sm:$0xff]  ;;  %v5029_v0 = vld [vmem:[%s15021_s0 + $0x90] sm:$0xff] }
 0x416   : > { %v5030_v18 = vld [vmem:[%s15021_s0 + $0x98] sm:$0xff]  ;;  %v5031_v30 = vld [vmem:[%s15021_s0 + $0xa0] sm:$0xff]  ;;  %v5032_v28 = vld [vmem:[%s15021_s0 + $0xa8] sm:$0xff] }
 0x417   : > { %v5033_v43 = vld [vmem:[%s15021_s0 + $0xb0] sm:$0xff]  ;;  %v5034_v19 = vld [vmem:[%s15021_s0 + $0xb8] sm:$0xff]  ;;  %v5035_v22 = vld [vmem:[%s15021_s0 + $0xc0] sm:$0xff] }
 0x418   : > { %v5036_v10 = vld [vmem:[%s15021_s0 + $0xc8] sm:$0xff]  ;;  %v5037_v38 = vld [vmem:[%s15021_s0 + $0xd0] sm:$0xff]  ;;  %v5038_v46 = vld [vmem:[%s15021_s0 + $0xd8] sm:$0xff] }
 0x419   : > { %v5039_v14 = vld [vmem:[%s15021_s0 + $0xe0] sm:$0xff]  ;;  %v5040_v26 = vld [vmem:[%s15021_s0 + $0xe8] sm:$0xff]  ;;  %v5041_v56 = vld [vmem:[%s15021_s0 + $0xf0] sm:$0xff] }
 0x41a   : > { %v5042_v59 = vld [vmem:[%s15021_s0 + $0xf8] sm:$0xff]  ;;  %v5043_v60 = vld [vmem:[%s15021_s0 + $0x100] sm:$0xff]  ;;  %v5044_v3 = vld [vmem:[%s15021_s0 + $0x108] sm:$0xff] }
 0x41b   : > { %v5045_v12 = vld [vmem:[%s15021_s0 + $0x110] sm:$0xff]  ;;  %v5046_v17 = vld [vmem:[%s15021_s0 + $0x118] sm:$0xff]  ;;  %v5047_v13 = vld [vmem:[%s15021_s0 + $0x120] sm:$0xff] }
 0x41c   : > { %v5048_v32 = vld [vmem:[%s15021_s0 + $0x128] sm:$0xff]  ;;  %v5049_v63 = vld [vmem:[%s15021_s0 + $0x130] sm:$0xff]  ;;  %v5050_v39 = vld [vmem:[%s15021_s0 + $0x138] sm:$0xff] }
 0x41d   : > { %v5051_v52 = vld [vmem:[%s15021_s0 + $0x140] sm:$0xff]  ;;  %v5052_v55 = vld [vmem:[%s15021_s0 + $0x148] sm:$0xff] }
 0x441   : > { %s7932_s25 = spop %7931 }
 0x442   : > { %v11452_v27 = vstv %s7932_s25  ;;  %s7934_s15 = spop %7933 }
 0x443   : > { %v11491_v29 = vmul.f32 %v11452_v27, %v5011_v5  ;;  %v11494_v6 = vmul.f32 %v11452_v27, %v5012_v20  ;;  %v11509_v54 = vmul.f32 %v11452_v27, %v5013_v1  ;;  %v11512_v37 = vmul.f32 %v11452_v27, %v5014_v7  ;;  %v5053_v20 = vld [vmem:[%s15021_s0 + $0x150] sm:$0xff]  ;;  %v5054_v1 = vld [vmem:[%s15021_s0 + $0x158] sm:$0xff]  ;;  %v5055_v7 = vld [vmem:[%s15021_s0 + $0x160] sm:$0xff] }
 0x444   : > { %v11515_v58 = vmul.f32 %v11452_v27, %v5015_v34  ;;  %v11518_v16 = vmul.f32 %v11452_v27, %v5016_v62  ;;  %v11533_v2 = vmul.f32 %v11452_v27, %v5017_v33  ;;  %v11536_v50 = vmul.f32 %v11452_v27, %v5018_v57  ;;  %v5056_v34 = vld [vmem:[%s15021_s0 + $0x168] sm:$0xff] }
 0x445   : > { %v11539_v8 = vmul.f32 %v11452_v27, %v5019_v44  ;;  %v11542_v47 = vmul.f32 %v11452_v27, %v5020_v11  ;;  %v11557_v31 = vmul.f32 %v11452_v27, %v5021_v40  ;;  %v11560_v24 = vmul.f32 %v11452_v27, %v5022_v41  ;;  %v5057_v11 = vld [vmem:[%s15021_s0 + $0x170] sm:$0xff]  ;;  %v5058_v40 = vld [vmem:[%s15021_s0 + $0x178] sm:$0xff]  ;;  %v5059_v41 = vld [vmem:[%s15021_s0 + $0x180] sm:$0xff] }
 0x446   : > { %v11563_v49 = vmul.f32 %v11452_v27, %v5023_v23  ;;  %v11566_v15 = vmul.f32 %v11452_v27, %v5024_v61  ;;  %v11581_v51 = vmul.f32 %v11452_v27, %v5025_v25  ;;  %v11584_v48 = vmul.f32 %v11452_v27, %v5026_v45  ;;  %v5060_v23 = vld [vmem:[%s15021_s0 + $0x188] sm:$0xff] }
 0x447   : > { %v11587_v35 = vmul.f32 %v11452_v27, %v5027_v21  ;;  %v11590_v42 = vmul.f32 %v11452_v27, %v5028_v53  ;;  %v11605_v36 = vmul.f32 %v11452_v27, %v5029_v0  ;;  %v11608_v9 = vmul.f32 %v11452_v27, %v5030_v18  ;;  %v5061_v53 = vld [vmem:[%s15021_s0 + $0x190] sm:$0xff]  ;;  %v5062_v0 = vld [vmem:[%s15021_s0 + $0x198] sm:$0xff]  ;;  %v5063_v18 = vld [vmem:[%s15021_s0 + $0x1a0] sm:$0xff] }
 0x448   : > { %v11611_v4 = vmul.f32 %v11452_v27, %v5031_v30  ;;  %v11614_v5 = vmul.f32 %v11452_v27, %v5032_v28  ;;  %v11629_v62 = vmul.f32 %v11452_v27, %v5033_v43  ;;  %v11632_v33 = vmul.f32 %v11452_v27, %v5034_v19  ;;  %v5064_v30 = vld [vmem:[%s15021_s0 + $0x1a8] sm:$0xff] }
 0x449   : > { %15091 = vst [vmem:[#allocation35_spill] sm:$0xff] %v11590_v42  ;;  %15092 = vst [vmem:[#allocation36_spill] sm:$0xff] %v11605_v36  ;;  %v11635_v57 = vmul.f32 %v11452_v27, %v5035_v22  ;;  %v11638_v44 = vmul.f32 %v11452_v27, %v5036_v10  ;;  %v11653_v61 = vmul.f32 %v11452_v27, %v5037_v38  ;;  %v5065_v10 = vld [vmem:[%s15021_s0 + $0x1b0] sm:$0xff]  ;;  %v5066_v38 = vld [vmem:[%s15021_s0 + $0x1b8] sm:$0xff] }
 0x44a   : > { %15093 = vst [vmem:[#allocation37_spill] sm:$0xff] %v11608_v9  ;;  %15094 = vst [vmem:[#allocation38_spill] sm:$0xff] %v11611_v4  ;;  %v11656_v25 = vmul.f32 %v11452_v27, %v5038_v46  ;;  %v11659_v45 = vmul.f32 %v11452_v27, %v5039_v14  ;;  %v11662_v21 = vmul.f32 %v11452_v27, %v5040_v26  ;;  %v5067_v46 = vld [vmem:[%s15021_s0 + $0x1c0] sm:$0xff]  ;;  %v5068_v14 = vld [vmem:[%s15021_s0 + $0x1c8] sm:$0xff] }
 0x44b   : > { %15095 = vst [vmem:[#allocation39_spill] sm:$0xff] %v11614_v5  ;;  %15096 = vst [vmem:[#allocation40_spill] sm:$0xff] %v11629_v62  ;;  %v11677_v28 = vmul.f32 %v11452_v27, %v5041_v56  ;;  %v11680_v43 = vmul.f32 %v11452_v27, %v5042_v59  ;;  %v11683_v19 = vmul.f32 %v11452_v27, %v5043_v60  ;;  %v6691_v5 = vld [vmem:[%s15021_s0 + $0x528] sm:$0xff]  ;;  %v6692_v4 = vld [vmem:[%s15021_s0 + $0x530] sm:$0xff] }
 0x44c   : > { %15097 = vst [vmem:[#allocation41_spill] sm:$0xff] %v11632_v33  ;;  %15098 = vst [vmem:[#allocation42_spill] sm:$0xff] %v11635_v57  ;;  %v11686_v22 = vmul.f32 %v11452_v27, %v5044_v3  ;;  %v11701_v26 = vmul.f32 %v11452_v27, %v5045_v12  ;;  %v11704_v56 = vmul.f32 %v11452_v27, %v5046_v17  ;;  %v5069_v3 = vld [vmem:[%s15021_s0 + $0x1d0] sm:$0xff]  ;;  %v5071_v12 = vld [vmem:[%s15021_s0 + $0x1e0] sm:$0xff] }
 0x44d   : > { %15099 = vst [vmem:[#allocation43_spill] sm:$0xff] %v11638_v44  ;;  %15100 = vst [vmem:[#allocation44_spill] sm:$0xff] %v11653_v61  ;;  %v11707_v59 = vmul.f32 %v11452_v27, %v5047_v13  ;;  %v11710_v60 = vmul.f32 %v11452_v27, %v5048_v32  ;;  %v5072_v17 = vld [vmem:[%s15021_s0 + $0x1e8] sm:$0xff]  ;;  %v11725_v13 = vmul.f32 %v11452_v27, %v5049_v63  ;;  %v5075_v63 = vld [vmem:[%s15021_s0 + $0x200] sm:$0xff] }
 0x44e   : > { %15101 = vst [vmem:[#allocation45_spill] sm:$0xff] %v11656_v25  ;;  %15102 = vst [vmem:[#allocation46_spill] sm:$0xff] %v11659_v45  ;;  %v11728_v32 = vmul.f32 %v11452_v27, %v5050_v39  ;;  %v5076_v39 = vld [vmem:[%s15021_s0 + $0x208] sm:$0xff]  ;;  %v6684_v45 = vld [vmem:[%s15021_s0 + $0x4f0] sm:$0xff] }
 0x44f   : > { %15103 = vst [vmem:[#allocation47_spill] sm:$0xff] %v11662_v21  ;;  %15104 = vst [vmem:[#allocation48_spill] sm:$0xff] %v11677_v28  ;;  %v6683_v21 = vld [vmem:[%s15021_s0 + $0x4e8] sm:$0xff]  ;;  %v6688_v57 = vld [vmem:[%s15021_s0 + $0x510] sm:$0xff] }
 0x450   : > { %15105 = vst [vmem:[#allocation49_spill] sm:$0xff] %v11680_v43  ;;  %15106 = vst [vmem:[#allocation50_spill] sm:$0xff] %v11683_v19  ;;  %v5126_v19 = vld [vmem:[%s15021_s0 + $0x398] sm:$0xff]  ;;  %v6687_v44 = vld [vmem:[%s15021_s0 + $0x508] sm:$0xff] }
 0x451   : > { %15107 = vst [vmem:[#allocation51_spill] sm:$0xff] %v11686_v22  ;;  %15108 = vst [vmem:[#allocation52_spill] sm:$0xff] %v11701_v26  ;;  %v5070_v22 = vld [vmem:[%s15021_s0 + $0x1d8] sm:$0xff]  ;;  %v6695_v42 = vld [vmem:[%s15021_s0 + $0x548] sm:$0xff] }
 0x452   : > { %15109 = vst [vmem:[#allocation53_spill] sm:$0xff] %v11704_v56  ;;  %15110 = vst [vmem:[#allocation54_spill] sm:$0xff] %v11707_v59  ;;  %v11734_v59 = vmul.f32 %v11452_v27, %v5052_v55  ;;  %v5073_v56 = vld [vmem:[%s15021_s0 + $0x1f0] sm:$0xff]  ;;  %v5074_v26 = vld [vmem:[%s15021_s0 + $0x1f8] sm:$0xff]  ;;  %v11752_v55 = vmul.f32 %v11452_v27, %v5054_v1 }
 0x453   : > { %15111 = vst [vmem:[#allocation55_spill] sm:$0xff] %v11710_v60  ;;  %15112 = vst [vmem:[#allocation56_spill] sm:$0xff] %v11725_v13  ;;  %v11731_v60 = vmul.f32 %v11452_v27, %v5051_v52  ;;  %v11749_v52 = vmul.f32 %v11452_v27, %v5053_v20  ;;  %v5078_v13 = vld [vmem:[%s15021_s0 + $0x218] sm:$0xff]  ;;  %v5079_v20 = vld [vmem:[%s15021_s0 + $0x220] sm:$0xff] }
 0x454   : > { %15113 = vst [vmem:[#allocation57_spill] sm:$0xff] %v11728_v32  ;;  %15115 = vst [vmem:[#allocation59_spill] sm:$0xff] %v11734_v59  ;;  %v11755_v59 = vmul.f32 %v11452_v27, %v5055_v7  ;;  %v5077_v32 = vld [vmem:[%s15021_s0 + $0x210] sm:$0xff]  ;;  %v5080_v1 = vld [vmem:[%s15021_s0 + $0x228] sm:$0xff]  ;;  %v11773_v7 = vmul.f32 %v11452_v27, %v5057_v11 }
 0x455   : > { %15114 = vst [vmem:[#allocation58_spill] sm:$0xff] %v11731_v60  ;;  %15116 = vst [vmem:[#allocation60_spill] sm:$0xff] %v11749_v52  ;;  %v11758_v60 = vmul.f32 %v11452_v27, %v5056_v34  ;;  %v11776_v34 = vmul.f32 %v11452_v27, %v5058_v40  ;;  %v5082_v52 = vld [vmem:[%s15021_s0 + $0x238] sm:$0xff]  ;;  %v5083_v11 = vld [vmem:[%s15021_s0 + $0x240] sm:$0xff] }
 0x456   : > { %15117 = vst [vmem:[#allocation61_spill] sm:$0xff] %v11752_v55  ;;  %15118 = vst [vmem:[#allocation62_spill] sm:$0xff] %v11755_v59  ;;  %v11782_v59 = vmul.f32 %v11452_v27, %v5060_v23  ;;  %v5081_v55 = vld [vmem:[%s15021_s0 + $0x230] sm:$0xff]  ;;  %v5084_v40 = vld [vmem:[%s15021_s0 + $0x248] sm:$0xff]  ;;  %v11800_v23 = vmul.f32 %v11452_v27, %v5062_v0 }
 0x457   : > { %15119 = vst [vmem:[#allocation63_spill] sm:$0xff] %v11758_v60  ;;  %15120 = vst [vmem:[#allocation64_spill] sm:$0xff] %v11773_v7  ;;  %v11779_v60 = vmul.f32 %v11452_v27, %v5059_v41  ;;  %v11797_v41 = vmul.f32 %v11452_v27, %v5061_v53  ;;  %v5086_v7 = vld [vmem:[%s15021_s0 + $0x258] sm:$0xff]  ;;  %v5087_v53 = vld [vmem:[%s15021_s0 + $0x260] sm:$0xff] }
 0x458   : > { %15121 = vst [vmem:[#allocation65_spill] sm:$0xff] %v11776_v34  ;;  %15123 = vst [vmem:[#allocation67_spill] sm:$0xff] %v11782_v59  ;;  %v11803_v59 = vmul.f32 %v11452_v27, %v5063_v18  ;;  %v5085_v34 = vld [vmem:[%s15021_s0 + $0x250] sm:$0xff]  ;;  %v5088_v0 = vld [vmem:[%s15021_s0 + $0x268] sm:$0xff]  ;;  %v11821_v18 = vmul.f32 %v11452_v27, %v5065_v10 }
 0x459   : > { %15122 = vst [vmem:[#allocation66_spill] sm:$0xff] %v11779_v60  ;;  %15124 = vst [vmem:[#allocation68_spill] sm:$0xff] %v11797_v41  ;;  %v11806_v60 = vmul.f32 %v11452_v27, %v5064_v30  ;;  %v11824_v30 = vmul.f32 %v11452_v27, %v5066_v38  ;;  %v5090_v41 = vld [vmem:[%s15021_s0 + $0x278] sm:$0xff]  ;;  %v5091_v10 = vld [vmem:[%s15021_s0 + $0x280] sm:$0xff] }
 0x45a   : > { %15125 = vst [vmem:[#allocation69_spill] sm:$0xff] %v11800_v23  ;;  %15126 = vst [vmem:[#allocation70_spill] sm:$0xff] %v11803_v59  ;;  %v11830_v59 = vmul.f32 %v11452_v27, %v5068_v14  ;;  %v5089_v23 = vld [vmem:[%s15021_s0 + $0x270] sm:$0xff]  ;;  %v5092_v38 = vld [vmem:[%s15021_s0 + $0x288] sm:$0xff]  ;;  %v11848_v14 = vmul.f32 %v11452_v27, %v5070_v22 }
 0x45b   : > { %15127 = vst [vmem:[#allocation71_spill] sm:$0xff] %v11806_v60  ;;  %15128 = vst [vmem:[#allocation72_spill] sm:$0xff] %v11821_v18  ;;  %v11827_v60 = vmul.f32 %v11452_v27, %v5067_v46  ;;  %v11845_v46 = vmul.f32 %v11452_v27, %v5069_v3  ;;  %v5094_v18 = vld [vmem:[%s15021_s0 + $0x298] sm:$0xff]  ;;  %v5095_v3 = vld [vmem:[%s15021_s0 + $0x2a0] sm:$0xff] }
 0x45c   : > { %15129 = vst [vmem:[#allocation73_spill] sm:$0xff] %v11824_v30  ;;  %15131 = vst [vmem:[#allocation75_spill] sm:$0xff] %v11830_v59  ;;  %v11851_v59 = vmul.f32 %v11452_v27, %v5071_v12  ;;  %v5093_v30 = vld [vmem:[%s15021_s0 + $0x290] sm:$0xff]  ;;  %v5096_v22 = vld [vmem:[%s15021_s0 + $0x2a8] sm:$0xff]  ;;  %v11869_v12 = vmul.f32 %v11452_v27, %v5073_v56 }
 0x45d   : > { %15130 = vst [vmem:[#allocation74_spill] sm:$0xff] %v11827_v60  ;;  %15132 = vst [vmem:[#allocation76_spill] sm:$0xff] %v11845_v46  ;;  %v11854_v60 = vmul.f32 %v11452_v27, %v5072_v17  ;;  %v11872_v17 = vmul.f32 %v11452_v27, %v5074_v26  ;;  %v5098_v46 = vld [vmem:[%s15021_s0 + $0x2b8] sm:$0xff]  ;;  %v5099_v56 = vld [vmem:[%s15021_s0 + $0x2c0] sm:$0xff] }
 0x45e   : > { %15133 = vst [vmem:[#allocation77_spill] sm:$0xff] %v11848_v14  ;;  %15134 = vst [vmem:[#allocation78_spill] sm:$0xff] %v11851_v59  ;;  %v11878_v59 = vmul.f32 %v11452_v27, %v5076_v39  ;;  %v5097_v14 = vld [vmem:[%s15021_s0 + $0x2b0] sm:$0xff]  ;;  %v5100_v26 = vld [vmem:[%s15021_s0 + $0x2c8] sm:$0xff]  ;;  %v11896_v39 = vmul.f32 %v11452_v27, %v5078_v13 }
 0x45f   : > { %15135 = vst [vmem:[#allocation79_spill] sm:$0xff] %v11854_v60  ;;  %15136 = vst [vmem:[#allocation80_spill] sm:$0xff] %v11869_v12  ;;  %v11875_v60 = vmul.f32 %v11452_v27, %v5075_v63  ;;  %v11893_v63 = vmul.f32 %v11452_v27, %v5077_v32  ;;  %v5102_v12 = vld [vmem:[%s15021_s0 + $0x2d8] sm:$0xff]  ;;  %v5103_v32 = vld [vmem:[%s15021_s0 + $0x2e0] sm:$0xff] }
 0x460   : > { %15137 = vst [vmem:[#allocation81_spill] sm:$0xff] %v11872_v17  ;;  %15139 = vst [vmem:[#allocation83_spill] sm:$0xff] %v11878_v59  ;;  %v11899_v59 = vmul.f32 %v11452_v27, %v5079_v20  ;;  %v5101_v17 = vld [vmem:[%s15021_s0 + $0x2d0] sm:$0xff]  ;;  %v5104_v13 = vld [vmem:[%s15021_s0 + $0x2e8] sm:$0xff]  ;;  %v11917_v20 = vmul.f32 %v11452_v27, %v5081_v55 }
 0x461   : > { %15138 = vst [vmem:[#allocation82_spill] sm:$0xff] %v11875_v60  ;;  %15140 = vst [vmem:[#allocation84_spill] sm:$0xff] %v11893_v63  ;;  %v11902_v60 = vmul.f32 %v11452_v27, %v5080_v1  ;;  %v11920_v1 = vmul.f32 %v11452_v27, %v5082_v52  ;;  %v5106_v63 = vld [vmem:[%s15021_s0 + $0x2f8] sm:$0xff]  ;;  %v5107_v55 = vld [vmem:[%s15021_s0 + $0x300] sm:$0xff] }
 0x462   : > { %15141 = vst [vmem:[#allocation85_spill] sm:$0xff] %v11896_v39  ;;  %15142 = vst [vmem:[#allocation86_spill] sm:$0xff] %v11899_v59  ;;  %v11926_v59 = vmul.f32 %v11452_v27, %v5084_v40  ;;  %v5105_v39 = vld [vmem:[%s15021_s0 + $0x2f0] sm:$0xff]  ;;  %v5108_v52 = vld [vmem:[%s15021_s0 + $0x308] sm:$0xff]  ;;  %v11944_v40 = vmul.f32 %v11452_v27, %v5086_v7 }
 0x463   : > { %15143 = vst [vmem:[#allocation87_spill] sm:$0xff] %v11902_v60  ;;  %15144 = vst [vmem:[#allocation88_spill] sm:$0xff] %v11917_v20  ;;  %v11923_v60 = vmul.f32 %v11452_v27, %v5083_v11  ;;  %v11941_v11 = vmul.f32 %v11452_v27, %v5085_v34  ;;  %v5110_v20 = vld [vmem:[%s15021_s0 + $0x318] sm:$0xff]  ;;  %v5111_v34 = vld [vmem:[%s15021_s0 + $0x320] sm:$0xff] }
 0x464   : > { %15145 = vst [vmem:[#allocation89_spill] sm:$0xff] %v11920_v1  ;;  %15147 = vst [vmem:[#allocation91_spill] sm:$0xff] %v11926_v59  ;;  %v11947_v59 = vmul.f32 %v11452_v27, %v5087_v53  ;;  %v5109_v1 = vld [vmem:[%s15021_s0 + $0x310] sm:$0xff]  ;;  %v5112_v7 = vld [vmem:[%s15021_s0 + $0x328] sm:$0xff]  ;;  %v11965_v53 = vmul.f32 %v11452_v27, %v5089_v23 }
 0x465   : > { %15146 = vst [vmem:[#allocation90_spill] sm:$0xff] %v11923_v60  ;;  %15148 = vst [vmem:[#allocation92_spill] sm:$0xff] %v11941_v11  ;;  %v11950_v60 = vmul.f32 %v11452_v27, %v5088_v0  ;;  %v11968_v0 = vmul.f32 %v11452_v27, %v5090_v41  ;;  %v5114_v11 = vld [vmem:[%s15021_s0 + $0x338] sm:$0xff]  ;;  %v5115_v23 = vld [vmem:[%s15021_s0 + $0x340] sm:$0xff] }
 0x466   : > { %15149 = vst [vmem:[#allocation93_spill] sm:$0xff] %v11944_v40  ;;  %15150 = vst [vmem:[#allocation94_spill] sm:$0xff] %v11947_v59  ;;  %v11974_v59 = vmul.f32 %v11452_v27, %v5092_v38  ;;  %v5113_v40 = vld [vmem:[%s15021_s0 + $0x330] sm:$0xff]  ;;  %v5116_v41 = vld [vmem:[%s15021_s0 + $0x348] sm:$0xff]  ;;  %v11992_v38 = vmul.f32 %v11452_v27, %v5094_v18 }
 0x467   : > { %15151 = vst [vmem:[#allocation95_spill] sm:$0xff] %v11950_v60  ;;  %15152 = vst [vmem:[#allocation96_spill] sm:$0xff] %v11965_v53  ;;  %v11971_v60 = vmul.f32 %v11452_v27, %v5091_v10  ;;  %v11989_v10 = vmul.f32 %v11452_v27, %v5093_v30  ;;  %v5118_v53 = vld [vmem:[%s15021_s0 + $0x358] sm:$0xff]  ;;  %v5119_v30 = vld [vmem:[%s15021_s0 + $0x360] sm:$0xff] }
 0x468   : > { %15153 = vst [vmem:[#allocation97_spill] sm:$0xff] %v11968_v0  ;;  %15155 = vst [vmem:[#allocation99_spill] sm:$0xff] %v11974_v59  ;;  %v11995_v59 = vmul.f32 %v11452_v27, %v5095_v3  ;;  %v5117_v0 = vld [vmem:[%s15021_s0 + $0x350] sm:$0xff]  ;;  %v5120_v18 = vld [vmem:[%s15021_s0 + $0x368] sm:$0xff]  ;;  %v12013_v3 = vmul.f32 %v11452_v27, %v5097_v14 }
 0x469   : > { %15154 = vst [vmem:[#allocation98_spill] sm:$0xff] %v11971_v60  ;;  %15156 = vst [vmem:[#allocation100_spill] sm:$0xff] %v11989_v10  ;;  %v11998_v60 = vmul.f32 %v11452_v27, %v5096_v22  ;;  %v12016_v22 = vmul.f32 %v11452_v27, %v5098_v46  ;;  %v5122_v10 = vld [vmem:[%s15021_s0 + $0x378] sm:$0xff]  ;;  %v5123_v14 = vld [vmem:[%s15021_s0 + $0x380] sm:$0xff] }
 0x46a   : > { %15157 = vst [vmem:[#allocation101_spill] sm:$0xff] %v11992_v38  ;;  %15158 = vst [vmem:[#allocation102_spill] sm:$0xff] %v11995_v59  ;;  %v12022_v59 = vmul.f32 %v11452_v27, %v5100_v26  ;;  %v5121_v38 = vld [vmem:[%s15021_s0 + $0x370] sm:$0xff]  ;;  %v5124_v46 = vld [vmem:[%s15021_s0 + $0x388] sm:$0xff]  ;;  %v12037_v26 = vmul.f32 %v11452_v27, %v5101_v17 }
 0x46b   : > { %15159 = vst [vmem:[#allocation103_spill] sm:$0xff] %v11998_v60  ;;  %15160 = vst [vmem:[#allocation104_spill] sm:$0xff] %v12013_v3  ;;  %v12019_v60 = vmul.f32 %v11452_v27, %v5099_v56  ;;  %v5791_v56 = vld [vmem:[#allocation3 + $0x2] sm:$0x1]  ;;  %v5125_v3 = vld [vmem:[%s15021_s0 + $0x390] sm:$0xff] }
 0x46c   : > { %15161 = vst [vmem:[#allocation105_spill] sm:$0xff] %v12016_v22  ;;  %15163 = vst [vmem:[#allocation107_spill] sm:$0xff] %v12022_v59  ;;  %v12040_v59 = vmul.f32 %v11452_v27, %v5102_v12  ;;  %v12046_v22 = vmul.f32 %v11452_v27, %v5104_v13  ;;  %v5127_v17 = vld [vmem:[%s15021_s0 + $0x3a0] sm:$0xff]  ;;  %v5128_v12 = vld [vmem:[%s15021_s0 + $0x3a8] sm:$0xff]  ;;  %v12064_v13 = vmul.f32 %v11452_v27, %v5106_v63 }
 0x46d   : > { %15162 = vst [vmem:[#allocation106_spill] sm:$0xff] %v12019_v60  ;;  %15164 = vst [vmem:[#allocation108_spill] sm:$0xff] %v12037_v26  ;;  %v12043_v60 = vmul.f32 %v11452_v27, %v5103_v32  ;;  %v12061_v32 = vmul.f32 %v11452_v27, %v5105_v39  ;;  %v5131_v39 = vld [vmem:[%s15021_s0 + $0x3c0] sm:$0xff]  ;;  %v5132_v63 = vld [vmem:[%s15021_s0 + $0x3c8] sm:$0xff] }
 0x46e   : > { %15165 = vst [vmem:[#allocation109_spill] sm:$0xff] %v12040_v59  ;;  %15167 = vst [vmem:[#allocation111_spill] sm:$0xff] %v12046_v22  ;;  %v12067_v22 = vmul.f32 %v11452_v27, %v5107_v55  ;;  %v5129_v59 = vld [vmem:[%s15021_s0 + $0x3b0] sm:$0xff]  ;;  %v12085_v55 = vmul.f32 %v11452_v27, %v5109_v1  ;;  %v5135_v1 = vld [vmem:[%s15021_s0 + $0x3e0] sm:$0xff] }
 0x46f   : > { %15166 = vst [vmem:[#allocation110_spill] sm:$0xff] %v12043_v60  ;;  %7935 = vpush %v5791_v56  ;;  %v12070_v60 = vmul.f32 %v11452_v27, %v5108_v52  ;;  %v5130_v56 = vld [vmem:[%s15021_s0 + $0x3b8] sm:$0xff]  ;;  %v12088_v52 = vmul.f32 %v11452_v27, %v5110_v20  ;;  %v12106_v20 = vmul.f32 %v11452_v27, %v5113_v40  ;;  %v6676_v26 = vld [vmem:[%s15021_s0 + $0x4b0] sm:$0xff] }
 0x470   : > { %15168 = vst [vmem:[#allocation112_spill] sm:$0xff] %v12061_v32  ;;  %15169 = vst [vmem:[#allocation113_spill] sm:$0xff] %v12064_v13  ;;  %v5133_v13 = vld [vmem:[%s15021_s0 + $0x3d0] sm:$0xff]  ;;  %v5134_v32 = vld [vmem:[%s15021_s0 + $0x3d8] sm:$0xff] }
 0x471   : > { %15170 = vst [vmem:[#allocation114_spill] sm:$0xff] %v12067_v22  ;;  %15171 = vst [vmem:[#allocation115_spill] sm:$0xff] %v12070_v60  ;;  %v12091_v60 = vmul.f32 %v11452_v27, %v5111_v34  ;;  %v12094_v22 = vmul.f32 %v11452_v27, %v5112_v7  ;;  %v12109_v34 = vmul.f32 %v11452_v27, %v5114_v11  ;;  %v5138_v40 = vld [vmem:[%s15021_s0 + $0x3f8] sm:$0xff]  ;;  %v6654_v11 = vld [vmem:[%s15021_s0 + $0x400] sm:$0xff] }
 0x472   : > { %15172 = vst [vmem:[#allocation116_spill] sm:$0xff] %v12085_v55  ;;  %15173 = vst [vmem:[#allocation117_spill] sm:$0xff] %v12088_v52  ;;  %v12112_v7 = vmul.f32 %v11452_v27, %v5115_v23  ;;  %v5137_v52 = vld [vmem:[%s15021_s0 + $0x3f0] sm:$0xff]  ;;  %v12130_v23 = vmul.f32 %v11452_v27, %v5117_v0  ;;  %v6657_v0 = vld [vmem:[%s15021_s0 + $0x418] sm:$0xff] }
 0x473   : > { %15174 = vst [vmem:[#allocation118_spill] sm:$0xff] %v12091_v60  ;;  %15175 = vst [vmem:[#allocation119_spill] sm:$0xff] %v12094_v22  ;;  %v12115_v22 = vmul.f32 %v11452_v27, %v5116_v41  ;;  %v5136_v60 = vld [vmem:[%s15021_s0 + $0x3e8] sm:$0xff]  ;;  %v12133_v41 = vmul.f32 %v11452_v27, %v5118_v53  ;;  %v6658_v53 = vld [vmem:[%s15021_s0 + $0x420] sm:$0xff] }
 0x474   : > { %15176 = vst [vmem:[#allocation120_spill] sm:$0xff] %v12106_v20  ;;  %15177 = vst [vmem:[#allocation121_spill] sm:$0xff] %v12109_v34  ;;  %v6655_v34 = vld [vmem:[%s15021_s0 + $0x408] sm:$0xff]  ;;  %v6656_v20 = vld [vmem:[%s15021_s0 + $0x410] sm:$0xff] }
 0x475   : > { %15178 = vst [vmem:[#allocation122_spill] sm:$0xff] %v12112_v7  ;;  %15179 = vst [vmem:[#allocation123_spill] sm:$0xff] %v12115_v22  ;;  %v12136_v22 = vmul.f32 %v11452_v27, %v5119_v30  ;;  %v12139_v7 = vmul.f32 %v11452_v27, %v5120_v18  ;;  %v12154_v30 = vmul.f32 %v11452_v27, %v5121_v38  ;;  %v6661_v38 = vld [vmem:[%s15021_s0 + $0x438] sm:$0xff]  ;;  %v6675_v55 = vld [vmem:[%s15021_s0 + $0x4a8] sm:$0xff] }
 0x476   : > { %15180 = vst [vmem:[#allocation124_spill] sm:$0xff] %v12130_v23  ;;  %15181 = vst [vmem:[#allocation125_spill] sm:$0xff] %v12133_v41  ;;  %v12157_v18 = vmul.f32 %v11452_v27, %v5122_v10  ;;  %v6659_v41 = vld [vmem:[%s15021_s0 + $0x428] sm:$0xff]  ;;  %v6660_v23 = vld [vmem:[%s15021_s0 + $0x430] sm:$0xff] }
 0x477   : > { %15182 = vst [vmem:[#allocation126_spill] sm:$0xff] %v12136_v22  ;;  %15183 = vst [vmem:[#allocation127_spill] sm:$0xff] %v12139_v7  ;;  %v12160_v7 = vmul.f32 %v11452_v27, %v5123_v14  ;;  %v12163_v22 = vmul.f32 %v11452_v27, %v5124_v46  ;;  %v6662_v10 = vld [vmem:[%s15021_s0 + $0x440] sm:$0xff]  ;;  %v12178_v14 = vmul.f32 %v11452_v27, %v5125_v3  ;;  %v6665_v3 = vld [vmem:[%s15021_s0 + $0x458] sm:$0xff] }
 0x478   : > { %15184 = vst [vmem:[#allocation128_spill] sm:$0xff] %v12154_v30  ;;  %15185 = vst [vmem:[#allocation129_spill] sm:$0xff] %v12157_v18  ;;  %v12181_v46 = vmul.f32 %v11452_v27, %v5126_v19  ;;  %v6663_v18 = vld [vmem:[%s15021_s0 + $0x448] sm:$0xff]  ;;  %v6664_v30 = vld [vmem:[%s15021_s0 + $0x450] sm:$0xff] }
 0x479   : > { %15186 = vst [vmem:[#allocation130_spill] sm:$0xff] %v12160_v7  ;;  %15187 = vst [vmem:[#allocation131_spill] sm:$0xff] %v12163_v22  ;;  %v12184_v22 = vmul.f32 %v11452_v27, %v5127_v17  ;;  %v12187_v7 = vmul.f32 %v11452_v27, %v5128_v12  ;;  %v6666_v19 = vld [vmem:[%s15021_s0 + $0x460] sm:$0xff]  ;;  %v12202_v17 = vmul.f32 %v11452_v27, %v5129_v59  ;;  %v6669_v59 = vld [vmem:[%s15021_s0 + $0x478] sm:$0xff] }
 0x47a   : > { %15188 = vst [vmem:[#allocation132_spill] sm:$0xff] %v12178_v14  ;;  %15189 = vst [vmem:[#allocation133_spill] sm:$0xff] %v12181_v46  ;;  %v12205_v12 = vmul.f32 %v11452_v27, %v5130_v56  ;;  %v6667_v46 = vld [vmem:[%s15021_s0 + $0x468] sm:$0xff]  ;;  %v6668_v14 = vld [vmem:[%s15021_s0 + $0x470] sm:$0xff] }
 0x47b   : > { %15190 = vst [vmem:[#allocation134_spill] sm:$0xff] %v12184_v22  ;;  %15191 = vst [vmem:[#allocation135_spill] sm:$0xff] %v12187_v7  ;;  %v12208_v7 = vmul.f32 %v11452_v27, %v5131_v39  ;;  %v12211_v22 = vmul.f32 %v11452_v27, %v5132_v63  ;;  %v6670_v56 = vld [vmem:[%s15021_s0 + $0x480] sm:$0xff]  ;;  %v12226_v39 = vmul.f32 %v11452_v27, %v5133_v13  ;;  %v6673_v13 = vld [vmem:[%s15021_s0 + $0x498] sm:$0xff] }
 0x47c   : > { %15192 = vst [vmem:[#allocation136_spill] sm:$0xff] %v12202_v17  ;;  %15193 = vst [vmem:[#allocation137_spill] sm:$0xff] %v12205_v12  ;;  %v12229_v63 = vmul.f32 %v11452_v27, %v5134_v32  ;;  %v6671_v12 = vld [vmem:[%s15021_s0 + $0x488] sm:$0xff]  ;;  %v6672_v17 = vld [vmem:[%s15021_s0 + $0x490] sm:$0xff] }
 0x47d   : > { %15194 = vst [vmem:[#allocation138_spill] sm:$0xff] %v12208_v7  ;;  %15195 = vst [vmem:[#allocation139_spill] sm:$0xff] %v12211_v22  ;;  %v12232_v22 = vmul.f32 %v11452_v27, %v5135_v1  ;;  %v12234_v7 = vstv %s7934_s15  ;;  %v6674_v32 = vld [vmem:[%s15021_s0 + $0x4a0] sm:$0xff]  ;;  %v12249_v1 = vmul.f32 %v11452_v27, %v5136_v60  ;;  %v6677_v60 = vld [vmem:[%s15021_s0 + $0x4b8] sm:$0xff] }
 0x47e   : > { %15196 = vst [vmem:[#allocation140_spill] sm:$0xff] %v12226_v39  ;;  %15197 = vst [vmem:[#allocation141_spill] sm:$0xff] %v12229_v63  ;;  %v12255_v63 = vmul.f32 %v11452_v27, %v5138_v40  ;;  %v12258_v39 = vmul.f32 %v6654_v11, %v12234_v7  ;;  %v12276_v40 = vmul.f32 %v6656_v20, %v12234_v7  ;;  %v6682_v20 = vld [vmem:[%s15021_s0 + $0x4e0] sm:$0xff] }
 0x47f   : > { %15198 = vst [vmem:[#allocation142_spill] sm:$0xff] %v12232_v22  ;;  %15199 = vst [vmem:[#allocation143_spill] sm:$0xff] %v12249_v1  ;;  %v12252_v22 = vmul.f32 %v11452_v27, %v5137_v52  ;;  %v6678_v27 = vld [vmem:[%s15021_s0 + $0x4c0] sm:$0xff]  ;;  %v12273_v52 = vmul.f32 %v6655_v34, %v12234_v7  ;;  %v12279_v11 = vmul.f32 %v6657_v0, %v12234_v7  ;;  %v6680_v1 = vld [vmem:[%s15021_s0 + $0x4d0] sm:$0xff] }
 0x480   : > { %15201 = vst [vmem:[#allocation145_spill] sm:$0xff] %v12255_v63  ;;  %v12282_v63 = vmul.f32 %v6658_v53, %v12234_v7  ;;  %v6681_v34 = vld [vmem:[%s15021_s0 + $0x4d8] sm:$0xff]  ;;  %v12297_v0 = vmul.f32 %v6659_v41, %v12234_v7  ;;  %v12300_v53 = vmul.f32 %v6660_v23, %v12234_v7  ;;  %v12303_v43 = vmul.f32 %v6661_v38, %v12234_v7  ;;  %v6686_v23 = vld [vmem:[%s15021_s0 + $0x500] sm:$0xff] }
 0x481   : > { %15200 = vst [vmem:[#allocation144_spill] sm:$0xff] %v12252_v22  ;;  %v6679_v22 = vld [vmem:[%s15021_s0 + $0x4c8] sm:$0xff]  ;;  %v12306_v28 = vmul.f32 %v6662_v10, %v12234_v7  ;;  %v6685_v41 = vld [vmem:[%s15021_s0 + $0x4f8] sm:$0xff]  ;;  %v12321_v38 = vmul.f32 %v6663_v18, %v12234_v7  ;;  %v12324_v10 = vmul.f32 %v6664_v30, %v12234_v7  ;;  %v12327_v25 = vmul.f32 %v6665_v3, %v12234_v7  ;;  %v6690_v30 = vld [vmem:[%s15021_s0 + $0x520] sm:$0xff] }
 0x482   : > { %v12330_v61 = vmul.f32 %v6666_v19, %v12234_v7  ;;  %v6689_v18 = vld [vmem:[%s15021_s0 + $0x518] sm:$0xff]  ;;  %v12345_v3 = vmul.f32 %v6667_v46, %v12234_v7  ;;  %v12348_v19 = vmul.f32 %v6668_v14, %v12234_v7  ;;  %v12351_v33 = vmul.f32 %v6669_v59, %v12234_v7  ;;  %v6694_v14 = vld [vmem:[%s15021_s0 + $0x540] sm:$0xff] }
 0x483   : > { %v12354_v62 = vmul.f32 %v6670_v56, %v12234_v7  ;;  %v6693_v46 = vld [vmem:[%s15021_s0 + $0x538] sm:$0xff]  ;;  %v12369_v59 = vmul.f32 %v6671_v12, %v12234_v7  ;;  %v12372_v56 = vmul.f32 %v6672_v17, %v12234_v7  ;;  %v12375_v9 = vmul.f32 %v6673_v13, %v12234_v7  ;;  %v6698_v17 = vld [vmem:[%s15021_s0 + $0x560] sm:$0xff] }
 0x484   : > { %v12378_v36 = vmul.f32 %v6674_v32, %v12234_v7  ;;  %v6697_v12 = vld [vmem:[%s15021_s0 + $0x558] sm:$0xff]  ;;  %v12393_v13 = vmul.f32 %v6675_v55, %v12234_v7  ;;  %v12396_v32 = vmul.f32 %v6676_v26, %v12234_v7  ;;  %v6702_v26 = vld [vmem:[%s15021_s0 + $0x580] sm:$0xff] }
 0x485   : > { %15202 = vst [vmem:[#allocation146_spill] sm:$0xff] %v12354_v62  ;;  %15203 = vst [vmem:[#allocation147_spill] sm:$0xff] %v12369_v59  ;;  %v6696_v62 = vld [vmem:[%s15021_s0 + $0x550] sm:$0xff]  ;;  %v6701_v55 = vld [vmem:[%s15021_s0 + $0x578] sm:$0xff] }
 0x486   : > { %15204 = vst [vmem:[#allocation148_spill] sm:$0xff] %v12372_v56  ;;  %15205 = vst [vmem:[#allocation149_spill] sm:$0xff] %v12375_v9  ;;  %v12402_v9 = vmul.f32 %v6678_v27, %v12234_v7  ;;  %v6699_v56 = vld [vmem:[%s15021_s0 + $0x568] sm:$0xff]  ;;  %v6700_v59 = vld [vmem:[%s15021_s0 + $0x570] sm:$0xff]  ;;  %v12420_v27 = vmul.f32 %v6680_v1, %v12234_v7 }
 0x487   : > { %15206 = vst [vmem:[#allocation150_spill] sm:$0xff] %v12378_v36  ;;  %15207 = vst [vmem:[#allocation151_spill] sm:$0xff] %v12393_v13  ;;  %v12399_v36 = vmul.f32 %v6677_v60, %v12234_v7  ;;  %v12417_v60 = vmul.f32 %v6679_v22, %v12234_v7  ;;  %v6704_v13 = vld [vmem:[%s15021_s0 + $0x590] sm:$0xff]  ;;  %v6705_v22 = vld [vmem:[%s15021_s0 + $0x598] sm:$0xff] }
 0x488   : > { %15208 = vst [vmem:[#allocation152_spill] sm:$0xff] %v12396_v32  ;;  %15210 = vst [vmem:[#allocation154_spill] sm:$0xff] %v12402_v9  ;;  %v12423_v9 = vmul.f32 %v6681_v34, %v12234_v7  ;;  %v6703_v32 = vld [vmem:[%s15021_s0 + $0x588] sm:$0xff]  ;;  %v6706_v1 = vld [vmem:[%s15021_s0 + $0x5a0] sm:$0xff]  ;;  %v12441_v34 = vmul.f32 %v6683_v21, %v12234_v7 }
 0x489   : > { %15209 = vst [vmem:[#allocation153_spill] sm:$0xff] %v12399_v36  ;;  %15211 = vst [vmem:[#allocation155_spill] sm:$0xff] %v12417_v60  ;;  %v12426_v36 = vmul.f32 %v6682_v20, %v12234_v7  ;;  %v12444_v20 = vmul.f32 %v6684_v45, %v12234_v7  ;;  %v6708_v60 = vld [vmem:[%s15021_s0 + $0x5b0] sm:$0xff]  ;;  %v6709_v21 = vld [vmem:[%s15021_s0 + $0x5b8] sm:$0xff] }
 0x48a   : > { %15212 = vst [vmem:[#allocation156_spill] sm:$0xff] %v12420_v27  ;;  %15213 = vst [vmem:[#allocation157_spill] sm:$0xff] %v12423_v9  ;;  %v12450_v9 = vmul.f32 %v6686_v23, %v12234_v7  ;;  %v6707_v27 = vld [vmem:[%s15021_s0 + $0x5a8] sm:$0xff]  ;;  %v6710_v45 = vld [vmem:[%s15021_s0 + $0x5c0] sm:$0xff]  ;;  %v12468_v23 = vmul.f32 %v6688_v57, %v12234_v7 }
 0x48b   : > { %15214 = vst [vmem:[#allocation158_spill] sm:$0xff] %v12426_v36  ;;  %15215 = vst [vmem:[#allocation159_spill] sm:$0xff] %v12441_v34  ;;  %v12447_v36 = vmul.f32 %v6685_v41, %v12234_v7  ;;  %v12465_v41 = vmul.f32 %v6687_v44, %v12234_v7  ;;  %v6712_v34 = vld [vmem:[%s15021_s0 + $0x5d0] sm:$0xff]  ;;  %v6713_v44 = vld [vmem:[%s15021_s0 + $0x5d8] sm:$0xff] }
 0x48c   : > { %15216 = vst [vmem:[#allocation160_spill] sm:$0xff] %v12444_v20  ;;  %15218 = vst [vmem:[#allocation162_spill] sm:$0xff] %v12450_v9  ;;  %v12471_v9 = vmul.f32 %v6689_v18, %v12234_v7  ;;  %v6711_v20 = vld [vmem:[%s15021_s0 + $0x5c8] sm:$0xff]  ;;  %v6714_v57 = vld [vmem:[%s15021_s0 + $0x5e0] sm:$0xff]  ;;  %v12489_v18 = vmul.f32 %v6691_v5, %v12234_v7 }
 0x48d   : > { %15217 = vst [vmem:[#allocation161_spill] sm:$0xff] %v12447_v36  ;;  %15219 = vst [vmem:[#allocation163_spill] sm:$0xff] %v12465_v41  ;;  %v12474_v36 = vmul.f32 %v6690_v30, %v12234_v7  ;;  %v12492_v30 = vmul.f32 %v6692_v4, %v12234_v7  ;;  %v6716_v41 = vld [vmem:[%s15021_s0 + $0x5f0] sm:$0xff]  ;;  %v6717_v5 = vld [vmem:[%s15021_s0 + $0x5f8] sm:$0xff] }
 0x48e   : > { %15220 = vst [vmem:[#allocation164_spill] sm:$0xff] %v12468_v23  ;;  %15221 = vst [vmem:[#allocation165_spill] sm:$0xff] %v12471_v9  ;;  %v12498_v9 = vmul.f32 %v6694_v14, %v12234_v7  ;;  %v6715_v23 = vld [vmem:[%s15021_s0 + $0x5e8] sm:$0xff]  ;;  %v6718_v4 = vld [vmem:[%s15021_s0 + $0x600] sm:$0xff]  ;;  %v12516_v14 = vmul.f32 %v6696_v62, %v12234_v7 }
 0x48f   : > { %15222 = vst [vmem:[#allocation166_spill] sm:$0xff] %v12474_v36  ;;  %15223 = vst [vmem:[#allocation167_spill] sm:$0xff] %v12489_v18  ;;  %v12495_v36 = vmul.f32 %v6693_v46, %v12234_v7  ;;  %v12513_v46 = vmul.f32 %v6695_v42, %v12234_v7  ;;  %v6720_v18 = vld [vmem:[%s15021_s0 + $0x610] sm:$0xff]  ;;  %v6721_v42 = vld [vmem:[%s15021_s0 + $0x618] sm:$0xff] }
 0x490   : > { %15224 = vst [vmem:[#allocation168_spill] sm:$0xff] %v12492_v30  ;;  %15226 = vst [vmem:[#allocation170_spill] sm:$0xff] %v12498_v9  ;;  %v12519_v9 = vmul.f32 %v6697_v12, %v12234_v7  ;;  %v6719_v30 = vld [vmem:[%s15021_s0 + $0x608] sm:$0xff]  ;;  %v6722_v62 = vld [vmem:[%s15021_s0 + $0x620] sm:$0xff]  ;;  %v12537_v12 = vmul.f32 %v6699_v56, %v12234_v7 }
 0x491   : > { %15225 = vst [vmem:[#allocation169_spill] sm:$0xff] %v12495_v36  ;;  %15227 = vst [vmem:[#allocation171_spill] sm:$0xff] %v12513_v46  ;;  %v12522_v36 = vmul.f32 %v6698_v17, %v12234_v7  ;;  %v12540_v17 = vmul.f32 %v6700_v59, %v12234_v7  ;;  %v6724_v46 = vld [vmem:[%s15021_s0 + $0x630] sm:$0xff]  ;;  %v6725_v56 = vld [vmem:[%s15021_s0 + $0x638] sm:$0xff] }
 0x492   : > { %15228 = vst [vmem:[#allocation172_spill] sm:$0xff] %v12516_v14  ;;  %15229 = vst [vmem:[#allocation173_spill] sm:$0xff] %v12519_v9  ;;  %v12546_v9 = vmul.f32 %v6702_v26, %v12234_v7  ;;  %v6723_v14 = vld [vmem:[%s15021_s0 + $0x628] sm:$0xff]  ;;  %v6726_v59 = vld [vmem:[%s15021_s0 + $0x640] sm:$0xff]  ;;  %v12564_v26 = vmul.f32 %v6704_v13, %v12234_v7 }
 0x493   : > { %15230 = vst [vmem:[#allocation174_spill] sm:$0xff] %v12522_v36  ;;  %15231 = vst [vmem:[#allocation175_spill] sm:$0xff] %v12537_v12  ;;  %v12543_v36 = vmul.f32 %v6701_v55, %v12234_v7  ;;  %v12561_v55 = vmul.f32 %v6703_v32, %v12234_v7  ;;  %v6728_v12 = vld [vmem:[%s15021_s0 + $0x650] sm:$0xff]  ;;  %v6729_v32 = vld [vmem:[%s15021_s0 + $0x658] sm:$0xff] }
 0x494   : > { %15232 = vst [vmem:[#allocation176_spill] sm:$0xff] %v12540_v17  ;;  %15234 = vst [vmem:[#allocation178_spill] sm:$0xff] %v12546_v9  ;;  %v12567_v9 = vmul.f32 %v6705_v22, %v12234_v7  ;;  %v6727_v17 = vld [vmem:[%s15021_s0 + $0x648] sm:$0xff]  ;;  %v6730_v13 = vld [vmem:[%s15021_s0 + $0x660] sm:$0xff]  ;;  %v12585_v22 = vmul.f32 %v6707_v27, %v12234_v7 }
 0x495   : > { %15233 = vst [vmem:[#allocation177_spill] sm:$0xff] %v12543_v36  ;;  %15235 = vst [vmem:[#allocation179_spill] sm:$0xff] %v12561_v55  ;;  %v12570_v36 = vmul.f32 %v6706_v1, %v12234_v7  ;;  %v12588_v1 = vmul.f32 %v6708_v60, %v12234_v7  ;;  %v6732_v55 = vld [vmem:[%s15021_s0 + $0x670] sm:$0xff]  ;;  %v6733_v27 = vld [vmem:[%s15021_s0 + $0x678] sm:$0xff] }
 0x496   : > { %15236 = vst [vmem:[#allocation180_spill] sm:$0xff] %v12564_v26  ;;  %15237 = vst [vmem:[#allocation181_spill] sm:$0xff] %v12567_v9  ;;  %v12594_v9 = vmul.f32 %v6710_v45, %v12234_v7  ;;  %v6731_v26 = vld [vmem:[%s15021_s0 + $0x668] sm:$0xff]  ;;  %v6734_v60 = vld [vmem:[%s15021_s0 + $0x680] sm:$0xff]  ;;  %v12612_v45 = vmul.f32 %v6712_v34, %v12234_v7 }
 0x497   : > { %15238 = vst [vmem:[#allocation182_spill] sm:$0xff] %v12570_v36  ;;  %15239 = vst [vmem:[#allocation183_spill] sm:$0xff] %v12585_v22  ;;  %v12591_v36 = vmul.f32 %v6709_v21, %v12234_v7  ;;  %v12609_v21 = vmul.f32 %v6711_v20, %v12234_v7  ;;  %v6736_v22 = vld [vmem:[%s15021_s0 + $0x690] sm:$0xff]  ;;  %v6737_v20 = vld [vmem:[%s15021_s0 + $0x698] sm:$0xff] }
 0x498   : > { %15240 = vst [vmem:[#allocation184_spill] sm:$0xff] %v12588_v1  ;;  %15242 = vst [vmem:[#allocation186_spill] sm:$0xff] %v12594_v9  ;;  %v12615_v9 = vmul.f32 %v6713_v44, %v12234_v7  ;;  %v6735_v1 = vld [vmem:[%s15021_s0 + $0x688] sm:$0xff]  ;;  %v6738_v34 = vld [vmem:[%s15021_s0 + $0x6a0] sm:$0xff]  ;;  %v12633_v44 = vmul.f32 %v6715_v23, %v12234_v7 }
 0x499   : > { %15241 = vst [vmem:[#allocation185_spill] sm:$0xff] %v12591_v36  ;;  %15243 = vst [vmem:[#allocation187_spill] sm:$0xff] %v12609_v21  ;;  %v12618_v36 = vmul.f32 %v6714_v57, %v12234_v7  ;;  %v12636_v57 = vmul.f32 %v6716_v41, %v12234_v7  ;;  %v6740_v21 = vld [vmem:[%s15021_s0 + $0x6b0] sm:$0xff]  ;;  %v6741_v23 = vld [vmem:[%s15021_s0 + $0x6b8] sm:$0xff] }
 0x49a   : > { %15244 = vst [vmem:[#allocation188_spill] sm:$0xff] %v12612_v45  ;;  %15245 = vst [vmem:[#allocation189_spill] sm:$0xff] %v12615_v9  ;;  %v12642_v9 = vmul.f32 %v6718_v4, %v12234_v7  ;;  %v6739_v45 = vld [vmem:[%s15021_s0 + $0x6a8] sm:$0xff]  ;;  %v6742_v41 = vld [vmem:[%s15021_s0 + $0x6c0] sm:$0xff]  ;;  %v12660_v4 = vmul.f32 %v6720_v18, %v12234_v7 }
 0x49b   : > { %15246 = vst [vmem:[#allocation190_spill] sm:$0xff] %v12618_v36  ;;  %15247 = vst [vmem:[#allocation191_spill] sm:$0xff] %v12633_v44  ;;  %v12639_v36 = vmul.f32 %v6717_v5, %v12234_v7  ;;  %v12657_v5 = vmul.f32 %v6719_v30, %v12234_v7  ;;  %v6744_v44 = vld [vmem:[%s15021_s0 + $0x6d0] sm:$0xff]  ;;  %v6745_v30 = vld [vmem:[%s15021_s0 + $0x6d8] sm:$0xff] }
 0x49c   : > { %15248 = vst [vmem:[#allocation192_spill] sm:$0xff] %v12636_v57  ;;  %15250 = vst [vmem:[#allocation194_spill] sm:$0xff] %v12642_v9  ;;  %v12663_v9 = vmul.f32 %v6721_v42, %v12234_v7  ;;  %v6743_v57 = vld [vmem:[%s15021_s0 + $0x6c8] sm:$0xff]  ;;  %v6746_v18 = vld [vmem:[%s15021_s0 + $0x6e0] sm:$0xff]  ;;  %v12681_v42 = vmul.f32 %v6723_v14, %v12234_v7 }
 0x49d   : > { %15249 = vst [vmem:[#allocation193_spill] sm:$0xff] %v12639_v36  ;;  %15251 = vst [vmem:[#allocation195_spill] sm:$0xff] %v12657_v5  ;;  %v12666_v36 = vmul.f32 %v6722_v62, %v12234_v7  ;;  %v12684_v62 = vmul.f32 %v6724_v46, %v12234_v7  ;;  %v6748_v5 = vld [vmem:[%s15021_s0 + $0x6f0] sm:$0xff]  ;;  %v6749_v14 = vld [vmem:[%s15021_s0 + $0x6f8] sm:$0xff] }
 0x49e   : > { %15252 = vst [vmem:[#allocation196_spill] sm:$0xff] %v12660_v4  ;;  %15253 = vst [vmem:[#allocation197_spill] sm:$0xff] %v12663_v9  ;;  %v12690_v9 = vmul.f32 %v6726_v59, %v12234_v7  ;;  %v6747_v4 = vld [vmem:[%s15021_s0 + $0x6e8] sm:$0xff]  ;;  %v6750_v46 = vld [vmem:[%s15021_s0 + $0x700] sm:$0xff]  ;;  %v12708_v59 = vmul.f32 %v6728_v12, %v12234_v7 }
 0x49f   : > { %15254 = vst [vmem:[#allocation198_spill] sm:$0xff] %v12666_v36  ;;  %15255 = vst [vmem:[#allocation199_spill] sm:$0xff] %v12681_v42  ;;  %v12687_v36 = vmul.f32 %v6725_v56, %v12234_v7  ;;  %v12705_v56 = vmul.f32 %v6727_v17, %v12234_v7  ;;  %v6752_v42 = vld [vmem:[%s15021_s0 + $0x710] sm:$0xff]  ;;  %v6753_v17 = vld [vmem:[%s15021_s0 + $0x718] sm:$0xff] }
 0x4a0   : > { %15256 = vst [vmem:[#allocation200_spill] sm:$0xff] %v12684_v62  ;;  %15258 = vst [vmem:[#allocation202_spill] sm:$0xff] %v12690_v9  ;;  %v12711_v9 = vmul.f32 %v6729_v32, %v12234_v7  ;;  %v6751_v62 = vld [vmem:[%s15021_s0 + $0x708] sm:$0xff]  ;;  %v6754_v12 = vld [vmem:[%s15021_s0 + $0x720] sm:$0xff]  ;;  %v12729_v32 = vmul.f32 %v6731_v26, %v12234_v7  ;;  %s7936_s27 = spop %7935 }
 0x4a1   : > { %15257 = vst [vmem:[#allocation201_spill] sm:$0xff] %v12687_v36  ;;  %15259 = vst [vmem:[#allocation203_spill] sm:$0xff] %v12705_v56  ;;  %v12714_v36 = vmul.f32 %v6730_v13, %v12234_v7  ;;  %v12732_v13 = vmul.f32 %v6732_v55, %v12234_v7  ;;  %v6756_v56 = vld [vmem:[%s15021_s0 + $0x730] sm:$0xff]  ;;  %v6757_v26 = vld [vmem:[%s15021_s0 + $0x738] sm:$0xff]  ;;  %v12750_v55 = vmul.f32 %v6735_v1, %v12234_v7 }
 0x4a2   : > { %15260 = vst [vmem:[#allocation204_spill] sm:$0xff] %v12708_v59  ;;  %15261 = vst [vmem:[#allocation205_spill] sm:$0xff] %v12711_v9  ;;  %v12738_v9 = vmul.f32 %v6734_v60, %v12234_v7  ;;  %v6755_v59 = vld [vmem:[%s15021_s0 + $0x728] sm:$0xff]  ;;  %v12756_v60 = vmul.f32 %v6737_v20, %v12234_v7  ;;  %v6760_v1 = vld [vmem:[%s15021_s0 + $0x750] sm:$0xff]  ;;  %v12774_v20 = vmul.f32 %v6740_v21, %v12234_v7 }
 0x4a3   : > { %15262 = vst [vmem:[#allocation206_spill] sm:$0xff] %v12714_v36  ;;  %15263 = vst [vmem:[#allocation207_spill] sm:$0xff] %v12732_v13  ;;  %v12735_v36 = vmul.f32 %v6733_v27, %v12234_v7  ;;  %v12753_v27 = vmul.f32 %v6736_v22, %v12234_v7  ;;  %v6759_v13 = vld [vmem:[%s15021_s0 + $0x748] sm:$0xff]  ;;  %v12771_v22 = vmul.f32 %v6739_v45, %v12234_v7 }
 0x4a4   : > { %15265 = vst [vmem:[#allocation209_spill] sm:$0xff] %v12738_v9  ;;  %15267 = vst [vmem:[#allocation211_spill] sm:$0xff] %v12756_v60  ;;  %v12759_v9 = vmul.f32 %v6738_v34, %v12234_v7  ;;  %v12777_v34 = vmul.f32 %v6741_v23, %v12234_v7  ;;  %v6761_v60 = vld [vmem:[%s15021_s0 + $0x758] sm:$0xff]  ;;  %v6763_v45 = vld [vmem:[%s15021_s0 + $0x768] sm:$0xff]  ;;  %v12792_v21 = vmul.f32 %v6743_v57, %v12234_v7 }
 0x4a5   : > { %15264 = vst [vmem:[#allocation208_spill] sm:$0xff] %v12735_v36  ;;  %15266 = vst [vmem:[#allocation210_spill] sm:$0xff] %v12753_v27  ;;  %v6758_v36 = vld [vmem:[%s15021_s0 + $0x740] sm:$0xff]  ;;  %v12795_v23 = vmul.f32 %v6744_v44, %v12234_v7  ;;  %v12813_v44 = vmul.f32 %v6747_v4, %v12234_v7  ;;  %v6769_v4 = vld [vmem:[%s15021_s0 + $0x798] sm:$0xff] }
 0x4a6   : > { %15268 = vst [vmem:[#allocation212_spill] sm:$0xff] %v12759_v9  ;;  %15269 = vst [vmem:[#allocation213_spill] sm:$0xff] %v12774_v20  ;;  %v12780_v9 = vmul.f32 %v6742_v41, %v12234_v7  ;;  %v6762_v27 = vld [vmem:[%s15021_s0 + $0x760] sm:$0xff]  ;;  %v12798_v41 = vmul.f32 %v6745_v30, %v12234_v7  ;;  %v6765_v20 = vld [vmem:[%s15021_s0 + $0x778] sm:$0xff]  ;;  %v12816_v30 = vmul.f32 %v6748_v5, %v12234_v7 }
 0x4a7   : > { %15270 = vst [vmem:[#allocation214_spill] sm:$0xff] %v12777_v34  ;;  %15272 = vst [vmem:[#allocation216_spill] sm:$0xff] %v12795_v23  ;;  %v6764_v34 = vld [vmem:[%s15021_s0 + $0x770] sm:$0xff]  ;;  %v6766_v57 = vld [vmem:[%s15021_s0 + $0x780] sm:$0xff]  ;;  %v12834_v5 = vmul.f32 %v6751_v62, %v12234_v7 }
 0x4a8   : > { %15271 = vst [vmem:[#allocation215_spill] sm:$0xff] %v12780_v9  ;;  %15273 = vst [vmem:[#allocation217_spill] sm:$0xff] %v12798_v41  ;;  %v12801_v9 = vmul.f32 %v6746_v18, %v12234_v7  ;;  %v12819_v18 = vmul.f32 %v6749_v14, %v12234_v7  ;;  %v6767_v41 = vld [vmem:[%s15021_s0 + $0x788] sm:$0xff]  ;;  %v6768_v23 = vld [vmem:[%s15021_s0 + $0x790] sm:$0xff]  ;;  %v12837_v14 = vmul.f32 %v6752_v42, %v12234_v7 }
 0x4a9   : > { %15275 = vst [vmem:[#allocation219_spill] sm:$0xff] %v12816_v30  ;;  %v6771_v30 = vld [vmem:[%s15021_s0 + $0x7a8] sm:$0xff]  ;;  %v6772_v62 = vld [vmem:[%s15021_s0 + $0x7b0] sm:$0xff]  ;;  %v12855_v42 = vmul.f32 %v6755_v59, %v12234_v7 }
 0x4aa   : > { %15274 = vst [vmem:[#allocation218_spill] sm:$0xff] %v12801_v9  ;;  %15276 = vst [vmem:[#allocation220_spill] sm:$0xff] %v12819_v18  ;;  %v12822_v9 = vmul.f32 %v6750_v46, %v12234_v7  ;;  %v12840_v46 = vmul.f32 %v6753_v17, %v12234_v7  ;;  %v6770_v18 = vld [vmem:[%s15021_s0 + $0x7a0] sm:$0xff]  ;;  %v12858_v17 = vmul.f32 %v6756_v56, %v12234_v7  ;;  %v6775_v59 = vld [vmem:[%s15021_s0 + $0x7c8] sm:$0xff] }
 0x4ab   : > { %15278 = vst [vmem:[#allocation222_spill] sm:$0xff] %v12837_v14  ;;  %v6774_v14 = vld [vmem:[%s15021_s0 + $0x7c0] sm:$0xff]  ;;  %v12876_v56 = vmul.f32 %v6759_v13, %v12234_v7 }
 0x4ac   : > { %15277 = vst [vmem:[#allocation221_spill] sm:$0xff] %v12822_v9  ;;  %15279 = vst [vmem:[#allocation223_spill] sm:$0xff] %v12840_v46  ;;  %v12843_v9 = vmul.f32 %v6754_v12, %v12234_v7  ;;  %v12861_v12 = vmul.f32 %v6757_v26, %v12234_v7  ;;  %v6773_v46 = vld [vmem:[%s15021_s0 + $0x7b8] sm:$0xff]  ;;  %v12879_v26 = vmul.f32 %v6760_v1, %v12234_v7  ;;  %v6778_v13 = vld [vmem:[%s15021_s0 + $0x7e0] sm:$0xff] }
 0x4ad   : > { %15281 = vst [vmem:[#allocation225_spill] sm:$0xff] %v12858_v17  ;;  %v6777_v17 = vld [vmem:[%s15021_s0 + $0x7d8] sm:$0xff]  ;;  %v12897_v1 = vmul.f32 %v6763_v45, %v12234_v7 }
 0x4ae   : > { %15280 = vst [vmem:[#allocation224_spill] sm:$0xff] %v12843_v9  ;;  %15282 = vst [vmem:[#allocation226_spill] sm:$0xff] %v12861_v12  ;;  %v12864_v9 = vmul.f32 %v6758_v36, %v12234_v7  ;;  %v12882_v36 = vmul.f32 %v6761_v60, %v12234_v7  ;;  %v6776_v12 = vld [vmem:[%s15021_s0 + $0x7d0] sm:$0xff]  ;;  %v12900_v60 = vmul.f32 %v6764_v34, %v12234_v7  ;;  %v6781_v45 = vld [vmem:[%s15021_s0 + $0x7f8] sm:$0xff] }
 0x4af   : > { %15284 = vst [vmem:[#allocation228_spill] sm:$0xff] %v12879_v26  ;;  %15287 = vst [vmem:[#allocation231_spill] sm:$0xff] %v12897_v1  ;;  %v6780_v26 = vld [vmem:[%s15021_s0 + $0x7f0] sm:$0xff]  ;;  %v12918_v34 = vmul.f32 %v6767_v41, %v12234_v7  ;;  %v12936_v1 = vmul.f32 %v6773_v46, %v12234_v7  ;;  %v12939_v41 = vmul.f32 %v6774_v14, %v12234_v7 }
 0x4b0   : > { %15283 = vst [vmem:[#allocation227_spill] sm:$0xff] %v12864_v9  ;;  %15285 = vst [vmem:[#allocation229_spill] sm:$0xff] %v12882_v36  ;;  %v12885_v9 = vmul.f32 %v6762_v27, %v12234_v7  ;;  %v12903_v27 = vmul.f32 %v6765_v20, %v12234_v7  ;;  %v6779_v36 = vld [vmem:[%s15021_s0 + $0x7e8] sm:$0xff]  ;;  %v12921_v20 = vmul.f32 %v6768_v23, %v12234_v7 }
 0x4b1   : > { %15288 = vst [vmem:[#allocation232_spill] sm:$0xff] %v12900_v60  ;;  %v12933_v60 = vmul.f32 %v6772_v62, %v12234_v7  ;;  %v12942_v23 = vmul.f32 %v6775_v59, %v12234_v7  ;;  %v12954_v62 = vmul.f32 %v6779_v36, %v12234_v7  ;;  %v12957_v46 = vmul.f32 %v6780_v26, %v12234_v7 }
 0x4b2   : > { %15286 = vst [vmem:[#allocation230_spill] sm:$0xff] %v12885_v9  ;;  %15289 = vst [vmem:[#allocation233_spill] sm:$0xff] %v12903_v27  ;;  %v12906_v9 = vmul.f32 %v6766_v57, %v12234_v7  ;;  %v12924_v57 = vmul.f32 %v6769_v4, %v12234_v7  ;;  %v12930_v27 = vmul.f32 %v6771_v30, %v12234_v7 }
 0x4b3   : > { %v12945_v4 = vmul.f32 %v6776_v12, %v12234_v7  ;;  %v12951_v30 = vmul.f32 %v6778_v13, %v12234_v7  ;;  %v12960_v14 = vmul.f32 %v6781_v45, %v12234_v7  ;;  %v12964_v59 = vadd.f32 %v12258_v39, %v11491_v29  ;;  %v15296_v39 = vld [vmem:[#allocation148_spill] sm:$0xff]  ;;  %v15313_v13 = vld [vmem:[#allocation42_spill] sm:$0xff] }
 0x4b4   : > { %15290 = vst [vmem:[#allocation234_spill] sm:$0xff] %v12906_v9  ;;  %v12927_v9 = vmul.f32 %v6770_v18, %v12234_v7  ;;  %v12948_v18 = vmul.f32 %v6777_v17, %v12234_v7  ;;  %v12968_v17 = vadd.f32 %v12273_v52, %v11494_v6  ;;  %v12972_v12 = vadd.f32 %v12276_v40, %v11509_v54  ;;  %v15299_v52 = vld [vmem:[#allocation149_spill] sm:$0xff]  ;;  %v15301_v40 = vld [vmem:[#allocation38_spill] sm:$0xff] }
 0x4b5   : > { %v12976_v36 = vadd.f32 %v12279_v11, %v11512_v37  ;;  %v12980_v7 = vadd.f32 %v12282_v63, %v11515_v58  ;;  %v12984_v29 = vadd.f32 %v12297_v0, %v11518_v16  ;;  %v12988_v6 = vadd.f32 %v12300_v53, %v11533_v2  ;;  %v15298_v63 = vld [vmem:[#allocation37_spill] sm:$0xff]  ;;  %v15302_v11 = vld [vmem:[#allocation150_spill] sm:$0xff]  ;;  %v15305_v0 = vld [vmem:[#allocation151_spill] sm:$0xff] }
 0x4b6   : > { %v12992_v54 = vadd.f32 %v12303_v43, %v11536_v50  ;;  %v12996_v37 = vadd.f32 %v12306_v28, %v11539_v8  ;;  %v13000_v58 = vadd.f32 %v12321_v38, %v11542_v47  ;;  %v13004_v16 = vadd.f32 %v12324_v10, %v11557_v31  ;;  %v15291_v28 = vld [vmem:[#allocation146_spill] sm:$0xff]  ;;  %v15293_v43 = vld [vmem:[#allocation147_spill] sm:$0xff]  ;;  %v15307_v53 = vld [vmem:[#allocation40_spill] sm:$0xff] }
 0x4b7   : > { %v13008_v2 = vadd.f32 %v12327_v25, %v11560_v24  ;;  %v13012_v50 = vadd.f32 %v12330_v61, %v11563_v49  ;;  %v13016_v8 = vadd.f32 %v12345_v3, %v11566_v15  ;;  %v13020_v47 = vadd.f32 %v12348_v19, %v11581_v51  ;;  %v15292_v25 = vld [vmem:[#allocation35_spill] sm:$0xff]  ;;  %v15295_v61 = vld [vmem:[#allocation36_spill] sm:$0xff]  ;;  %v15310_v3 = vld [vmem:[#allocation41_spill] sm:$0xff] }
 0x4b8   : > { %v13024_v31 = vadd.f32 %v12351_v33, %v11584_v48  ;;  %v13028_v24 = vadd.f32 %v15291_v28, %v11587_v35  ;;  %v13032_v49 = vadd.f32 %v15293_v43, %v15292_v25  ;;  %v13036_v15 = vadd.f32 %v15296_v39, %v15295_v61  ;;  %v15304_v33 = vld [vmem:[#allocation39_spill] sm:$0xff]  ;;  %v15308_v38 = vld [vmem:[#allocation152_spill] sm:$0xff]  ;;  %v15311_v19 = vld [vmem:[#allocation153_spill] sm:$0xff] }
 0x4b9   : > { %v13040_v51 = vadd.f32 %v15299_v52, %v15298_v63  ;;  %v13044_v48 = vadd.f32 %v15302_v11, %v15301_v40  ;;  %v13048_v35 = vadd.f32 %v15305_v0, %v15304_v33  ;;  %v13052_v10 = vadd.f32 %v15308_v38, %v15307_v53  ;;  %v15314_v45 = vld [vmem:[#allocation154_spill] sm:$0xff]  ;;  %v15316_v25 = vld [vmem:[#allocation43_spill] sm:$0xff]  ;;  %v15319_v39 = vld [vmem:[#allocation44_spill] sm:$0xff] }
 0x4ba   : > { %15294 = vst [vmem:[#allocation146_spill] sm:$0xff] %v13032_v49  ;;  %15297 = vst [vmem:[#allocation35_spill] sm:$0xff] %v13036_v15  ;;  %v13056_v26 = vadd.f32 %v15311_v19, %v15310_v3  ;;  %v13060_v28 = vadd.f32 %v15314_v45, %v15313_v13  ;;  %v15317_v43 = vld [vmem:[#allocation155_spill] sm:$0xff]  ;;  %v15320_v63 = vld [vmem:[#allocation156_spill] sm:$0xff] }
 0x4bb   : > { %15300 = vst [vmem:[#allocation147_spill] sm:$0xff] %v13040_v51  ;;  %15303 = vst [vmem:[#allocation36_spill] sm:$0xff] %v13044_v48  ;;  %v13064_v61 = vadd.f32 %v15317_v43, %v15316_v25  ;;  %v13068_v52 = vadd.f32 %v15320_v63, %v15319_v39  ;;  %v15322_v40 = vld [vmem:[#allocation45_spill] sm:$0xff]  ;;  %v15325_v0 = vld [vmem:[#allocation46_spill] sm:$0xff] }
 0x4bc   : > { %15306 = vst [vmem:[#allocation148_spill] sm:$0xff] %v13048_v35  ;;  %15309 = vst [vmem:[#allocation37_spill] sm:$0xff] %v13052_v10  ;;  %v15323_v11 = vld [vmem:[#allocation157_spill] sm:$0xff]  ;;  %v15326_v53 = vld [vmem:[#allocation158_spill] sm:$0xff] }
 0x4bd   : > { %15312 = vst [vmem:[#allocation149_spill] sm:$0xff] %v13056_v26  ;;  %15315 = vst [vmem:[#allocation38_spill] sm:$0xff] %v13060_v28  ;;  %v13072_v33 = vadd.f32 %v15323_v11, %v15322_v40  ;;  %v13076_v38 = vadd.f32 %v15326_v53, %v15325_v0  ;;  %v15328_v3 = vld [vmem:[#allocation47_spill] sm:$0xff]  ;;  %v15331_v45 = vld [vmem:[#allocation48_spill] sm:$0xff] }
 0x4be   : > { %15318 = vst [vmem:[#allocation150_spill] sm:$0xff] %v13064_v61  ;;  %15321 = vst [vmem:[#allocation39_spill] sm:$0xff] %v13068_v52  ;;  %v15329_v19 = vld [vmem:[#allocation159_spill] sm:$0xff]  ;;  %v15332_v28 = vld [vmem:[#allocation160_spill] sm:$0xff] }
 0x4bf   : > { %15324 = vst [vmem:[#allocation151_spill] sm:$0xff] %v13072_v33  ;;  %15327 = vst [vmem:[#allocation40_spill] sm:$0xff] %v13076_v38  ;;  %v13080_v13 = vadd.f32 %v15329_v19, %v15328_v3  ;;  %v13084_v25 = vadd.f32 %v15332_v28, %v15331_v45  ;;  %v15334_v43 = vld [vmem:[#allocation49_spill] sm:$0xff]  ;;  %v15337_v63 = vld [vmem:[#allocation50_spill] sm:$0xff] }
 0x4c0   : > { %v15335_v61 = vld [vmem:[#allocation161_spill] sm:$0xff]  ;;  %v15338_v52 = vld [vmem:[#allocation162_spill] sm:$0xff]  ;;  %v15340_v11 = vld [vmem:[#allocation51_spill] sm:$0xff] }
 0x4c1   : > { %15330 = vst [vmem:[#allocation152_spill] sm:$0xff] %v13080_v13  ;;  %15333 = vst [vmem:[#allocation41_spill] sm:$0xff] %v13084_v25  ;;  %v13088_v39 = vadd.f32 %v15335_v61, %v15334_v43  ;;  %v13092_v40 = vadd.f32 %v15338_v52, %v15337_v63  ;;  %v15341_v33 = vld [vmem:[#allocation163_spill] sm:$0xff]  ;;  %v15343_v53 = vld [vmem:[#allocation52_spill] sm:$0xff] }
 0x4c2   : > { %v13096_v0 = vadd.f32 %v15341_v33, %v15340_v11  ;;  %v15344_v38 = vld [vmem:[#allocation164_spill] sm:$0xff]  ;;  %v15346_v19 = vld [vmem:[#allocation53_spill] sm:$0xff]  ;;  %v15349_v45 = vld [vmem:[#allocation54_spill] sm:$0xff] }
 0x4c3   : > { %15336 = vst [vmem:[#allocation153_spill] sm:$0xff] %v13088_v39  ;;  %15339 = vst [vmem:[#allocation42_spill] sm:$0xff] %v13092_v40  ;;  %v13100_v3 = vadd.f32 %v15344_v38, %v15343_v53  ;;  %v15347_v13 = vld [vmem:[#allocation165_spill] sm:$0xff]  ;;  %v15350_v25 = vld [vmem:[#allocation166_spill] sm:$0xff] }
 0x4c4   : > { %15342 = vst [vmem:[#allocation154_spill] sm:$0xff] %v13096_v0  ;;  %v13104_v28 = vadd.f32 %v15347_v13, %v15346_v19  ;;  %v13108_v61 = vadd.f32 %v15350_v25, %v15349_v45  ;;  %v15352_v43 = vld [vmem:[#allocation55_spill] sm:$0xff]  ;;  %v15355_v63 = vld [vmem:[#allocation56_spill] sm:$0xff]  ;;  %v15358_v11 = vld [vmem:[#allocation57_spill] sm:$0xff] }
 0x4c5   : > { %15345 = vst [vmem:[#allocation43_spill] sm:$0xff] %v13100_v3  ;;  %v15353_v39 = vld [vmem:[#allocation167_spill] sm:$0xff]  ;;  %v15356_v40 = vld [vmem:[#allocation168_spill] sm:$0xff]  ;;  %v15359_v0 = vld [vmem:[#allocation169_spill] sm:$0xff] }
 0x4c6   : > { %15348 = vst [vmem:[#allocation155_spill] sm:$0xff] %v13104_v28  ;;  %15351 = vst [vmem:[#allocation44_spill] sm:$0xff] %v13108_v61  ;;  %v13112_v52 = vadd.f32 %v15353_v39, %v15352_v43  ;;  %v13116_v33 = vadd.f32 %v15356_v40, %v15355_v63  ;;  %v13120_v38 = vadd.f32 %v15359_v0, %v15358_v11  ;;  %v15361_v53 = vld [vmem:[#allocation58_spill] sm:$0xff]  ;;  %v15364_v19 = vld [vmem:[#allocation59_spill] sm:$0xff] }
 0x4c7   : > { %v15362_v3 = vld [vmem:[#allocation170_spill] sm:$0xff]  ;;  %v15365_v28 = vld [vmem:[#allocation171_spill] sm:$0xff]  ;;  %v15367_v45 = vld [vmem:[#allocation60_spill] sm:$0xff] }
 0x4c8   : > { %15354 = vst [vmem:[#allocation156_spill] sm:$0xff] %v13112_v52  ;;  %15357 = vst [vmem:[#allocation45_spill] sm:$0xff] %v13116_v33  ;;  %v13124_v13 = vadd.f32 %v15362_v3, %v15361_v53  ;;  %v13128_v25 = vadd.f32 %v15365_v28, %v15364_v19  ;;  %v15368_v61 = vld [vmem:[#allocation172_spill] sm:$0xff]  ;;  %v15370_v43 = vld [vmem:[#allocation61_spill] sm:$0xff] }
 0x4c9   : > { %15360 = vst [vmem:[#allocation157_spill] sm:$0xff] %v13120_v38  ;;  %v13132_v39 = vadd.f32 %v15368_v61, %v15367_v45  ;;  %v15371_v52 = vld [vmem:[#allocation173_spill] sm:$0xff]  ;;  %v15373_v63 = vld [vmem:[#allocation62_spill] sm:$0xff]  ;;  %v15376_v11 = vld [vmem:[#allocation63_spill] sm:$0xff] }
 0x4ca   : > { %15363 = vst [vmem:[#allocation46_spill] sm:$0xff] %v13124_v13  ;;  %15366 = vst [vmem:[#allocation158_spill] sm:$0xff] %v13128_v25  ;;  %v13136_v40 = vadd.f32 %v15371_v52, %v15370_v43  ;;  %v15374_v33 = vld [vmem:[#allocation174_spill] sm:$0xff]  ;;  %v15377_v38 = vld [vmem:[#allocation175_spill] sm:$0xff] }
 0x4cb   : > { %15369 = vst [vmem:[#allocation47_spill] sm:$0xff] %v13132_v39  ;;  %v13140_v0 = vadd.f32 %v15374_v33, %v15373_v63  ;;  %v13144_v3 = vadd.f32 %v15377_v38, %v15376_v11  ;;  %v15379_v53 = vld [vmem:[#allocation64_spill] sm:$0xff]  ;;  %v15382_v19 = vld [vmem:[#allocation65_spill] sm:$0xff]  ;;  %v15385_v45 = vld [vmem:[#allocation66_spill] sm:$0xff] }
 0x4cc   : > { %15372 = vst [vmem:[#allocation159_spill] sm:$0xff] %v13136_v40  ;;  %v15380_v13 = vld [vmem:[#allocation176_spill] sm:$0xff]  ;;  %v15383_v25 = vld [vmem:[#allocation177_spill] sm:$0xff]  ;;  %v15386_v39 = vld [vmem:[#allocation178_spill] sm:$0xff] }
 0x4cd   : > { %15375 = vst [vmem:[#allocation48_spill] sm:$0xff] %v13140_v0  ;;  %15378 = vst [vmem:[#allocation160_spill] sm:$0xff] %v13144_v3  ;;  %v13148_v28 = vadd.f32 %v15380_v13, %v15379_v53  ;;  %v13152_v61 = vadd.f32 %v15383_v25, %v15382_v19  ;;  %v13156_v52 = vadd.f32 %v15386_v39, %v15385_v45  ;;  %v15388_v43 = vld [vmem:[#allocation67_spill] sm:$0xff]  ;;  %v15391_v63 = vld [vmem:[#allocation68_spill] sm:$0xff] }
 0x4ce   : > { %v15389_v40 = vld [vmem:[#allocation179_spill] sm:$0xff]  ;;  %v15392_v0 = vld [vmem:[#allocation180_spill] sm:$0xff]  ;;  %v15394_v11 = vld [vmem:[#allocation69_spill] sm:$0xff] }
 0x4cf   : > { %15381 = vst [vmem:[#allocation49_spill] sm:$0xff] %v13148_v28  ;;  %15384 = vst [vmem:[#allocation161_spill] sm:$0xff] %v13152_v61  ;;  %v13160_v33 = vadd.f32 %v15389_v40, %v15388_v43  ;;  %v13164_v38 = vadd.f32 %v15392_v0, %v15391_v63  ;;  %v15395_v3 = vld [vmem:[#allocation181_spill] sm:$0xff]  ;;  %v15397_v53 = vld [vmem:[#allocation70_spill] sm:$0xff] }
 0x4d0   : > { %15387 = vst [vmem:[#allocation50_spill] sm:$0xff] %v13156_v52  ;;  %v13168_v13 = vadd.f32 %v15395_v3, %v15394_v11  ;;  %v15398_v28 = vld [vmem:[#allocation182_spill] sm:$0xff]  ;;  %v15400_v19 = vld [vmem:[#allocation71_spill] sm:$0xff]  ;;  %v15403_v45 = vld [vmem:[#allocation72_spill] sm:$0xff] }
 0x4d1   : > { %15390 = vst [vmem:[#allocation162_spill] sm:$0xff] %v13160_v33  ;;  %15393 = vst [vmem:[#allocation51_spill] sm:$0xff] %v13164_v38  ;;  %v13172_v25 = vadd.f32 %v15398_v28, %v15397_v53  ;;  %v15401_v61 = vld [vmem:[#allocation183_spill] sm:$0xff]  ;;  %v15404_v52 = vld [vmem:[#allocation184_spill] sm:$0xff] }
 0x4d2   : > { %15396 = vst [vmem:[#allocation163_spill] sm:$0xff] %v13168_v13  ;;  %v13176_v39 = vadd.f32 %v15401_v61, %v15400_v19  ;;  %v13180_v40 = vadd.f32 %v15404_v52, %v15403_v45  ;;  %v15406_v43 = vld [vmem:[#allocation73_spill] sm:$0xff]  ;;  %v15409_v63 = vld [vmem:[#allocation74_spill] sm:$0xff]  ;;  %v15412_v11 = vld [vmem:[#allocation75_spill] sm:$0xff] }
 0x4d3   : > { %15399 = vst [vmem:[#allocation52_spill] sm:$0xff] %v13172_v25  ;;  %v15407_v33 = vld [vmem:[#allocation185_spill] sm:$0xff]  ;;  %v15410_v38 = vld [vmem:[#allocation186_spill] sm:$0xff]  ;;  %v15413_v13 = vld [vmem:[#allocation187_spill] sm:$0xff] }
 0x4d4   : > { %15402 = vst [vmem:[#allocation164_spill] sm:$0xff] %v13176_v39  ;;  %15405 = vst [vmem:[#allocation53_spill] sm:$0xff] %v13180_v40  ;;  %v13184_v0 = vadd.f32 %v15407_v33, %v15406_v43  ;;  %v13188_v3 = vadd.f32 %v15410_v38, %v15409_v63  ;;  %v13192_v28 = vadd.f32 %v15413_v13, %v15412_v11  ;;  %v15415_v53 = vld [vmem:[#allocation76_spill] sm:$0xff]  ;;  %v15418_v19 = vld [vmem:[#allocation77_spill] sm:$0xff] }
 0x4d5   : > { %v15416_v25 = vld [vmem:[#allocation188_spill] sm:$0xff]  ;;  %v15419_v39 = vld [vmem:[#allocation189_spill] sm:$0xff]  ;;  %v15421_v45 = vld [vmem:[#allocation78_spill] sm:$0xff] }
 0x4d6   : > { %15408 = vst [vmem:[#allocation165_spill] sm:$0xff] %v13184_v0  ;;  %15411 = vst [vmem:[#allocation54_spill] sm:$0xff] %v13188_v3  ;;  %v13196_v61 = vadd.f32 %v15416_v25, %v15415_v53  ;;  %v13200_v52 = vadd.f32 %v15419_v39, %v15418_v19  ;;  %v15422_v40 = vld [vmem:[#allocation190_spill] sm:$0xff]  ;;  %v15424_v43 = vld [vmem:[#allocation79_spill] sm:$0xff] }
 0x4d7   : > { %15414 = vst [vmem:[#allocation166_spill] sm:$0xff] %v13192_v28  ;;  %v13204_v33 = vadd.f32 %v15422_v40, %v15421_v45  ;;  %v15425_v0 = vld [vmem:[#allocation191_spill] sm:$0xff]  ;;  %v15427_v63 = vld [vmem:[#allocation80_spill] sm:$0xff]  ;;  %v15430_v11 = vld [vmem:[#allocation81_spill] sm:$0xff] }
 0x4d8   : > { %15417 = vst [vmem:[#allocation55_spill] sm:$0xff] %v13196_v61  ;;  %15420 = vst [vmem:[#allocation167_spill] sm:$0xff] %v13200_v52  ;;  %v13208_v38 = vadd.f32 %v15425_v0, %v15424_v43  ;;  %v15428_v3 = vld [vmem:[#allocation192_spill] sm:$0xff]  ;;  %v15431_v28 = vld [vmem:[#allocation193_spill] sm:$0xff] }
 0x4d9   : > { %15423 = vst [vmem:[#allocation56_spill] sm:$0xff] %v13204_v33  ;;  %v13212_v13 = vadd.f32 %v15428_v3, %v15427_v63  ;;  %v13216_v25 = vadd.f32 %v15431_v28, %v15430_v11  ;;  %v15433_v53 = vld [vmem:[#allocation82_spill] sm:$0xff]  ;;  %v15436_v19 = vld [vmem:[#allocation83_spill] sm:$0xff]  ;;  %v15439_v45 = vld [vmem:[#allocation84_spill] sm:$0xff] }
 0x4da   : > { %15426 = vst [vmem:[#allocation168_spill] sm:$0xff] %v13208_v38  ;;  %v15434_v61 = vld [vmem:[#allocation194_spill] sm:$0xff]  ;;  %v15437_v52 = vld [vmem:[#allocation195_spill] sm:$0xff]  ;;  %v15440_v33 = vld [vmem:[#allocation196_spill] sm:$0xff] }
 0x4db   : > { %15429 = vst [vmem:[#allocation57_spill] sm:$0xff] %v13212_v13  ;;  %15432 = vst [vmem:[#allocation169_spill] sm:$0xff] %v13216_v25  ;;  %v13220_v39 = vadd.f32 %v15434_v61, %v15433_v53  ;;  %v13224_v40 = vadd.f32 %v15437_v52, %v15436_v19  ;;  %v13228_v0 = vadd.f32 %v15440_v33, %v15439_v45  ;;  %v15442_v43 = vld [vmem:[#allocation85_spill] sm:$0xff]  ;;  %v15445_v63 = vld [vmem:[#allocation86_spill] sm:$0xff] }
 0x4dc   : > { %v15443_v38 = vld [vmem:[#allocation197_spill] sm:$0xff]  ;;  %v15446_v13 = vld [vmem:[#allocation198_spill] sm:$0xff]  ;;  %v15448_v11 = vld [vmem:[#allocation87_spill] sm:$0xff] }
 0x4dd   : > { %15435 = vst [vmem:[#allocation58_spill] sm:$0xff] %v13220_v39  ;;  %15438 = vst [vmem:[#allocation170_spill] sm:$0xff] %v13224_v40  ;;  %v13232_v3 = vadd.f32 %v15443_v38, %v15442_v43  ;;  %v13236_v28 = vadd.f32 %v15446_v13, %v15445_v63  ;;  %v15449_v25 = vld [vmem:[#allocation199_spill] sm:$0xff]  ;;  %v15451_v53 = vld [vmem:[#allocation88_spill] sm:$0xff] }
 0x4de   : > { %15441 = vst [vmem:[#allocation59_spill] sm:$0xff] %v13228_v0  ;;  %v13240_v61 = vadd.f32 %v15449_v25, %v15448_v11  ;;  %v15452_v39 = vld [vmem:[#allocation200_spill] sm:$0xff]  ;;  %v15454_v19 = vld [vmem:[#allocation89_spill] sm:$0xff]  ;;  %v15457_v45 = vld [vmem:[#allocation90_spill] sm:$0xff] }
 0x4df   : > { %15444 = vst [vmem:[#allocation171_spill] sm:$0xff] %v13232_v3  ;;  %15447 = vst [vmem:[#allocation60_spill] sm:$0xff] %v13236_v28  ;;  %v13244_v52 = vadd.f32 %v15452_v39, %v15451_v53  ;;  %v15455_v40 = vld [vmem:[#allocation201_spill] sm:$0xff]  ;;  %v15458_v0 = vld [vmem:[#allocation202_spill] sm:$0xff] }
 0x4e0   : > { %15450 = vst [vmem:[#allocation172_spill] sm:$0xff] %v13240_v61  ;;  %v13248_v33 = vadd.f32 %v15455_v40, %v15454_v19  ;;  %v13252_v38 = vadd.f32 %v15458_v0, %v15457_v45  ;;  %v15460_v43 = vld [vmem:[#allocation91_spill] sm:$0xff]  ;;  %v15463_v63 = vld [vmem:[#allocation92_spill] sm:$0xff]  ;;  %v15466_v11 = vld [vmem:[#allocation93_spill] sm:$0xff] }
 0x4e1   : > { %15453 = vst [vmem:[#allocation61_spill] sm:$0xff] %v13244_v52  ;;  %v15461_v3 = vld [vmem:[#allocation203_spill] sm:$0xff]  ;;  %v15464_v28 = vld [vmem:[#allocation204_spill] sm:$0xff]  ;;  %v15467_v61 = vld [vmem:[#allocation205_spill] sm:$0xff] }
 0x4e2   : > { %15456 = vst [vmem:[#allocation173_spill] sm:$0xff] %v13248_v33  ;;  %15459 = vst [vmem:[#allocation62_spill] sm:$0xff] %v13252_v38  ;;  %v13256_v13 = vadd.f32 %v15461_v3, %v15460_v43  ;;  %v13260_v25 = vadd.f32 %v15464_v28, %v15463_v63  ;;  %v13264_v39 = vadd.f32 %v15467_v61, %v15466_v11  ;;  %v15469_v53 = vld [vmem:[#allocation94_spill] sm:$0xff]  ;;  %v15472_v19 = vld [vmem:[#allocation95_spill] sm:$0xff] }
 0x4e3   : > { %v15470_v52 = vld [vmem:[#allocation206_spill] sm:$0xff]  ;;  %v13272_v0 = vadd.f32 %v12729_v32, %v15472_v19  ;;  %v15474_v45 = vld [vmem:[#allocation96_spill] sm:$0xff]  ;;  %v15475_v38 = vld [vmem:[#allocation207_spill] sm:$0xff] }
 0x4e4   : > { %15462 = vst [vmem:[#allocation174_spill] sm:$0xff] %v13256_v13  ;;  %15465 = vst [vmem:[#allocation63_spill] sm:$0xff] %v13260_v25  ;;  %v13268_v40 = vadd.f32 %v15470_v52, %v15469_v53  ;;  %v13276_v3 = vadd.f32 %v15475_v38, %v15474_v45  ;;  %v15477_v43 = vld [vmem:[#allocation97_spill] sm:$0xff]  ;;  %v15478_v13 = vld [vmem:[#allocation208_spill] sm:$0xff] }
 0x4e5   : > { %15468 = vst [vmem:[#allocation175_spill] sm:$0xff] %v13264_v39  ;;  %15473 = vst [vmem:[#allocation176_spill] sm:$0xff] %v13272_v0  ;;  %v13280_v28 = vadd.f32 %v15478_v13, %v15477_v43  ;;  %v15480_v63 = vld [vmem:[#allocation98_spill] sm:$0xff]  ;;  %v15481_v25 = vld [vmem:[#allocation209_spill] sm:$0xff] }
 0x4e6   : > { %15471 = vst [vmem:[#allocation64_spill] sm:$0xff] %v13268_v40  ;;  %15476 = vst [vmem:[#allocation65_spill] sm:$0xff] %v13276_v3  ;;  %v13284_v61 = vadd.f32 %v15481_v25, %v15480_v63  ;;  %v15483_v11 = vld [vmem:[#allocation99_spill] sm:$0xff]  ;;  %v15485_v53 = vld [vmem:[#allocation100_spill] sm:$0xff] }
 0x4e7   : > { %15479 = vst [vmem:[#allocation177_spill] sm:$0xff] %v13280_v28  ;;  %v13288_v52 = vadd.f32 %v12750_v55, %v15483_v11  ;;  %v15486_v40 = vld [vmem:[#allocation210_spill] sm:$0xff]  ;;  %v15488_v19 = vld [vmem:[#allocation101_spill] sm:$0xff]  ;;  %v15489_v0 = vld [vmem:[#allocation211_spill] sm:$0xff] }
 0x4e8   : > { %15482 = vst [vmem:[#allocation66_spill] sm:$0xff] %v13284_v61  ;;  %v13292_v32 = vadd.f32 %v15486_v40, %v15485_v53  ;;  %v13296_v38 = vadd.f32 %v15489_v0, %v15488_v19  ;;  %v15491_v45 = vld [vmem:[#allocation102_spill] sm:$0xff]  ;;  %v15492_v3 = vld [vmem:[#allocation212_spill] sm:$0xff]  ;;  %v15494_v43 = vld [vmem:[#allocation103_spill] sm:$0xff] }
 0x4e9   : > { %15484 = vst [vmem:[#allocation178_spill] sm:$0xff] %v13288_v52  ;;  %v13300_v13 = vadd.f32 %v15492_v3, %v15491_v45  ;;  %v13304_v25 = vadd.f32 %v12771_v22, %v15494_v43  ;;  %v15496_v63 = vld [vmem:[#allocation104_spill] sm:$0xff]  ;;  %v15497_v61 = vld [vmem:[#allocation213_spill] sm:$0xff]  ;;  %v15500_v52 = vld [vmem:[#allocation214_spill] sm:$0xff] }
 0x4ea   : > { %15487 = vst [vmem:[#allocation67_spill] sm:$0xff] %v13292_v32  ;;  %15490 = vst [vmem:[#allocation179_spill] sm:$0xff] %v13296_v38  ;;  %v13308_v55 = vadd.f32 %v15497_v61, %v15496_v63  ;;  %v15499_v11 = vld [vmem:[#allocation105_spill] sm:$0xff]  ;;  %v15502_v53 = vld [vmem:[#allocation106_spill] sm:$0xff] }
 0x4eb   : > { %15493 = vst [vmem:[#allocation68_spill] sm:$0xff] %v13300_v13  ;;  %15495 = vst [vmem:[#allocation180_spill] sm:$0xff] %v13304_v25  ;;  %v13312_v40 = vadd.f32 %v15500_v52, %v15499_v11  ;;  %v15503_v32 = vld [vmem:[#allocation215_spill] sm:$0xff]  ;;  %v15507_v45 = vld [vmem:[#allocation108_spill] sm:$0xff] }
 0x4ec   : > { %15498 = vst [vmem:[#allocation69_spill] sm:$0xff] %v13308_v55  ;;  %v13316_v0 = vadd.f32 %v15503_v32, %v15502_v53  ;;  %v15505_v19 = vld [vmem:[#allocation107_spill] sm:$0xff]  ;;  %v15508_v13 = vld [vmem:[#allocation216_spill] sm:$0xff]  ;;  %v15510_v43 = vld [vmem:[#allocation109_spill] sm:$0xff] }
 0x4ed   : > { %15501 = vst [vmem:[#allocation181_spill] sm:$0xff] %v13312_v40  ;;  %v13320_v3 = vadd.f32 %v12792_v21, %v15505_v19  ;;  %v13324_v22 = vadd.f32 %v15508_v13, %v15507_v45  ;;  %v15511_v25 = vld [vmem:[#allocation217_spill] sm:$0xff]  ;;  %v15513_v63 = vld [vmem:[#allocation110_spill] sm:$0xff]  ;;  %v15516_v11 = vld [vmem:[#allocation111_spill] sm:$0xff] }
 0x4ee   : > { %15504 = vst [vmem:[#allocation70_spill] sm:$0xff] %v13316_v0  ;;  %v13328_v61 = vadd.f32 %v15511_v25, %v15510_v43  ;;  %v15514_v55 = vld [vmem:[#allocation218_spill] sm:$0xff]  ;;  %v13336_v32 = vadd.f32 %v12813_v44, %v15516_v11  ;;  %v15518_v53 = vld [vmem:[#allocation112_spill] sm:$0xff]  ;;  %v15519_v0 = vld [vmem:[#allocation219_spill] sm:$0xff] }
 0x4ef   : > { %15506 = vst [vmem:[#allocation182_spill] sm:$0xff] %v13320_v3  ;;  %15509 = vst [vmem:[#allocation71_spill] sm:$0xff] %v13324_v22  ;;  %v13332_v52 = vadd.f32 %v15514_v55, %v15513_v63  ;;  %v13340_v21 = vadd.f32 %v15519_v0, %v15518_v53  ;;  %v15521_v19 = vld [vmem:[#allocation113_spill] sm:$0xff]  ;;  %v15522_v3 = vld [vmem:[#allocation220_spill] sm:$0xff] }
 0x4f0   : > { %15512 = vst [vmem:[#allocation183_spill] sm:$0xff] %v13328_v61  ;;  %15517 = vst [vmem:[#allocation184_spill] sm:$0xff] %v13336_v32  ;;  %v13344_v13 = vadd.f32 %v15522_v3, %v15521_v19  ;;  %v15524_v45 = vld [vmem:[#allocation114_spill] sm:$0xff]  ;;  %v15525_v22 = vld [vmem:[#allocation221_spill] sm:$0xff] }
 0x4f1   : > { %15515 = vst [vmem:[#allocation72_spill] sm:$0xff] %v13332_v52  ;;  %15520 = vst [vmem:[#allocation73_spill] sm:$0xff] %v13340_v21  ;;  %v13348_v25 = vadd.f32 %v15525_v22, %v15524_v45  ;;  %v15527_v43 = vld [vmem:[#allocation115_spill] sm:$0xff]  ;;  %v15529_v63 = vld [vmem:[#allocation116_spill] sm:$0xff] }
 0x4f2   : > { %15523 = vst [vmem:[#allocation185_spill] sm:$0xff] %v13344_v13  ;;  %v13352_v55 = vadd.f32 %v12834_v5, %v15527_v43  ;;  %v15530_v52 = vld [vmem:[#allocation222_spill] sm:$0xff]  ;;  %v15532_v11 = vld [vmem:[#allocation117_spill] sm:$0xff]  ;;  %v15533_v32 = vld [vmem:[#allocation223_spill] sm:$0xff] }
 0x4f3   : > { %15526 = vst [vmem:[#allocation74_spill] sm:$0xff] %v13348_v25  ;;  %v13356_v44 = vadd.f32 %v15530_v52, %v15529_v63  ;;  %v13360_v0 = vadd.f32 %v15533_v32, %v15532_v11  ;;  %v15535_v53 = vld [vmem:[#allocation118_spill] sm:$0xff]  ;;  %v15536_v21 = vld [vmem:[#allocation224_spill] sm:$0xff]  ;;  %v15538_v19 = vld [vmem:[#allocation119_spill] sm:$0xff] }
 0x4f4   : > { %15528 = vst [vmem:[#allocation186_spill] sm:$0xff] %v13352_v55  ;;  %v13364_v3 = vadd.f32 %v15536_v21, %v15535_v53  ;;  %v13368_v22 = vadd.f32 %v12855_v42, %v15538_v19  ;;  %v15540_v45 = vld [vmem:[#allocation120_spill] sm:$0xff]  ;;  %v15541_v25 = vld [vmem:[#allocation225_spill] sm:$0xff]  ;;  %v15544_v55 = vld [vmem:[#allocation226_spill] sm:$0xff] }
 0x4f5   : > { %15531 = vst [vmem:[#allocation75_spill] sm:$0xff] %v13356_v44  ;;  %15534 = vst [vmem:[#allocation187_spill] sm:$0xff] %v13360_v0  ;;  %v13372_v5 = vadd.f32 %v15541_v25, %v15540_v45  ;;  %v15543_v43 = vld [vmem:[#allocation121_spill] sm:$0xff]  ;;  %v15546_v63 = vld [vmem:[#allocation122_spill] sm:$0xff] }
 0x4f6   : > { %15537 = vst [vmem:[#allocation76_spill] sm:$0xff] %v13364_v3  ;;  %15539 = vst [vmem:[#allocation188_spill] sm:$0xff] %v13368_v22  ;;  %v13376_v52 = vadd.f32 %v15544_v55, %v15543_v43  ;;  %v15547_v44 = vld [vmem:[#allocation227_spill] sm:$0xff]  ;;  %v15551_v53 = vld [vmem:[#allocation124_spill] sm:$0xff] }
 0x4f7   : > { %15542 = vst [vmem:[#allocation77_spill] sm:$0xff] %v13372_v5  ;;  %v13380_v32 = vadd.f32 %v15547_v44, %v15546_v63  ;;  %v15549_v11 = vld [vmem:[#allocation123_spill] sm:$0xff]  ;;  %v15552_v3 = vld [vmem:[#allocation228_spill] sm:$0xff]  ;;  %v15554_v19 = vld [vmem:[#allocation125_spill] sm:$0xff] }
 0x4f8   : > { %15545 = vst [vmem:[#allocation189_spill] sm:$0xff] %v13376_v52  ;;  %v13384_v21 = vadd.f32 %v12876_v56, %v15549_v11  ;;  %v13388_v42 = vadd.f32 %v15552_v3, %v15551_v53  ;;  %v15555_v22 = vld [vmem:[#allocation229_spill] sm:$0xff]  ;;  %v15557_v45 = vld [vmem:[#allocation126_spill] sm:$0xff]  ;;  %v6783_v56 = vld [vmem:[%s15021_s0 + $0x808] sm:$0xff] }
 0x4f9   : > { %15548 = vst [vmem:[#allocation78_spill] sm:$0xff] %v13380_v32  ;;  %v13392_v25 = vadd.f32 %v15555_v22, %v15554_v19  ;;  %v15558_v5 = vld [vmem:[#allocation230_spill] sm:$0xff]  ;;  %v6784_v3 = vld [vmem:[%s15021_s0 + $0x810] sm:$0xff]  ;;  %v6785_v22 = vld [vmem:[%s15021_s0 + $0x818] sm:$0xff] }
 0x4fa   : > { %15550 = vst [vmem:[#allocation190_spill] sm:$0xff] %v13384_v21  ;;  %15553 = vst [vmem:[#allocation79_spill] sm:$0xff] %v13388_v42  ;;  %v13396_v55 = vadd.f32 %v15558_v5, %v15557_v45  ;;  %v6782_v44 = vld [vmem:[%s15021_s0 + $0x800] sm:$0xff]  ;;  %v15560_v43 = vld [vmem:[#allocation127_spill] sm:$0xff] }
 0x4fb   : > { %15556 = vst [vmem:[#allocation191_spill] sm:$0xff] %v13392_v25  ;;  %v15561_v63 = vld [vmem:[#allocation231_spill] sm:$0xff]  ;;  %v15563_v11 = vld [vmem:[#allocation128_spill] sm:$0xff]  ;;  %v15566_v45 = vld [vmem:[#allocation129_spill] sm:$0xff] }
 0x4fc   : > { %15559 = vst [vmem:[#allocation80_spill] sm:$0xff] %v13396_v55  ;;  %v13412_v5 = vadd.f32 %v15561_v63, %v15560_v43  ;;  %v15564_v53 = vld [vmem:[#allocation232_spill] sm:$0xff]  ;;  %v15567_v55 = vld [vmem:[#allocation233_spill] sm:$0xff]  ;;  %v15569_v42 = vld [vmem:[#allocation130_spill] sm:$0xff] }
 0x4fd   : > { %v13416_v19 = vadd.f32 %v15564_v53, %v15563_v11  ;;  %v13420_v25 = vadd.f32 %v15567_v55, %v15566_v45  ;;  %v15570_v21 = vld [vmem:[#allocation234_spill] sm:$0xff]  ;;  %v6787_v43 = vld [vmem:[%s15021_s0 + $0x828] sm:$0xff]  ;;  %v6788_v63 = vld [vmem:[%s15021_s0 + $0x830] sm:$0xff] }
 0x4fe   : > { %15562 = vst [vmem:[#allocation192_spill] sm:$0xff] %v13412_v5  ;;  %v13424_v32 = vadd.f32 %v15570_v21, %v15569_v42  ;;  %v6786_v52 = vld [vmem:[%s15021_s0 + $0x820] sm:$0xff]  ;;  %v6789_v55 = vld [vmem:[%s15021_s0 + $0x838] sm:$0xff]  ;;  %v15572_v11 = vld [vmem:[#allocation131_spill] sm:$0xff] }
 0x4ff   : > { %15565 = vst [vmem:[#allocation81_spill] sm:$0xff] %v13416_v19  ;;  %15568 = vst [vmem:[#allocation193_spill] sm:$0xff] %v13420_v25  ;;  %v13440_v21 = vadd.f32 %v12918_v34, %v15572_v11  ;;  %v15574_v42 = vld [vmem:[#allocation132_spill] sm:$0xff]  ;;  %v15576_v45 = vld [vmem:[#allocation133_spill] sm:$0xff] }
 0x500   : > { %15571 = vst [vmem:[#allocation82_spill] sm:$0xff] %v13424_v32  ;;  %v13444_v53 = vadd.f32 %v12921_v20, %v15574_v42  ;;  %v13448_v32 = vadd.f32 %v12924_v57, %v15576_v45  ;;  %v15578_v25 = vld [vmem:[#allocation134_spill] sm:$0xff]  ;;  %v6791_v34 = vld [vmem:[%s15021_s0 + $0x848] sm:$0xff]  ;;  %v6792_v20 = vld [vmem:[%s15021_s0 + $0x850] sm:$0xff] }
 0x501   : > { %15573 = vst [vmem:[#allocation194_spill] sm:$0xff] %v13440_v21  ;;  %v13452_v19 = vadd.f32 %v12927_v9, %v15578_v25  ;;  %v6790_v5 = vld [vmem:[%s15021_s0 + $0x840] sm:$0xff]  ;;  %v6793_v57 = vld [vmem:[%s15021_s0 + $0x858] sm:$0xff]  ;;  %v15580_v11 = vld [vmem:[#allocation135_spill] sm:$0xff] }
 0x502   : > { %15575 = vst [vmem:[#allocation83_spill] sm:$0xff] %v13444_v53  ;;  %15577 = vst [vmem:[#allocation195_spill] sm:$0xff] %v13448_v32  ;;  %v13468_v9 = vadd.f32 %v12930_v27, %v15580_v11  ;;  %v15582_v25 = vld [vmem:[#allocation136_spill] sm:$0xff]  ;;  %v15584_v45 = vld [vmem:[#allocation137_spill] sm:$0xff] }
 0x503   : > { %15579 = vst [vmem:[#allocation84_spill] sm:$0xff] %v13452_v19  ;;  %v13472_v42 = vadd.f32 %v12933_v60, %v15582_v25  ;;  %v13476_v19 = vadd.f32 %v12936_v1, %v15584_v45  ;;  %v15586_v32 = vld [vmem:[#allocation138_spill] sm:$0xff]  ;;  %v6795_v27 = vld [vmem:[%s15021_s0 + $0x868] sm:$0xff]  ;;  %v6796_v60 = vld [vmem:[%s15021_s0 + $0x870] sm:$0xff] }
 0x504   : > { %15581 = vst [vmem:[#allocation196_spill] sm:$0xff] %v13468_v9  ;;  %v13480_v53 = vadd.f32 %v12939_v41, %v15586_v32  ;;  %v6794_v21 = vld [vmem:[%s15021_s0 + $0x860] sm:$0xff]  ;;  %v6797_v1 = vld [vmem:[%s15021_s0 + $0x878] sm:$0xff]  ;;  %v15588_v11 = vld [vmem:[#allocation139_spill] sm:$0xff] }
 0x505   : > { %15583 = vst [vmem:[#allocation85_spill] sm:$0xff] %v13472_v42  ;;  %15585 = vst [vmem:[#allocation197_spill] sm:$0xff] %v13476_v19  ;;  %v13496_v41 = vadd.f32 %v12942_v23, %v15588_v11  ;;  %v15590_v32 = vld [vmem:[#allocation140_spill] sm:$0xff]  ;;  %v15592_v45 = vld [vmem:[#allocation141_spill] sm:$0xff] }
 0x506   : > { %15587 = vst [vmem:[#allocation86_spill] sm:$0xff] %v13480_v53  ;;  %v13500_v25 = vadd.f32 %v12945_v4, %v15590_v32  ;;  %v13504_v53 = vadd.f32 %v12948_v18, %v15592_v45  ;;  %v15594_v19 = vld [vmem:[#allocation142_spill] sm:$0xff]  ;;  %v6799_v23 = vld [vmem:[%s15021_s0 + $0x888] sm:$0xff]  ;;  %v6800_v4 = vld [vmem:[%s15021_s0 + $0x890] sm:$0xff] }
 0x507   : > { %15589 = vst [vmem:[#allocation198_spill] sm:$0xff] %v13496_v41  ;;  %v13508_v42 = vadd.f32 %v12951_v30, %v15594_v19  ;;  %v6798_v9 = vld [vmem:[%s15021_s0 + $0x880] sm:$0xff]  ;;  %v6801_v18 = vld [vmem:[%s15021_s0 + $0x898] sm:$0xff]  ;;  %v15596_v11 = vld [vmem:[#allocation143_spill] sm:$0xff] }
 0x508   : > { %15591 = vst [vmem:[#allocation87_spill] sm:$0xff] %v13500_v25  ;;  %15593 = vst [vmem:[#allocation199_spill] sm:$0xff] %v13504_v53  ;;  %v13524_v30 = vadd.f32 %v12954_v62, %v15596_v11  ;;  %v15598_v19 = vld [vmem:[#allocation144_spill] sm:$0xff]  ;;  %v15600_v45 = vld [vmem:[#allocation145_spill] sm:$0xff]  ;;  %v13534_v53 = vstv %s7936_s27 }
 0x509   : > { %15595 = vst [vmem:[#allocation88_spill] sm:$0xff] %v13508_v42  ;;  %v13528_v32 = vadd.f32 %v12957_v46, %v15598_v19  ;;  %v13532_v42 = vadd.f32 %v12960_v14, %v15600_v45  ;;  %v6802_v25 = vld [vmem:[%s15021_s0 + $0x8a0] sm:$0xff]  ;;  %v6803_v41 = vld [vmem:[%s15021_s0 + $0x8a8] sm:$0xff]  ;;  %v6804_v62 = vld [vmem:[%s15021_s0 + $0x8b0] sm:$0xff]  ;;  %v13549_v14 = vmul.f32 %v6782_v44, %v13534_v53  ;;  %v13552_v11 = vmul.f32 %v6783_v56, %v13534_v53 }
 0x50a   : > { %15597 = vst [vmem:[#allocation200_spill] sm:$0xff] %v13524_v30  ;;  %v6805_v46 = vld [vmem:[%s15021_s0 + $0x8b8] sm:$0xff]  ;;  %v13555_v19 = vmul.f32 %v6784_v3, %v13534_v53  ;;  %v13558_v45 = vmul.f32 %v6785_v22, %v13534_v53  ;;  %v6808_v44 = vld [vmem:[%s15021_s0 + $0x8d0] sm:$0xff]  ;;  %v13573_v3 = vmul.f32 %v6786_v52, %v13534_v53  ;;  %v13576_v22 = vmul.f32 %v6787_v43, %v13534_v53  ;;  %v6810_v13 = vld [vmem:[%s15021_s0 + $0x8e0] sm:$0xff] }
 0x50b   : > { %15599 = vst [vmem:[#allocation89_spill] sm:$0xff] %v13528_v32  ;;  %15601 = vst [vmem:[#allocation201_spill] sm:$0xff] %v13532_v42  ;;  %v6806_v42 = vld [vmem:[%s15021_s0 + $0x8c0] sm:$0xff]  ;;  %v6807_v32 = vld [vmem:[%s15021_s0 + $0x8c8] sm:$0xff]  ;;  %v13579_v30 = vmul.f32 %v6788_v63, %v13534_v53  ;;  %v13582_v0 = vmul.f32 %v6789_v55, %v13534_v53  ;;  %v13597_v63 = vmul.f32 %v6790_v5, %v13534_v53 }
 0x50c   : > { %v6809_v56 = vld [vmem:[%s15021_s0 + $0x8d8] sm:$0xff]  ;;  %v6811_v61 = vld [vmem:[%s15021_s0 + $0x8e8] sm:$0xff]  ;;  %v6812_v52 = vld [vmem:[%s15021_s0 + $0x8f0] sm:$0xff]  ;;  %v13600_v55 = vmul.f32 %v6791_v34, %v13534_v53  ;;  %v13603_v40 = vmul.f32 %v6792_v20, %v13534_v53  ;;  %v13606_v38 = vmul.f32 %v6793_v57, %v13534_v53  ;;  %v13621_v20 = vmul.f32 %v6794_v21, %v13534_v53 }
 0x50d   : > { %v6813_v43 = vld [vmem:[%s15021_s0 + $0x8f8] sm:$0xff]  ;;  %v6814_v28 = vld [vmem:[%s15021_s0 + $0x900] sm:$0xff]  ;;  %v6815_v39 = vld [vmem:[%s15021_s0 + $0x908] sm:$0xff]  ;;  %v13624_v57 = vmul.f32 %v6795_v27, %v13534_v53  ;;  %v13627_v33 = vmul.f32 %v6796_v60, %v13534_v53  ;;  %v13630_v26 = vmul.f32 %v6797_v1, %v13534_v53  ;;  %v13645_v60 = vmul.f32 %v6798_v9, %v13534_v53 }
 0x50e   : > { %v6816_v5 = vld [vmem:[%s15021_s0 + $0x910] sm:$0xff]  ;;  %v6817_v34 = vld [vmem:[%s15021_s0 + $0x918] sm:$0xff]  ;;  %v6818_v10 = vld [vmem:[%s15021_s0 + $0x920] sm:$0xff]  ;;  %v13648_v1 = vmul.f32 %v6799_v23, %v13534_v53  ;;  %v13651_v48 = vmul.f32 %v6800_v4, %v13534_v53  ;;  %v13654_v51 = vmul.f32 %v6801_v18, %v13534_v53  ;;  %v13669_v4 = vmul.f32 %v6802_v25, %v13534_v53 }
 0x50f   : > { %v6819_v35 = vld [vmem:[%s15021_s0 + $0x928] sm:$0xff]  ;;  %v6820_v21 = vld [vmem:[%s15021_s0 + $0x930] sm:$0xff]  ;;  %v6821_v27 = vld [vmem:[%s15021_s0 + $0x938] sm:$0xff]  ;;  %15602 = vst [vmem:[#allocation90_spill] sm:$0xff] %v13645_v60  ;;  %v13672_v18 = vmul.f32 %v6803_v41, %v13534_v53 }
 0x510   : > { %15603 = vst [vmem:[#allocation202_spill] sm:$0xff] %v13648_v1  ;;  %15604 = vst [vmem:[#allocation91_spill] sm:$0xff] %v13651_v48  ;;  %v6822_v15 = vld [vmem:[%s15021_s0 + $0x940] sm:$0xff]  ;;  %v6823_v49 = vld [vmem:[%s15021_s0 + $0x948] sm:$0xff]  ;;  %v13678_v48 = vmul.f32 %v6805_v46, %v13534_v53  ;;  %v13696_v46 = vmul.f32 %v6807_v32, %v13534_v53 }
 0x511   : > { %15605 = vst [vmem:[#allocation203_spill] sm:$0xff] %v13654_v51  ;;  %v6824_v9 = vld [vmem:[%s15021_s0 + $0x950] sm:$0xff]  ;;  %v6825_v23 = vld [vmem:[%s15021_s0 + $0x958] sm:$0xff]  ;;  %15606 = vst [vmem:[#allocation92_spill] sm:$0xff] %v13669_v4  ;;  %v13675_v51 = vmul.f32 %v6804_v62, %v13534_v53  ;;  %v13693_v62 = vmul.f32 %v6806_v42, %v13534_v53 }
 0x512   : > { %15607 = vst [vmem:[#allocation204_spill] sm:$0xff] %v13672_v18  ;;  %15609 = vst [vmem:[#allocation205_spill] sm:$0xff] %v13678_v48  ;;  %v6826_v1 = vld [vmem:[%s15021_s0 + $0x960] sm:$0xff]  ;;  %v6827_v60 = vld [vmem:[%s15021_s0 + $0x968] sm:$0xff]  ;;  %v13699_v48 = vmul.f32 %v6808_v44, %v13534_v53  ;;  %v13717_v44 = vmul.f32 %v6810_v13, %v13534_v53 }
 0x513   : > { %15608 = vst [vmem:[#allocation93_spill] sm:$0xff] %v13675_v51  ;;  %v6828_v25 = vld [vmem:[%s15021_s0 + $0x970] sm:$0xff]  ;;  %v6829_v41 = vld [vmem:[%s15021_s0 + $0x978] sm:$0xff]  ;;  %15610 = vst [vmem:[#allocation94_spill] sm:$0xff] %v13693_v62  ;;  %v13702_v51 = vmul.f32 %v6809_v56, %v13534_v53  ;;  %v13720_v56 = vmul.f32 %v6811_v61, %v13534_v53 }
 0x514   : > { %15611 = vst [vmem:[#allocation206_spill] sm:$0xff] %v13696_v46  ;;  %15612 = vst [vmem:[#allocation95_spill] sm:$0xff] %v13699_v48  ;;  %v6830_v18 = vld [vmem:[%s15021_s0 + $0x980] sm:$0xff]  ;;  %v6831_v4 = vld [vmem:[%s15021_s0 + $0x988] sm:$0xff]  ;;  %v13726_v48 = vmul.f32 %v6813_v43, %v13534_v53  ;;  %v13744_v43 = vmul.f32 %v6815_v39, %v13534_v53 }
 0x515   : > { %15613 = vst [vmem:[#allocation96_spill] sm:$0xff] %v13702_v51  ;;  %v6832_v42 = vld [vmem:[%s15021_s0 + $0x990] sm:$0xff]  ;;  %v6833_v32 = vld [vmem:[%s15021_s0 + $0x998] sm:$0xff]  ;;  %15614 = vst [vmem:[#allocation207_spill] sm:$0xff] %v13717_v44  ;;  %v13723_v51 = vmul.f32 %v6812_v52, %v13534_v53  ;;  %v13741_v52 = vmul.f32 %v6814_v28, %v13534_v53 }
 0x516   : > { %15615 = vst [vmem:[#allocation97_spill] sm:$0xff] %v13720_v56  ;;  %15617 = vst [vmem:[#allocation98_spill] sm:$0xff] %v13726_v48  ;;  %v6834_v46 = vld [vmem:[%s15021_s0 + $0x9a0] sm:$0xff]  ;;  %v6835_v62 = vld [vmem:[%s15021_s0 + $0x9a8] sm:$0xff]  ;;  %v13747_v48 = vmul.f32 %v6816_v5, %v13534_v53  ;;  %v13765_v5 = vmul.f32 %v6818_v10, %v13534_v53 }
 0x517   : > { %15616 = vst [vmem:[#allocation208_spill] sm:$0xff] %v13723_v51  ;;  %v6836_v13 = vld [vmem:[%s15021_s0 + $0x9b0] sm:$0xff]  ;;  %v6837_v61 = vld [vmem:[%s15021_s0 + $0x9b8] sm:$0xff]  ;;  %15618 = vst [vmem:[#allocation209_spill] sm:$0xff] %v13741_v52  ;;  %v13750_v51 = vmul.f32 %v6817_v34, %v13534_v53  ;;  %v13768_v34 = vmul.f32 %v6819_v35, %v13534_v53 }
 0x518   : > { %15619 = vst [vmem:[#allocation99_spill] sm:$0xff] %v13744_v43  ;;  %15620 = vst [vmem:[#allocation100_spill] sm:$0xff] %v13747_v48  ;;  %v6838_v56 = vld [vmem:[%s15021_s0 + $0x9c0] sm:$0xff]  ;;  %v6839_v44 = vld [vmem:[%s15021_s0 + $0x9c8] sm:$0xff]  ;;  %v13774_v48 = vmul.f32 %v6821_v27, %v13534_v53  ;;  %v13792_v27 = vmul.f32 %v6823_v49, %v13534_v53 }
 0x519   : > { %15621 = vst [vmem:[#allocation210_spill] sm:$0xff] %v13750_v51  ;;  %v6840_v28 = vld [vmem:[%s15021_s0 + $0x9d0] sm:$0xff]  ;;  %v6841_v39 = vld [vmem:[%s15021_s0 + $0x9d8] sm:$0xff]  ;;  %15622 = vst [vmem:[#allocation101_spill] sm:$0xff] %v13765_v5  ;;  %v13771_v51 = vmul.f32 %v6820_v21, %v13534_v53  ;;  %v13789_v21 = vmul.f32 %v6822_v15, %v13534_v53 }
 0x51a   : > { %15623 = vst [vmem:[#allocation211_spill] sm:$0xff] %v13768_v34  ;;  %15625 = vst [vmem:[#allocation212_spill] sm:$0xff] %v13774_v48  ;;  %v6842_v43 = vld [vmem:[%s15021_s0 + $0x9e0] sm:$0xff]  ;;  %v6843_v52 = vld [vmem:[%s15021_s0 + $0x9e8] sm:$0xff]  ;;  %v13795_v48 = vmul.f32 %v6824_v9, %v13534_v53  ;;  %v13813_v9 = vmul.f32 %v6826_v1, %v13534_v53 }
 0x51b   : > { %15624 = vst [vmem:[#allocation102_spill] sm:$0xff] %v13771_v51  ;;  %v6844_v10 = vld [vmem:[%s15021_s0 + $0x9f0] sm:$0xff]  ;;  %v6845_v35 = vld [vmem:[%s15021_s0 + $0x9f8] sm:$0xff]  ;;  %15626 = vst [vmem:[#allocation103_spill] sm:$0xff] %v13789_v21  ;;  %v13798_v51 = vmul.f32 %v6825_v23, %v13534_v53  ;;  %v13816_v23 = vmul.f32 %v6827_v60, %v13534_v53 }
 0x51c   : > { %15627 = vst [vmem:[#allocation104_spill] sm:$0xff] %v13792_v27  ;;  %15628 = vst [vmem:[#allocation213_spill] sm:$0xff] %v13795_v48  ;;  %v6846_v34 = vld [vmem:[%s15021_s0 + $0xa00] sm:$0xff]  ;;  %v6847_v5 = vld [vmem:[%s15021_s0 + $0xa08] sm:$0xff]  ;;  %v13822_v48 = vmul.f32 %v6829_v41, %v13534_v53  ;;  %v13840_v41 = vmul.f32 %v6831_v4, %v13534_v53 }
 0x51d   : > { %15629 = vst [vmem:[#allocation105_spill] sm:$0xff] %v13798_v51  ;;  %v6848_v15 = vld [vmem:[%s15021_s0 + $0xa10] sm:$0xff]  ;;  %v6849_v49 = vld [vmem:[%s15021_s0 + $0xa18] sm:$0xff]  ;;  %15630 = vst [vmem:[#allocation214_spill] sm:$0xff] %v13813_v9  ;;  %v13819_v51 = vmul.f32 %v6828_v25, %v13534_v53  ;;  %v13837_v25 = vmul.f32 %v6830_v18, %v13534_v53 }
 0x51e   : > { %15631 = vst [vmem:[#allocation106_spill] sm:$0xff] %v13816_v23  ;;  %15633 = vst [vmem:[#allocation107_spill] sm:$0xff] %v13822_v48  ;;  %v6850_v27 = vld [vmem:[%s15021_s0 + $0xa20] sm:$0xff]  ;;  %v6851_v21 = vld [vmem:[%s15021_s0 + $0xa28] sm:$0xff]  ;;  %v13843_v48 = vmul.f32 %v6832_v42, %v13534_v53  ;;  %v13861_v42 = vmul.f32 %v6834_v46, %v13534_v53 }
 0x51f   : > { %15632 = vst [vmem:[#allocation215_spill] sm:$0xff] %v13819_v51  ;;  %v6852_v1 = vld [vmem:[%s15021_s0 + $0xa30] sm:$0xff]  ;;  %v6853_v60 = vld [vmem:[%s15021_s0 + $0xa38] sm:$0xff]  ;;  %15634 = vst [vmem:[#allocation108_spill] sm:$0xff] %v13837_v25  ;;  %v13846_v51 = vmul.f32 %v6833_v32, %v13534_v53  ;;  %v13864_v32 = vmul.f32 %v6835_v62, %v13534_v53 }
 0x520   : > { %15635 = vst [vmem:[#allocation216_spill] sm:$0xff] %v13840_v41  ;;  %15636 = vst [vmem:[#allocation109_spill] sm:$0xff] %v13843_v48  ;;  %v6854_v23 = vld [vmem:[%s15021_s0 + $0xa40] sm:$0xff]  ;;  %v6855_v9 = vld [vmem:[%s15021_s0 + $0xa48] sm:$0xff]  ;;  %v13870_v48 = vmul.f32 %v6837_v61, %v13534_v53  ;;  %v13888_v61 = vmul.f32 %v6839_v44, %v13534_v53 }
 0x521   : > { %15637 = vst [vmem:[#allocation217_spill] sm:$0xff] %v13846_v51  ;;  %v6856_v18 = vld [vmem:[%s15021_s0 + $0xa50] sm:$0xff]  ;;  %v6857_v4 = vld [vmem:[%s15021_s0 + $0xa58] sm:$0xff]  ;;  %15638 = vst [vmem:[#allocation110_spill] sm:$0xff] %v13861_v42  ;;  %v13867_v51 = vmul.f32 %v6836_v13, %v13534_v53  ;;  %v13885_v13 = vmul.f32 %v6838_v56, %v13534_v53 }
 0x522   : > { %15639 = vst [vmem:[#allocation218_spill] sm:$0xff] %v13864_v32  ;;  %15641 = vst [vmem:[#allocation112_spill] sm:$0xff] %v13870_v48  ;;  %v6858_v41 = vld [vmem:[%s15021_s0 + $0xa60] sm:$0xff]  ;;  %v6859_v25 = vld [vmem:[%s15021_s0 + $0xa68] sm:$0xff]  ;;  %v13891_v48 = vmul.f32 %v6840_v28, %v13534_v53  ;;  %v13909_v28 = vmul.f32 %v6842_v43, %v13534_v53 }
 0x523   : > { %15640 = vst [vmem:[#allocation111_spill] sm:$0xff] %v13867_v51  ;;  %v6860_v46 = vld [vmem:[%s15021_s0 + $0xa70] sm:$0xff]  ;;  %v6861_v62 = vld [vmem:[%s15021_s0 + $0xa78] sm:$0xff]  ;;  %15642 = vst [vmem:[#allocation219_spill] sm:$0xff] %v13885_v13  ;;  %v13894_v51 = vmul.f32 %v6841_v39, %v13534_v53  ;;  %v13912_v39 = vmul.f32 %v6843_v52, %v13534_v53 }
 0x524   : > { %15643 = vst [vmem:[#allocation113_spill] sm:$0xff] %v13888_v61  ;;  %15644 = vst [vmem:[#allocation220_spill] sm:$0xff] %v13891_v48  ;;  %v6862_v32 = vld [vmem:[%s15021_s0 + $0xa80] sm:$0xff]  ;;  %v6863_v42 = vld [vmem:[%s15021_s0 + $0xa88] sm:$0xff]  ;;  %v13918_v48 = vmul.f32 %v6845_v35, %v13534_v53  ;;  %v13936_v35 = vmul.f32 %v6847_v5, %v13534_v53 }
 0x525   : > { %15645 = vst [vmem:[#allocation114_spill] sm:$0xff] %v13894_v51  ;;  %v6864_v56 = vld [vmem:[%s15021_s0 + $0xa90] sm:$0xff]  ;;  %v6865_v44 = vld [vmem:[%s15021_s0 + $0xa98] sm:$0xff]  ;;  %15646 = vst [vmem:[#allocation221_spill] sm:$0xff] %v13909_v28  ;;  %v13915_v51 = vmul.f32 %v6844_v10, %v13534_v53  ;;  %v13933_v10 = vmul.f32 %v6846_v34, %v13534_v53 }
 0x526   : > { %15647 = vst [vmem:[#allocation115_spill] sm:$0xff] %v13912_v39  ;;  %15649 = vst [vmem:[#allocation222_spill] sm:$0xff] %v13918_v48  ;;  %v6866_v61 = vld [vmem:[%s15021_s0 + $0xaa0] sm:$0xff]  ;;  %v6867_v13 = vld [vmem:[%s15021_s0 + $0xaa8] sm:$0xff]  ;;  %v13939_v48 = vmul.f32 %v6848_v15, %v13534_v53  ;;  %v13957_v15 = vmul.f32 %v6850_v27, %v13534_v53 }
 0x527   : > { %15648 = vst [vmem:[#allocation116_spill] sm:$0xff] %v13915_v51  ;;  %v6868_v43 = vld [vmem:[%s15021_s0 + $0xab0] sm:$0xff]  ;;  %v6869_v52 = vld [vmem:[%s15021_s0 + $0xab8] sm:$0xff]  ;;  %15650 = vst [vmem:[#allocation117_spill] sm:$0xff] %v13933_v10  ;;  %v13942_v51 = vmul.f32 %v6849_v49, %v13534_v53  ;;  %v13960_v49 = vmul.f32 %v6851_v21, %v13534_v53 }
 0x528   : > { %15651 = vst [vmem:[#allocation223_spill] sm:$0xff] %v13936_v35  ;;  %15652 = vst [vmem:[#allocation118_spill] sm:$0xff] %v13939_v48  ;;  %v6870_v39 = vld [vmem:[%s15021_s0 + $0xac0] sm:$0xff]  ;;  %v6871_v28 = vld [vmem:[%s15021_s0 + $0xac8] sm:$0xff]  ;;  %v13966_v48 = vmul.f32 %v6853_v60, %v13534_v53  ;;  %v13984_v60 = vmul.f32 %v6855_v9, %v13534_v53 }
 0x529   : > { %15653 = vst [vmem:[#allocation224_spill] sm:$0xff] %v13942_v51  ;;  %v6872_v34 = vld [vmem:[%s15021_s0 + $0xad0] sm:$0xff]  ;;  %v6873_v5 = vld [vmem:[%s15021_s0 + $0xad8] sm:$0xff]  ;;  %15654 = vst [vmem:[#allocation119_spill] sm:$0xff] %v13957_v15  ;;  %v13963_v51 = vmul.f32 %v6852_v1, %v13534_v53  ;;  %v13981_v1 = vmul.f32 %v6854_v23, %v13534_v53 }
 0x52a   : > { %15655 = vst [vmem:[#allocation120_spill] sm:$0xff] %v13960_v49  ;;  %15657 = vst [vmem:[#allocation121_spill] sm:$0xff] %v13966_v48  ;;  %v6874_v35 = vld [vmem:[%s15021_s0 + $0xae0] sm:$0xff]  ;;  %v6875_v10 = vld [vmem:[%s15021_s0 + $0xae8] sm:$0xff]  ;;  %v13987_v48 = vmul.f32 %v6856_v18, %v13534_v53  ;;  %v14005_v18 = vmul.f32 %v6858_v41, %v13534_v53 }
 0x52b   : > { %15656 = vst [vmem:[#allocation225_spill] sm:$0xff] %v13963_v51  ;;  %v6876_v27 = vld [vmem:[%s15021_s0 + $0xaf0] sm:$0xff]  ;;  %v6877_v21 = vld [vmem:[%s15021_s0 + $0xaf8] sm:$0xff]  ;;  %15658 = vst [vmem:[#allocation226_spill] sm:$0xff] %v13981_v1  ;;  %v13990_v51 = vmul.f32 %v6857_v4, %v13534_v53  ;;  %v14008_v4 = vmul.f32 %v6859_v25, %v13534_v53 }
 0x52c   : > { %15659 = vst [vmem:[#allocation122_spill] sm:$0xff] %v13984_v60  ;;  %15660 = vst [vmem:[#allocation227_spill] sm:$0xff] %v13987_v48  ;;  %v6878_v49 = vld [vmem:[%s15021_s0 + $0xb00] sm:$0xff]  ;;  %v6879_v15 = vld [vmem:[%s15021_s0 + $0xb08] sm:$0xff]  ;;  %v14014_v48 = vmul.f32 %v6861_v62, %v13534_v53  ;;  %v14032_v62 = vmul.f32 %v6863_v42, %v13534_v53  ;;  %v14050_v42 = vmul.f32 %v6866_v61, %v13534_v53 }
 0x52d   : > { %15661 = vst [vmem:[#allocation123_spill] sm:$0xff] %v13990_v51  ;;  %v6880_v23 = vld [vmem:[%s15021_s0 + $0xb10] sm:$0xff]  ;;  %v6881_v9 = vld [vmem:[%s15021_s0 + $0xb18] sm:$0xff]  ;;  %15662 = vst [vmem:[#allocation124_spill] sm:$0xff] %v14005_v18  ;;  %v14011_v51 = vmul.f32 %v6860_v46, %v13534_v53  ;;  %v14029_v46 = vmul.f32 %v6862_v32, %v13534_v53 }
 0x52e   : > { %15663 = vst [vmem:[#allocation228_spill] sm:$0xff] %v14008_v4  ;;  %15665 = vst [vmem:[#allocation229_spill] sm:$0xff] %v14014_v48  ;;  %v6882_v60 = vld [vmem:[%s15021_s0 + $0xb20] sm:$0xff]  ;;  %v6883_v1 = vld [vmem:[%s15021_s0 + $0xb28] sm:$0xff]  ;;  %v14035_v48 = vmul.f32 %v6864_v56, %v13534_v53  ;;  %v14053_v56 = vmul.f32 %v6867_v13, %v13534_v53  ;;  %v14071_v13 = vmul.f32 %v6870_v39, %v13534_v53 }
 0x52f   : > { %15664 = vst [vmem:[#allocation125_spill] sm:$0xff] %v14011_v51  ;;  %v6884_v41 = vld [vmem:[%s15021_s0 + $0xb30] sm:$0xff]  ;;  %v6885_v25 = vld [vmem:[%s15021_s0 + $0xb38] sm:$0xff]  ;;  %15666 = vst [vmem:[#allocation126_spill] sm:$0xff] %v14032_v62  ;;  %v14038_v51 = vmul.f32 %v6865_v44, %v13534_v53  ;;  %v14056_v44 = vmul.f32 %v6868_v43, %v13534_v53  ;;  %v14074_v43 = vmul.f32 %v6871_v28, %v13534_v53 }
 0x530   : > { %15667 = vst [vmem:[#allocation230_spill] sm:$0xff] %v14035_v48  ;;  %v6886_v4 = vld [vmem:[%s15021_s0 + $0xb40] sm:$0xff]  ;;  %v6887_v18 = vld [vmem:[%s15021_s0 + $0xb48] sm:$0xff]  ;;  %v6888_v32 = vld [vmem:[%s15021_s0 + $0xb50] sm:$0xff]  ;;  %v14092_v28 = vmul.f32 %v6874_v35, %v13534_v53  ;;  %v14113_v35 = vmul.f32 %v6878_v49, %v13534_v53 }
 0x531   : > { %15668 = vst [vmem:[#allocation127_spill] sm:$0xff] %v14038_v51  ;;  %15669 = vst [vmem:[#allocation231_spill] sm:$0xff] %v14053_v56  ;;  %v14059_v51 = vmul.f32 %v6869_v52, %v13534_v53  ;;  %v6889_v48 = vld [vmem:[%s15021_s0 + $0xb58] sm:$0xff]  ;;  %v6890_v62 = vld [vmem:[%s15021_s0 + $0xb60] sm:$0xff]  ;;  %v14077_v52 = vmul.f32 %v6872_v34, %v13534_v53  ;;  %v14095_v34 = vmul.f32 %v6875_v10, %v13534_v53 }
 0x532   : > { %15670 = vst [vmem:[#allocation128_spill] sm:$0xff] %v14056_v44  ;;  %v6891_v61 = vld [vmem:[%s15021_s0 + $0xb68] sm:$0xff]  ;;  %15672 = vst [vmem:[#allocation129_spill] sm:$0xff] %v14074_v43  ;;  %v6892_v44 = vld [vmem:[%s15021_s0 + $0xb70] sm:$0xff] }
 0x533   : > { %15671 = vst [vmem:[#allocation232_spill] sm:$0xff] %v14059_v51  ;;  %15673 = vst [vmem:[#allocation233_spill] sm:$0xff] %v14077_v52  ;;  %v14080_v51 = vmul.f32 %v6873_v5, %v13534_v53  ;;  %v6893_v56 = vld [vmem:[%s15021_s0 + $0xb78] sm:$0xff]  ;;  %v6894_v39 = vld [vmem:[%s15021_s0 + $0xb80] sm:$0xff]  ;;  %v14098_v5 = vmul.f32 %v6876_v27, %v13534_v53  ;;  %v14116_v27 = vmul.f32 %v6879_v15, %v13534_v53 }
 0x534   : > { %15675 = vst [vmem:[#allocation234_spill] sm:$0xff] %v14095_v34  ;;  %v6895_v52 = vld [vmem:[%s15021_s0 + $0xb88] sm:$0xff]  ;;  %v6896_v43 = vld [vmem:[%s15021_s0 + $0xb90] sm:$0xff]  ;;  %v6897_v10 = vld [vmem:[%s15021_s0 + $0xb98] sm:$0xff]  ;;  %v14134_v15 = vmul.f32 %v6882_v60, %v13534_v53 }
 0x535   : > { %15674 = vst [vmem:[#allocation130_spill] sm:$0xff] %v14080_v51  ;;  %15676 = vst [vmem:[#allocation131_spill] sm:$0xff] %v14098_v5  ;;  %v14101_v51 = vmul.f32 %v6877_v21, %v13534_v53  ;;  %v14119_v21 = vmul.f32 %v6880_v23, %v13534_v53  ;;  %v6898_v5 = vld [vmem:[%s15021_s0 + $0xba0] sm:$0xff]  ;;  %v6899_v34 = vld [vmem:[%s15021_s0 + $0xba8] sm:$0xff]  ;;  %v14137_v23 = vmul.f32 %v6883_v1, %v13534_v53 }
 0x536   : > { %15678 = vst [vmem:[#allocation133_spill] sm:$0xff] %v14116_v27  ;;  %v6900_v49 = vld [vmem:[%s15021_s0 + $0xbb0] sm:$0xff]  ;;  %v6902_v27 = vld [vmem:[%s15021_s0 + $0xbc0] sm:$0xff]  ;;  %v6903_v60 = vld [vmem:[%s15021_s0 + $0xbc8] sm:$0xff]  ;;  %v14155_v1 = vmul.f32 %v6886_v4, %v13534_v53 }
 0x537   : > { %15677 = vst [vmem:[#allocation132_spill] sm:$0xff] %v14101_v51  ;;  %15679 = vst [vmem:[#allocation134_spill] sm:$0xff] %v14119_v21  ;;  %v14122_v51 = vmul.f32 %v6881_v9, %v13534_v53  ;;  %v14140_v9 = vmul.f32 %v6884_v41, %v13534_v53  ;;  %v6901_v21 = vld [vmem:[%s15021_s0 + $0xbb8] sm:$0xff]  ;;  %v14158_v41 = vmul.f32 %v6887_v18, %v13534_v53  ;;  %v6906_v4 = vld [vmem:[%s15021_s0 + $0xbe0] sm:$0xff] }
 0x538   : > { %15681 = vst [vmem:[#allocation136_spill] sm:$0xff] %v14137_v23  ;;  %v6905_v23 = vld [vmem:[%s15021_s0 + $0xbd8] sm:$0xff]  ;;  %v14176_v18 = vmul.f32 %v6890_v62, %v13534_v53 }
 0x539   : > { %15680 = vst [vmem:[#allocation135_spill] sm:$0xff] %v14122_v51  ;;  %15682 = vst [vmem:[#allocation137_spill] sm:$0xff] %v14140_v9  ;;  %v14143_v51 = vmul.f32 %v6885_v25, %v13534_v53  ;;  %v14161_v25 = vmul.f32 %v6888_v32, %v13534_v53  ;;  %v6904_v9 = vld [vmem:[%s15021_s0 + $0xbd0] sm:$0xff]  ;;  %v14179_v32 = vmul.f32 %v6891_v61, %v13534_v53  ;;  %v6909_v62 = vld [vmem:[%s15021_s0 + $0xbf8] sm:$0xff] }
 0x53a   : > { %15684 = vst [vmem:[#allocation139_spill] sm:$0xff] %v14158_v41  ;;  %15687 = vst [vmem:[#allocation142_spill] sm:$0xff] %v14176_v18  ;;  %v6908_v41 = vld [vmem:[%s15021_s0 + $0xbf0] sm:$0xff]  ;;  %v14197_v61 = vmul.f32 %v6894_v39, %v13534_v53  ;;  %v14215_v18 = vmul.f32 %v6900_v49, %v13534_v53  ;;  %v14218_v39 = vmul.f32 %v6901_v21, %v13534_v53 }
 0x53b   : > { %15683 = vst [vmem:[#allocation138_spill] sm:$0xff] %v14143_v51  ;;  %15685 = vst [vmem:[#allocation140_spill] sm:$0xff] %v14161_v25  ;;  %v14164_v51 = vmul.f32 %v6889_v48, %v13534_v53  ;;  %v14182_v48 = vmul.f32 %v6892_v44, %v13534_v53  ;;  %v6907_v25 = vld [vmem:[%s15021_s0 + $0xbe8] sm:$0xff]  ;;  %v14200_v44 = vmul.f32 %v6895_v52, %v13534_v53 }
 0x53c   : > { %15688 = vst [vmem:[#allocation143_spill] sm:$0xff] %v14179_v32  ;;  %v14212_v32 = vmul.f32 %v6899_v34, %v13534_v53  ;;  %v14221_v52 = vmul.f32 %v6902_v27, %v13534_v53  ;;  %v14233_v34 = vmul.f32 %v6906_v4, %v13534_v53  ;;  %v14236_v49 = vmul.f32 %v6907_v25, %v13534_v53 }
 0x53d   : > { %15686 = vst [vmem:[#allocation141_spill] sm:$0xff] %v14164_v51  ;;  %15689 = vst [vmem:[#allocation144_spill] sm:$0xff] %v14182_v48  ;;  %v14185_v51 = vmul.f32 %v6893_v56, %v13534_v53  ;;  %v14203_v56 = vmul.f32 %v6896_v43, %v13534_v53  ;;  %v14209_v48 = vmul.f32 %v6898_v5, %v13534_v53 }
 0x53e   : > { %v14224_v43 = vmul.f32 %v6903_v60, %v13534_v53  ;;  %v14230_v5 = vmul.f32 %v6905_v23, %v13534_v53  ;;  %v14239_v21 = vmul.f32 %v6908_v41, %v13534_v53  ;;  %v14242_v27 = vmul.f32 %v6909_v62, %v13534_v53  ;;  %v15707_v62 = vld [vmem:[#allocation94_spill] sm:$0xff] }
 0x53f   : > { %15690 = vst [vmem:[#allocation145_spill] sm:$0xff] %v14185_v51  ;;  %v14206_v51 = vmul.f32 %v6897_v10, %v13534_v53  ;;  %v14227_v10 = vmul.f32 %v6904_v9, %v13534_v53  ;;  %v5924_v60 = vadd.f32 %v13549_v14, %v12964_v59  ;;  %v5925_v9 = vadd.f32 %v13552_v11, %v12968_v17  ;;  %v15700_v14 = vld [vmem:[#allocation148_spill] sm:$0xff] }
 0x540   : > { %v5926_v23 = vadd.f32 %v13555_v19, %v12972_v12  ;;  %v5927_v4 = vadd.f32 %v13558_v45, %v12976_v36  ;;  %v5928_v25 = vadd.f32 %v13573_v3, %v12980_v7  ;;  %v5929_v41 = vadd.f32 %v13576_v22, %v12984_v29  ;;  %v15701_v11 = vld [vmem:[#allocation204_spill] sm:$0xff]  ;;  %v15702_v45 = vld [vmem:[#allocation37_spill] sm:$0xff] }
 0x541   : > { %v5930_v53 = vadd.f32 %v13579_v30, %v12988_v6  ;;  %v5931_v59 = vadd.f32 %v13582_v0, %v12992_v54  ;;  %v5932_v17 = vadd.f32 %v13597_v63, %v12996_v37  ;;  %v5933_v12 = vadd.f32 %v13600_v55, %v13000_v58  ;;  %6053 = vst.msk [vmem:[%s15025_s4] sm:$0xff] %vm6052_vm9, %v5924_v60  ;;  %v15691_v58 = vld [vmem:[#allocation90_spill] sm:$0xff]  ;;  %v15699_v0 = vld [vmem:[#allocation92_spill] sm:$0xff]  ;;  %v15703_v3 = vld [vmem:[#allocation93_spill] sm:$0xff] }
 0x542   : > { %v5934_v36 = vadd.f32 %v13603_v40, %v13004_v16  ;;  %v5935_v7 = vadd.f32 %v13606_v38, %v13008_v2  ;;  %6054 = vst.msk [vmem:[%s15025_s4 + $0x8] sm:$0xff] %vm6052_vm9, %v5925_v9  ;;  %6055 = vst.msk [vmem:[%s15025_s4 + $0x10] sm:$0xff] %vm6052_vm9, %v5926_v23  ;;  %v5936_v29 = vadd.f32 %v13621_v20, %v13012_v50  ;;  %v15692_v2 = vld [vmem:[#allocation146_spill] sm:$0xff]  ;;  %v15697_v38 = vld [vmem:[#allocation203_spill] sm:$0xff] }
 0x543   : > { %6056 = vst.msk [vmem:[%s15025_s4 + $0x18] sm:$0xff] %vm6052_vm9, %v5927_v4  ;;  %v5937_v6 = vadd.f32 %v13624_v57, %v13016_v8  ;;  %v5938_v54 = vadd.f32 %v13627_v33, %v13020_v47  ;;  %v5939_v37 = vadd.f32 %v13630_v26, %v13024_v31  ;;  %6057 = vst.msk [vmem:[%s15025_s4 + $0x20] sm:$0xff] %vm6052_vm9, %v5928_v25  ;;  %v15693_v50 = vld [vmem:[#allocation202_spill] sm:$0xff]  ;;  %v15694_v47 = vld [vmem:[#allocation35_spill] sm:$0xff] }
 0x544   : > { %6058 = vst.msk [vmem:[%s15025_s4 + $0x28] sm:$0xff] %vm6052_vm9, %v5929_v41  ;;  %6059 = vst.msk [vmem:[%s15025_s4 + $0x30] sm:$0xff] %vm6052_vm9, %v5930_v53  ;;  %v5940_v16 = vadd.f32 %v15691_v58, %v13028_v24  ;;  %v5941_v8 = vadd.f32 %v15693_v50, %v15692_v2  ;;  %v15695_v31 = vld [vmem:[#allocation91_spill] sm:$0xff]  ;;  %v15698_v24 = vld [vmem:[#allocation36_spill] sm:$0xff]  ;;  %v5945_v19 = vadd.f32 %v15701_v11, %v15700_v14 }
 0x545   : > { %6060 = vst.msk [vmem:[%s15025_s4 + $0x38] sm:$0xff] %vm6052_vm9, %v5931_v59  ;;  %v5942_v26 = vadd.f32 %v15695_v31, %v15694_v47  ;;  %v15696_v33 = vld [vmem:[#allocation147_spill] sm:$0xff]  ;;  %6061 = vst.msk [vmem:[%s15025_s4 + $0x40] sm:$0xff] %vm6052_vm9, %v5932_v17  ;;  %v5944_v30 = vadd.f32 %v15699_v0, %v15698_v24  ;;  %v5946_v22 = vadd.f32 %v15703_v3, %v15702_v45  ;;  %v15704_v63 = vld [vmem:[#allocation149_spill] sm:$0xff] }
 0x546   : > { %v5943_v40 = vadd.f32 %v15697_v38, %v15696_v33  ;;  %6062 = vst.msk [vmem:[%s15025_s4 + $0x48] sm:$0xff] %vm6052_vm9, %v5933_v12  ;;  %6063 = vst.msk [vmem:[%s15025_s4 + $0x50] sm:$0xff] %vm6052_vm9, %v5934_v36  ;;  %v15705_v55 = vld [vmem:[#allocation205_spill] sm:$0xff]  ;;  %v15706_v57 = vld [vmem:[#allocation38_spill] sm:$0xff] }
 0x547   : > { %6064 = vst.msk [vmem:[%s15025_s4 + $0x58] sm:$0xff] %vm6052_vm9, %v5935_v7  ;;  %v5947_v20 = vadd.f32 %v15705_v55, %v15704_v63  ;;  %6065 = vst.msk [vmem:[%s15025_s4 + $0x60] sm:$0xff] %vm6052_vm9, %v5936_v29  ;;  %v5948_v60 = vadd.f32 %v15707_v62, %v15706_v57  ;;  %v15708_v9 = vld [vmem:[#allocation150_spill] sm:$0xff]  ;;  %v15710_v25 = vld [vmem:[#allocation39_spill] sm:$0xff] }
 0x548   : > { %6066 = vst.msk [vmem:[%s15025_s4 + $0x68] sm:$0xff] %vm6052_vm9, %v5937_v6  ;;  %6067 = vst.msk [vmem:[%s15025_s4 + $0x70] sm:$0xff] %vm6052_vm9, %v5938_v54  ;;  %v15709_v23 = vld [vmem:[#allocation206_spill] sm:$0xff]  ;;  %v15711_v41 = vld [vmem:[#allocation95_spill] sm:$0xff] }
 0x549   : > { %6068 = vst.msk [vmem:[%s15025_s4 + $0x78] sm:$0xff] %vm6052_vm9, %v5939_v37  ;;  %v5949_v4 = vadd.f32 %v15709_v23, %v15708_v9  ;;  %v5950_v53 = vadd.f32 %v15711_v41, %v15710_v25  ;;  %v15712_v59 = vld [vmem:[#allocation151_spill] sm:$0xff]  ;;  %v15713_v17 = vld [vmem:[#allocation96_spill] sm:$0xff]  ;;  %6069 = vst.msk [vmem:[%s15025_s4 + $0x80] sm:$0xff] %vm6052_vm9, %v5940_v16 }
 0x54a   : > { %v5951_v12 = vadd.f32 %v15713_v17, %v15712_v59  ;;  %6070 = vst.msk [vmem:[%s15025_s4 + $0x88] sm:$0xff] %vm6052_vm9, %v5941_v8  ;;  %6071 = vst.msk [vmem:[%s15025_s4 + $0x90] sm:$0xff] %vm6052_vm9, %v5942_v26  ;;  %v15714_v36 = vld [vmem:[#allocation40_spill] sm:$0xff]  ;;  %v15715_v7 = vld [vmem:[#allocation207_spill] sm:$0xff] }
 0x54b   : > { %6072 = vst.msk [vmem:[%s15025_s4 + $0x98] sm:$0xff] %vm6052_vm9, %v5943_v40  ;;  %v5952_v29 = vadd.f32 %v15715_v7, %v15714_v36  ;;  %v15716_v6 = vld [vmem:[#allocation152_spill] sm:$0xff]  ;;  %v15717_v54 = vld [vmem:[#allocation97_spill] sm:$0xff]  ;;  %v15721_v8 = vld [vmem:[#allocation98_spill] sm:$0xff] }
 0x54c   : > { %v5953_v37 = vadd.f32 %v15717_v54, %v15716_v6  ;;  %v15718_v58 = vld [vmem:[#allocation41_spill] sm:$0xff]  ;;  %v15719_v16 = vld [vmem:[#allocation208_spill] sm:$0xff]  ;;  %6073 = vst.msk [vmem:[%s15025_s4 + $0xa0] sm:$0xff] %vm6052_vm9, %v5944_v30  ;;  %6074 = vst.msk [vmem:[%s15025_s4 + $0xa8] sm:$0xff] %vm6052_vm9, %v5945_v19 }
 0x54d   : > { %v5954_v2 = vadd.f32 %v15719_v16, %v15718_v58  ;;  %v15720_v50 = vld [vmem:[#allocation153_spill] sm:$0xff]  ;;  %6075 = vst.msk [vmem:[%s15025_s4 + $0xb0] sm:$0xff] %vm6052_vm9, %v5946_v22  ;;  %6076 = vst.msk [vmem:[%s15025_s4 + $0xb8] sm:$0xff] %vm6052_vm9, %v5947_v20  ;;  %v15722_v31 = vld [vmem:[#allocation42_spill] sm:$0xff] }
 0x54e   : > { %v5955_v47 = vadd.f32 %v15721_v8, %v15720_v50  ;;  %v15723_v26 = vld [vmem:[#allocation209_spill] sm:$0xff]  ;;  %v15724_v38 = vld [vmem:[#allocation154_spill] sm:$0xff]  ;;  %v15725_v40 = vld [vmem:[#allocation99_spill] sm:$0xff]  ;;  %6077 = vst.msk [vmem:[%s15025_s4 + $0xc0] sm:$0xff] %vm6052_vm9, %v5948_v60 }
 0x54f   : > { %v5956_v33 = vadd.f32 %v15723_v26, %v15722_v31  ;;  %v5957_v24 = vadd.f32 %v15725_v40, %v15724_v38  ;;  %v15726_v0 = vld [vmem:[#allocation43_spill] sm:$0xff]  ;;  %v15727_v30 = vld [vmem:[#allocation100_spill] sm:$0xff]  ;;  %v15729_v19 = vld [vmem:[#allocation210_spill] sm:$0xff]  ;;  %6078 = vst.msk [vmem:[%s15025_s4 + $0xc8] sm:$0xff] %vm6052_vm9, %v5949_v4 }
 0x550   : > { %v5958_v14 = vadd.f32 %v15727_v30, %v15726_v0  ;;  %v15728_v11 = vld [vmem:[#allocation155_spill] sm:$0xff]  ;;  %6079 = vst.msk [vmem:[%s15025_s4 + $0xd0] sm:$0xff] %vm6052_vm9, %v5950_v53  ;;  %6080 = vst.msk [vmem:[%s15025_s4 + $0xd8] sm:$0xff] %vm6052_vm9, %v5951_v12  ;;  %v15730_v3 = vld [vmem:[#allocation44_spill] sm:$0xff] }
 0x551   : > { %v5959_v45 = vadd.f32 %v15729_v19, %v15728_v11  ;;  %v15731_v22 = vld [vmem:[#allocation101_spill] sm:$0xff]  ;;  %v15732_v55 = vld [vmem:[#allocation156_spill] sm:$0xff]  ;;  %v15733_v20 = vld [vmem:[#allocation211_spill] sm:$0xff]  ;;  %6081 = vst.msk [vmem:[%s15025_s4 + $0xe0] sm:$0xff] %vm6052_vm9, %v5952_v29 }
 0x552   : > { %v5960_v63 = vadd.f32 %v15731_v22, %v15730_v3  ;;  %v5961_v57 = vadd.f32 %v15733_v20, %v15732_v55  ;;  %v15734_v62 = vld [vmem:[#allocation45_spill] sm:$0xff]  ;;  %v15735_v60 = vld [vmem:[#allocation102_spill] sm:$0xff]  ;;  %v15737_v4 = vld [vmem:[#allocation212_spill] sm:$0xff]  ;;  %6082 = vst.msk [vmem:[%s15025_s4 + $0xe8] sm:$0xff] %vm6052_vm9, %v5953_v37 }
 0x553   : > { %v5962_v9 = vadd.f32 %v15735_v60, %v15734_v62  ;;  %v15736_v23 = vld [vmem:[#allocation157_spill] sm:$0xff]  ;;  %6083 = vst.msk [vmem:[%s15025_s4 + $0xf0] sm:$0xff] %vm6052_vm9, %v5954_v2  ;;  %6084 = vst.msk [vmem:[%s15025_s4 + $0xf8] sm:$0xff] %vm6052_vm9, %v5955_v47  ;;  %v15738_v41 = vld [vmem:[#allocation46_spill] sm:$0xff] }
 0x554   : > { %v5963_v25 = vadd.f32 %v15737_v4, %v15736_v23  ;;  %v15739_v53 = vld [vmem:[#allocation103_spill] sm:$0xff]  ;;  %v15740_v17 = vld [vmem:[#allocation158_spill] sm:$0xff]  ;;  %v15741_v12 = vld [vmem:[#allocation104_spill] sm:$0xff]  ;;  %6085 = vst.msk [vmem:[%s15025_s4 + $0x100] sm:$0xff] %vm6052_vm9, %v5956_v33 }
 0x555   : > { %v5964_v59 = vadd.f32 %v15739_v53, %v15738_v41  ;;  %v5965_v36 = vadd.f32 %v15741_v12, %v15740_v17  ;;  %v15742_v7 = vld [vmem:[#allocation47_spill] sm:$0xff]  ;;  %v15743_v29 = vld [vmem:[#allocation213_spill] sm:$0xff]  ;;  %6086 = vst.msk [vmem:[%s15025_s4 + $0x108] sm:$0xff] %vm6052_vm9, %v5957_v24  ;;  %6087 = vst.msk [vmem:[%s15025_s4 + $0x110] sm:$0xff] %vm6052_vm9, %v5958_v14 }
 0x556   : > { %v5966_v6 = vadd.f32 %v15743_v29, %v15742_v7  ;;  %v15744_v54 = vld [vmem:[#allocation159_spill] sm:$0xff]  ;;  %v15745_v37 = vld [vmem:[#allocation105_spill] sm:$0xff]  ;;  %6088 = vst.msk [vmem:[%s15025_s4 + $0x118] sm:$0xff] %vm6052_vm9, %v5959_v45  ;;  %v15746_v16 = vld [vmem:[#allocation48_spill] sm:$0xff] }
 0x557   : > { %v5967_v58 = vadd.f32 %v15745_v37, %v15744_v54  ;;  %v15747_v2 = vld [vmem:[#allocation214_spill] sm:$0xff]  ;;  %v15748_v8 = vld [vmem:[#allocation160_spill] sm:$0xff]  ;;  %v15750_v26 = vld [vmem:[#allocation49_spill] sm:$0xff]  ;;  %6089 = vst.msk [vmem:[%s15025_s4 + $0x120] sm:$0xff] %vm6052_vm9, %v5960_v63 }
 0x558   : > { %v5968_v50 = vadd.f32 %v15747_v2, %v15746_v16  ;;  %v15749_v47 = vld [vmem:[#allocation106_spill] sm:$0xff]  ;;  %v15751_v33 = vld [vmem:[#allocation215_spill] sm:$0xff]  ;;  %v15752_v40 = vld [vmem:[#allocation161_spill] sm:$0xff]  ;;  %6090 = vst.msk [vmem:[%s15025_s4 + $0x128] sm:$0xff] %vm6052_vm9, %v5961_v57 }
 0x559   : > { %v5969_v31 = vadd.f32 %v15749_v47, %v15748_v8  ;;  %v5970_v38 = vadd.f32 %v15751_v33, %v15750_v26  ;;  %v15753_v24 = vld [vmem:[#allocation107_spill] sm:$0xff]  ;;  %6091 = vst.msk [vmem:[%s15025_s4 + $0x130] sm:$0xff] %vm6052_vm9, %v5962_v9  ;;  %6092 = vst.msk [vmem:[%s15025_s4 + $0x138] sm:$0xff] %vm6052_vm9, %v5963_v25  ;;  %v15754_v30 = vld [vmem:[#allocation50_spill] sm:$0xff] }
 0x55a   : > { %v5971_v0 = vadd.f32 %v15753_v24, %v15752_v40  ;;  %v15755_v14 = vld [vmem:[#allocation108_spill] sm:$0xff]  ;;  %v15756_v19 = vld [vmem:[#allocation162_spill] sm:$0xff]  ;;  %v15758_v22 = vld [vmem:[#allocation51_spill] sm:$0xff]  ;;  %6093 = vst.msk [vmem:[%s15025_s4 + $0x140] sm:$0xff] %vm6052_vm9, %v5964_v59 }
 0x55b   : > { %v5972_v11 = vadd.f32 %v15755_v14, %v15754_v30  ;;  %v15757_v45 = vld [vmem:[#allocation216_spill] sm:$0xff]  ;;  %v15759_v63 = vld [vmem:[#allocation109_spill] sm:$0xff]  ;;  %v15760_v20 = vld [vmem:[#allocation163_spill] sm:$0xff]  ;;  %6094 = vst.msk [vmem:[%s15025_s4 + $0x148] sm:$0xff] %vm6052_vm9, %v5965_v36 }
 0x55c   : > { %v5973_v3 = vadd.f32 %v15757_v45, %v15756_v19  ;;  %v5974_v55 = vadd.f32 %v15759_v63, %v15758_v22  ;;  %v15761_v57 = vld [vmem:[#allocation217_spill] sm:$0xff]  ;;  %6095 = vst.msk [vmem:[%s15025_s4 + $0x150] sm:$0xff] %vm6052_vm9, %v5966_v6  ;;  %6096 = vst.msk [vmem:[%s15025_s4 + $0x158] sm:$0xff] %vm6052_vm9, %v5967_v58  ;;  %v15762_v60 = vld [vmem:[#allocation52_spill] sm:$0xff] }
 0x55d   : > { %v5975_v62 = vadd.f32 %v15761_v57, %v15760_v20  ;;  %v15763_v9 = vld [vmem:[#allocation110_spill] sm:$0xff]  ;;  %v15764_v4 = vld [vmem:[#allocation164_spill] sm:$0xff]  ;;  %v15766_v53 = vld [vmem:[#allocation53_spill] sm:$0xff]  ;;  %6097 = vst.msk [vmem:[%s15025_s4 + $0x160] sm:$0xff] %vm6052_vm9, %v5968_v50 }
 0x55e   : > { %v5976_v23 = vadd.f32 %v15763_v9, %v15762_v60  ;;  %v15765_v25 = vld [vmem:[#allocation218_spill] sm:$0xff]  ;;  %v15767_v59 = vld [vmem:[#allocation111_spill] sm:$0xff]  ;;  %v15768_v12 = vld [vmem:[#allocation165_spill] sm:$0xff]  ;;  %6098 = vst.msk [vmem:[%s15025_s4 + $0x168] sm:$0xff] %vm6052_vm9, %v5969_v31 }
 0x55f   : > { %v5977_v41 = vadd.f32 %v15765_v25, %v15764_v4  ;;  %v5978_v17 = vadd.f32 %v15767_v59, %v15766_v53  ;;  %v15769_v36 = vld [vmem:[#allocation112_spill] sm:$0xff]  ;;  %6099 = vst.msk [vmem:[%s15025_s4 + $0x170] sm:$0xff] %vm6052_vm9, %v5970_v38  ;;  %6100 = vst.msk [vmem:[%s15025_s4 + $0x178] sm:$0xff] %vm6052_vm9, %v5971_v0  ;;  %v15770_v29 = vld [vmem:[#allocation54_spill] sm:$0xff] }
 0x560   : > { %v5979_v7 = vadd.f32 %v15769_v36, %v15768_v12  ;;  %v15771_v6 = vld [vmem:[#allocation219_spill] sm:$0xff]  ;;  %v15772_v37 = vld [vmem:[#allocation166_spill] sm:$0xff]  ;;  %v15773_v58 = vld [vmem:[#allocation113_spill] sm:$0xff]  ;;  %6101 = vst.msk [vmem:[%s15025_s4 + $0x180] sm:$0xff] %vm6052_vm9, %v5972_v11 }
 0x561   : > { %v5980_v54 = vadd.f32 %v15771_v6, %v15770_v29  ;;  %v5981_v16 = vadd.f32 %v15773_v58, %v15772_v37  ;;  %v15774_v2 = vld [vmem:[#allocation55_spill] sm:$0xff]  ;;  %v15775_v50 = vld [vmem:[#allocation220_spill] sm:$0xff]  ;;  %v15777_v31 = vld [vmem:[#allocation114_spill] sm:$0xff]  ;;  %6102 = vst.msk [vmem:[%s15025_s4 + $0x188] sm:$0xff] %vm6052_vm9, %v5973_v3 }
 0x562   : > { %v5982_v8 = vadd.f32 %v15775_v50, %v15774_v2  ;;  %v15776_v47 = vld [vmem:[#allocation167_spill] sm:$0xff]  ;;  %6103 = vst.msk [vmem:[%s15025_s4 + $0x190] sm:$0xff] %vm6052_vm9, %v5974_v55  ;;  %6104 = vst.msk [vmem:[%s15025_s4 + $0x198] sm:$0xff] %vm6052_vm9, %v5975_v62  ;;  %v15778_v33 = vld [vmem:[#allocation56_spill] sm:$0xff] }
 0x563   : > { %v5983_v26 = vadd.f32 %v15777_v31, %v15776_v47  ;;  %v15779_v38 = vld [vmem:[#allocation221_spill] sm:$0xff]  ;;  %v15780_v24 = vld [vmem:[#allocation168_spill] sm:$0xff]  ;;  %v15781_v0 = vld [vmem:[#allocation115_spill] sm:$0xff]  ;;  %6105 = vst.msk [vmem:[%s15025_s4 + $0x1a0] sm:$0xff] %vm6052_vm9, %v5976_v23 }
 0x564   : > { %v5984_v40 = vadd.f32 %v15779_v38, %v15778_v33  ;;  %v5985_v30 = vadd.f32 %v15781_v0, %v15780_v24  ;;  %v15782_v14 = vld [vmem:[#allocation57_spill] sm:$0xff]  ;;  %v15783_v11 = vld [vmem:[#allocation116_spill] sm:$0xff]  ;;  %v15785_v3 = vld [vmem:[#allocation222_spill] sm:$0xff]  ;;  %6106 = vst.msk [vmem:[%s15025_s4 + $0x1a8] sm:$0xff] %vm6052_vm9, %v5977_v41 }
 0x565   : > { %v5986_v19 = vadd.f32 %v15783_v11, %v15782_v14  ;;  %v15784_v45 = vld [vmem:[#allocation169_spill] sm:$0xff]  ;;  %6107 = vst.msk [vmem:[%s15025_s4 + $0x1b0] sm:$0xff] %vm6052_vm9, %v5978_v17  ;;  %6108 = vst.msk [vmem:[%s15025_s4 + $0x1b8] sm:$0xff] %vm6052_vm9, %v5979_v7  ;;  %v15786_v63 = vld [vmem:[#allocation58_spill] sm:$0xff] }
 0x566   : > { %v5987_v22 = vadd.f32 %v15785_v3, %v15784_v45  ;;  %v15787_v55 = vld [vmem:[#allocation117_spill] sm:$0xff]  ;;  %v15788_v57 = vld [vmem:[#allocation170_spill] sm:$0xff]  ;;  %v15789_v62 = vld [vmem:[#allocation223_spill] sm:$0xff]  ;;  %6109 = vst.msk [vmem:[%s15025_s4 + $0x1c0] sm:$0xff] %vm6052_vm9, %v5980_v54 }
 0x567   : > { %v5988_v20 = vadd.f32 %v15787_v55, %v15786_v63  ;;  %v5989_v60 = vadd.f32 %v15789_v62, %v15788_v57  ;;  %v15790_v9 = vld [vmem:[#allocation59_spill] sm:$0xff]  ;;  %v15791_v23 = vld [vmem:[#allocation118_spill] sm:$0xff]  ;;  %v15793_v41 = vld [vmem:[#allocation224_spill] sm:$0xff]  ;;  %6110 = vst.msk [vmem:[%s15025_s4 + $0x1c8] sm:$0xff] %vm6052_vm9, %v5981_v16 }
 0x568   : > { %v5990_v4 = vadd.f32 %v15791_v23, %v15790_v9  ;;  %v15792_v25 = vld [vmem:[#allocation171_spill] sm:$0xff]  ;;  %6111 = vst.msk [vmem:[%s15025_s4 + $0x1d0] sm:$0xff] %vm6052_vm9, %v5982_v8  ;;  %6112 = vst.msk [vmem:[%s15025_s4 + $0x1d8] sm:$0xff] %vm6052_vm9, %v5983_v26  ;;  %v15794_v59 = vld [vmem:[#allocation60_spill] sm:$0xff] }
 0x569   : > { %v5991_v53 = vadd.f32 %v15793_v41, %v15792_v25  ;;  %v15795_v17 = vld [vmem:[#allocation119_spill] sm:$0xff]  ;;  %v15796_v36 = vld [vmem:[#allocation172_spill] sm:$0xff]  ;;  %v15798_v6 = vld [vmem:[#allocation61_spill] sm:$0xff]  ;;  %6113 = vst.msk [vmem:[%s15025_s4 + $0x1e0] sm:$0xff] %vm6052_vm9, %v5984_v40 }
 0x56a   : > { %v5992_v12 = vadd.f32 %v15795_v17, %v15794_v59  ;;  %v15797_v7 = vld [vmem:[#allocation120_spill] sm:$0xff]  ;;  %v15799_v54 = vld [vmem:[#allocation225_spill] sm:$0xff]  ;;  %6114 = vst.msk [vmem:[%s15025_s4 + $0x1e8] sm:$0xff] %vm6052_vm9, %v5985_v30  ;;  %6115 = vst.msk [vmem:[%s15025_s4 + $0x1f0] sm:$0xff] %vm6052_vm9, %v5986_v19 }
 0x56b   : > { %v5993_v29 = vadd.f32 %v15797_v7, %v15796_v36  ;;  %v5994_v37 = vadd.f32 %v15799_v54, %v15798_v6  ;;  %v15800_v58 = vld [vmem:[#allocation173_spill] sm:$0xff]  ;;  %6116 = vst.msk [vmem:[%s15025_s4 + $0x1f8] sm:$0xff] %vm6052_vm9, %v5987_v22  ;;  %v15802_v50 = vld [vmem:[#allocation62_spill] sm:$0xff]  ;;  %v15806_v38 = vld [vmem:[#allocation63_spill] sm:$0xff] }
 0x56c   : > { %v15801_v16 = vld [vmem:[#allocation121_spill] sm:$0xff]  ;;  %v15803_v8 = vld [vmem:[#allocation226_spill] sm:$0xff]  ;;  %v15807_v40 = vld [vmem:[#allocation227_spill] sm:$0xff]  ;;  %6117 = vst.msk [vmem:[%s15025_s4 + $0x200] sm:$0xff] %vm6052_vm9, %v5988_v20 }
 0x56d   : > { %v5995_v2 = vadd.f32 %v15801_v16, %v15800_v58  ;;  %v5996_v47 = vadd.f32 %v15803_v8, %v15802_v50  ;;  %v15804_v31 = vld [vmem:[#allocation174_spill] sm:$0xff]  ;;  %v5998_v24 = vadd.f32 %v15807_v40, %v15806_v38  ;;  %v15808_v0 = vld [vmem:[#allocation175_spill] sm:$0xff]  ;;  %6118 = vst.msk [vmem:[%s15025_s4 + $0x208] sm:$0xff] %vm6052_vm9, %v5989_v60  ;;  %6119 = vst.msk [vmem:[%s15025_s4 + $0x210] sm:$0xff] %vm6052_vm9, %v5990_v4 }
 0x56e   : > { %v15805_v26 = vld [vmem:[#allocation122_spill] sm:$0xff]  ;;  %v15809_v30 = vld [vmem:[#allocation123_spill] sm:$0xff]  ;;  %6120 = vst.msk [vmem:[%s15025_s4 + $0x218] sm:$0xff] %vm6052_vm9, %v5991_v53  ;;  %v15810_v11 = vld [vmem:[#allocation64_spill] sm:$0xff] }
 0x56f   : > { %v5997_v33 = vadd.f32 %v15805_v26, %v15804_v31  ;;  %v5999_v14 = vadd.f32 %v15809_v30, %v15808_v0  ;;  %v15811_v19 = vld [vmem:[#allocation124_spill] sm:$0xff]  ;;  %v15814_v55 = vld [vmem:[#allocation65_spill] sm:$0xff]  ;;  %6121 = vst.msk [vmem:[%s15025_s4 + $0x220] sm:$0xff] %vm6052_vm9, %v5992_v12  ;;  %6122 = vst.msk [vmem:[%s15025_s4 + $0x228] sm:$0xff] %vm6052_vm9, %v5993_v29 }
 0x570   : > { %v6000_v45 = vadd.f32 %v15811_v19, %v15810_v11  ;;  %v15812_v3 = vld [vmem:[#allocation176_spill] sm:$0xff]  ;;  %v15815_v20 = vld [vmem:[#allocation125_spill] sm:$0xff]  ;;  %6123 = vst.msk [vmem:[%s15025_s4 + $0x230] sm:$0xff] %vm6052_vm9, %v5994_v37  ;;  %6124 = vst.msk [vmem:[%s15025_s4 + $0x238] sm:$0xff] %vm6052_vm9, %v5995_v2 }
 0x571   : > { %v15813_v22 = vld [vmem:[#allocation228_spill] sm:$0xff]  ;;  %v6002_v57 = vadd.f32 %v15815_v20, %v15814_v55  ;;  %v15816_v62 = vld [vmem:[#allocation177_spill] sm:$0xff]  ;;  %v15818_v23 = vld [vmem:[#allocation66_spill] sm:$0xff]  ;;  %6125 = vst.msk [vmem:[%s15025_s4 + $0x240] sm:$0xff] %vm6052_vm9, %v5996_v47 }
 0x572   : > { %v6001_v63 = vadd.f32 %v15813_v22, %v15812_v3  ;;  %v15817_v60 = vld [vmem:[#allocation229_spill] sm:$0xff]  ;;  %v6004_v4 = vadd.f32 %v14029_v46, %v15818_v23  ;;  %v15819_v25 = vld [vmem:[#allocation178_spill] sm:$0xff]  ;;  %v15821_v59 = vld [vmem:[#allocation67_spill] sm:$0xff]  ;;  %6126 = vst.msk [vmem:[%s15025_s4 + $0x248] sm:$0xff] %vm6052_vm9, %v5997_v33 }
 0x573   : > { %v6003_v9 = vadd.f32 %v15817_v60, %v15816_v62  ;;  %v15820_v41 = vld [vmem:[#allocation126_spill] sm:$0xff]  ;;  %v15823_v36 = vld [vmem:[#allocation179_spill] sm:$0xff]  ;;  %6127 = vst.msk [vmem:[%s15025_s4 + $0x250] sm:$0xff] %vm6052_vm9, %v5998_v24  ;;  %6128 = vst.msk [vmem:[%s15025_s4 + $0x258] sm:$0xff] %vm6052_vm9, %v5999_v14 }
 0x574   : > { %v6005_v53 = vadd.f32 %v15820_v41, %v15819_v25  ;;  %v15822_v17 = vld [vmem:[#allocation230_spill] sm:$0xff]  ;;  %v15824_v7 = vld [vmem:[#allocation127_spill] sm:$0xff]  ;;  %v15825_v46 = vld [vmem:[#allocation68_spill] sm:$0xff]  ;;  %6129 = vst.msk [vmem:[%s15025_s4 + $0x260] sm:$0xff] %vm6052_vm9, %v6000_v45 }
 0x575   : > { %v6006_v12 = vadd.f32 %v15822_v17, %v15821_v59  ;;  %v6007_v29 = vadd.f32 %v15824_v7, %v15823_v36  ;;  %v6008_v6 = vadd.f32 %v14050_v42, %v15825_v46  ;;  %v15826_v54 = vld [vmem:[#allocation180_spill] sm:$0xff]  ;;  %v15827_v37 = vld [vmem:[#allocation231_spill] sm:$0xff]  ;;  %v15828_v16 = vld [vmem:[#allocation69_spill] sm:$0xff]  ;;  %6130 = vst.msk [vmem:[%s15025_s4 + $0x268] sm:$0xff] %vm6052_vm9, %v6001_v63 }
 0x576   : > { %v6009_v58 = vadd.f32 %v15827_v37, %v15826_v54  ;;  %v15829_v2 = vld [vmem:[#allocation128_spill] sm:$0xff]  ;;  %v15830_v8 = vld [vmem:[#allocation181_spill] sm:$0xff]  ;;  %6131 = vst.msk [vmem:[%s15025_s4 + $0x270] sm:$0xff] %vm6052_vm9, %v6002_v57  ;;  %6132 = vst.msk [vmem:[%s15025_s4 + $0x278] sm:$0xff] %vm6052_vm9, %v6003_v9 }
 0x577   : > { %v6010_v50 = vadd.f32 %v15829_v2, %v15828_v16  ;;  %v15831_v47 = vld [vmem:[#allocation232_spill] sm:$0xff]  ;;  %v15832_v42 = vld [vmem:[#allocation70_spill] sm:$0xff]  ;;  %v15834_v38 = vld [vmem:[#allocation129_spill] sm:$0xff]  ;;  %6133 = vst.msk [vmem:[%s15025_s4 + $0x280] sm:$0xff] %vm6052_vm9, %v6004_v4 }
 0x578   : > { %v6011_v31 = vadd.f32 %v15831_v47, %v15830_v8  ;;  %v6012_v26 = vadd.f32 %v14071_v13, %v15832_v42  ;;  %v15833_v33 = vld [vmem:[#allocation182_spill] sm:$0xff]  ;;  %v15835_v24 = vld [vmem:[#allocation71_spill] sm:$0xff]  ;;  %v15836_v0 = vld [vmem:[#allocation233_spill] sm:$0xff]  ;;  %6134 = vst.msk [vmem:[%s15025_s4 + $0x288] sm:$0xff] %vm6052_vm9, %v6005_v53 }
 0x579   : > { %v6013_v40 = vadd.f32 %v15834_v38, %v15833_v33  ;;  %v6014_v30 = vadd.f32 %v15836_v0, %v15835_v24  ;;  %v15837_v14 = vld [vmem:[#allocation183_spill] sm:$0xff]  ;;  %v15838_v11 = vld [vmem:[#allocation130_spill] sm:$0xff]  ;;  %6135 = vst.msk [vmem:[%s15025_s4 + $0x290] sm:$0xff] %vm6052_vm9, %v6006_v12  ;;  %6136 = vst.msk [vmem:[%s15025_s4 + $0x298] sm:$0xff] %vm6052_vm9, %v6007_v29 }
 0x57a   : > { %v6015_v19 = vadd.f32 %v15838_v11, %v15837_v14  ;;  %v15839_v13 = vld [vmem:[#allocation72_spill] sm:$0xff]  ;;  %v15841_v22 = vld [vmem:[#allocation234_spill] sm:$0xff]  ;;  %v15842_v55 = vld [vmem:[#allocation73_spill] sm:$0xff]  ;;  %6137 = vst.msk [vmem:[%s15025_s4 + $0x2a0] sm:$0xff] %vm6052_vm9, %v6008_v6 }
 0x57b   : > { %v6016_v45 = vadd.f32 %v14092_v28, %v15839_v13  ;;  %v15840_v3 = vld [vmem:[#allocation184_spill] sm:$0xff]  ;;  %v15843_v20 = vld [vmem:[#allocation131_spill] sm:$0xff]  ;;  %v15844_v62 = vld [vmem:[#allocation185_spill] sm:$0xff]  ;;  %6138 = vst.msk [vmem:[%s15025_s4 + $0x2a8] sm:$0xff] %vm6052_vm9, %v6009_v58 }
 0x57c   : > { %v6017_v63 = vadd.f32 %v15841_v22, %v15840_v3  ;;  %v6018_v57 = vadd.f32 %v15843_v20, %v15842_v55  ;;  %v15845_v60 = vld [vmem:[#allocation132_spill] sm:$0xff]  ;;  %6139 = vst.msk [vmem:[%s15025_s4 + $0x2b0] sm:$0xff] %vm6052_vm9, %v6010_v50  ;;  %6140 = vst.msk [vmem:[%s15025_s4 + $0x2b8] sm:$0xff] %vm6052_vm9, %v6011_v31  ;;  %v15846_v28 = vld [vmem:[#allocation74_spill] sm:$0xff] }
 0x57d   : > { %v6019_v9 = vadd.f32 %v15845_v60, %v15844_v62  ;;  %v6020_v23 = vadd.f32 %v14113_v35, %v15846_v28  ;;  %v15847_v4 = vld [vmem:[#allocation186_spill] sm:$0xff]  ;;  %v15848_v25 = vld [vmem:[#allocation133_spill] sm:$0xff]  ;;  %v15849_v53 = vld [vmem:[#allocation75_spill] sm:$0xff]  ;;  %6141 = vst.msk [vmem:[%s15025_s4 + $0x2c0] sm:$0xff] %vm6052_vm9, %v6012_v26 }
 0x57e   : > { %v6021_v41 = vadd.f32 %v15848_v25, %v15847_v4  ;;  %v15850_v59 = vld [vmem:[#allocation134_spill] sm:$0xff]  ;;  %v15851_v12 = vld [vmem:[#allocation187_spill] sm:$0xff]  ;;  %6142 = vst.msk [vmem:[%s15025_s4 + $0x2c8] sm:$0xff] %vm6052_vm9, %v6013_v40  ;;  %6143 = vst.msk [vmem:[%s15025_s4 + $0x2d0] sm:$0xff] %vm6052_vm9, %v6014_v30 }
 0x57f   : > { %v6022_v17 = vadd.f32 %v15850_v59, %v15849_v53  ;;  %v15852_v36 = vld [vmem:[#allocation135_spill] sm:$0xff]  ;;  %6144 = vst.msk [vmem:[%s15025_s4 + $0x2d8] sm:$0xff] %vm6052_vm9, %v6015_v19  ;;  %v15853_v35 = vld [vmem:[#allocation76_spill] sm:$0xff]  ;;  %v15856_v37 = vld [vmem:[#allocation77_spill] sm:$0xff] }
 0x580   : > { %v6023_v7 = vadd.f32 %v15852_v36, %v15851_v12  ;;  %v6024_v29 = vadd.f32 %v14134_v15, %v15853_v35  ;;  %v15854_v46 = vld [vmem:[#allocation188_spill] sm:$0xff]  ;;  %v15857_v58 = vld [vmem:[#allocation137_spill] sm:$0xff]  ;;  %v15859_v50 = vld [vmem:[#allocation138_spill] sm:$0xff]  ;;  %6145 = vst.msk [vmem:[%s15025_s4 + $0x2e0] sm:$0xff] %vm6052_vm9, %v6016_v45 }
 0x581   : > { %v15855_v6 = vld [vmem:[#allocation136_spill] sm:$0xff]  ;;  %v6026_v16 = vadd.f32 %v15857_v58, %v15856_v37  ;;  %v15858_v2 = vld [vmem:[#allocation189_spill] sm:$0xff]  ;;  %6146 = vst.msk [vmem:[%s15025_s4 + $0x2e8] sm:$0xff] %vm6052_vm9, %v6017_v63  ;;  %6147 = vst.msk [vmem:[%s15025_s4 + $0x2f0] sm:$0xff] %vm6052_vm9, %v6018_v57 }
 0x582   : > { %v6025_v54 = vadd.f32 %v15855_v6, %v15854_v46  ;;  %v6027_v8 = vadd.f32 %v15859_v50, %v15858_v2  ;;  %6148 = vst.msk [vmem:[%s15025_s4 + $0x2f8] sm:$0xff] %vm6052_vm9, %v6019_v9  ;;  %v15860_v15 = vld [vmem:[#allocation78_spill] sm:$0xff]  ;;  %v15862_v42 = vld [vmem:[#allocation139_spill] sm:$0xff]  ;;  %v15864_v38 = vld [vmem:[#allocation140_spill] sm:$0xff] }
 0x583   : > { %v6028_v47 = vadd.f32 %v14155_v1, %v15860_v15  ;;  %v15861_v31 = vld [vmem:[#allocation190_spill] sm:$0xff]  ;;  %v15863_v33 = vld [vmem:[#allocation79_spill] sm:$0xff]  ;;  %v15866_v0 = vld [vmem:[#allocation141_spill] sm:$0xff]  ;;  %6149 = vst.msk [vmem:[%s15025_s4 + $0x300] sm:$0xff] %vm6052_vm9, %v6020_v23 }
 0x584   : > { %v6029_v26 = vadd.f32 %v15862_v42, %v15861_v31  ;;  %v6030_v40 = vadd.f32 %v15864_v38, %v15863_v33  ;;  %v15865_v24 = vld [vmem:[#allocation191_spill] sm:$0xff]  ;;  %6150 = vst.msk [vmem:[%s15025_s4 + $0x308] sm:$0xff] %vm6052_vm9, %v6021_v41  ;;  %6151 = vst.msk [vmem:[%s15025_s4 + $0x310] sm:$0xff] %vm6052_vm9, %v6022_v17  ;;  %v15867_v1 = vld [vmem:[#allocation80_spill] sm:$0xff] }
 0x585   : > { %v6031_v30 = vadd.f32 %v15866_v0, %v15865_v24  ;;  %6152 = vst.msk [vmem:[%s15025_s4 + $0x318] sm:$0xff] %vm6052_vm9, %v6023_v7  ;;  %v15868_v14 = vld [vmem:[#allocation142_spill] sm:$0xff]  ;;  %v15869_v19 = vld [vmem:[#allocation192_spill] sm:$0xff]  ;;  %v15870_v13 = vld [vmem:[#allocation143_spill] sm:$0xff] }
 0x586   : > { %v6032_v11 = vadd.f32 %v15868_v14, %v15867_v1  ;;  %v6033_v45 = vadd.f32 %v15870_v13, %v15869_v19  ;;  %v15871_v3 = vld [vmem:[#allocation81_spill] sm:$0xff]  ;;  %v15872_v22 = vld [vmem:[#allocation144_spill] sm:$0xff]  ;;  %6153 = vst.msk [vmem:[%s15025_s4 + $0x320] sm:$0xff] %vm6052_vm9, %v6024_v29  ;;  %6154 = vst.msk [vmem:[%s15025_s4 + $0x328] sm:$0xff] %vm6052_vm9, %v6025_v54 }
 0x587   : > { %v6034_v63 = vadd.f32 %v15872_v22, %v15871_v3  ;;  %v15873_v55 = vld [vmem:[#allocation193_spill] sm:$0xff]  ;;  %6155 = vst.msk [vmem:[%s15025_s4 + $0x330] sm:$0xff] %vm6052_vm9, %v6026_v16  ;;  %6156 = vst.msk [vmem:[%s15025_s4 + $0x338] sm:$0xff] %vm6052_vm9, %v6027_v8  ;;  %v15875_v62 = vld [vmem:[#allocation82_spill] sm:$0xff] }
 0x588   : > { %v15874_v20 = vld [vmem:[#allocation145_spill] sm:$0xff]  ;;  %v6036_v60 = vadd.f32 %v14197_v61, %v15875_v62  ;;  %v15876_v9 = vld [vmem:[#allocation194_spill] sm:$0xff]  ;;  %v15877_v23 = vld [vmem:[#allocation83_spill] sm:$0xff]  ;;  %6157 = vst.msk [vmem:[%s15025_s4 + $0x340] sm:$0xff] %vm6052_vm9, %v6028_v47 }
 0x589   : > { %v6035_v57 = vadd.f32 %v15874_v20, %v15873_v55  ;;  %v6037_v28 = vadd.f32 %v14200_v44, %v15876_v9  ;;  %v6038_v4 = vadd.f32 %v14203_v56, %v15877_v23  ;;  %v15878_v25 = vld [vmem:[#allocation195_spill] sm:$0xff]  ;;  %6158 = vst.msk [vmem:[%s15025_s4 + $0x348] sm:$0xff] %vm6052_vm9, %v6029_v26  ;;  %6159 = vst.msk [vmem:[%s15025_s4 + $0x350] sm:$0xff] %vm6052_vm9, %v6030_v40  ;;  %v15880_v44 = vld [vmem:[#allocation196_spill] sm:$0xff] }
 0x58a   : > { %v6039_v41 = vadd.f32 %v14206_v51, %v15878_v25  ;;  %6160 = vst.msk [vmem:[%s15025_s4 + $0x358] sm:$0xff] %vm6052_vm9, %v6031_v30  ;;  %v15879_v51 = vld [vmem:[#allocation84_spill] sm:$0xff]  ;;  %v6041_v56 = vadd.f32 %v14212_v32, %v15880_v44  ;;  %v15881_v53 = vld [vmem:[#allocation85_spill] sm:$0xff]  ;;  %6161 = vst.msk [vmem:[%s15025_s4 + $0x360] sm:$0xff] %vm6052_vm9, %v6032_v11 }
 0x58b   : > { %v6040_v61 = vadd.f32 %v14209_v48, %v15879_v51  ;;  %v6042_v59 = vadd.f32 %v14215_v18, %v15881_v53  ;;  %v15882_v17 = vld [vmem:[#allocation197_spill] sm:$0xff]  ;;  %6162 = vst.msk [vmem:[%s15025_s4 + $0x368] sm:$0xff] %vm6052_vm9, %v6033_v45  ;;  %6163 = vst.msk [vmem:[%s15025_s4 + $0x370] sm:$0xff] %vm6052_vm9, %v6034_v63  ;;  %v15883_v18 = vld [vmem:[#allocation86_spill] sm:$0xff] }
 0x58c   : > { %v6043_v12 = vadd.f32 %v14218_v39, %v15882_v17  ;;  %6164 = vst.msk [vmem:[%s15025_s4 + $0x378] sm:$0xff] %vm6052_vm9, %v6035_v57  ;;  %v6044_v32 = vadd.f32 %v14221_v52, %v15883_v18  ;;  %v15884_v48 = vld [vmem:[#allocation198_spill] sm:$0xff]  ;;  %v15885_v36 = vld [vmem:[#allocation87_spill] sm:$0xff]  ;;  %6165 = vst.msk [vmem:[%s15025_s4 + $0x380] sm:$0xff] %vm6052_vm9, %v6036_v60 }
 0x58d   : > { %v6045_v39 = vadd.f32 %v14224_v43, %v15884_v48  ;;  %v6046_v7 = vadd.f32 %v14227_v10, %v15885_v36  ;;  %v15886_v35 = vld [vmem:[#allocation199_spill] sm:$0xff]  ;;  %6166 = vst.msk [vmem:[%s15025_s4 + $0x388] sm:$0xff] %vm6052_vm9, %v6037_v28  ;;  %6167 = vst.msk [vmem:[%s15025_s4 + $0x390] sm:$0xff] %vm6052_vm9, %v6038_v4  ;;  %v15887_v52 = vld [vmem:[#allocation88_spill] sm:$0xff] }
 0x58e   : > { %v6047_v29 = vadd.f32 %v14230_v5, %v15886_v35  ;;  %6168 = vst.msk [vmem:[%s15025_s4 + $0x398] sm:$0xff] %vm6052_vm9, %v6039_v41  ;;  %v6048_v43 = vadd.f32 %v14233_v34, %v15887_v52  ;;  %v15888_v10 = vld [vmem:[#allocation200_spill] sm:$0xff]  ;;  %v15889_v46 = vld [vmem:[#allocation89_spill] sm:$0xff]  ;;  %6169 = vst.msk [vmem:[%s15025_s4 + $0x3a0] sm:$0xff] %vm6052_vm9, %v6040_v61 }
 0x58f   : > { %v6049_v5 = vadd.f32 %v14236_v49, %v15888_v10  ;;  %v6050_v6 = vadd.f32 %v14239_v21, %v15889_v46  ;;  %v15890_v54 = vld [vmem:[#allocation201_spill] sm:$0xff]  ;;  %6170 = vst.msk [vmem:[%s15025_s4 + $0x3a8] sm:$0xff] %vm6052_vm9, %v6041_v56  ;;  %6171 = vst.msk [vmem:[%s15025_s4 + $0x3b0] sm:$0xff] %vm6052_vm9, %v6042_v59 }
 0x590   : > { %v6051_v37 = vadd.f32 %v14242_v27, %v15890_v54  ;;  %6172 = vst.msk [vmem:[%s15025_s4 + $0x3b8] sm:$0xff] %vm6052_vm9, %v6043_v12  ;;  %6173 = vst.msk [vmem:[%s15025_s4 + $0x3c0] sm:$0xff] %vm6052_vm9, %v6044_v32 }
 0x591   : > { %6174 = vst.msk [vmem:[%s15025_s4 + $0x3c8] sm:$0xff] %vm6052_vm9, %v6045_v39  ;;  %6175 = vst.msk [vmem:[%s15025_s4 + $0x3d0] sm:$0xff] %vm6052_vm9, %v6046_v7 }
 0x592   : > { %6176 = vst.msk [vmem:[%s15025_s4 + $0x3d8] sm:$0xff] %vm6052_vm9, %v6047_v29  ;;  %6177 = vst.msk [vmem:[%s15025_s4 + $0x3e0] sm:$0xff] %vm6052_vm9, %v6048_v43 }
 0x593   : > { %6178 = vst.msk [vmem:[%s15025_s4 + $0x3e8] sm:$0xff] %vm6052_vm9, %v6049_v5  ;;  %6179 = vst.msk [vmem:[%s15025_s4 + $0x3f0] sm:$0xff] %vm6052_vm9, %v6050_v6 }
 0x594   : > { %6180 = vst.msk [vmem:[%s15025_s4 + $0x3f8] sm:$0xff] %vm6052_vm9, %v6051_v37 }
 0x595 PF: > { %s14_s17 = sadd.s32 1, %s8761_s17   ;;  %s15891_s15 = smov %s8757_s16 }
 0x596   : > { %p11_p7 = scmp.ge.s32.totalorder %s14_s17, 4   ;;  %s15892_s16 = smov %s15894_s18 }
 0x598   :  { %13 = sbr.rel (!%p11_p7) target bundleno = 2 (0x2), region = 84 }

</bundles_post_ra>
